<compile_context>
chip_gen: v6e
topology: v6e:2x2x1
jax: 0.10.0
libtpu: 0.0.40
codegen_flags: <defaults>
</compile_context>

<pallas_src>
import math

import jax
import jax.numpy as jnp
from jax.experimental import pallas as pl
from jax.experimental.pallas import tpu as pltpu

_BN_EPS = 1e-5
_T_BUF = 16    # rows per batch block in the activation slab (power of two)
_GUARD = 8     # guard rows at each end of the slab (keeps stores 8-aligned)


# ----------------------------------------------------------------------------
# Fused per-stack Pallas kernel
# ----------------------------------------------------------------------------
def _make_stack_kernel(meta, *, B, T0, C0, T_final, n_out):
    """Builds the fused kernel for one conv stack.

    meta: list of static layer descriptors:
        {"kind":"conv", "K", "pad", "relu", "C_out"}  or  {"kind":"pool"}
    Kernel args: x_ref, (w_ref, shift_ref) per conv, o_ref, buf_a, buf_b.
    Activation slab layout (rows):
        [ GUARD | block b=0 (T_BUF rows) | ... | block b=B-1 | GUARD ]
    Inside each block, data for time t lives at local row 1 + t; local row 0
    and rows >= 1 + T are kept zero and serve as the Conv1d zero padding.
    """
    n_conv = sum(1 for m in meta if m["kind"] == "conv")
    N = B * _T_BUF  # M dimension of every matmul (batch folded in)

    def kernel(*refs):
        x_ref = refs[0]
        params = refs[1:1 + 2 * n_conv]
        o_ref = refs[1 + 2 * n_conv]
        buf_a, buf_b = refs[2 + 2 * n_conv:]

        # Zero both slabs, then scatter the input into each batch block.
        buf_a[...] = jnp.zeros_like(buf_a)
        buf_b[...] = jnp.zeros_like(buf_b)
        for b in range(B):
            r0 = _GUARD + b * _T_BUF + 1
            buf_a[r0:r0 + T0, 0:C0] = x_ref[b]

        # Row-validity machinery: local row index within each batch block.
        row = jax.lax.broadcasted_iota(jnp.int32, (N, 1), 0)
        rloc = row & (_T_BUF - 1)

        cur, nxt = buf_a, buf_b
        T, C = T0, C0
        pi = 0
        for m in meta:
            if m["kind"] == "conv":
                K, pad, relu, C_out = m["K"], m["pad"], m["relu"], m["C_out"]
                w_ref, s_ref = params[2 * pi], params[2 * pi + 1]
                pi += 1
                T_out = T + 2 * pad - K + 1
                acc = None
                for k in range(K):
                    start = _GUARD + k - pad          # static shift per tap
                    xk = cur[start:start + N, 0:C].astype(jnp.bfloat16)
                    d = jnp.dot(xk, w_ref[k],
                                preferred_element_type=jnp.float32)
                    acc = d if acc is None else acc + d
                y = acc + s_ref[...]                  # BN scale folded into w
                if relu:
                    y = jnp.maximum(y, 0.0)
                valid = (rloc >= 1) & (rloc <= T_out)
                y = jnp.where(valid, y, 0.0)          # re-zero halo rows
                nxt[_GUARD:_GUARD + N, 0:C_out] = y
                cur, nxt = nxt, cur
                T, C = T_out, C_out
            else:  # MaxPool1d(kernel_size=3, stride=1)
                T_out = T - 2
                y = jnp.maximum(
                    jnp.maximum(cur[_GUARD:_GUARD + N, 0:C],
                                cur[_GUARD + 1:_GUARD + 1 + N, 0:C]),
                    cur[_GUARD + 2:_GUARD + 2 + N, 0:C])
                valid = (rloc >= 1) & (rloc <= T_out)
                y = jnp.where(valid, y, 0.0)
                nxt[_GUARD:_GUARD + N, 0:C] = y
                cur, nxt = nxt, cur
                T = T_out

        assert T == T_final and C == n_out
        for b in range(B):
            r0 = _GUARD + b * _T_BUF + 1
            o_ref[b] = cur[r0:r0 + T_final, 0:n_out]

    return kernel


def run_stack(x, layers, *, n_out):
    """x: (B, T0, C0) f32 channels-last (C0 a multiple of 128)."""
    B, T0, C0 = x.shape
    assert C0 % 128 == 0
    assert T0 + 2 <= _T_BUF, "sequence too long for the activation slab"

    # Static shape walk + parameter flattening.
    meta, flat_params = [], []
    T = T0
    c_max = max(C0, n_out)
    for layer in layers:
        if layer["kind"] == "conv":
            meta.append(dict(kind="conv", K=layer["K"], pad=layer["pad"],
                             relu=layer["relu"], C_out=layer["C_out"]))
            flat_params += [layer["w"], layer["shift"]]
            T = T + 2 * layer["pad"] - layer["K"] + 1
            c_max = max(c_max, layer["C_out"])
        else:
            meta.append(dict(kind="pool"))
            T = T - 2
        assert T >= 1, "input sequence too short for this stack"
    T_final = T

    kernel = _make_stack_kernel(meta, B=B, T0=T0, C0=C0,
                                T_final=T_final, n_out=n_out)
    rows = 2 * _GUARD + B * _T_BUF
    return pl.pallas_call(
        kernel,
        out_shape=jax.ShapeDtypeStruct((B, T_final, n_out), jnp.float32),
        # No grid: whole arrays live (single-buffered) in VMEM by default.
        scratch_shapes=[pltpu.VMEM((rows, c_max), jnp.float32),
                        pltpu.VMEM((rows, c_max), jnp.float32)],
        compiler_params=pltpu.CompilerParams(
            vmem_limit_bytes=32 * 1024 * 1024),
    )(x, *flat_params)


# ----------------------------------------------------------------------------
# Parameter construction (deterministic, synthetic; BN eval-mode folded)
# ----------------------------------------------------------------------------
def _conv_layer(key, c_in, c_out, k, pad, relu, use_bn, c_in_pad=None):
    k1, k2, k3, k4, k5, k6 = jax.random.split(key, 6)
    w = jax.random.normal(k1, (k, c_in, c_out), jnp.float32) * math.sqrt(
        2.0 / (c_in * k))
    bias = jax.random.normal(k2, (c_out,), jnp.float32) * 0.01
    if use_bn:
        gamma = 1.0 + 0.1 * jax.random.normal(k3, (c_out,), jnp.float32)
        beta = 0.1 * jax.random.normal(k4, (c_out,), jnp.float32)
        mean = 0.1 * jax.random.normal(k5, (c_out,), jnp.float32)
        var = jnp.abs(1.0 + 0.1 * jax.random.normal(k6, (c_out,), jnp.float32))
        inv = gamma / jnp.sqrt(var + _BN_EPS)
        scale = inv
        shift = beta + (bias - mean) * inv
    else:
        scale = jnp.ones((c_out,), jnp.float32)
        shift = bias
    w = w * scale[None, None, :]          # fold BN scale into the weights
    if c_in_pad is not None and c_in_pad > c_in:
        w = jnp.pad(w, ((0, 0), (0, c_in_pad - c_in), (0, 0)))
        c_in = c_in_pad
    return dict(kind="conv", K=k, pad=pad, relu=relu, C_in=c_in, C_out=c_out,
                w=w.astype(jnp.bfloat16),
                shift=shift.reshape(1, c_out).astype(jnp.float32))


def _pool():
    return dict(kind="pool")


def build_syncnet_params(key, auddim=1024, lipdim=60, n_out=1024):
    keys = iter(jax.random.split(key, 32))
    lip_c_pad = -(-lipdim // 128) * 128   # 60 -> 128 lane-dense input

    # netcnnaud
    aud = [
        _conv_layer(next(keys), auddim, 512, 3, 1, True, True), _pool(),
        _conv_layer(next(keys), 512, 512, 3, 1, True, True), _pool(),
        _conv_layer(next(keys), 512, 512, 3, 1, True, True),
        _conv_layer(next(keys), 512, 256, 3, 1, True, True), _pool(),
        _conv_layer(next(keys), 256, 256, 3, 1, True, True),
        _conv_layer(next(keys), 256, 512, 3, 1, True, True), _pool(),
        _conv_layer(next(keys), 512, 512, 2, 0, True, True),
        _conv_layer(next(keys), 512, 512, 1, 0, True, True),
        _conv_layer(next(keys), 512, n_out, 1, 0, False, False),
    ]
    # netcnnlip
    lip = [
        _conv_layer(next(keys), lipdim, 512, 3, 1, True, True,
                    c_in_pad=lip_c_pad),
        _conv_layer(next(keys), 512, 512, 3, 1, True, True), _pool(),
        _conv_layer(next(keys), 512, 512, 3, 1, True, True),
        _conv_layer(next(keys), 512, 256, 3, 1, True, True),
        _conv_layer(next(keys), 256, 256, 3, 1, True, True),
        _conv_layer(next(keys), 256, 512, 3, 1, True, True), _pool(),
        _conv_layer(next(keys), 512, 512, 1, 0, True, True),
        _conv_layer(next(keys), 512, n_out, 1, 0, False, False),
    ]
    return aud, lip


# ----------------------------------------------------------------------------
# Forward pass
# ----------------------------------------------------------------------------
def syncnet_forward(hubert, mouth_lm, aud_layers, lip_layers, n_out=1024):
    """hubert: (B, T_aud, auddim), mouth_lm: (B, T_lip, lipdim) channels-last
    (the PyTorch module's input convention before its internal transpose)."""
    lip_c_in = lip_layers[0]["C_in"]          # lane-padded (60 -> 128)
    if mouth_lm.shape[-1] < lip_c_in:
        mouth_lm = jnp.pad(
            mouth_lm, ((0, 0), (0, 0), (0, lip_c_in - mouth_lm.shape[-1])))

    mouth_embedding = run_stack(mouth_lm, lip_layers, n_out=n_out)
    audio_embedding = run_stack(hubert, aud_layers, n_out=n_out)

    # torch .squeeze(1): only squeeze if the time dim collapsed to 1.
    if audio_embedding.shape[1] == 1:
        audio_embedding = audio_embedding[:, 0, :]
    if mouth_embedding.shape[1] == 1:
        mouth_embedding = mouth_embedding[:, 0, :]
    return audio_embedding, mouth_embedding


# ----------------------------------------------------------------------------
# Main
# ----------------------------------------------------------------------------
if __name__ == "__main__":
    key = jax.random.PRNGKey(0)
    k_params, k_aud, k_lip = jax.random.split(key, 3)

    AUDDIM, LIPDIM, NOUT = 1024, 60, 1024
    B = 2
    # Audio stack shrinks T by 9 (4 maxpools + one k=2 conv), lip stack by 4,
    # so T_aud=10 / T_lip=5 yields a single output frame each (as in real use).
    T_AUD, T_LIP = 10, 5

    aud_layers, lip_layers = build_syncnet_params(
        k_params, auddim=AUDDIM, lipdim=LIPDIM, n_out=NOUT)

    hubert = jax.random.normal(k_aud, (B, T_AUD, AUDDIM), jnp.float32)
    mouth_lm = jax.random.normal(k_lip, (B, T_LIP, LIPDIM), jnp.float32)

    audio_emb, mouth_emb = syncnet_forward(hubert, mouth_lm,
                                           aud_layers, lip_layers, n_out=NOUT)
    jax.block_until_ready((audio_emb, mouth_emb))

    assert audio_emb.shape == (B, NOUT), audio_emb.shape
    assert mouth_emb.shape == (B, NOUT), mouth_emb.shape
    assert bool(jnp.all(jnp.isfinite(audio_emb)))
    assert bool(jnp.all(jnp.isfinite(mouth_emb)))
    print("KERNEL_OK")
</pallas_src>

<mosaic_0001>
module attributes {stable_mosaic.version = 11 : i64} {
  func.func @kernel(%arg0: memref<2x5x128xf32, #tpu.memory_space<vmem>>, %arg1: memref<3x128x512xbf16, #tpu.memory_space<vmem>>, %arg2: memref<1x512xf32, #tpu.memory_space<vmem>>, %arg3: memref<3x512x512xbf16, #tpu.memory_space<vmem>>, %arg4: memref<1x512xf32, #tpu.memory_space<vmem>>, %arg5: memref<3x512x512xbf16, #tpu.memory_space<vmem>>, %arg6: memref<1x512xf32, #tpu.memory_space<vmem>>, %arg7: memref<3x512x256xbf16, #tpu.memory_space<vmem>>, %arg8: memref<1x256xf32, #tpu.memory_space<vmem>>, %arg9: memref<3x256x256xbf16, #tpu.memory_space<vmem>>, %arg10: memref<1x256xf32, #tpu.memory_space<vmem>>, %arg11: memref<3x256x512xbf16, #tpu.memory_space<vmem>>, %arg12: memref<1x512xf32, #tpu.memory_space<vmem>>, %arg13: memref<1x512x512xbf16, #tpu.memory_space<vmem>>, %arg14: memref<1x512xf32, #tpu.memory_space<vmem>>, %arg15: memref<1x512x1024xbf16, #tpu.memory_space<vmem>>, %arg16: memref<1x1024xf32, #tpu.memory_space<vmem>>, %arg17: memref<2x1x1024xf32, #tpu.memory_space<vmem>>, %arg18: memref<48x1024xf32, #tpu.memory_space<vmem>>, %arg19: memref<48x1024xf32, #tpu.memory_space<vmem>>) attributes {dimension_semantics = [], scalar_prefetch = 0 : i64, scratch_operands = 2 : i64, tpu.core_type = #tpu.core_type<tc>} {
    %cst = arith.constant 0.000000e+00 : f32
    %0 = vector.broadcast %cst : f32 to vector<48x1024xf32>
    %c0 = arith.constant 0 : index
    %c0_0 = arith.constant 0 : index
    %1 = vector.load %arg18[%c0, %c0_0] : memref<48x1024xf32, #tpu.memory_space<vmem>>, vector<48x1024xf32>
    tpu.vector_store %arg18[%c0, %c0_0], %0 {strides = array<i32>} : memref<48x1024xf32, #tpu.memory_space<vmem>>, vector<48x1024xf32>,
    %cst_1 = arith.constant 0.000000e+00 : f32
    %2 = vector.broadcast %cst_1 : f32 to vector<48x1024xf32>
    %c0_2 = arith.constant 0 : index
    %c0_3 = arith.constant 0 : index
    %3 = vector.load %arg19[%c0_2, %c0_3] : memref<48x1024xf32, #tpu.memory_space<vmem>>, vector<48x1024xf32>
    tpu.vector_store %arg19[%c0_2, %c0_3], %2 {strides = array<i32>} : memref<48x1024xf32, #tpu.memory_space<vmem>>, vector<48x1024xf32>,
    %c0_4 = arith.constant 0 : index
    %c0_5 = arith.constant 0 : index
    %c0_6 = arith.constant 0 : index
    %4 = vector.load %arg0[%c0_4, %c0_5, %c0_6] : memref<2x5x128xf32, #tpu.memory_space<vmem>>, vector<1x5x128xf32>
    %5 = vector.shape_cast %4 : vector<1x5x128xf32> to vector<5x128xf32>
    %c9 = arith.constant 9 : index
    %c0_7 = arith.constant 0 : index
    %6 = vector.load %arg18[%c9, %c0_7] : memref<48x1024xf32, #tpu.memory_space<vmem>>, vector<5x128xf32>
    tpu.vector_store %arg18[%c9, %c0_7], %5 {strides = array<i32>} : memref<48x1024xf32, #tpu.memory_space<vmem>>, vector<5x128xf32>,
    %c1 = arith.constant 1 : index
    %c0_8 = arith.constant 0 : index
    %c0_9 = arith.constant 0 : index
    %7 = vector.load %arg0[%c1, %c0_8, %c0_9] : memref<2x5x128xf32, #tpu.memory_space<vmem>>, vector<1x5x128xf32>
    %8 = vector.shape_cast %7 : vector<1x5x128xf32> to vector<5x128xf32>
    %c25 = arith.constant 25 : index
    %c0_10 = arith.constant 0 : index
    %9 = vector.load %arg18[%c25, %c0_10] : memref<48x1024xf32, #tpu.memory_space<vmem>>, vector<5x128xf32>
    tpu.vector_store %arg18[%c25, %c0_10], %8 {strides = array<i32>} : memref<48x1024xf32, #tpu.memory_space<vmem>>, vector<5x128xf32>,
    %10 = tpu.iota {dimensions = array<i32: 0>} : vector<32x1xi32>
    %c15_i32 = arith.constant 15 : i32
    %11 = vector.broadcast %c15_i32 : i32 to vector<32x1xi32>
    %12 = arith.andi %10, %11 : vector<32x1xi32>
    %c7 = arith.constant 7 : index
    %c0_11 = arith.constant 0 : index
    %13 = vector.load %arg18[%c7, %c0_11] : memref<48x1024xf32, #tpu.memory_space<vmem>>, vector<32x128xf32>
    %14 = arith.truncf %13 : vector<32x128xf32> to vector<32x128xbf16>
    %c0_12 = arith.constant 0 : index
    %c0_13 = arith.constant 0 : index
    %c0_14 = arith.constant 0 : index
    %15 = vector.load %arg1[%c0_12, %c0_13, %c0_14] : memref<3x128x512xbf16, #tpu.memory_space<vmem>>, vector<1x128x512xbf16>
    %16 = vector.shape_cast %15 : vector<1x128x512xbf16> to vector<128x512xbf16>
    %cst_15 = arith.constant dense<0.000000e+00> : vector<32x512xf32>
    %17 = tpu.matmul %14, %16, %cst_15 {dimension_numbers = #tpu.dot_dimension_numbers<[1], [0], [0], [1], [0, 0, 1, 1], [], []>} : vector<32x128xbf16>, vector<128x512xbf16>, vector<32x512xf32> -> vector<32x512xf32>
    %c8 = arith.constant 8 : index
    %c0_16 = arith.constant 0 : index
    %18 = vector.load %arg18[%c8, %c0_16] : memref<48x1024xf32, #tpu.memory_space<vmem>>, vector<32x128xf32>
    %19 = arith.truncf %18 : vector<32x128xf32> to vector<32x128xbf16>
    %c1_17 = arith.constant 1 : index
    %c0_18 = arith.constant 0 : index
    %c0_19 = arith.constant 0 : index
    %20 = vector.load %arg1[%c1_17, %c0_18, %c0_19] : memref<3x128x512xbf16, #tpu.memory_space<vmem>>, vector<1x128x512xbf16>
    %21 = vector.shape_cast %20 : vector<1x128x512xbf16> to vector<128x512xbf16>
    %cst_20 = arith.constant dense<0.000000e+00> : vector<32x512xf32>
    %22 = tpu.matmul %19, %21, %cst_20 {dimension_numbers = #tpu.dot_dimension_numbers<[1], [0], [0], [1], [0, 0, 1, 1], [], []>} : vector<32x128xbf16>, vector<128x512xbf16>, vector<32x512xf32> -> vector<32x512xf32>
    %23 = arith.addf %17, %22 : vector<32x512xf32>
    %c9_21 = arith.constant 9 : index
    %c0_22 = arith.constant 0 : index
    %24 = vector.load %arg18[%c9_21, %c0_22] : memref<48x1024xf32, #tpu.memory_space<vmem>>, vector<32x128xf32>
    %25 = arith.truncf %24 : vector<32x128xf32> to vector<32x128xbf16>
    %c2 = arith.constant 2 : index
    %c0_23 = arith.constant 0 : index
    %c0_24 = arith.constant 0 : index
    %26 = vector.load %arg1[%c2, %c0_23, %c0_24] : memref<3x128x512xbf16, #tpu.memory_space<vmem>>, vector<1x128x512xbf16>
    %27 = vector.shape_cast %26 : vector<1x128x512xbf16> to vector<128x512xbf16>
    %cst_25 = arith.constant dense<0.000000e+00> : vector<32x512xf32>
    %28 = tpu.matmul %25, %27, %cst_25 {dimension_numbers = #tpu.dot_dimension_numbers<[1], [0], [0], [1], [0, 0, 1, 1], [], []>} : vector<32x128xbf16>, vector<128x512xbf16>, vector<32x512xf32> -> vector<32x512xf32>
    %29 = arith.addf %23, %28 : vector<32x512xf32>
    %c0_26 = arith.constant 0 : index
    %c0_27 = arith.constant 0 : index
    %30 = vector.load %arg2[%c0_26, %c0_27] : memref<1x512xf32, #tpu.memory_space<vmem>>, vector<1x512xf32>
    %31 = vector.broadcast %30 : vector<1x512xf32> to vector<32x512xf32>
    %32 = arith.addf %29, %31 : vector<32x512xf32>
    %cst_28 = arith.constant 0.000000e+00 : f32
    %33 = vector.broadcast %cst_28 : f32 to vector<32x512xf32>
    %34 = arith.maximumf %32, %33 : vector<32x512xf32>
    %c1_i32 = arith.constant 1 : i32
    %35 = vector.broadcast %c1_i32 : i32 to vector<32x1xi32>
    %36 = arith.cmpi sge, %12, %35 : vector<32x1xi32>
    %c5_i32 = arith.constant 5 : i32
    %37 = vector.broadcast %c5_i32 : i32 to vector<32x1xi32>
    %38 = arith.cmpi sle, %12, %37 : vector<32x1xi32>
    %39 = arith.andi %36, %38 : vector<32x1xi1>
    %cst_29 = arith.constant 0.000000e+00 : f32
    %40 = vector.shape_cast %39 : vector<32x1xi1> to vector<32x1xi1>
    %41 = vector.broadcast %40 : vector<32x1xi1> to vector<32x512xi1>
    %42 = vector.broadcast %cst_29 : f32 to vector<32x512xf32>
    %43 = arith.select %41, %34, %42 : vector<32x512xi1>, vector<32x512xf32>
    %c8_30 = arith.constant 8 : index
    %c0_31 = arith.constant 0 : index
    %44 = vector.load %arg19[%c8_30, %c0_31] : memref<48x1024xf32, #tpu.memory_space<vmem>>, vector<32x512xf32>
    tpu.vector_store %arg19[%c8_30, %c0_31], %43 {strides = array<i32>} : memref<48x1024xf32, #tpu.memory_space<vmem>>, vector<32x512xf32>,
    %c7_32 = arith.constant 7 : index
    %c0_33 = arith.constant 0 : index
    %45 = vector.load %arg19[%c7_32, %c0_33] : memref<48x1024xf32, #tpu.memory_space<vmem>>, vector<32x512xf32>
    %46 = arith.truncf %45 : vector<32x512xf32> to vector<32x512xbf16>
    %c0_34 = arith.constant 0 : index
    %c0_35 = arith.constant 0 : index
    %c0_36 = arith.constant 0 : index
    %47 = vector.load %arg3[%c0_34, %c0_35, %c0_36] : memref<3x512x512xbf16, #tpu.memory_space<vmem>>, vector<1x512x512xbf16>
    %48 = vector.shape_cast %47 : vector<1x512x512xbf16> to vector<512x512xbf16>
    %cst_37 = arith.constant dense<0.000000e+00> : vector<32x512xf32>
    %49 = tpu.matmul %46, %48, %cst_37 {dimension_numbers = #tpu.dot_dimension_numbers<[1], [0], [0], [1], [0, 0, 1, 1], [], []>} : vector<32x512xbf16>, vector<512x512xbf16>, vector<32x512xf32> -> vector<32x512xf32>
    %c8_38 = arith.constant 8 : index
    %c0_39 = arith.constant 0 : index
    %50 = vector.load %arg19[%c8_38, %c0_39] : memref<48x1024xf32, #tpu.memory_space<vmem>>, vector<32x512xf32>
    %51 = arith.truncf %50 : vector<32x512xf32> to vector<32x512xbf16>
    %c1_40 = arith.constant 1 : index
    %c0_41 = arith.constant 0 : index
    %c0_42 = arith.constant 0 : index
    %52 = vector.load %arg3[%c1_40, %c0_41, %c0_42] : memref<3x512x512xbf16, #tpu.memory_space<vmem>>, vector<1x512x512xbf16>
    %53 = vector.shape_cast %52 : vector<1x512x512xbf16> to vector<512x512xbf16>
    %cst_43 = arith.constant dense<0.000000e+00> : vector<32x512xf32>
    %54 = tpu.matmul %51, %53, %cst_43 {dimension_numbers = #tpu.dot_dimension_numbers<[1], [0], [0], [1], [0, 0, 1, 1], [], []>} : vector<32x512xbf16>, vector<512x512xbf16>, vector<32x512xf32> -> vector<32x512xf32>
    %55 = arith.addf %49, %54 : vector<32x512xf32>
    %c9_44 = arith.constant 9 : index
    %c0_45 = arith.constant 0 : index
    %56 = vector.load %arg19[%c9_44, %c0_45] : memref<48x1024xf32, #tpu.memory_space<vmem>>, vector<32x512xf32>
    %57 = arith.truncf %56 : vector<32x512xf32> to vector<32x512xbf16>
    %c2_46 = arith.constant 2 : index
    %c0_47 = arith.constant 0 : index
    %c0_48 = arith.constant 0 : index
    %58 = vector.load %arg3[%c2_46, %c0_47, %c0_48] : memref<3x512x512xbf16, #tpu.memory_space<vmem>>, vector<1x512x512xbf16>
    %59 = vector.shape_cast %58 : vector<1x512x512xbf16> to vector<512x512xbf16>
    %cst_49 = arith.constant dense<0.000000e+00> : vector<32x512xf32>
    %60 = tpu.matmul %57, %59, %cst_49 {dimension_numbers = #tpu.dot_dimension_numbers<[1], [0], [0], [1], [0, 0, 1, 1], [], []>} : vector<32x512xbf16>, vector<512x512xbf16>, vector<32x512xf32> -> vector<32x512xf32>
    %61 = arith.addf %55, %60 : vector<32x512xf32>
    %c0_50 = arith.constant 0 : index
    %c0_51 = arith.constant 0 : index
    %62 = vector.load %arg4[%c0_50, %c0_51] : memref<1x512xf32, #tpu.memory_space<vmem>>, vector<1x512xf32>
    %63 = vector.broadcast %62 : vector<1x512xf32> to vector<32x512xf32>
    %64 = arith.addf %61, %63 : vector<32x512xf32>
    %cst_52 = arith.constant 0.000000e+00 : f32
    %65 = vector.broadcast %cst_52 : f32 to vector<32x512xf32>
    %66 = arith.maximumf %64, %65 : vector<32x512xf32>
    %c1_i32_53 = arith.constant 1 : i32
    %67 = vector.broadcast %c1_i32_53 : i32 to vector<32x1xi32>
    %68 = arith.cmpi sge, %12, %67 : vector<32x1xi32>
    %c5_i32_54 = arith.constant 5 : i32
    %69 = vector.broadcast %c5_i32_54 : i32 to vector<32x1xi32>
    %70 = arith.cmpi sle, %12, %69 : vector<32x1xi32>
    %71 = arith.andi %68, %70 : vector<32x1xi1>
    %cst_55 = arith.constant 0.000000e+00 : f32
    %72 = vector.shape_cast %71 : vector<32x1xi1> to vector<32x1xi1>
    %73 = vector.broadcast %72 : vector<32x1xi1> to vector<32x512xi1>
    %74 = vector.broadcast %cst_55 : f32 to vector<32x512xf32>
    %75 = arith.select %73, %66, %74 : vector<32x512xi1>, vector<32x512xf32>
    %c8_56 = arith.constant 8 : index
    %c0_57 = arith.constant 0 : index
    %76 = vector.load %arg18[%c8_56, %c0_57] : memref<48x1024xf32, #tpu.memory_space<vmem>>, vector<32x512xf32>
    tpu.vector_store %arg18[%c8_56, %c0_57], %75 {strides = array<i32>} : memref<48x1024xf32, #tpu.memory_space<vmem>>, vector<32x512xf32>,
    %c8_58 = arith.constant 8 : index
    %c0_59 = arith.constant 0 : index
    %77 = vector.load %arg18[%c8_58, %c0_59] : memref<48x1024xf32, #tpu.memory_space<vmem>>, vector<32x512xf32>
    %c9_60 = arith.constant 9 : index
    %c0_61 = arith.constant 0 : index
    %78 = vector.load %arg18[%c9_60, %c0_61] : memref<48x1024xf32, #tpu.memory_space<vmem>>, vector<32x512xf32>
    %79 = arith.maximumf %77, %78 : vector<32x512xf32>
    %c10 = arith.constant 10 : index
    %c0_62 = arith.constant 0 : index
    %80 = vector.load %arg18[%c10, %c0_62] : memref<48x1024xf32, #tpu.memory_space<vmem>>, vector<32x512xf32>
    %81 = arith.maximumf %79, %80 : vector<32x512xf32>
    %c1_i32_63 = arith.constant 1 : i32
    %82 = vector.broadcast %c1_i32_63 : i32 to vector<32x1xi32>
    %83 = arith.cmpi sge, %12, %82 : vector<32x1xi32>
    %c3_i32 = arith.constant 3 : i32
    %84 = vector.broadcast %c3_i32 : i32 to vector<32x1xi32>
    %85 = arith.cmpi sle, %12, %84 : vector<32x1xi32>
    %86 = arith.andi %83, %85 : vector<32x1xi1>
    %cst_64 = arith.constant 0.000000e+00 : f32
    %87 = vector.shape_cast %86 : vector<32x1xi1> to vector<32x1xi1>
    %88 = vector.broadcast %87 : vector<32x1xi1> to vector<32x512xi1>
    %89 = vector.broadcast %cst_64 : f32 to vector<32x512xf32>
    %90 = arith.select %88, %81, %89 : vector<32x512xi1>, vector<32x512xf32>
    %c8_65 = arith.constant 8 : index
    %c0_66 = arith.constant 0 : index
    %91 = vector.load %arg19[%c8_65, %c0_66] : memref<48x1024xf32, #tpu.memory_space<vmem>>, vector<32x512xf32>
    tpu.vector_store %arg19[%c8_65, %c0_66], %90 {strides = array<i32>} : memref<48x1024xf32, #tpu.memory_space<vmem>>, vector<32x512xf32>,
    %c7_67 = arith.constant 7 : index
    %c0_68 = arith.constant 0 : index
    %92 = vector.load %arg19[%c7_67, %c0_68] : memref<48x1024xf32, #tpu.memory_space<vmem>>, vector<32x512xf32>
    %93 = arith.truncf %92 : vector<32x512xf32> to vector<32x512xbf16>
    %c0_69 = arith.constant 0 : index
    %c0_70 = arith.constant 0 : index
    %c0_71 = arith.constant 0 : index
    %94 = vector.load %arg5[%c0_69, %c0_70, %c0_71] : memref<3x512x512xbf16, #tpu.memory_space<vmem>>, vector<1x512x512xbf16>
    %95 = vector.shape_cast %94 : vector<1x512x512xbf16> to vector<512x512xbf16>
    %cst_72 = arith.constant dense<0.000000e+00> : vector<32x512xf32>
    %96 = tpu.matmul %93, %95, %cst_72 {dimension_numbers = #tpu.dot_dimension_numbers<[1], [0], [0], [1], [0, 0, 1, 1], [], []>} : vector<32x512xbf16>, vector<512x512xbf16>, vector<32x512xf32> -> vector<32x512xf32>
    %c8_73 = arith.constant 8 : index
    %c0_74 = arith.constant 0 : index
    %97 = vector.load %arg19[%c8_73, %c0_74] : memref<48x1024xf32, #tpu.memory_space<vmem>>, vector<32x512xf32>
    %98 = arith.truncf %97 : vector<32x512xf32> to vector<32x512xbf16>
    %c1_75 = arith.constant 1 : index
    %c0_76 = arith.constant 0 : index
    %c0_77 = arith.constant 0 : index
    %99 = vector.load %arg5[%c1_75, %c0_76, %c0_77] : memref<3x512x512xbf16, #tpu.memory_space<vmem>>, vector<1x512x512xbf16>
    %100 = vector.shape_cast %99 : vector<1x512x512xbf16> to vector<512x512xbf16>
    %cst_78 = arith.constant dense<0.000000e+00> : vector<32x512xf32>
    %101 = tpu.matmul %98, %100, %cst_78 {dimension_numbers = #tpu.dot_dimension_numbers<[1], [0], [0], [1], [0, 0, 1, 1], [], []>} : vector<32x512xbf16>, vector<512x512xbf16>, vector<32x512xf32> -> vector<32x512xf32>
    %102 = arith.addf %96, %101 : vector<32x512xf32>
    %c9_79 = arith.constant 9 : index
    %c0_80 = arith.constant 0 : index
    %103 = vector.load %arg19[%c9_79, %c0_80] : memref<48x1024xf32, #tpu.memory_space<vmem>>, vector<32x512xf32>
    %104 = arith.truncf %103 : vector<32x512xf32> to vector<32x512xbf16>
    %c2_81 = arith.constant 2 : index
    %c0_82 = arith.constant 0 : index
    %c0_83 = arith.constant 0 : index
    %105 = vector.load %arg5[%c2_81, %c0_82, %c0_83] : memref<3x512x512xbf16, #tpu.memory_space<vmem>>, vector<1x512x512xbf16>
    %106 = vector.shape_cast %105 : vector<1x512x512xbf16> to vector<512x512xbf16>
    %cst_84 = arith.constant dense<0.000000e+00> : vector<32x512xf32>
    %107 = tpu.matmul %104, %106, %cst_84 {dimension_numbers = #tpu.dot_dimension_numbers<[1], [0], [0], [1], [0, 0, 1, 1], [], []>} : vector<32x512xbf16>, vector<512x512xbf16>, vector<32x512xf32> -> vector<32x512xf32>
    %108 = arith.addf %102, %107 : vector<32x512xf32>
    %c0_85 = arith.constant 0 : index
    %c0_86 = arith.constant 0 : index
    %109 = vector.load %arg6[%c0_85, %c0_86] : memref<1x512xf32, #tpu.memory_space<vmem>>, vector<1x512xf32>
    %110 = vector.broadcast %109 : vector<1x512xf32> to vector<32x512xf32>
    %111 = arith.addf %108, %110 : vector<32x512xf32>
    %cst_87 = arith.constant 0.000000e+00 : f32
    %112 = vector.broadcast %cst_87 : f32 to vector<32x512xf32>
    %113 = arith.maximumf %111, %112 : vector<32x512xf32>
    %c1_i32_88 = arith.constant 1 : i32
    %114 = vector.broadcast %c1_i32_88 : i32 to vector<32x1xi32>
    %115 = arith.cmpi sge, %12, %114 : vector<32x1xi32>
    %c3_i32_89 = arith.constant 3 : i32
    %116 = vector.broadcast %c3_i32_89 : i32 to vector<32x1xi32>
    %117 = arith.cmpi sle, %12, %116 : vector<32x1xi32>
    %118 = arith.andi %115, %117 : vector<32x1xi1>
    %cst_90 = arith.constant 0.000000e+00 : f32
    %119 = vector.shape_cast %118 : vector<32x1xi1> to vector<32x1xi1>
    %120 = vector.broadcast %119 : vector<32x1xi1> to vector<32x512xi1>
    %121 = vector.broadcast %cst_90 : f32 to vector<32x512xf32>
    %122 = arith.select %120, %113, %121 : vector<32x512xi1>, vector<32x512xf32>
    %c8_91 = arith.constant 8 : index
    %c0_92 = arith.constant 0 : index
    %123 = vector.load %arg18[%c8_91, %c0_92] : memref<48x1024xf32, #tpu.memory_space<vmem>>, vector<32x512xf32>
    tpu.vector_store %arg18[%c8_91, %c0_92], %122 {strides = array<i32>} : memref<48x1024xf32, #tpu.memory_space<vmem>>, vector<32x512xf32>,
    %c7_93 = arith.constant 7 : index
    %c0_94 = arith.constant 0 : index
    %124 = vector.load %arg18[%c7_93, %c0_94] : memref<48x1024xf32, #tpu.memory_space<vmem>>, vector<32x512xf32>
    %125 = arith.truncf %124 : vector<32x512xf32> to vector<32x512xbf16>
    %c0_95 = arith.constant 0 : index
    %c0_96 = arith.constant 0 : index
    %c0_97 = arith.constant 0 : index
    %126 = vector.load %arg7[%c0_95, %c0_96, %c0_97] : memref<3x512x256xbf16, #tpu.memory_space<vmem>>, vector<1x512x256xbf16>
    %127 = vector.shape_cast %126 : vector<1x512x256xbf16> to vector<512x256xbf16>
    %cst_98 = arith.constant dense<0.000000e+00> : vector<32x256xf32>
    %128 = tpu.matmul %125, %127, %cst_98 {dimension_numbers = #tpu.dot_dimension_numbers<[1], [0], [0], [1], [0, 0, 1, 1], [], []>} : vector<32x512xbf16>, vector<512x256xbf16>, vector<32x256xf32> -> vector<32x256xf32>
    %c8_99 = arith.constant 8 : index
    %c0_100 = arith.constant 0 : index
    %129 = vector.load %arg18[%c8_99, %c0_100] : memref<48x1024xf32, #tpu.memory_space<vmem>>, vector<32x512xf32>
    %130 = arith.truncf %129 : vector<32x512xf32> to vector<32x512xbf16>
    %c1_101 = arith.constant 1 : index
    %c0_102 = arith.constant 0 : index
    %c0_103 = arith.constant 0 : index
    %131 = vector.load %arg7[%c1_101, %c0_102, %c0_103] : memref<3x512x256xbf16, #tpu.memory_space<vmem>>, vector<1x512x256xbf16>
    %132 = vector.shape_cast %131 : vector<1x512x256xbf16> to vector<512x256xbf16>
    %cst_104 = arith.constant dense<0.000000e+00> : vector<32x256xf32>
    %133 = tpu.matmul %130, %132, %cst_104 {dimension_numbers = #tpu.dot_dimension_numbers<[1], [0], [0], [1], [0, 0, 1, 1], [], []>} : vector<32x512xbf16>, vector<512x256xbf16>, vector<32x256xf32> -> vector<32x256xf32>
    %134 = arith.addf %128, %133 : vector<32x256xf32>
    %c9_105 = arith.constant 9 : index
    %c0_106 = arith.constant 0 : index
    %135 = vector.load %arg18[%c9_105, %c0_106] : memref<48x1024xf32, #tpu.memory_space<vmem>>, vector<32x512xf32>
    %136 = arith.truncf %135 : vector<32x512xf32> to vector<32x512xbf16>
    %c2_107 = arith.constant 2 : index
    %c0_108 = arith.constant 0 : index
    %c0_109 = arith.constant 0 : index
    %137 = vector.load %arg7[%c2_107, %c0_108, %c0_109] : memref<3x512x256xbf16, #tpu.memory_space<vmem>>, vector<1x512x256xbf16>
    %138 = vector.shape_cast %137 : vector<1x512x256xbf16> to vector<512x256xbf16>
    %cst_110 = arith.constant dense<0.000000e+00> : vector<32x256xf32>
    %139 = tpu.matmul %136, %138, %cst_110 {dimension_numbers = #tpu.dot_dimension_numbers<[1], [0], [0], [1], [0, 0, 1, 1], [], []>} : vector<32x512xbf16>, vector<512x256xbf16>, vector<32x256xf32> -> vector<32x256xf32>
    %140 = arith.addf %134, %139 : vector<32x256xf32>
    %c0_111 = arith.constant 0 : index
    %c0_112 = arith.constant 0 : index
    %141 = vector.load %arg8[%c0_111, %c0_112] : memref<1x256xf32, #tpu.memory_space<vmem>>, vector<1x256xf32>
    %142 = vector.broadcast %141 : vector<1x256xf32> to vector<32x256xf32>
    %143 = arith.addf %140, %142 : vector<32x256xf32>
    %cst_113 = arith.constant 0.000000e+00 : f32
    %144 = vector.broadcast %cst_113 : f32 to vector<32x256xf32>
    %145 = arith.maximumf %143, %144 : vector<32x256xf32>
    %c1_i32_114 = arith.constant 1 : i32
    %146 = vector.broadcast %c1_i32_114 : i32 to vector<32x1xi32>
    %147 = arith.cmpi sge, %12, %146 : vector<32x1xi32>
    %c3_i32_115 = arith.constant 3 : i32
    %148 = vector.broadcast %c3_i32_115 : i32 to vector<32x1xi32>
    %149 = arith.cmpi sle, %12, %148 : vector<32x1xi32>
    %150 = arith.andi %147, %149 : vector<32x1xi1>
    %cst_116 = arith.constant 0.000000e+00 : f32
    %151 = vector.shape_cast %150 : vector<32x1xi1> to vector<32x1xi1>
    %152 = vector.broadcast %151 : vector<32x1xi1> to vector<32x256xi1>
    %153 = vector.broadcast %cst_116 : f32 to vector<32x256xf32>
    %154 = arith.select %152, %145, %153 : vector<32x256xi1>, vector<32x256xf32>
    %c8_117 = arith.constant 8 : index
    %c0_118 = arith.constant 0 : index
    %155 = vector.load %arg19[%c8_117, %c0_118] : memref<48x1024xf32, #tpu.memory_space<vmem>>, vector<32x256xf32>
    tpu.vector_store %arg19[%c8_117, %c0_118], %154 {strides = array<i32>} : memref<48x1024xf32, #tpu.memory_space<vmem>>, vector<32x256xf32>,
    %c7_119 = arith.constant 7 : index
    %c0_120 = arith.constant 0 : index
    %156 = vector.load %arg19[%c7_119, %c0_120] : memref<48x1024xf32, #tpu.memory_space<vmem>>, vector<32x256xf32>
    %157 = arith.truncf %156 : vector<32x256xf32> to vector<32x256xbf16>
    %c0_121 = arith.constant 0 : index
    %c0_122 = arith.constant 0 : index
    %c0_123 = arith.constant 0 : index
    %158 = vector.load %arg9[%c0_121, %c0_122, %c0_123] : memref<3x256x256xbf16, #tpu.memory_space<vmem>>, vector<1x256x256xbf16>
    %159 = vector.shape_cast %158 : vector<1x256x256xbf16> to vector<256x256xbf16>
    %cst_124 = arith.constant dense<0.000000e+00> : vector<32x256xf32>
    %160 = tpu.matmul %157, %159, %cst_124 {dimension_numbers = #tpu.dot_dimension_numbers<[1], [0], [0], [1], [0, 0, 1, 1], [], []>} : vector<32x256xbf16>, vector<256x256xbf16>, vector<32x256xf32> -> vector<32x256xf32>
    %c8_125 = arith.constant 8 : index
    %c0_126 = arith.constant 0 : index
    %161 = vector.load %arg19[%c8_125, %c0_126] : memref<48x1024xf32, #tpu.memory_space<vmem>>, vector<32x256xf32>
    %162 = arith.truncf %161 : vector<32x256xf32> to vector<32x256xbf16>
    %c1_127 = arith.constant 1 : index
    %c0_128 = arith.constant 0 : index
    %c0_129 = arith.constant 0 : index
    %163 = vector.load %arg9[%c1_127, %c0_128, %c0_129] : memref<3x256x256xbf16, #tpu.memory_space<vmem>>, vector<1x256x256xbf16>
    %164 = vector.shape_cast %163 : vector<1x256x256xbf16> to vector<256x256xbf16>
    %cst_130 = arith.constant dense<0.000000e+00> : vector<32x256xf32>
    %165 = tpu.matmul %162, %164, %cst_130 {dimension_numbers = #tpu.dot_dimension_numbers<[1], [0], [0], [1], [0, 0, 1, 1], [], []>} : vector<32x256xbf16>, vector<256x256xbf16>, vector<32x256xf32> -> vector<32x256xf32>
    %166 = arith.addf %160, %165 : vector<32x256xf32>
    %c9_131 = arith.constant 9 : index
    %c0_132 = arith.constant 0 : index
    %167 = vector.load %arg19[%c9_131, %c0_132] : memref<48x1024xf32, #tpu.memory_space<vmem>>, vector<32x256xf32>
    %168 = arith.truncf %167 : vector<32x256xf32> to vector<32x256xbf16>
    %c2_133 = arith.constant 2 : index
    %c0_134 = arith.constant 0 : index
    %c0_135 = arith.constant 0 : index
    %169 = vector.load %arg9[%c2_133, %c0_134, %c0_135] : memref<3x256x256xbf16, #tpu.memory_space<vmem>>, vector<1x256x256xbf16>
    %170 = vector.shape_cast %169 : vector<1x256x256xbf16> to vector<256x256xbf16>
    %cst_136 = arith.constant dense<0.000000e+00> : vector<32x256xf32>
    %171 = tpu.matmul %168, %170, %cst_136 {dimension_numbers = #tpu.dot_dimension_numbers<[1], [0], [0], [1], [0, 0, 1, 1], [], []>} : vector<32x256xbf16>, vector<256x256xbf16>, vector<32x256xf32> -> vector<32x256xf32>
    %172 = arith.addf %166, %171 : vector<32x256xf32>
    %c0_137 = arith.constant 0 : index
    %c0_138 = arith.constant 0 : index
    %173 = vector.load %arg10[%c0_137, %c0_138] : memref<1x256xf32, #tpu.memory_space<vmem>>, vector<1x256xf32>
    %174 = vector.broadcast %173 : vector<1x256xf32> to vector<32x256xf32>
    %175 = arith.addf %172, %174 : vector<32x256xf32>
    %cst_139 = arith.constant 0.000000e+00 : f32
    %176 = vector.broadcast %cst_139 : f32 to vector<32x256xf32>
    %177 = arith.maximumf %175, %176 : vector<32x256xf32>
    %c1_i32_140 = arith.constant 1 : i32
    %178 = vector.broadcast %c1_i32_140 : i32 to vector<32x1xi32>
    %179 = arith.cmpi sge, %12, %178 : vector<32x1xi32>
    %c3_i32_141 = arith.constant 3 : i32
    %180 = vector.broadcast %c3_i32_141 : i32 to vector<32x1xi32>
    %181 = arith.cmpi sle, %12, %180 : vector<32x1xi32>
    %182 = arith.andi %179, %181 : vector<32x1xi1>
    %cst_142 = arith.constant 0.000000e+00 : f32
    %183 = vector.shape_cast %182 : vector<32x1xi1> to vector<32x1xi1>
    %184 = vector.broadcast %183 : vector<32x1xi1> to vector<32x256xi1>
    %185 = vector.broadcast %cst_142 : f32 to vector<32x256xf32>
    %186 = arith.select %184, %177, %185 : vector<32x256xi1>, vector<32x256xf32>
    %c8_143 = arith.constant 8 : index
    %c0_144 = arith.constant 0 : index
    %187 = vector.load %arg18[%c8_143, %c0_144] : memref<48x1024xf32, #tpu.memory_space<vmem>>, vector<32x256xf32>
    tpu.vector_store %arg18[%c8_143, %c0_144], %186 {strides = array<i32>} : memref<48x1024xf32, #tpu.memory_space<vmem>>, vector<32x256xf32>,
    %c7_145 = arith.constant 7 : index
    %c0_146 = arith.constant 0 : index
    %188 = vector.load %arg18[%c7_145, %c0_146] : memref<48x1024xf32, #tpu.memory_space<vmem>>, vector<32x256xf32>
    %189 = arith.truncf %188 : vector<32x256xf32> to vector<32x256xbf16>
    %c0_147 = arith.constant 0 : index
    %c0_148 = arith.constant 0 : index
    %c0_149 = arith.constant 0 : index
    %190 = vector.load %arg11[%c0_147, %c0_148, %c0_149] : memref<3x256x512xbf16, #tpu.memory_space<vmem>>, vector<1x256x512xbf16>
    %191 = vector.shape_cast %190 : vector<1x256x512xbf16> to vector<256x512xbf16>
    %cst_150 = arith.constant dense<0.000000e+00> : vector<32x512xf32>
    %192 = tpu.matmul %189, %191, %cst_150 {dimension_numbers = #tpu.dot_dimension_numbers<[1], [0], [0], [1], [0, 0, 1, 1], [], []>} : vector<32x256xbf16>, vector<256x512xbf16>, vector<32x512xf32> -> vector<32x512xf32>
    %c8_151 = arith.constant 8 : index
    %c0_152 = arith.constant 0 : index
    %193 = vector.load %arg18[%c8_151, %c0_152] : memref<48x1024xf32, #tpu.memory_space<vmem>>, vector<32x256xf32>
    %194 = arith.truncf %193 : vector<32x256xf32> to vector<32x256xbf16>
    %c1_153 = arith.constant 1 : index
    %c0_154 = arith.constant 0 : index
    %c0_155 = arith.constant 0 : index
    %195 = vector.load %arg11[%c1_153, %c0_154, %c0_155] : memref<3x256x512xbf16, #tpu.memory_space<vmem>>, vector<1x256x512xbf16>
    %196 = vector.shape_cast %195 : vector<1x256x512xbf16> to vector<256x512xbf16>
    %cst_156 = arith.constant dense<0.000000e+00> : vector<32x512xf32>
    %197 = tpu.matmul %194, %196, %cst_156 {dimension_numbers = #tpu.dot_dimension_numbers<[1], [0], [0], [1], [0, 0, 1, 1], [], []>} : vector<32x256xbf16>, vector<256x512xbf16>, vector<32x512xf32> -> vector<32x512xf32>
    %198 = arith.addf %192, %197 : vector<32x512xf32>
    %c9_157 = arith.constant 9 : index
    %c0_158 = arith.constant 0 : index
    %199 = vector.load %arg18[%c9_157, %c0_158] : memref<48x1024xf32, #tpu.memory_space<vmem>>, vector<32x256xf32>
    %200 = arith.truncf %199 : vector<32x256xf32> to vector<32x256xbf16>
    %c2_159 = arith.constant 2 : index
    %c0_160 = arith.constant 0 : index
    %c0_161 = arith.constant 0 : index
    %201 = vector.load %arg11[%c2_159, %c0_160, %c0_161] : memref<3x256x512xbf16, #tpu.memory_space<vmem>>, vector<1x256x512xbf16>
    %202 = vector.shape_cast %201 : vector<1x256x512xbf16> to vector<256x512xbf16>
    %cst_162 = arith.constant dense<0.000000e+00> : vector<32x512xf32>
    %203 = tpu.matmul %200, %202, %cst_162 {dimension_numbers = #tpu.dot_dimension_numbers<[1], [0], [0], [1], [0, 0, 1, 1], [], []>} : vector<32x256xbf16>, vector<256x512xbf16>, vector<32x512xf32> -> vector<32x512xf32>
    %204 = arith.addf %198, %203 : vector<32x512xf32>
    %c0_163 = arith.constant 0 : index
    %c0_164 = arith.constant 0 : index
    %205 = vector.load %arg12[%c0_163, %c0_164] : memref<1x512xf32, #tpu.memory_space<vmem>>, vector<1x512xf32>
    %206 = vector.broadcast %205 : vector<1x512xf32> to vector<32x512xf32>
    %207 = arith.addf %204, %206 : vector<32x512xf32>
    %cst_165 = arith.constant 0.000000e+00 : f32
    %208 = vector.broadcast %cst_165 : f32 to vector<32x512xf32>
    %209 = arith.maximumf %207, %208 : vector<32x512xf32>
    %c1_i32_166 = arith.constant 1 : i32
    %210 = vector.broadcast %c1_i32_166 : i32 to vector<32x1xi32>
    %211 = arith.cmpi sge, %12, %210 : vector<32x1xi32>
    %c3_i32_167 = arith.constant 3 : i32
    %212 = vector.broadcast %c3_i32_167 : i32 to vector<32x1xi32>
    %213 = arith.cmpi sle, %12, %212 : vector<32x1xi32>
    %214 = arith.andi %211, %213 : vector<32x1xi1>
    %cst_168 = arith.constant 0.000000e+00 : f32
    %215 = vector.shape_cast %214 : vector<32x1xi1> to vector<32x1xi1>
    %216 = vector.broadcast %215 : vector<32x1xi1> to vector<32x512xi1>
    %217 = vector.broadcast %cst_168 : f32 to vector<32x512xf32>
    %218 = arith.select %216, %209, %217 : vector<32x512xi1>, vector<32x512xf32>
    %c8_169 = arith.constant 8 : index
    %c0_170 = arith.constant 0 : index
    %219 = vector.load %arg19[%c8_169, %c0_170] : memref<48x1024xf32, #tpu.memory_space<vmem>>, vector<32x512xf32>
    tpu.vector_store %arg19[%c8_169, %c0_170], %218 {strides = array<i32>} : memref<48x1024xf32, #tpu.memory_space<vmem>>, vector<32x512xf32>,
    %c8_171 = arith.constant 8 : index
    %c0_172 = arith.constant 0 : index
    %220 = vector.load %arg19[%c8_171, %c0_172] : memref<48x1024xf32, #tpu.memory_space<vmem>>, vector<32x512xf32>
    %c9_173 = arith.constant 9 : index
    %c0_174 = arith.constant 0 : index
    %221 = vector.load %arg19[%c9_173, %c0_174] : memref<48x1024xf32, #tpu.memory_space<vmem>>, vector<32x512xf32>
    %222 = arith.maximumf %220, %221 : vector<32x512xf32>
    %c10_175 = arith.constant 10 : index
    %c0_176 = arith.constant 0 : index
    %223 = vector.load %arg19[%c10_175, %c0_176] : memref<48x1024xf32, #tpu.memory_space<vmem>>, vector<32x512xf32>
    %224 = arith.maximumf %222, %223 : vector<32x512xf32>
    %c1_i32_177 = arith.constant 1 : i32
    %225 = vector.broadcast %c1_i32_177 : i32 to vector<32x1xi32>
    %226 = arith.cmpi sge, %12, %225 : vector<32x1xi32>
    %c1_i32_178 = arith.constant 1 : i32
    %227 = vector.broadcast %c1_i32_178 : i32 to vector<32x1xi32>
    %228 = arith.cmpi sle, %12, %227 : vector<32x1xi32>
    %229 = arith.andi %226, %228 : vector<32x1xi1>
    %cst_179 = arith.constant 0.000000e+00 : f32
    %230 = vector.shape_cast %229 : vector<32x1xi1> to vector<32x1xi1>
    %231 = vector.broadcast %230 : vector<32x1xi1> to vector<32x512xi1>
    %232 = vector.broadcast %cst_179 : f32 to vector<32x512xf32>
    %233 = arith.select %231, %224, %232 : vector<32x512xi1>, vector<32x512xf32>
    %c8_180 = arith.constant 8 : index
    %c0_181 = arith.constant 0 : index
    %234 = vector.load %arg18[%c8_180, %c0_181] : memref<48x1024xf32, #tpu.memory_space<vmem>>, vector<32x512xf32>
    tpu.vector_store %arg18[%c8_180, %c0_181], %233 {strides = array<i32>} : memref<48x1024xf32, #tpu.memory_space<vmem>>, vector<32x512xf32>,
    %c8_182 = arith.constant 8 : index
    %c0_183 = arith.constant 0 : index
    %235 = vector.load %arg18[%c8_182, %c0_183] : memref<48x1024xf32, #tpu.memory_space<vmem>>, vector<32x512xf32>
    %236 = arith.truncf %235 : vector<32x512xf32> to vector<32x512xbf16>
    %c0_184 = arith.constant 0 : index
    %c0_185 = arith.constant 0 : index
    %c0_186 = arith.constant 0 : index
    %237 = vector.load %arg13[%c0_184, %c0_185, %c0_186] : memref<1x512x512xbf16, #tpu.memory_space<vmem>>, vector<1x512x512xbf16>
    %238 = vector.shape_cast %237 : vector<1x512x512xbf16> to vector<512x512xbf16>
    %cst_187 = arith.constant dense<0.000000e+00> : vector<32x512xf32>
    %239 = tpu.matmul %236, %238, %cst_187 {dimension_numbers = #tpu.dot_dimension_numbers<[1], [0], [0], [1], [0, 0, 1, 1], [], []>} : vector<32x512xbf16>, vector<512x512xbf16>, vector<32x512xf32> -> vector<32x512xf32>
    %c0_188 = arith.constant 0 : index
    %c0_189 = arith.constant 0 : index
    %240 = vector.load %arg14[%c0_188, %c0_189] : memref<1x512xf32, #tpu.memory_space<vmem>>, vector<1x512xf32>
    %241 = vector.broadcast %240 : vector<1x512xf32> to vector<32x512xf32>
    %242 = arith.addf %239, %241 : vector<32x512xf32>
    %cst_190 = arith.constant 0.000000e+00 : f32
    %243 = vector.broadcast %cst_190 : f32 to vector<32x512xf32>
    %244 = arith.maximumf %242, %243 : vector<32x512xf32>
    %c1_i32_191 = arith.constant 1 : i32
    %245 = vector.broadcast %c1_i32_191 : i32 to vector<32x1xi32>
    %246 = arith.cmpi sge, %12, %245 : vector<32x1xi32>
    %c1_i32_192 = arith.constant 1 : i32
    %247 = vector.broadcast %c1_i32_192 : i32 to vector<32x1xi32>
    %248 = arith.cmpi sle, %12, %247 : vector<32x1xi32>
    %249 = arith.andi %246, %248 : vector<32x1xi1>
    %cst_193 = arith.constant 0.000000e+00 : f32
    %250 = vector.shape_cast %249 : vector<32x1xi1> to vector<32x1xi1>
    %251 = vector.broadcast %250 : vector<32x1xi1> to vector<32x512xi1>
    %252 = vector.broadcast %cst_193 : f32 to vector<32x512xf32>
    %253 = arith.select %251, %244, %252 : vector<32x512xi1>, vector<32x512xf32>
    %c8_194 = arith.constant 8 : index
    %c0_195 = arith.constant 0 : index
    %254 = vector.load %arg19[%c8_194, %c0_195] : memref<48x1024xf32, #tpu.memory_space<vmem>>, vector<32x512xf32>
    tpu.vector_store %arg19[%c8_194, %c0_195], %253 {strides = array<i32>} : memref<48x1024xf32, #tpu.memory_space<vmem>>, vector<32x512xf32>,
    %c8_196 = arith.constant 8 : index
    %c0_197 = arith.constant 0 : index
    %255 = vector.load %arg19[%c8_196, %c0_197] : memref<48x1024xf32, #tpu.memory_space<vmem>>, vector<32x512xf32>
    %256 = arith.truncf %255 : vector<32x512xf32> to vector<32x512xbf16>
    %c0_198 = arith.constant 0 : index
    %c0_199 = arith.constant 0 : index
    %c0_200 = arith.constant 0 : index
    %257 = vector.load %arg15[%c0_198, %c0_199, %c0_200] : memref<1x512x1024xbf16, #tpu.memory_space<vmem>>, vector<1x512x1024xbf16>
    %258 = vector.shape_cast %257 : vector<1x512x1024xbf16> to vector<512x1024xbf16>
    %cst_201 = arith.constant dense<0.000000e+00> : vector<32x1024xf32>
    %259 = tpu.matmul %256, %258, %cst_201 {dimension_numbers = #tpu.dot_dimension_numbers<[1], [0], [0], [1], [0, 0, 1, 1], [], []>} : vector<32x512xbf16>, vector<512x1024xbf16>, vector<32x1024xf32> -> vector<32x1024xf32>
    %c0_202 = arith.constant 0 : index
    %c0_203 = arith.constant 0 : index
    %260 = vector.load %arg16[%c0_202, %c0_203] : memref<1x1024xf32, #tpu.memory_space<vmem>>, vector<1x1024xf32>
    %261 = vector.broadcast %260 : vector<1x1024xf32> to vector<32x1024xf32>
    %262 = arith.addf %259, %261 : vector<32x1024xf32>
    %c1_i32_204 = arith.constant 1 : i32
    %263 = vector.broadcast %c1_i32_204 : i32 to vector<32x1xi32>
    %264 = arith.cmpi sge, %12, %263 : vector<32x1xi32>
    %c1_i32_205 = arith.constant 1 : i32
    %265 = vector.broadcast %c1_i32_205 : i32 to vector<32x1xi32>
    %266 = arith.cmpi sle, %12, %265 : vector<32x1xi32>
    %267 = arith.andi %264, %266 : vector<32x1xi1>
    %cst_206 = arith.constant 0.000000e+00 : f32
    %268 = vector.shape_cast %267 : vector<32x1xi1> to vector<32x1xi1>
    %269 = vector.broadcast %268 : vector<32x1xi1> to vector<32x1024xi1>
    %270 = vector.broadcast %cst_206 : f32 to vector<32x1024xf32>
    %271 = arith.select %269, %262, %270 : vector<32x1024xi1>, vector<32x1024xf32>
    %c8_207 = arith.constant 8 : index
    %c0_208 = arith.constant 0 : index
    %272 = vector.load %arg18[%c8_207, %c0_208] : memref<48x1024xf32, #tpu.memory_space<vmem>>, vector<32x1024xf32>
    tpu.vector_store %arg18[%c8_207, %c0_208], %271 {strides = array<i32>} : memref<48x1024xf32, #tpu.memory_space<vmem>>, vector<32x1024xf32>,
    %c9_209 = arith.constant 9 : index
    %c0_210 = arith.constant 0 : index
    %273 = vector.load %arg18[%c9_209, %c0_210] : memref<48x1024xf32, #tpu.memory_space<vmem>>, vector<1x1024xf32>
    %c0_211 = arith.constant 0 : index
    %c0_212 = arith.constant 0 : index
    %c0_213 = arith.constant 0 : index
    %274 = vector.load %arg17[%c0_211, %c0_212, %c0_213] : memref<2x1x1024xf32, #tpu.memory_space<vmem>>, vector<1x1x1024xf32>
    %275 = vector.shape_cast %274 : vector<1x1x1024xf32> to vector<1x1024xf32>
    %276 = vector.shape_cast %273 : vector<1x1024xf32> to vector<1x1x1024xf32>
    tpu.vector_store %arg17[%c0_211, %c0_212, %c0_213], %276 {strides = array<i32>} : memref<2x1x1024xf32, #tpu.memory_space<vmem>>, vector<1x1x1024xf32>,
    %c25_214 = arith.constant 25 : index
    %c0_215 = arith.constant 0 : index
    %277 = vector.load %arg18[%c25_214, %c0_215] : memref<48x1024xf32, #tpu.memory_space<vmem>>, vector<1x1024xf32>
    %c1_216 = arith.constant 1 : index
    %c0_217 = arith.constant 0 : index
    %c0_218 = arith.constant 0 : index
    %278 = vector.load %arg17[%c1_216, %c0_217, %c0_218] : memref<2x1x1024xf32, #tpu.memory_space<vmem>>, vector<1x1x1024xf32>
    %279 = vector.shape_cast %278 : vector<1x1x1024xf32> to vector<1x1024xf32>
    %280 = vector.shape_cast %277 : vector<1x1024xf32> to vector<1x1x1024xf32>
    tpu.vector_store %arg17[%c1_216, %c0_217, %c0_218], %280 {strides = array<i32>} : memref<2x1x1024xf32, #tpu.memory_space<vmem>>, vector<1x1x1024xf32>,
    return
  }
}

</mosaic_0001>

<bundles_post_ra>
// kernel: tpu_custom_call.1
= control target key start
LH: loop header
LB: loop body
LE: loop exit
PB: predicated region body
PF: predicated region fallthrough
CT: control target
= control target key end

     0   :  { %s22704_s0 = inlined_call_operand.vmem [shape: f32[2,5,128], index: 0, kind: input, shape index: {}]   ;;  %s22705_s1 = inlined_call_operand.hbm [shape: bf16[3,128,512], index: 1, kind: input, shape index: {}]   ;;  %s22706_s2 = inlined_call_operand.hbm [shape: f32[1,512], index: 2, kind: input, shape index: {}]   ;;  %s22707_s3 = inlined_call_operand.hbm [shape: bf16[3,512,512], index: 3, kind: input, shape index: {}]   ;;  %s22708_s4 = inlined_call_operand.hbm [shape: f32[1,512], index: 4, kind: input, shape index: {}]   ;;  %s22709_s5 = inlined_call_operand.hbm [shape: bf16[3,512,512], index: 5, kind: input, shape index: {}]   ;;  %s22710_s6 = inlined_call_operand.hbm [shape: f32[1,512], index: 6, kind: input, shape index: {}]   ;;  %s22711_s7 = inlined_call_operand.hbm [shape: bf16[3,512,256], index: 7, kind: input, shape index: {}]   ;;  %s22712_s8 = inlined_call_operand.hbm [shape: f32[1,256], index: 8, kind: input, shape index: {}]   ;;  %s22713_s9 = inlined_call_operand.hbm [shape: bf16[3,256,256], index: 9, kind: input, shape index: {}]   ;;  %s22714_s10 = inlined_call_operand.hbm [shape: f32[1,256], index: 10, kind: input, shape index: {}]   ;;  %s22715_s11 = inlined_call_operand.hbm [shape: bf16[3,256,512], index: 11, kind: input, shape index: {}]   ;;  %s22716_s12 = inlined_call_operand.hbm [shape: f32[1,512], index: 12, kind: input, shape index: {}]   ;;  %s22717_s13 = inlined_call_operand.hbm [shape: bf16[1,512,512], index: 13, kind: input, shape index: {}]   ;;  %s22718_s14 = inlined_call_operand.hbm [shape: f32[1,512], index: 14, kind: input, shape index: {}]   ;;  %s22719_s15 = inlined_call_operand.hbm [shape: bf16[1,512,1024], index: 15, kind: input, shape index: {}]   ;;  %s22720_s16 = inlined_call_operand.hbm [shape: f32[1,1024], index: 16, kind: input, shape index: {}]   ;;  %s22721_s17 = inlined_call_operand.hbm [shape: f32[2,1,1024], index: 17, kind: output, shape index: {}]  }
   0x1   :  { %22723 = sst [smem:[#allocation41_spill]] %s22704_s0 }
   0x2   :  { %22724 = sst [smem:[#allocation42_spill]] %s22705_s1 }
   0x3   :  { %22 = vsyncpa [#allocation5], 0 }
   0x4   :  { %23 = vsyncpa [#allocation8], 0 }
   0x5   :  { %24 = vsyncpa [#allocation11], 0 }
   0x6   :  { %25 = vsyncpa [#allocation14], 0 }
   0x7   :  { %26 = vsyncpa [#allocation17], 0 }
   0x8   :  { %27 = vsyncpa [#allocation20], 0 }
   0x9   :  { %28 = vsyncpa [#allocation23], 0 }
   0xa   :  { %29 = vsyncpa [#allocation26], 0 }
   0xb   :  { %30 = vsyncpa [#allocation29], 0 }
   0xc   :  { %31 = vsyncpa [#allocation6], 0  ;;  %s20866_s24 = smov [#allocation7]   ;;  %s20867_s26 = smov [#allocation10]  }
   0xd   :  { %s52_s25 = sshll.u32 %s20866_s24, 4  ;;  %s74_s27 = sshll.u32 %s20867_s26, 4  ;;  %s53_s25 = int_to_ptr.vmem [resolvable:$true] %s52_s25  ;;  %s75_s27 = int_to_ptr.vmem [resolvable:$true] %s74_s27 }
   0xe   :  { %s20514_s28 = scalar_lea.vmem %s53_s25, 64  ;;  %p20519_p1 = scmp.lt.s32.totalorder %s53_s25, %s53_s25 }
   0xf   :  { %p20515_p0 = scmp.ne.s32.totalorder %s53_s25, %s20514_s28  ;;  %p20520_p2 = scmp.lt.s32.totalorder %s20514_s28, %s20514_s28 }
  0x11   :  { %p20521_p3 = por %p20520_p2, %p20519_p1 }
  0x13   :  { %p20522_p4 = pnand %p20521_p3, %p20515_p0 }
  0x15   :  { %20525 = shalt.err (!%p20522_p4)
}
  0x16   :  { %55 = dma.hbm_to_vmem [thread:$0]  %s22706_s2, 64, %s53_s25, [#allocation8]  }
  0x17   :  { %s20534_s30 = scalar_lea.vmem %s75_s27, 64  ;;  %p20539_p6 = scmp.lt.s32.totalorder %s75_s27, %s75_s27 }
  0x18   :  { %p20535_p5 = scmp.ne.s32.totalorder %s75_s27, %s20534_s30  ;;  %p20540_p7 = scmp.lt.s32.totalorder %s20534_s30, %s20534_s30 }
  0x1a   :  { %p20541_p8 = por %p20540_p7, %p20539_p6 }
  0x1c   :  { %p20542_p9 = pnand %p20541_p8, %p20535_p5 }
  0x1e   :  { %20545 = shalt.err (!%p20542_p9)
}
  0x1f   :  { %77 = dma.hbm_to_vmem [thread:$0]  %s22708_s4, 64, %s75_s27, [#allocation11]  }
  0x20   :  { %s20868_s1 = smov [#allocation13]   ;;  %s20869_s21 = smov [#allocation16]  }
  0x21   :  { %s96_s20 = sshll.u32 %s20868_s1, 4  ;;  %s118_s22 = sshll.u32 %s20869_s21, 4  ;;  %s97_s20 = int_to_ptr.vmem [resolvable:$true] %s96_s20  ;;  %s119_s22 = int_to_ptr.vmem [resolvable:$true] %s118_s22 }
  0x22   :  { %s20554_s23 = scalar_lea.vmem %s97_s20, 64  ;;  %p20559_p11 = scmp.lt.s32.totalorder %s97_s20, %s97_s20 }
  0x23   :  { %p20555_p10 = scmp.ne.s32.totalorder %s97_s20, %s20554_s23  ;;  %p20560_p12 = scmp.lt.s32.totalorder %s20554_s23, %s20554_s23 }
  0x25   :  { %p20561_p13 = por %p20560_p12, %p20559_p11 }
  0x27   :  { %p20562_p0 = pnand %p20561_p13, %p20555_p10 }
  0x29   :  { %20565 = shalt.err (!%p20562_p0)
}
  0x2a   :  { %99 = dma.hbm_to_vmem [thread:$0]  %s22710_s6, 64, %s97_s20, [#allocation14]  }
  0x2b   :  { %s20574_s25 = scalar_lea.vmem %s119_s22, 32  ;;  %p20579_p2 = scmp.lt.s32.totalorder %s119_s22, %s119_s22 }
  0x2c   :  { %p20575_p1 = scmp.ne.s32.totalorder %s119_s22, %s20574_s25  ;;  %p20580_p3 = scmp.lt.s32.totalorder %s20574_s25, %s20574_s25 }
  0x2e   :  { %p20581_p4 = por %p20580_p3, %p20579_p2 }
  0x30   :  { %p20582_p5 = pnand %p20581_p4, %p20575_p1 }
  0x32   :  { %20585 = shalt.err (!%p20582_p5)
}
  0x33   :  { %121 = dma.hbm_to_vmem [thread:$0]  %s22712_s8, 32, %s119_s22, [#allocation17]  }
  0x34   :  { %s20870_s27 = smov [#allocation19]   ;;  %s20871_s29 = smov [#allocation22]  }
  0x35   :  { %s140_s28 = sshll.u32 %s20870_s27, 4  ;;  %s162_s0 = sshll.u32 %s20871_s29, 4  ;;  %s141_s28 = int_to_ptr.vmem [resolvable:$true] %s140_s28  ;;  %s163_s0 = int_to_ptr.vmem [resolvable:$true] %s162_s0 }
  0x36   :  { %s20594_s30 = scalar_lea.vmem %s141_s28, 32  ;;  %p20599_p7 = scmp.lt.s32.totalorder %s141_s28, %s141_s28 }
  0x37   :  { %p20595_p6 = scmp.ne.s32.totalorder %s141_s28, %s20594_s30  ;;  %p20600_p8 = scmp.lt.s32.totalorder %s20594_s30, %s20594_s30 }
  0x39   :  { %p20601_p9 = por %p20600_p8, %p20599_p7 }
  0x3b   :  { %p20602_p10 = pnand %p20601_p9, %p20595_p6 }
  0x3d   :  { %20605 = shalt.err (!%p20602_p10)
}
  0x3e   :  { %143 = dma.hbm_to_vmem [thread:$0]  %s22714_s10, 32, %s141_s28, [#allocation20]  }
  0x3f   :  { %s20614_s19 = scalar_lea.vmem %s163_s0, 64  ;;  %p20619_p12 = scmp.lt.s32.totalorder %s163_s0, %s163_s0 }
  0x40   :  { %p20615_p11 = scmp.ne.s32.totalorder %s163_s0, %s20614_s19  ;;  %p20620_p13 = scmp.lt.s32.totalorder %s20614_s19, %s20614_s19 }
  0x42   :  { %p20621_p0 = por %p20620_p13, %p20619_p12 }
  0x44   :  { %p20622_p1 = pnand %p20621_p0, %p20615_p11 }
  0x46   :  { %20625 = shalt.err (!%p20622_p1)
}
  0x47   :  { %165 = dma.hbm_to_vmem [thread:$0]  %s22716_s12, 64, %s163_s0, [#allocation23]  }
  0x48   :  { %s20872_s20 = smov [#allocation25]   ;;  %s20873_s22 = smov [#allocation4]  }
  0x49   :  { %s184_s21 = sshll.u32 %s20872_s20, 4  ;;  %s39_s23 = sshll.u32 %s20873_s22, 4  ;;  %s185_s21 = int_to_ptr.vmem [resolvable:$true] %s184_s21  ;;  %s40_s23 = int_to_ptr.vmem [resolvable:$true] %s39_s23 }
  0x4a   :  { %s20634_s2 = scalar_lea.vmem %s185_s21, 64  ;;  %p20639_p3 = scmp.lt.s32.totalorder %s185_s21, %s185_s21 }
  0x4b   :  { %p20635_p2 = scmp.ne.s32.totalorder %s185_s21, %s20634_s2  ;;  %p20640_p4 = scmp.lt.s32.totalorder %s20634_s2, %s20634_s2 }
  0x4d   :  { %p20641_p5 = por %p20640_p4, %p20639_p3 }
  0x4f   :  { %p20642_p6 = pnand %p20641_p5, %p20635_p2 }
  0x51   :  { %20645 = shalt.err (!%p20642_p6)
}
  0x52   :  { %187 = dma.hbm_to_vmem [thread:$0]  %s22718_s14, 64, %s185_s21, [#allocation26]  }
  0x53   :  { %s20654_s25 = scalar_lea.vmem %s40_s23, 12288  ;;  %p20659_p8 = scmp.lt.s32.totalorder %s40_s23, %s40_s23 }
  0x54   :  { %p20655_p7 = scmp.ne.s32.totalorder %s40_s23, %s20654_s25  ;;  %p20660_p9 = scmp.lt.s32.totalorder %s20654_s25, %s20654_s25 }
  0x56   :  { %p20661_p10 = por %p20660_p9, %p20659_p8 }
  0x58   :  { %p20662_p11 = pnand %p20661_p10, %p20655_p7 }
  0x5a   :  { %20665 = shalt.err (!%p20662_p11)
}
  0x5b   :  { %s20874_s12 = smov 256   ;;  %s20875_s4 = smov 16  }
  0x5c   :  { %s22725_s28 = sld [smem:[#allocation42_spill]]  ;;  %s20876_s29 = smov [#allocation9]  }
  0x5d   :  { %s61_s0 = sshll.u32 %s20876_s29, 4  ;;  %s20877_s30 = smov [#allocation12]   ;;  %s62_s0 = int_to_ptr.vmem [resolvable:$true] %s61_s0 }
  0x5e   :  { %s83_s14 = sshll.u32 %s20877_s30, 4  ;;  %s20674_s6 = scalar_lea.vmem %s62_s0, 49152  ;;  %s84_s14 = int_to_ptr.vmem [resolvable:$true] %s83_s14 }
  0x5f   :  { %p20675_p12 = scmp.ne.s32.totalorder %s62_s0, %s20674_s6  ;;  %p20679_p13 = scmp.lt.s32.totalorder %s62_s0, %s62_s0 }
  0x60   :  { %p20680_p0 = scmp.lt.s32.totalorder %s20674_s6, %s20674_s6 }
  0x62   :  { %45 = dma.hbm_to_vmem [thread:$0]  %s22725_s28, 12288, %s40_s23, [#allocation5], %s20874_s12, %s20874_s12, %s20875_s4  }
  0x63   :  { %p20681_p1 = por %p20680_p0, %p20679_p13 }
  0x65   :  { %p20682_p2 = pnand %p20681_p1, %p20675_p12 }
  0x67   :  { %20685 = shalt.err (!%p20682_p2)
}
  0x68   :  { %67 = dma.hbm_to_vmem [thread:$0]  %s22707_s3, 49152, %s62_s0, [#allocation8], %s20874_s12, %s20874_s12, %s20875_s4  }
  0x69   :  { %s20694_s8 = scalar_lea.vmem %s84_s14, 49152  ;;  %p20699_p4 = scmp.lt.s32.totalorder %s84_s14, %s84_s14 }
  0x6a   :  { %p20695_p3 = scmp.ne.s32.totalorder %s84_s14, %s20694_s8  ;;  %p20700_p5 = scmp.lt.s32.totalorder %s20694_s8, %s20694_s8 }
  0x6c   :  { %p20701_p6 = por %p20700_p5, %p20699_p4 }
  0x6e   :  { %p20702_p7 = pnand %p20701_p6, %p20695_p3 }
  0x70   :  { %20705 = shalt.err (!%p20702_p7)
}
  0x71   :  { %89 = dma.hbm_to_vmem [thread:$0]  %s22709_s5, 49152, %s84_s14, [#allocation11], %s20874_s12, %s20874_s12, %s20875_s4  }
  0x72   :  { %s20878_s21 = smov [#allocation15]  }
  0x73   :  { %s105_s22 = sshll.u32 %s20878_s21, 4  ;;  %s106_s22 = int_to_ptr.vmem [resolvable:$true] %s105_s22 }
  0x74   :  { %s20714_s23 = scalar_lea.vmem %s106_s22, 24576  ;;  %p20719_p9 = scmp.lt.s32.totalorder %s106_s22, %s106_s22 }
  0x75   :  { %p20715_p8 = scmp.ne.s32.totalorder %s106_s22, %s20714_s23  ;;  %p20720_p10 = scmp.lt.s32.totalorder %s20714_s23, %s20714_s23 }
  0x77   :  { %p20721_p11 = por %p20720_p10, %p20719_p9 }
  0x79   :  { %p20722_p12 = pnand %p20721_p11, %p20715_p8 }
  0x7b   :  { %20725 = shalt.err (!%p20722_p12)
}
  0x7c   :  { %s20879_s3 = smov 128   ;;  %s20880_s2 = smov 8  }
  0x7d   :  { %111 = dma.hbm_to_vmem [thread:$0]  %s22711_s7, 24576, %s106_s22, [#allocation14], %s20879_s3, %s20879_s3, %s20880_s2  }
  0x7e   :  { %s20881_s5 = smov [#allocation18]   ;;  %s20882_s26 = smov [#allocation21]  }
  0x7f   :  { %s127_s25 = sshll.u32 %s20881_s5, 4  ;;  %s149_s27 = sshll.u32 %s20882_s26, 4  ;;  %s128_s25 = int_to_ptr.vmem [resolvable:$true] %s127_s25  ;;  %s150_s27 = int_to_ptr.vmem [resolvable:$true] %s149_s27 }
  0x80   :  { %s20734_s28 = scalar_lea.vmem %s128_s25, 12288  ;;  %p20739_p0 = scmp.lt.s32.totalorder %s128_s25, %s128_s25 }
  0x81   :  { %p20735_p13 = scmp.ne.s32.totalorder %s128_s25, %s20734_s28  ;;  %p20740_p1 = scmp.lt.s32.totalorder %s20734_s28, %s20734_s28 }
  0x83   :  { %p20741_p2 = por %p20740_p1, %p20739_p0 }
  0x85   :  { %p20742_p3 = pnand %p20741_p2, %p20735_p13 }
  0x87   :  { %20745 = shalt.err (!%p20742_p3)
}
  0x88   :  { %133 = dma.hbm_to_vmem [thread:$0]  %s22713_s9, 12288, %s128_s25, [#allocation17], %s20879_s3, %s20879_s3, %s20880_s2  }
  0x89   :  { %s20754_s7 = scalar_lea.vmem %s150_s27, 24576  ;;  %p20759_p5 = scmp.lt.s32.totalorder %s150_s27, %s150_s27 }
  0x8a   :  { %p20755_p4 = scmp.ne.s32.totalorder %s150_s27, %s20754_s7  ;;  %p20760_p6 = scmp.lt.s32.totalorder %s20754_s7, %s20754_s7 }
  0x8c   :  { %p20761_p7 = por %p20760_p6, %p20759_p5 }
  0x8e   :  { %p20762_p8 = pnand %p20761_p7, %p20755_p4 }
  0x90   :  { %20765 = shalt.err (!%p20762_p8)
}
  0x91   :  { %155 = dma.hbm_to_vmem [thread:$0]  %s22715_s11, 24576, %s150_s27, [#allocation20], %s20874_s12, %s20874_s12, %s20875_s4  }
  0x92   :  { %s20883_s6 = smov [#allocation24]   ;;  %s20884_s19 = smov [#allocation27]  }
  0x93   :  { %s171_s18 = sshll.u32 %s20883_s6, 4  ;;  %s193_s9 = sshll.u32 %s20884_s19, 4  ;;  %s172_s18 = int_to_ptr.vmem [resolvable:$true] %s171_s18  ;;  %s194_s9 = int_to_ptr.vmem [resolvable:$true] %s193_s9 }
  0x94   :  { %s20774_s8 = scalar_lea.vmem %s172_s18, 16384  ;;  %p20779_p10 = scmp.lt.s32.totalorder %s172_s18, %s172_s18 }
  0x95   :  { %p20775_p9 = scmp.ne.s32.totalorder %s172_s18, %s20774_s8  ;;  %p20780_p11 = scmp.lt.s32.totalorder %s20774_s8, %s20774_s8 }
  0x97   :  { %p20781_p12 = por %p20780_p11, %p20779_p10 }
  0x99   :  { %p20782_p13 = pnand %p20781_p12, %p20775_p9 }
  0x9b   :  { %20785 = shalt.err (!%p20782_p13)
}
  0x9c   :  { %177 = dma.hbm_to_vmem [thread:$0]  %s22717_s13, 16384, %s172_s18, [#allocation23], %s20874_s12, %s20874_s12, %s20875_s4  }
  0x9d   :  { %s20794_s11 = scalar_lea.vmem %s194_s9, 32768  ;;  %p20799_p1 = scmp.lt.s32.totalorder %s194_s9, %s194_s9 }
  0x9e   :  { %p20795_p0 = scmp.ne.s32.totalorder %s194_s9, %s20794_s11  ;;  %p20800_p2 = scmp.lt.s32.totalorder %s20794_s11, %s20794_s11 }
  0xa0   :  { %p20801_p3 = por %p20800_p2, %p20799_p1 }
  0xa2   :  { %p20802_p4 = pnand %p20801_p3, %p20795_p0 }
  0xa4   :  { %20805 = shalt.err (!%p20802_p4)
}
  0xa5   :  { %s20885_s21 = smov 512   ;;  %s20886_s22 = smov 32  }
  0xa6   :  { %199 = dma.hbm_to_vmem [thread:$0]  %s22719_s15, 32768, %s194_s9, [#allocation26], %s20885_s21, %s20885_s21, %s20886_s22  }
  0xa7   :  { %s20887_s24 = smov [#allocation28]  }
  0xa8   :  { %s206_s5 = sshll.u32 %s20887_s24, 4  ;;  %s207_s5 = int_to_ptr.vmem [resolvable:$true] %s206_s5 }
  0xa9   :  { %s20814_s25 = scalar_lea.vmem %s207_s5, 128  ;;  %p20819_p6 = scmp.lt.s32.totalorder %s207_s5, %s207_s5 }
  0xaa   :  { %p20815_p5 = scmp.ne.s32.totalorder %s207_s5, %s20814_s25  ;;  %p20820_p7 = scmp.lt.s32.totalorder %s20814_s25, %s20814_s25 }
  0xac   :  { %p20821_p8 = por %p20820_p7, %p20819_p6 }
  0xae   :  { %p20822_p9 = pnand %p20821_p8, %p20815_p5 }
  0xb0   :  { %20825 = shalt.err (!%p20822_p9)
}
  0xb1   :  { %209 = dma.hbm_to_vmem [thread:$0]  %s22720_s16, 128, %s207_s5, [#allocation29]  }
  0xb2   :  { %20846 = dma.done.wait [#allocation5], 12288  }
  0xb3   :  { %20847 = vsyncadd [#allocation5], 4294955008 }
  0xb4   :  { %20848 = dma.done.wait [#allocation8], 49216  }
  0xb5   :  { %20849 = vsyncadd [#allocation8], 4294918080 }
  0xb6   :  { %20850 = dma.done.wait [#allocation11], 49216  }
  0xb7   :  { %20851 = vsyncadd [#allocation11], 4294918080 }
  0xb8   :  { %20852 = dma.done.wait [#allocation14], 24640  }
  0xb9   :  { %20853 = vsyncadd [#allocation14], 4294942656 }
  0xba   :  { %20854 = dma.done.wait [#allocation17], 12320  }
  0xbb   :  { %20855 = vsyncadd [#allocation17], 4294954976 }
  0xbc   :  { %20856 = dma.done.wait [#allocation20], 24608  }
  0xbd   :  { %20857 = vsyncadd [#allocation20], 4294942688 }
  0xbe   :  { %20858 = dma.done.wait [#allocation23], 16448  }
  0xbf   :  { %20859 = vsyncadd [#allocation23], 4294950848 }
  0xc0   :  { %20860 = dma.done.wait [#allocation26], 32832  }
  0xc1   :  { %20861 = vsyncadd [#allocation26], 4294934464 }
  0xc2   :  { %20862 = dma.done.wait [#allocation29], 128  }
  0xc3   :  { %20863 = vsyncadd [#allocation29], 4294967168  ;;  %v20888_v0 = vmov 0.0   ;;  %v20889_v1 = vmov 0   ;;  %v17987_v2 = vld [vmem:[#allocation4 + $0x1e4] ss:$16 sps:$4 sm:$0xff]  }
  0xc4   :  { %263 = vst [vmem:[#allocation2 + $0x20] sm:$0xff] %v20888_v0  ;;  %259 = vst [vmem:[#allocation2] sm:$0xff] %v20888_v0  ;;  %643 = vmatprep.mubr.bf16.mxu1 %v20889_v1  ;;  %938 = vmatprep.mubr.bf16.mxu0 %v20889_v1  ;;  %v17989_v3 = vld [vmem:[#allocation4 + $0xe4] ss:$16 sps:$4 sm:$0xff]   ;;  %v17991_v4 = vld [vmem:[#allocation4 + $0x1e0] ss:$16 sps:$4 sm:$0xff]  }
  0xc5   :  { %260 = vst [vmem:[#allocation2 + $0x8] sm:$0xff] %v20888_v0  ;;  %261 = vst [vmem:[#allocation2 + $0x10] sm:$0xff] %v20888_v0  ;;  %611 = vmatprep.subr.bf16.mxu1 %v17987_v2  ;;  %v17992_v5 = vld [vmem:[#allocation4 + $0xe0] ss:$16 sps:$4 sm:$0xff]   ;;  %906 = vmatprep.subr.bf16.mxu0 %v17989_v3  ;;  %v17993_v6 = vld [vmem:[#allocation4 + $0x1c4] ss:$16 sps:$4 sm:$0xff]  }
  0xc6   :  { %262 = vst [vmem:[#allocation2 + $0x18] sm:$0xff] %v20888_v0  ;;  %267 = vst [vmem:[#allocation2 + $0x40] sm:$0xff] %v20888_v0  ;;  %612 = vmatpush1.bf16.msra.mxu1 %v17991_v4  ;;  %907 = vmatpush1.bf16.msra.mxu0 %v17992_v5  ;;  %v17995_v7 = vld [vmem:[#allocation4 + $0xc4] ss:$16 sps:$4 sm:$0xff]   ;;  %v17997_v8 = vld [vmem:[#allocation4 + $0x1c0] ss:$16 sps:$4 sm:$0xff]  }
  0xc7   :  { %283 = vst [vmem:[#allocation2 + $0xc0] sm:$0xff] %v20888_v0  ;;  %291 = vst [vmem:[#allocation2 + $0x100] sm:$0xff] %v20888_v0  ;;  %613 = vmatprep.subr.bf16.mxu1 %v17993_v6  ;;  %v17998_v9 = vld [vmem:[#allocation4 + $0xc0] ss:$16 sps:$4 sm:$0xff]   ;;  %908 = vmatprep.subr.bf16.mxu0 %v17995_v7  ;;  %v17999_v10 = vld [vmem:[#allocation4 + $0x1a4] ss:$16 sps:$4 sm:$0xff]  }
  0xc8   :  { %299 = vst [vmem:[#allocation2 + $0x140] sm:$0xff] %v20888_v0  ;;  %300 = vst [vmem:[#allocation2 + $0x148] sm:$0xff] %v20888_v0  ;;  %v18001_v11 = vld [vmem:[#allocation4 + $0xa4] ss:$16 sps:$4 sm:$0xff]   ;;  %v18003_v12 = vld [vmem:[#allocation4 + $0x1a0] ss:$16 sps:$4 sm:$0xff]  }
  0xc9   :  { %301 = vst [vmem:[#allocation2 + $0x150] sm:$0xff] %v20888_v0  ;;  %302 = vst [vmem:[#allocation2 + $0x158] sm:$0xff] %v20888_v0  ;;  %v18004_v13 = vld [vmem:[#allocation4 + $0xa0] ss:$16 sps:$4 sm:$0xff]   ;;  %v18005_v14 = vld [vmem:[#allocation4 + $0x184] ss:$16 sps:$4 sm:$0xff]  }
  0xca   :  { %307 = vst [vmem:[#allocation3 + $0xb0] sm:$0xff] %v20888_v0  ;;  %308 = vst [vmem:[#allocation3 + $0xd0] sm:$0xff] %v20888_v0  ;;  %614 = vmatpush1.bf16.msra.mxu1 %v17997_v8  ;;  %909 = vmatpush1.bf16.msra.mxu0 %v17998_v9  ;;  %v18007_v15 = vld [vmem:[#allocation4 + $0x84] ss:$16 sps:$4 sm:$0xff]   ;;  %v18009_v16 = vld [vmem:[#allocation4 + $0x180] ss:$16 sps:$4 sm:$0xff]  }
  0xcb   :  { %309 = vst [vmem:[#allocation3 + $0x10] sm:$0xff] %v20888_v0  ;;  %310 = vst [vmem:[#allocation3 + $0x48] sm:$0xff] %v20888_v0  ;;  %615 = vmatprep.subr.bf16.mxu1 %v17999_v10  ;;  %910 = vmatprep.subr.bf16.mxu0 %v18001_v11  ;;  %v18010_v17 = vld [vmem:[#allocation4 + $0x80] ss:$16 sps:$4 sm:$0xff]   ;;  %v18011_v18 = vld [vmem:[#allocation4 + $0x164] ss:$16 sps:$4 sm:$0xff]  }
  0xcc   :  { %347 = vst [vmem:[#allocation3] sm:$0xff] %v20888_v0  ;;  %348 = vst [vmem:[#allocation3 + $0x78] sm:$0xff] %v20888_v0  ;;  %v18013_v19 = vld [vmem:[#allocation4 + $0x64] ss:$16 sps:$4 sm:$0xff]   ;;  %v18015_v20 = vld [vmem:[#allocation4 + $0x160] ss:$16 sps:$4 sm:$0xff]  }
  0xcd   :  { %349 = vst [vmem:[#allocation3 + $0x50] sm:$0xff] %v20888_v0  ;;  %350 = vst [vmem:[#allocation3 + $0x68] sm:$0xff] %v20888_v0  ;;  %v18016_v21 = vld [vmem:[#allocation4 + $0x60] ss:$16 sps:$4 sm:$0xff]   ;;  %v18017_v22 = vld [vmem:[#allocation4 + $0x144] ss:$16 sps:$4 sm:$0xff]  }
  0xce   :  { %1460 = vst [vmem:[#allocation3 + $0x60] sm:$0xff] %v20888_v0  ;;  %1461 = vst [vmem:[#allocation3 + $0xc8] sm:$0xff] %v20888_v0  ;;  %616 = vmatpush1.bf16.msra.mxu1 %v18003_v12  ;;  %911 = vmatpush1.bf16.msra.mxu0 %v18004_v13  ;;  %v18019_v23 = vld [vmem:[#allocation4 + $0x44] ss:$16 sps:$4 sm:$0xff]   ;;  %v18021_v24 = vld [vmem:[#allocation4 + $0x140] ss:$16 sps:$4 sm:$0xff]  }
  0xcf   :  { %1462 = vst [vmem:[#allocation3 + $0x28] sm:$0xff] %v20888_v0  ;;  %1463 = vst [vmem:[#allocation3 + $0x38] sm:$0xff] %v20888_v0  ;;  %617 = vmatprep.subr.bf16.mxu1 %v18005_v14  ;;  %912 = vmatprep.subr.bf16.mxu0 %v18007_v15  ;;  %v18022_v25 = vld [vmem:[#allocation4 + $0x40] ss:$16 sps:$4 sm:$0xff]   ;;  %v18023_v26 = vld [vmem:[#allocation4 + $0x124] ss:$16 sps:$4 sm:$0xff]  }
  0xd0   :  { %8347 = vst [vmem:[#allocation2 + $0x108] sm:$0xff] %v20888_v0  ;;  %8348 = vst [vmem:[#allocation2 + $0x110] sm:$0xff] %v20888_v0  ;;  %v18025_v27 = vld [vmem:[#allocation4 + $0x24] ss:$16 sps:$4 sm:$0xff]   ;;  %s22726_s4 = sld [smem:[#allocation41_spill]]  ;;  %s20891_s28 = smov [#allocation30]  }
  0xd1   :  { %8349 = vst [vmem:[#allocation2 + $0x118] sm:$0xff] %v20888_v0  ;;  %v18027_v32 = vld [vmem:[#allocation4 + $0x120] ss:$16 sps:$4 sm:$0xff]   ;;  %v18029_v34 = vld [vmem:[#allocation4 + $0x104] ss:$16 sps:$4 sm:$0xff]   ;;  %s16213_s29 = sshll.u32 %s20891_s28, 4  ;;  %s16214_s29 = int_to_ptr.vmem [resolvable:$true] %s16213_s29 }
  0xd2   :  { %618 = vmatpush1.bf16.msra.mxu1 %v18009_v16  ;;  %913 = vmatpush1.bf16.msra.mxu0 %v18010_v17  ;;  %v18028_v33 = vld [vmem:[#allocation4 + $0x20] ss:$16 sps:$4 sm:$0xff]   ;;  %v18031_v35 = vld [vmem:[#allocation4 + $0x4] ss:$16 sps:$4 sm:$0xff]   ;;  %v18037_v39 = vld [vmem:[#allocation4 + $0x1ec] ss:$16 sps:$4 sm:$0xff]   ;;  %p20831_p11 = scmp.lt.s32.totalorder %s16214_s29, %s16214_s29 }
  0xd3   :  { %619 = vmatprep.subr.bf16.mxu1 %v18011_v18  ;;  %914 = vmatprep.subr.bf16.mxu0 %v18013_v19  ;;  %v18033_v36 = vld [vmem:[#allocation4 + $0x100] ss:$16 sps:$4 sm:$0xff]   ;;  %v375_v38 = vld [vmem:[#allocation2] sm:$0x80]  ;;  %v18035_v46 = vld [vmem:[#allocation4 + $0x1e8] ss:$16 sps:$4 sm:$0xff]  }
  0xd4   :  { %v18034_v37 = vld [vmem:[#allocation4] ss:$16 sps:$4 sm:$0xff]   ;;  %v18040_v40 = vld [vmem:[#allocation4 + $0x2e4] ss:$16 sps:$4 sm:$0xff]   ;;  %v18043_v47 = vld [vmem:[#allocation4 + $0x1cc] ss:$16 sps:$4 sm:$0xff]  }
  0xd5   :  { %v18041_v56 = vld [vmem:[#allocation4 + $0x1c8] ss:$16 sps:$4 sm:$0xff]   ;;  %vm717_vm0 = vsmask.f32 4352  ;;  %v18049_v57 = vld [vmem:[#allocation4 + $0x1ac] ss:$16 sps:$4 sm:$0xff]  }
  0xd6   :  { %620 = vmatpush1.bf16.msra.mxu1 %v18015_v20  ;;  %915 = vmatpush1.bf16.msra.mxu0 %v18016_v21  ;;  %v355_v28 = vld [vmem:[%s22726_s4] sm:$0x1f]  ;;  %v16233_v29 = vld [vmem:[%s22726_s4 + $0x8] sm:$0x1f]  ;;  %vm1053_vm1 = vsmask.f32 7424 }
  0xd7   :  { %621 = vmatprep.subr.bf16.mxu1 %v18017_v22  ;;  %916 = vmatprep.subr.bf16.mxu0 %v18019_v23  ;;  %v357_v30 = vrot.slane %v355_v28, 7  ;;  %v363_v31 = vrot.slane %v16233_v29, 7  ;;  %v18038_v60 = vld [vmem:[#allocation4 + $0x2e0] ss:$16 sps:$4 sm:$0xff]   ;;  %v18046_v61 = vld [vmem:[#allocation4 + $0x2c4] ss:$16 sps:$4 sm:$0xff]  }
  0xd8   :  { %v18047_v62 = vld [vmem:[#allocation4 + $0x1a8] ss:$16 sps:$4 sm:$0xff]   ;;  %v379_v3 = vld [vmem:[#allocation2 + $0x100] sm:$0x7f]  ;;  %v18055_v4 = vld [vmem:[#allocation4 + $0x18c] ss:$16 sps:$4 sm:$0xff]  }
  0xd9   :  { %359 = vst [vmem:[#allocation2 + $0x40] sm:$0x3e] %v357_v30  ;;  %365 = vst [vmem:[#allocation2 + $0xc0] sm:$0x3e] %v363_v31  ;;  %v382_v5 = vpack.c.bf16 %v379_v3, %v379_v3  ;;  %v18044_v6 = vld [vmem:[#allocation4 + $0x2c0] ss:$16 sps:$4 sm:$0xff]  }
  0xda   :  { %622 = vmatpush1.bf16.msra.mxu1 %v18021_v24  ;;  %917 = vmatpush1.bf16.msra.mxu0 %v18022_v25  ;;  %8346 = vst [vmem:[#allocation2 + $0x100] sm:$0xff] %v20888_v0  ;;  %v18052_v7 = vld [vmem:[#allocation4 + $0x2a4] ss:$16 sps:$4 sm:$0xff]   ;;  %v18053_v10 = vld [vmem:[#allocation4 + $0x188] ss:$16 sps:$4 sm:$0xff]   ;;  %s20826_s0 = scalar_lea.vmem %s16214_s29, 256 }
  0xdb   :  { %623 = vmatprep.subr.bf16.mxu1 %v18023_v26  ;;  %918 = vmatprep.subr.bf16.mxu0 %v18025_v27  ;;  %v736_v8 = vshrl.u32 %v382_v5, 16  ;;  %v739_v9 = vshll.u32 %v382_v5, 16  ;;  %v18061_v11 = vld [vmem:[#allocation4 + $0x16c] ss:$16 sps:$4 sm:$0xff]   ;;  %v18050_v14 = vld [vmem:[#allocation4 + $0x2a0] ss:$16 sps:$4 sm:$0xff]   ;;  %p20827_p10 = scmp.ne.s32.totalorder %s16214_s29, %s20826_s0  ;;  %p20832_p12 = scmp.lt.s32.totalorder %s20826_s0, %s20826_s0 }
  0xdc   :  { %v18058_v15 = vld [vmem:[#allocation4 + $0x284] ss:$16 sps:$4 sm:$0xff]   ;;  %v18059_v17 = vld [vmem:[#allocation4 + $0x168] ss:$16 sps:$4 sm:$0xff]   ;;  %v18067_v18 = vld [vmem:[#allocation4 + $0x14c] ss:$16 sps:$4 sm:$0xff]  }
  0xdd   :  { %v738_v12 = vrot.slane %v736_v8, 3  ;;  %v741_v13 = vrot.slane %v739_v9, 4  ;;  %v18056_v20 = vld [vmem:[#allocation4 + $0x280] ss:$16 sps:$4 sm:$0xff]   ;;  %v18064_v21 = vld [vmem:[#allocation4 + $0x264] ss:$16 sps:$4 sm:$0xff]   ;;  %p20833_p13 = por %p20832_p12, %p20831_p11 }
  0xde   :  { %624 = vmatpush1.bf16.msra.mxu1 %v18027_v32  ;;  %919 = vmatpush1.bf16.msra.mxu0 %v18028_v33  ;;  %v18065_v23 = vld [vmem:[#allocation4 + $0x148] ss:$16 sps:$4 sm:$0xff]   ;;  %v18073_v24 = vld [vmem:[#allocation4 + $0x12c] ss:$16 sps:$4 sm:$0xff]   ;;  %v18062_v25 = vld [vmem:[#allocation4 + $0x260] ss:$16 sps:$4 sm:$0xff]  }
  0xdf   :  { %625 = vmatprep.subr.bf16.mxu1 %v18029_v34  ;;  %920 = vmatprep.subr.bf16.mxu0 %v18031_v35  ;;  %v742_v16 = vor.u32 %v741_v13, %v738_v12  ;;  %v18070_v27 = vld [vmem:[#allocation4 + $0x244] ss:$16 sps:$4 sm:$0xff]   ;;  %v18071_v28 = vld [vmem:[#allocation4 + $0x128] ss:$16 sps:$4 sm:$0xff]   ;;  %v18079_v29 = vld [vmem:[#allocation4 + $0x10c] ss:$16 sps:$4 sm:$0xff]   ;;  %p20834_p0 = pnand %p20833_p13, %p20827_p10 }
  0xe0   :  { %v376_v41 = vld [vmem:[#allocation2 + $0x40] sm:$0xff]  ;;  %v18077_v33 = vld [vmem:[#allocation4 + $0x108] ss:$16 sps:$4 sm:$0xff]   ;;  %v18085_v35 = vld [vmem:[#allocation4 + $0xec] ss:$16 sps:$4 sm:$0xff]  }
  0xe1   :  { %v378_v42 = vld [vmem:[#allocation2 + $0xc0] sm:$0xff]  ;;  %v380_v43 = vpack.c.bf16 %v376_v41, %v375_v38  ;;  %v21088_v45 = vpack.c.bf16 %v20888_v0, %v376_v41  ;;  %v18088_v41 = vld [vmem:[#allocation4 + $0xcc] ss:$16 sps:$4 sm:$0xff]   ;;  %v18104_v9 = vld [vmem:[#allocation4 + $0x8] ss:$16 sps:$4 sm:$0xff]  }
  0xe2   :  { %626 = vmatpush1.bf16.msra.mxu1 %v18033_v36  ;;  %921 = vmatpush1.bf16.msra.mxu0 %v18034_v37  ;;  %v381_v44 = vpack.c.bf16 %v378_v42, %v20888_v0  ;;  %v21093_v63 = vpack.c.bf16 %v20888_v0, %v378_v42  ;;  %v1012_v22 = vld [vmem:[#allocation2 + $0x40] sm:$0xfe]  ;;  %v18100_v5 = vld [vmem:[#allocation4 + $0x4c] ss:$16 sps:$4 sm:$0xff]   ;;  %v18142_v13 = vld [vmem:[#allocation9 + $0x484] ss:$16 sps:$4 sm:$0xff]  }
  0xe3   :  { %664 = vmatprep.subr.bf16.mxu1 %v18037_v39  ;;  %1236 = vmatprep.subr.bf16.mxu0 %v18040_v40  ;;  %v719_v48 = vshrl.u32 %v380_v43, 16  ;;  %v722_v49 = vshll.u32 %v380_v43, 16  ;;  %v1017_v26 = vpack.c.bf16 %v20888_v0, %v1012_v22  ;;  %v18068_v30 = vld [vmem:[#allocation4 + $0x240] ss:$16 sps:$4 sm:$0xff]   ;;  %v18076_v32 = vld [vmem:[#allocation4 + $0x224] ss:$16 sps:$4 sm:$0xff]  }
  0xe4   :  { %v727_v50 = vshrl.u32 %v381_v44, 16  ;;  %v730_v51 = vshll.u32 %v381_v44, 16  ;;  %v18074_v34 = vld [vmem:[#allocation4 + $0x220] ss:$16 sps:$4 sm:$0xff]   ;;  %v18082_v36 = vld [vmem:[#allocation4 + $0x204] ss:$16 sps:$4 sm:$0xff]  }
  0xe5   :  { %644 = vmatmul.mubr.bf16.vlgmr.msra.gmra.mxu1 %v21088_v45  ;;  %v721_v52 = vrot.slane %v719_v48, 3  ;;  %v724_v53 = vrot.slane %v722_v49, 4  ;;  %v1057_v31 = vshll.u32 %v1017_v26, 16  ;;  %v1055_v37 = vshrl.u32 %v1017_v26, 16  ;;  %v1016_v39 = vld [vmem:[#allocation2 + $0x140] sm:$0x1] }
  0xe6   :  { %v729_v54 = vrot.slane %v727_v50, 3  ;;  %v732_v55 = vrot.slane %v730_v51, 4  ;;  %665 = vmatpush1.bf16.msra.mxu1 %v18035_v46  ;;  %653 = vmatprep.mubr.bf16.mxu1 %v20889_v1  ;;  %v1062_v38 = vshll.u32 %v21093_v63, 16  ;;  %v18083_v40 = vld [vmem:[#allocation4 + $0xe8] ss:$16 sps:$4 sm:$0xff]   ;;  %v1019_v46 = vpack.c.bf16 %v1016_v39, %v1016_v39 }
  0xe7   :  { %666 = vmatprep.subr.bf16.mxu1 %v18043_v47  ;;  %v725_v58 = vor.u32 %v724_v53, %v721_v52  ;;  %v1059_v0 = vrot.slane %v1057_v31, 1  ;;  %v18080_v42 = vld [vmem:[#allocation4 + $0x200] ss:$16 sps:$4 sm:$0xff]   ;;  %v18086_v47 = vld [vmem:[#allocation4 + $0xc8] ss:$16 sps:$4 sm:$0xff]   ;;  %v1066_v49 = vshrl.u32 %v21093_v63, 16 }
  0xe8   :  { %v733_v59 = vor.u32 %v732_v55, %v729_v54  ;;  %v1064_v44 = vrot.slane %v1062_v38, 1  ;;  %v18091_v48 = vld [vmem:[#allocation4 + $0xac] ss:$16 sps:$4 sm:$0xff]   ;;  %v18133_v50 = vld [vmem:[#allocation9 + $0x4e4] ss:$16 sps:$4 sm:$0xff]   ;;  %v1070_v53 = vshll.u32 %v1019_v46, 16 }
  0xe9   :  { %v1060_v43 = vor.u32 %v1059_v0, %v1055_v37  ;;  %v18089_v52 = vld [vmem:[#allocation4 + $0xa8] ss:$16 sps:$4 sm:$0xff]   ;;  %v18131_v54 = vld [vmem:[#allocation9 + $0x4e0] ss:$16 sps:$4 sm:$0xff]   ;;  %v18094_v55 = vld [vmem:[#allocation4 + $0x8c] ss:$16 sps:$4 sm:$0xff]  }
  0xea   :  { %v21096_v2 = vsel %vm717_vm0, %v725_v58, %v733_v59  ;;  %667 = vmatpush1.bf16.msra.mxu1 %v18041_v56  ;;  %v21104_v19 = vsel %vm717_vm0, %v733_v59, %v742_v16  ;;  %v18134_v56 = vld [vmem:[#allocation9 + $0x4c0] ss:$16 sps:$4 sm:$0xff]   ;;  %v1068_v58 = vor.u32 %v1066_v49, %v1064_v44  ;;  %v1072_v59 = vrot.slane %v1070_v53, 1  ;;  %v18106_v8 = vld [vmem:[#allocation4 + $0xc] ss:$16 sps:$4 sm:$0xff]  }
  0xeb   :  { %939 = vmatmul.mubr.bf16.vlgmr.msra.gmra.mxu0 %v21096_v2  ;;  %668 = vmatprep.subr.bf16.mxu1 %v18049_v57  ;;  %v21114_v51 = vsel %vm1053_vm1, %v1060_v43, %v1064_v44  ;;  %v18139_v57 = vld [vmem:[#allocation9 + $0x4a4] ss:$16 sps:$4 sm:$0xff]   ;;  %v18112_v12 = vld [vmem:[#allocation4 + $0x2cc] ss:$16 sps:$4 sm:$0xff]   ;;  %v18149_v26 = vld [vmem:[#allocation9 + $0x420] ss:$16 sps:$4 sm:$0xff]   ;;  %v366_v44 = vlaneseq }
  0xec   :  { %1237 = vmatpush1.bf16.msra.mxu0 %v18038_v60  ;;  %948 = vmatprep.mubr.bf16.mxu0 %v20889_v1  ;;  %v18092_v60 = vld [vmem:[#allocation4 + $0x88] ss:$16 sps:$4 sm:$0xff]   ;;  %v21121_v3 = vsel %vm1053_vm1, %v1068_v58, %v1072_v59  ;;  %v18115_v16 = vld [vmem:[#allocation4 + $0x2ac] ss:$16 sps:$4 sm:$0xff]   ;;  %v18161_v38 = vld [vmem:[#allocation9 + $0x5a0] ss:$16 sps:$4 sm:$0xff]  }
  0xed   :  { %1238 = vmatprep.subr.bf16.mxu0 %v18046_v61  ;;  %654 = vmatmul.mubr.bf16.gmra.mxu1 %v21093_v63  ;;  %v18097_v61 = vld [vmem:[#allocation4 + $0x6c] ss:$16 sps:$4 sm:$0xff]   ;;  %v18148_v22 = vld [vmem:[#allocation9 + $0x444] ss:$16 sps:$4 sm:$0xff]   ;;  %v18167_v43 = vld [vmem:[#allocation9 + $0x560] ss:$16 sps:$4 sm:$0xff]  }
  0xee   :  { %669 = vmatpush1.bf16.msra.mxu1 %v18047_v62  ;;  %696 = vmatprep.mubr.bf16.mxu1 %v20889_v1  ;;  %v18137_v62 = vld [vmem:[#allocation9 + $0x4a0] ss:$16 sps:$4 sm:$0xff]   ;;  %v18124_v31 = vld [vmem:[#allocation4 + $0x24c] ss:$16 sps:$4 sm:$0xff]   ;;  %v18163_v0 = vld [vmem:[#allocation9 + $0x5a4] ss:$16 sps:$4 sm:$0xff]  }
  0xef   :  { %670 = vmatprep.subr.bf16.mxu1 %v18055_v4  ;;  %v18095_v4 = vld [vmem:[#allocation4 + $0x68] ss:$16 sps:$4 sm:$0xff]   ;;  %v18130_v37 = vld [vmem:[#allocation4 + $0x20c] ss:$16 sps:$4 sm:$0xff]  }
  0xf0   :  { %1239 = vmatpush1.bf16.msra.mxu0 %v18044_v6  ;;  %v18098_v6 = vld [vmem:[#allocation4 + $0x48] ss:$16 sps:$4 sm:$0xff]  }
  0xf1   :  { %1240 = vmatprep.subr.bf16.mxu0 %v18052_v7  ;;  %v18101_v7 = vld [vmem:[#allocation4 + $0x28] ss:$16 sps:$4 sm:$0xff]  }
  0xf2   :  { %671 = vmatpush1.bf16.msra.mxu1 %v18053_v10  ;;  %v18109_v10 = vld [vmem:[#allocation4 + $0x2ec] ss:$16 sps:$4 sm:$0xff]   ;;  %v18128_v39 = vld [vmem:[#allocation4 + $0x208] ss:$16 sps:$4 sm:$0xff]  }
  0xf3   :  { %672 = vmatprep.subr.bf16.mxu1 %v18061_v11  ;;  %949 = vmatmul.mubr.bf16.gmra.mxu0 %v21104_v19  ;;  %v18107_v11 = vld [vmem:[#allocation4 + $0x2e8] ss:$16 sps:$4 sm:$0xff]  }
  0xf4   :  { %1241 = vmatpush1.bf16.msra.mxu0 %v18050_v14  ;;  %1268 = vmatprep.mubr.bf16.mxu0 %v20889_v1  ;;  %v18140_v14 = vld [vmem:[#allocation9 + $0x480] ss:$16 sps:$4 sm:$0xff]   ;;  %v18172_v46 = vld [vmem:[#allocation9 + $0x544] ss:$16 sps:$4 sm:$0xff]  }
  0xf5   :  { %1242 = vmatprep.subr.bf16.mxu0 %v18058_v15  ;;  %v18110_v15 = vld [vmem:[#allocation4 + $0x2c8] ss:$16 sps:$4 sm:$0xff]  }
  0xf6   :  { %673 = vmatpush1.bf16.msra.mxu1 %v18059_v17  ;;  %v18145_v17 = vld [vmem:[#allocation9 + $0x464] ss:$16 sps:$4 sm:$0xff]  }
  0xf7   :  { %674 = vmatprep.subr.bf16.mxu1 %v18067_v18  ;;  %v18143_v18 = vld [vmem:[#allocation9 + $0x460] ss:$16 sps:$4 sm:$0xff]   ;;  %v18175_v49 = vld [vmem:[#allocation9 + $0x524] ss:$16 sps:$4 sm:$0xff]  }
  0xf8   :  { %1243 = vmatpush1.bf16.msra.mxu0 %v18056_v20  ;;  %v18113_v20 = vld [vmem:[#allocation4 + $0x2a8] ss:$16 sps:$4 sm:$0xff]  }
  0xf9   :  { %1244 = vmatprep.subr.bf16.mxu0 %v18064_v21  ;;  %v18118_v21 = vld [vmem:[#allocation4 + $0x28c] ss:$16 sps:$4 sm:$0xff]   ;;  %v18187_v59 = vld [vmem:[#allocation9 + $0x6c4] ss:$16 sps:$4 sm:$0xff]  }
  0xfa   :  { %675 = vmatpush1.bf16.msra.mxu1 %v18065_v23  ;;  %v18146_v23 = vld [vmem:[#allocation9 + $0x440] ss:$16 sps:$4 sm:$0xff]  }
  0xfb   :  { %676 = vmatprep.subr.bf16.mxu1 %v18073_v24  ;;  %v18116_v24 = vld [vmem:[#allocation4 + $0x288] ss:$16 sps:$4 sm:$0xff]  }
  0xfc   :  { %1245 = vmatpush1.bf16.msra.mxu0 %v18062_v25  ;;  %v18121_v25 = vld [vmem:[#allocation4 + $0x26c] ss:$16 sps:$4 sm:$0xff]  }
  0xfd   :  { %1246 = vmatprep.subr.bf16.mxu0 %v18070_v27  ;;  %v18154_v27 = vld [vmem:[#allocation9 + $0x404] ss:$16 sps:$4 sm:$0xff]  }
  0xfe   :  { %677 = vmatpush1.bf16.msra.mxu1 %v18071_v28  ;;  %v18152_v28 = vld [vmem:[#allocation9 + $0x400] ss:$16 sps:$4 sm:$0xff]  }
  0xff   :  { %678 = vmatprep.subr.bf16.mxu1 %v18079_v29  ;;  %v18157_v29 = vld [vmem:[#allocation9 + $0x5e4] ss:$16 sps:$4 sm:$0xff]  }
 0x100   :  { %1247 = vmatpush1.bf16.msra.mxu0 %v18068_v30  ;;  %v18119_v30 = vld [vmem:[#allocation4 + $0x268] ss:$16 sps:$4 sm:$0xff]  }
 0x101   :  { %1248 = vmatprep.subr.bf16.mxu0 %v18076_v32  ;;  %v18155_v32 = vld [vmem:[#allocation9 + $0x5e0] ss:$16 sps:$4 sm:$0xff]  }
 0x102   :  { %679 = vmatpush1.bf16.msra.mxu1 %v18077_v33  ;;  %v18122_v33 = vld [vmem:[#allocation4 + $0x248] ss:$16 sps:$4 sm:$0xff]  }
 0x103   :  { %959 = vmatprep.subr.bf16.mxu1 %v18085_v35  ;;  %v18160_v35 = vld [vmem:[#allocation9 + $0x5c4] ss:$16 sps:$4 sm:$0xff]  }
 0x104   :  { %1249 = vmatpush1.bf16.msra.mxu0 %v18074_v34  ;;  %v18158_v34 = vld [vmem:[#allocation9 + $0x5c0] ss:$16 sps:$4 sm:$0xff]  }
 0x105   :  { %1250 = vmatprep.subr.bf16.mxu0 %v18082_v36  ;;  %697 = vmatmul.mubr.bf16.vlgmr.msra.gmra.mxu1 %v21088_v45  ;;  %v18136_v45 = vld [vmem:[#allocation9 + $0x4c4] ss:$16 sps:$4 sm:$0xff]  }
 0x106   :  { %960 = vmatpush1.bf16.msra.mxu1 %v18083_v40  ;;  %706 = vmatprep.mubr.bf16.mxu1 %v20889_v1  ;;  %v18125_v36 = vld [vmem:[#allocation4 + $0x228] ss:$16 sps:$4 sm:$0xff]  }
 0x107   :  { %961 = vmatprep.subr.bf16.mxu1 %v18088_v41  ;;  %v18166_v40 = vld [vmem:[#allocation9 + $0x584] ss:$16 sps:$4 sm:$0xff]   ;;  %v18164_v41 = vld [vmem:[#allocation9 + $0x580] ss:$16 sps:$4 sm:$0xff]  }
 0x108   :  { %1251 = vmatpush1.bf16.msra.mxu0 %v18080_v42  ;;  %v18169_v42 = vld [vmem:[#allocation9 + $0x564] ss:$16 sps:$4 sm:$0xff]  }
 0x109   :  { %2405 = vmatprep.subr.bf16.mxu0 %v18133_v50  ;;  %v18173_v50 = vld [vmem:[#allocation9 + $0x520] ss:$16 sps:$4 sm:$0xff]  }
 0x10a   :  { %962 = vmatpush1.bf16.msra.mxu1 %v18086_v47  ;;  %v18170_v47 = vld [vmem:[#allocation9 + $0x540] ss:$16 sps:$4 sm:$0xff]  }
 0x10b   :  { %1269 = vmatmul.mubr.bf16.vlgmr.msra.gmra.mxu0 %v21114_v51  ;;  %963 = vmatprep.subr.bf16.mxu1 %v18091_v48  ;;  %v21131_v48 = vshrl.u32 %v366_v44, 7 }
 0x10c   :  { %1278 = vmatprep.mubr.bf16.mxu0 %v20889_v1  ;;  %2406 = vmatpush1.bf16.msra.mxu0 %v18131_v54 }
 0x10d   :  { %707 = vmatmul.mubr.bf16.gmra.mxu1 %v21093_v63  ;;  %2407 = vmatprep.subr.bf16.mxu0 %v18136_v45  ;;  %v18103_v63 = vld [vmem:[#allocation4 + $0x2c] ss:$16 sps:$4 sm:$0xff]   ;;  %v369_v54 = vadd.s32 16, %v21131_v48  ;;  %v18181_v45 = vld [vmem:[#allocation9 + $0x6e4] ss:$16 sps:$4 sm:$0xff]  }
 0x10e   :  { %964 = vmatpush1.bf16.msra.mxu1 %v18089_v52  ;;  %991 = vmatprep.mubr.bf16.mxu1 %v20889_v1  ;;  %v21134_v52 = vand.u32 15, %v21131_v48 }
 0x10f   :  { %965 = vmatprep.subr.bf16.mxu1 %v18094_v55  ;;  %v21152_v58 = vand.u32 15, %v369_v54  ;;  %v21185_v54 = vld [vmem:[#allocation7] sm:$0xf] }
 0x110   :  { %2408 = vmatpush1.bf16.msra.mxu0 %v18134_v56  ;;  %vm1412_vm2 = vcmp.ge.s32.totalorder %v21134_v52, 1  ;;  %vm4982_vm3 = vcmp.le.s32.totalorder %v21134_v52, 3  ;;  %vm12985_vm4 = vcmp.le.s32.totalorder %v21134_v52, 1  ;;  %v18184_v56 = vld [vmem:[#allocation9 + $0x4ec] ss:$16 sps:$4 sm:$0xff]   ;;  %vm1416_vm12 = vcmp.le.s32.totalorder %v21134_v52, 5 }
 0x111   :  { %2409 = vmatprep.subr.bf16.mxu0 %v18139_v57  ;;  %vm21141_vm5 = vmand %vm1412_vm2, %vm4982_vm3  ;;  %v18179_v57 = vld [vmem:[#allocation9 + $0x6e0] ss:$16 sps:$4 sm:$0xff]   ;;  %vm1414_vm7 = vcmp.ge.s32.totalorder %v21152_v58, 1  ;;  %vm4984_vm8 = vcmp.le.s32.totalorder %v21152_v58, 3  ;;  %vm12987_vm9 = vcmp.le.s32.totalorder %v21152_v58, 1  ;;  %vm1418_vm14 = vcmp.le.s32.totalorder %v21152_v58, 5 }
 0x112   :  { %966 = vmatpush1.bf16.msra.mxu1 %v18092_v60  ;;  %vm21148_vm6 = vmand %vm1412_vm2, %vm12985_vm4  ;;  %v18185_v60 = vld [vmem:[#allocation9 + $0x6c0] ss:$16 sps:$4 sm:$0xff]  }
 0x113   :  { %1279 = vmatmul.mubr.bf16.gmra.mxu0 %v21121_v3  ;;  %967 = vmatprep.subr.bf16.mxu1 %v18097_v61  ;;  %vm21159_vm10 = vmand %vm1414_vm7, %vm4984_vm8  ;;  %vm4913_vm8 = vcmask 1045504  }
 0x114   :  { %2410 = vmatpush1.bf16.msra.mxu0 %v18137_v62  ;;  %v21163_v62 = vld [vmem:[#allocation3 + $0x60] sm:$0x7f]  ;;  %vm21167_vm11 = vmand %vm1414_vm7, %vm12987_vm9 }
 0x115   :  { %2411 = vmatprep.subr.bf16.mxu0 %v18142_v13  ;;  %v18217_v13 = vld [vmem:[#allocation9 + $0x624] ss:$16 sps:$4 sm:$0xff]   ;;  %vm21204_vm13 = vmand %vm1412_vm2, %vm1416_vm12  ;;  %vm20890_vm2 = vmmov 1  }
 0x116   :  { %968 = vmatpush1.bf16.msra.mxu1 %v18095_v4  ;;  %v21171_v4 = vld [vmem:[#allocation3 + $0xc8] sm:$0x7f]  ;;  %vm21222_vm15 = vmand %vm1414_vm7, %vm1418_vm14  ;;  %vm4828_vm7 = vcmask 1046528  }
 0x117   :  { %969 = vmatprep.subr.bf16.mxu1 %v18100_v5  ;;  %v21173_v5 = vld [vmem:[#allocation2 + $0x20] sm:$0xff]  ;;  %vm21229_vm3 = vmpackc.low %vm20890_vm2, %vm21204_vm13 }
 0x118   :  { %2412 = vmatpush1.bf16.msra.mxu0 %v18140_v14  ;;  %5026 = vst [vmem:[#allocation3 + $0x60] sm:$0xff] %v21173_v5  ;;  %5027 = vst [vmem:[#allocation3 + $0xc8] sm:$0xff] %v21173_v5  ;;  %v18215_v14 = vld [vmem:[#allocation9 + $0x620] ss:$16 sps:$4 sm:$0xff]  }
 0x119   :  { %2413 = vmatprep.subr.bf16.mxu0 %v18145_v17  ;;  %v18227_v17 = vld [vmem:[#allocation9 + $0x7e0] ss:$16 sps:$4 sm:$0xff]   ;;  %vm21253_vm4 = vmpackc.low %vm20890_vm2, %vm21222_vm15 }
 0x11a   :  { %970 = vmatpush1.bf16.msra.mxu1 %v18098_v6  ;;  %v18193_v6 = vld [vmem:[#allocation9 + $0x6a4] ss:$16 sps:$4 sm:$0xff]   ;;  %vm21654_vm9 = vmpackc.low %vm20890_vm2, %vm21141_vm5 }
 0x11b   :  { %971 = vmatprep.subr.bf16.mxu1 %v18103_v63  ;;  %v18191_v63 = vld [vmem:[#allocation9 + $0x6a0] ss:$16 sps:$4 sm:$0xff]   ;;  %vm21670_vm12 = vmpackc.low %vm20890_vm2, %vm21159_vm10 }
 0x11c   :  { %2414 = vmatpush1.bf16.msra.mxu0 %v18143_v18  ;;  %v18229_v18 = vld [vmem:[#allocation9 + $0x7e4] ss:$16 sps:$4 sm:$0xff]  }
 0x11d   :  { %2415 = vmatprep.subr.bf16.mxu0 %v18148_v22  ;;  %v18239_v22 = vld [vmem:[#allocation9 + $0x7a0] ss:$16 sps:$4 sm:$0xff]  }
 0x11e   :  { %972 = vmatpush1.bf16.msra.mxu1 %v18101_v7  ;;  %v18199_v7 = vld [vmem:[#allocation9 + $0x684] ss:$16 sps:$4 sm:$0xff]  }
 0x11f   :  { %973 = vmatprep.subr.bf16.mxu1 %v18106_v8  ;;  %v18197_v8 = vld [vmem:[#allocation9 + $0x680] ss:$16 sps:$4 sm:$0xff]  }
 0x120   :  { %2416 = vmatpush1.bf16.msra.mxu0 %v18146_v23  ;;  %v18241_v23 = vld [vmem:[#allocation9 + $0x7a4] ss:$16 sps:$4 sm:$0xff]  }
 0x122   :  { %974 = vmatpush1.bf16.msra.mxu1 %v18104_v9  ;;  %v18205_v9 = vld [vmem:[#allocation9 + $0x664] ss:$16 sps:$4 sm:$0xff]  }
 0x123   :  { %1289 = vmatprep.subr.bf16.mxu1 %v18109_v10  ;;  %v18203_v10 = vld [vmem:[#allocation9 + $0x660] ss:$16 sps:$4 sm:$0xff]  }
 0x125   :  { %992 = vmatmul.mubr.bf16.vlgmr.msra.gmra.mxu1 %v21096_v2  ;;  %v18151_v2 = vld [vmem:[#allocation9 + $0x424] ss:$16 sps:$4 sm:$0xff]  }
 0x126   :  { %1290 = vmatpush1.bf16.msra.mxu1 %v18107_v11  ;;  %1001 = vmatprep.mubr.bf16.mxu1 %v20889_v1  ;;  %v18211_v11 = vld [vmem:[#allocation9 + $0x644] ss:$16 sps:$4 sm:$0xff]  }
 0x127   :  { %1291 = vmatprep.subr.bf16.mxu1 %v18112_v12  ;;  %2417 = vmatprep.subr.bf16.mxu0 %v18151_v2  ;;  %v18209_v12 = vld [vmem:[#allocation9 + $0x640] ss:$16 sps:$4 sm:$0xff]  }
 0x128   :  { %2418 = vmatpush1.bf16.msra.mxu0 %v18149_v26  ;;  %v18245_v2 = vld [vmem:[#allocation9 + $0x780] ss:$16 sps:$4 sm:$0xff]  }
 0x129   :  { %2419 = vmatprep.subr.bf16.mxu0 %v18154_v27  ;;  %v18251_v26 = vld [vmem:[#allocation9 + $0x760] ss:$16 sps:$4 sm:$0xff]   ;;  %v18259_v27 = vld [vmem:[#allocation9 + $0x744] ss:$16 sps:$4 sm:$0xff]  }
 0x12a   :  { %1292 = vmatpush1.bf16.msra.mxu1 %v18110_v15  ;;  %v18221_v15 = vld [vmem:[#allocation9 + $0x600] ss:$16 sps:$4 sm:$0xff]  }
 0x12b   :  { %1293 = vmatprep.subr.bf16.mxu1 %v18115_v16  ;;  %v18223_v16 = vld [vmem:[#allocation9 + $0x604] ss:$16 sps:$4 sm:$0xff]  }
 0x12c   :  { %2420 = vmatpush1.bf16.msra.mxu0 %v18152_v28  ;;  %v18257_v28 = vld [vmem:[#allocation9 + $0x740] ss:$16 sps:$4 sm:$0xff]  }
 0x12d   :  { %1002 = vmatmul.mubr.bf16.gmra.mxu1 %v21104_v19  ;;  %v18127_v19 = vld [vmem:[#allocation4 + $0x22c] ss:$16 sps:$4 sm:$0xff]   ;;  %2421 = vmatprep.subr.bf16.mxu0 %v18157_v29  ;;  %v18265_v29 = vld [vmem:[#allocation9 + $0x724] ss:$16 sps:$4 sm:$0xff]  }
 0x12e   :  { %1294 = vmatpush1.bf16.msra.mxu1 %v18113_v20  ;;  %1321 = vmatprep.mubr.bf16.mxu1 %v20889_v1  ;;  %v18233_v20 = vld [vmem:[#allocation9 + $0x7c0] ss:$16 sps:$4 sm:$0xff]  }
 0x12f   :  { %1295 = vmatprep.subr.bf16.mxu1 %v18118_v21  ;;  %v18235_v21 = vld [vmem:[#allocation9 + $0x7c4] ss:$16 sps:$4 sm:$0xff]  }
 0x130   :  { %2422 = vmatpush2.bf16.msra.mxu0 %v18155_v32  ;;  %v18269_v32 = vld [vmem:[#allocation9 + $0x700] ss:$16 sps:$4 sm:$0xff]  }
 0x131   :  { %2423 = vmatprep.subr.bf16.mxu0 %v18160_v35 }
 0x132   :  { %1296 = vmatpush1.bf16.msra.mxu1 %v18116_v24  ;;  %v18247_v24 = vld [vmem:[#allocation9 + $0x784] ss:$16 sps:$4 sm:$0xff]  }
 0x133   :  { %1297 = vmatprep.subr.bf16.mxu1 %v18121_v25  ;;  %v18253_v25 = vld [vmem:[#allocation9 + $0x764] ss:$16 sps:$4 sm:$0xff]  }
 0x134   :  { %2424 = vmatpush2.bf16.msra.mxu0 %v18158_v34  ;;  %v21180_v34 = vld [vmem:[#allocation3 + $0x38] sm:$0x7f] }
 0x135   :  { %2425 = vmatprep.subr.bf16.mxu0 %v18163_v0  ;;  %5029 = vst [vmem:[#allocation3 + $0x38] sm:$0xff] %v21173_v5 }
 0x136   :  { %1298 = vmatpush1.bf16.msra.mxu1 %v18119_v30  ;;  %v18263_v30 = vld [vmem:[#allocation9 + $0x720] ss:$16 sps:$4 sm:$0xff]  }
 0x137   :  { %1299 = vmatprep.subr.bf16.mxu1 %v18124_v31  ;;  %v18271_v31 = vld [vmem:[#allocation9 + $0x704] ss:$16 sps:$4 sm:$0xff]  }
 0x138   :  { %2426 = vmatpush2.bf16.msra.mxu0 %v18161_v38 }
 0x139   :  { %2427 = vmatprep.subr.bf16.mxu0 %v18166_v40 }
 0x13a   :  { %1300 = vmatpush1.bf16.msra.mxu1 %v18122_v33  ;;  %v18277_v33 = vld [vmem:[#allocation9 + $0x6ec] ss:$16 sps:$4 sm:$0xff]  }
 0x13b   :  { %1301 = vmatprep.subr.bf16.mxu1 %v18127_v19  ;;  %v21177_v19 = vld [vmem:[#allocation3 + $0x28] sm:$0x7f] }
 0x13c   :  { %2428 = vmatpush2.bf16.msra.mxu0 %v18164_v41  ;;  %5028 = vst [vmem:[#allocation3 + $0x28] sm:$0xff] %v21173_v5 }
 0x13d   :  { %2429 = vmatprep.subr.bf16.mxu0 %v18169_v42 }
 0x13e   :  { %1302 = vmatpush1.bf16.msra.mxu1 %v18125_v36 }
 0x13f   :  { %1303 = vmatprep.subr.bf16.mxu1 %v18130_v37 }
 0x140   :  { %2430 = vmatpush2.bf16.msra.mxu0 %v18167_v43 }
 0x141   :  { %2431 = vmatprep.subr.bf16.mxu0 %v18172_v46 }
 0x142   :  { %1304 = vmatpush1.bf16.msra.mxu1 %v18128_v39 }
 0x143   :  { %2458 = vmatprep.subr.bf16.mxu1 %v18181_v45  ;;  %v21188_v45 = vsub.s32 0, %v21131_v48 }
 0x144   :  { %2432 = vmatpush2.bf16.msra.mxu0 %v18170_v47 }
 0x145   :  { %1322 = vmatmul.mubr.bf16.vlgmr.msra.gmra.mxu1 %v21114_v51  ;;  %2433 = vmatprep.subr.bf16.mxu0 %v18175_v49  ;;  %v18176_v51 = vld [vmem:[#allocation9 + $0x500] ss:$16 sps:$4 sm:$0xff]  }
 0x146   :  { %1331 = vmatprep.mubr.bf16.mxu1 %v20889_v1  ;;  %v18178_v1 = vld [vmem:[#allocation9 + $0x504] ss:$16 sps:$4 sm:$0xff]   ;;  %2459 = vmatpush1.bf16.msra.mxu1 %v18179_v57  ;;  %v21193_v57 = vsub.s32 1, %v21131_v48 }
 0x147   :  { %2460 = vmatprep.subr.bf16.mxu1 %v18187_v59 }
 0x148   :  { %2434 = vmatpush2.bf16.msra.mxu0 %v18173_v50 }
 0x149   :  { %2435 = vmatprep.subr.bf16.mxu0 %v18178_v1 }
 0x14a   :  { %2461 = vmatpush1.bf16.msra.mxu1 %v18185_v60 }
 0x14b   :  { %2462 = vmatprep.subr.bf16.mxu1 %v18193_v6  ;;  %v1363_v6 = vrot.slane %v21185_v54, %v21188_v45 }
 0x14c   :  { %2436 = vmatpush2.bf16.msra.mxu0 %v18176_v51 }
 0x14d   :  { %1332 = vmatmul.mubr.bf16.gmra.mxu1 %v21121_v3  ;;  %2511 = vmatprep.subr.bf16.mxu0 %v18184_v56 }
 0x14e   :  { %2463 = vmatpush1.bf16.msra.mxu1 %v18191_v63 }
 0x14f   :  { %2464 = vmatprep.subr.bf16.mxu1 %v18199_v7 }
 0x152   :  { %2465 = vmatpush1.bf16.msra.mxu1 %v18197_v8 }
 0x153   :  { %2466 = vmatprep.subr.bf16.mxu1 %v18205_v9 }
 0x156   :  { %2467 = vmatpush1.bf16.msra.mxu1 %v18203_v10  ;;  %v1367_v10 = vrot.slane %v21185_v54, %v21193_v57 }
 0x157   :  { %2468 = vmatprep.subr.bf16.mxu1 %v18211_v11 }
 0x15a   :  { %2469 = vmatpush1.bf16.msra.mxu1 %v18209_v12 }
 0x15b   :  { %2470 = vmatprep.subr.bf16.mxu1 %v18217_v13 }
 0x15e   :  { %2471 = vmatpush1.bf16.msra.mxu1 %v18215_v14 }
 0x15f   :  { %2472 = vmatprep.subr.bf16.mxu1 %v18223_v16 }
 0x162   :  { %2473 = vmatpush1.bf16.msra.mxu1 %v18221_v15 }
 0x163   :  { %2474 = vmatprep.subr.bf16.mxu1 %v18229_v18 }
 0x166   :  { %2475 = vmatpush2.bf16.msra.mxu1 %v18227_v17 }
 0x167   :  { %2476 = vmatprep.subr.bf16.mxu1 %v18235_v21 }
 0x16a   :  { %2477 = vmatpush2.bf16.msra.mxu1 %v18233_v20 }
 0x16b   :  { %2478 = vmatprep.subr.bf16.mxu1 %v18241_v23  ;;  %v1464_v23 = vld [vmem:[#allocation3 + $0xb0] sm:$0x80] }
 0x16e   :  { %2479 = vmatpush2.bf16.msra.mxu1 %v18239_v22 }
 0x16f   :  { %2480 = vmatprep.subr.bf16.mxu1 %v18247_v24 }
 0x172   :  { %2481 = vmatpush2.bf16.msra.mxu1 %v18245_v2 }
 0x173   :  { %2482 = vmatprep.subr.bf16.mxu1 %v18253_v25 }
 0x176   :  { %2483 = vmatpush2.bf16.msra.mxu1 %v18251_v26  ;;  %v18182_v26 = vld [vmem:[#allocation9 + $0x4e8] ss:$16 sps:$4 sm:$0xff]  }
 0x177   :  { %2484 = vmatprep.subr.bf16.mxu1 %v18259_v27 }
 0x17a   :  { %2485 = vmatpush2.bf16.msra.mxu1 %v18257_v28  ;;  %v1492_v28 = vpack.c.bf16 %v21163_v62, %v21163_v62 }
 0x17b   :  { %2486 = vmatprep.subr.bf16.mxu1 %v18265_v29 }
 0x17c   :  { %v2689_v58 = vshll.u32 %v1492_v28, 16 }
 0x17e   :  { %2487 = vmatpush2.bf16.msra.mxu1 %v18263_v30 }
 0x17f   :  { %2488 = vmatprep.subr.bf16.mxu1 %v18271_v31 }
 0x182   :  { %2489 = vmatpush2.bf16.msra.mxu1 %v18269_v32 }
 0x183   :  { %2564 = vmatprep.subr.bf16.mxu1 %v18277_v33 }
 0x1a5   :  { %v645_v35 = vpop.f32.mrf.mxu1 }
 0x1a7   :  { %v647_v36 = vpop.f32.mrf.mxu1 }
 0x1a9   :  { %v649_v37 = vpop.f32.mrf.mxu1 }
 0x1aa   :  { %v18190_v37 = vld [vmem:[#allocation9 + $0x4cc] ss:$16 sps:$4 sm:$0xff]  }
 0x1ab   :  { %v940_v0 = vpop.f32.mrf.mxu0  ;;  %v651_v38 = vpop.f32.mrf.mxu1 }
 0x1ac   :  { %v941_v60 = vadd.f32 %v940_v0, %v645_v35 }
 0x1ad   :  { %v942_v39 = vpop.f32.mrf.mxu0  ;;  %v655_v40 = vpop.f32.mrf.mxu1 }
 0x1ae   :  { %v943_v8 = vadd.f32 %v942_v39, %v647_v36 }
 0x1af   :  { %v944_v41 = vpop.f32.mrf.mxu0  ;;  %v657_v42 = vpop.f32.mrf.mxu1 }
 0x1b1   :  { %v946_v43 = vpop.f32.mrf.mxu0  ;;  %v659_v44 = vpop.f32.mrf.mxu1 }
 0x1b3   :  { %v661_v46 = vpop.f32.mrf.mxu1  ;;  %v950_v47 = vpop.f32.mrf.mxu0 }
 0x1b4   :  { %v951_v24 = vadd.f32 %v950_v47, %v655_v40  ;;  %v2686_v40 = vshrl.u32 %v1492_v28, 16  ;;  %v18188_v46 = vld [vmem:[#allocation9 + $0x4c8] ss:$16 sps:$4 sm:$0xff]  }
 0x1b5   :  { %v952_v49 = vpop.f32.mrf.mxu0  ;;  %v18206_v28 = vld [vmem:[#allocation9 + $0x468] ss:$16 sps:$4 sm:$0xff]  }
 0x1b6   :  { %v953_v29 = vadd.f32 %v952_v49, %v657_v42 }
 0x1b7   :  { %v954_v50 = vpop.f32.mrf.mxu0 }
 0x1b9   :  { %v956_v1 = vpop.f32.mrf.mxu0 }
 0x1c5   :  { %v21183_v51 = vpop.f32.mrf.mxu1 }
 0x1c7   :  { %v21190_v56 = vpop.f32.mrf.mxu1 }
 0x1c9   :  { %v702_v59 = vpop.f32.mrf.mxu1 }
 0x1ca   :  { %v18196_v59 = vld [vmem:[#allocation9 + $0x4ac] ss:$16 sps:$4 sm:$0xff]  }
 0x1cb   :  { %v1270_v63 = vpop.f32.mrf.mxu0  ;;  %v704_v7 = vpop.f32.mrf.mxu1 }
 0x1cc   :  { %v1342_v9 = vadd.f32 %v1270_v63, %v941_v60  ;;  %v2691_v63 = vrot.slane %v2689_v58, 4  ;;  %v18224_v58 = vld [vmem:[#allocation9 + $0x408] ss:$16 sps:$4 sm:$0xff]  }
 0x1cd   :  { %v1272_v11 = vpop.f32.mrf.mxu0  ;;  %v21200_v12 = vpop.f32.mrf.mxu1 }
 0x1ce   :  { %v1380_v13 = vadd.f32 %v1363_v6, %v1342_v9  ;;  %v1343_v15 = vadd.f32 %v1272_v11, %v943_v8  ;;  %v18194_v8 = vld [vmem:[#allocation9 + $0x4a8] ss:$16 sps:$4 sm:$0xff]  }
 0x1cf   :  { %v1274_v16 = vpop.f32.mrf.mxu0  ;;  %v21208_v17 = vpop.f32.mrf.mxu1 }
 0x1d0   :  { %v1396_v18 = vmax.f32 %v1380_v13, 0.0  ;;  %v1381_v20 = vadd.f32 %v1367_v10, %v1343_v15  ;;  %v18202_v15 = vld [vmem:[#allocation9 + $0x48c] ss:$16 sps:$4 sm:$0xff]  }
 0x1d1   :  { %v1276_v21 = vpop.f32.mrf.mxu0  ;;  %v712_v22 = vpop.f32.mrf.mxu1  ;;  %v18400_v16 = vld [vmem:[#allocation9 + $0x6c] ss:$16 sps:$4 sm:$0xff]  }
 0x1d2   :  { %v1432_v2 = vsel %vm21204_vm13, %v1396_v18, 0.0  ;;  %v1397_v25 = vmax.f32 %v1381_v20, 0.0  ;;  %v21237_v43 = vpack.c.bf16 %v21173_v5, %v1396_v18 }
 0x1d3   :  { %1448 = vst [vmem:[#allocation3 + $0x108] sm:$0xff] %v1432_v2  ;;  %v1280_v52 = vpop.f32.mrf.mxu0  ;;  %v714_v27 = vpop.f32.mrf.mxu1  ;;  %v1484_v32 = vpack.c.bf16 %v1432_v2, %v1464_v23 }
 0x1d4   :  { %v21217_v30 = vsel %vm21204_vm13, %v1397_v25, 0.0  ;;  %v1350_v31 = vadd.f32 %v1280_v52, %v951_v24  ;;  %v20207_v38 = vpack.c.bf16 %v21173_v5, %v1397_v25  ;;  %v18200_v24 = vld [vmem:[#allocation9 + $0x488] ss:$16 sps:$4 sm:$0xff]   ;;  %v18208_v52 = vld [vmem:[#allocation9 + $0x46c] ss:$16 sps:$4 sm:$0xff]  }
 0x1d5   :  { %1449 = vst [vmem:[#allocation3 + $0x110] sm:$0xff] %v21217_v30  ;;  %v1282_v33 = vpop.f32.mrf.mxu0  ;;  %v2618_v44 = vshrl.u32 %v1484_v32, 16  ;;  %v2621_v49 = vshll.u32 %v1484_v32, 16 }
 0x1d6   :  { %v1388_v35 = vadd.f32 %v1363_v6, %v1350_v31  ;;  %v1351_v36 = vadd.f32 %v1282_v33, %v953_v29  ;;  %20208 = vmatprep.mubr.msk.bf16.mxu0 %vm21229_vm3, %v20207_v38  ;;  %v2688_v6 = vrot.slane %v2686_v40, 3  ;;  %v18214_v29 = vld [vmem:[#allocation9 + $0x44c] ss:$16 sps:$4 sm:$0xff]   ;;  %v18212_v33 = vld [vmem:[#allocation9 + $0x448] ss:$16 sps:$4 sm:$0xff]  }
 0x1d7   :  { %v1284_v39 = vpop.f32.mrf.mxu0  ;;  %20211 = vmatmul.mubr.msk.bf16.vlgmr.msra.gmra.mxu0 %vm21229_vm3, %v21237_v43  ;;  %v2620_v9 = vrot.slane %v2618_v44, 3  ;;  %v2623_v13 = vrot.slane %v2621_v49, 4  ;;  %v18236_v49 = vld [vmem:[#allocation9 + $0x5c8] ss:$16 sps:$4 sm:$0xff]  }
 0x1d8   :  { %v1404_v41 = vmax.f32 %v1388_v35, 0.0  ;;  %v1389_v42 = vadd.f32 %v1367_v10, %v1351_v36  ;;  %2512 = vmatpush1.bf16.msra.mxu0 %v18182_v26  ;;  %v2692_v22 = vor.u32 %v2691_v63, %v2688_v6  ;;  %v18220_v35 = vld [vmem:[#allocation9 + $0x42c] ss:$16 sps:$4 sm:$0xff]   ;;  %v18248_v6 = vld [vmem:[#allocation9 + $0x588] ss:$16 sps:$4 sm:$0xff]   ;;  %v21281_v63 = vsub.s32 3, %v21131_v48 }
 0x1d9   :  { %v1286_v47 = vpop.f32.mrf.mxu0  ;;  %2513 = vmatprep.subr.bf16.mxu0 %v18190_v37  ;;  %v2624_v2 = vor.u32 %v2623_v13, %v2620_v9  ;;  %v18226_v39 = vld [vmem:[#allocation9 + $0x40c] ss:$16 sps:$4 sm:$0xff]   ;;  %v18254_v13 = vld [vmem:[#allocation9 + $0x568] ss:$16 sps:$4 sm:$0xff]  }
 0x1da   :  { %v1440_v50 = vsel %vm21222_vm15, %v1404_v41, 0.0  ;;  %v1405_v1 = vmax.f32 %v1389_v42, 0.0  ;;  %v21264_v23 = vpack.c.bf16 %v21173_v5, %v1404_v41  ;;  %v18232_v42 = vld [vmem:[#allocation9 + $0x5ec] ss:$16 sps:$4 sm:$0xff]  }
 0x1db   :  { %1456 = vst [vmem:[#allocation3 + $0xe8] sm:$0xff] %v1440_v50  ;;  %v1488_v60 = vpack.c.bf16 %v1440_v50, %v21173_v5  ;;  %v18238_v47 = vld [vmem:[#allocation9 + $0x5cc] ss:$16 sps:$4 sm:$0xff]  }
 0x1dc   :  { %v21247_v7 = vsel %vm21222_vm15, %v1405_v1, 0.0  ;;  %2514 = vmatpush1.bf16.msra.mxu0 %v18188_v46  ;;  %v21258_v18 = vpack.c.bf16 %v21173_v5, %v1405_v1  ;;  %v18230_v46 = vld [vmem:[#allocation9 + $0x5e8] ss:$16 sps:$4 sm:$0xff]   ;;  %v18244_v50 = vld [vmem:[#allocation9 + $0x5ac] ss:$16 sps:$4 sm:$0xff]  }
 0x1dd   :  { %1457 = vst [vmem:[#allocation3 + $0xf8] sm:$0xff] %v21247_v7  ;;  %v2626_v10 = vshrl.u32 %v1488_v60, 16  ;;  %v2629_v11 = vshll.u32 %v1488_v60, 16  ;;  %2515 = vmatprep.subr.bf16.mxu0 %v18196_v59  ;;  %v18242_v1 = vld [vmem:[#allocation9 + $0x5a8] ss:$16 sps:$4 sm:$0xff]   ;;  %v21278_v60 = vsub.s32 2, %v21131_v48 }
 0x1de   :  { %20214 = vmatprep.mubr.msk.bf16.mxu0 %vm21253_vm4, %v21258_v18  ;;  %v18250_v59 = vld [vmem:[#allocation9 + $0x58c] ss:$16 sps:$4 sm:$0xff]  }
 0x1df   :  { %v2628_v20 = vrot.slane %v2626_v10, 3  ;;  %v2631_v21 = vrot.slane %v2629_v11, 4  ;;  %20217 = vmatmul.mubr.msk.bf16.gmra.mxu0 %vm21253_vm4, %v21264_v23  ;;  %v1371_v10 = vrot.slane %v21185_v54, %v21278_v60 }
 0x1e0   :  { %2516 = vmatpush1.bf16.msra.mxu0 %v18194_v8  ;;  %20220 = vmatprep.mubr.msk.bf16.mxu0 %vm21229_vm3, %v20207_v38  ;;  %v18218_v38 = vld [vmem:[#allocation9 + $0x428] ss:$16 sps:$4 sm:$0xff]   ;;  %v18256_v8 = vld [vmem:[#allocation9 + $0x56c] ss:$16 sps:$4 sm:$0xff]  }
 0x1e1   :  { %v2632_v25 = vor.u32 %v2631_v21, %v2628_v20  ;;  %2517 = vmatprep.subr.bf16.mxu0 %v18202_v15  ;;  %v1375_v21 = vrot.slane %v21185_v54, %v21281_v63 }
 0x1e3   :  { %v21272_v26 = vsel %vm717_vm0, %v2624_v2, %v2632_v25  ;;  %v21275_v27 = vsel %vm717_vm0, %v2632_v25, %v2692_v22  ;;  %v18262_v22 = vld [vmem:[#allocation9 + $0x54c] ss:$16 sps:$4 sm:$0xff]  }
 0x1e4   :  { %2518 = vmatpush1.bf16.msra.mxu0 %v18200_v24 }
 0x1e5   :  { %v993_v5 = vpop.f32.mrf.mxu1  ;;  %2519 = vmatprep.subr.bf16.mxu0 %v18208_v52 }
 0x1e6   :  { %v994_v9 = vadd.f32 %v993_v5, %v21183_v51  ;;  %v18260_v51 = vld [vmem:[#allocation9 + $0x548] ss:$16 sps:$4 sm:$0xff]   ;;  %v18268_v5 = vld [vmem:[#allocation9 + $0x52c] ss:$16 sps:$4 sm:$0xff]  }
 0x1e7   :  { %v995_v31 = vpop.f32.mrf.mxu1 }
 0x1e8   :  { %2520 = vmatpush1.bf16.msra.mxu0 %v18206_v28  ;;  %v996_v15 = vadd.f32 %v995_v31, %v21190_v56 }
 0x1e9   :  { %v997_v32 = vpop.f32.mrf.mxu1  ;;  %2521 = vmatprep.subr.bf16.mxu0 %v18214_v29 }
 0x1ea   :  { %v1466_v32 = vld [vmem:[#allocation3 + $0x10] sm:$0x80] }
 0x1eb   :  { %v999_v36 = vpop.f32.mrf.mxu1 }
 0x1ec   :  { %2522 = vmatpush1.bf16.msra.mxu0 %v18212_v33 }
 0x1ed   :  { %v1003_v37 = vpop.f32.mrf.mxu1  ;;  %2523 = vmatprep.subr.bf16.mxu0 %v18220_v35  ;;  %v1465_v35 = vld [vmem:[#allocation3 + $0xd0] sm:$0x80] }
 0x1ee   :  { %v1004_v56 = vadd.f32 %v1003_v37, %v21200_v12  ;;  %v18283_v37 = vld [vmem:[#allocation9 + $0x6cc] ss:$16 sps:$4 sm:$0xff]  }
 0x1ef   :  { %v1005_v40 = vpop.f32.mrf.mxu1 }
 0x1f0   :  { %2524 = vmatpush1.bf16.msra.mxu0 %v18218_v38  ;;  %v18266_v38 = vld [vmem:[#allocation9 + $0x528] ss:$16 sps:$4 sm:$0xff]  }
 0x1f1   :  { %v1007_v41 = vpop.f32.mrf.mxu1  ;;  %2525 = vmatprep.subr.bf16.mxu0 %v18226_v39  ;;  %v18274_v39 = vld [vmem:[#allocation9 + $0x50c] ss:$16 sps:$4 sm:$0xff]  }
 0x1f2   :  { %v1494_v41 = vpack.c.bf16 %v21177_v19, %v21177_v19 }
 0x1f3   :  { %v1009_v44 = vpop.f32.mrf.mxu1 }
 0x1f4   :  { %2526 = vmatpush1.bf16.msra.mxu0 %v18224_v58  ;;  %v18275_v58 = vld [vmem:[#allocation9 + $0x6e8] ss:$16 sps:$4 sm:$0xff]  }
 0x1f5   :  { %2527 = vmatprep.subr.bf16.mxu0 %v18232_v42  ;;  %v1006_v42 = vadd.f32 %v1005_v40, %v21208_v17  ;;  %v18272_v17 = vld [vmem:[#allocation9 + $0x508] ss:$16 sps:$4 sm:$0xff]  }
 0x1f8   :  { %2528 = vmatpush2.bf16.msra.mxu0 %v18230_v46 }
 0x1f9   :  { %2529 = vmatprep.subr.bf16.mxu0 %v18238_v47 }
 0x1fc   :  { %2530 = vmatpush2.bf16.msra.mxu0 %v18236_v49  ;;  %v21300_v49 = vld [vmem:[#allocation2 + $0x20] sm:$0xff] }
 0x1fd   :  { %2531 = vmatprep.subr.bf16.mxu0 %v18244_v50  ;;  %v1489_v50 = vpack.c.bf16 %v21247_v7, %v21300_v49 }
 0x200   :  { %2532 = vmatpush2.bf16.msra.mxu0 %v18242_v1 }
 0x201   :  { %2533 = vmatprep.subr.bf16.mxu0 %v18250_v59  ;;  %v18280_v59 = vld [vmem:[#allocation9 + $0xe4] ss:$16 sps:$4 sm:$0xff]  }
 0x204   :  { %2534 = vmatpush2.bf16.msra.mxu0 %v18248_v6 }
 0x205   :  { %v1323_v11 = vpop.f32.mrf.mxu1  ;;  %2535 = vmatprep.subr.bf16.mxu0 %v18256_v8  ;;  %v2704_v8 = vshrl.u32 %v1494_v41, 16 }
 0x206   :  { %v1344_v20 = vadd.f32 %v1323_v11, %v994_v9  ;;  %v2707_v9 = vshll.u32 %v1494_v41, 16  ;;  %v1485_v11 = vpack.c.bf16 %v21217_v30, %v1465_v35  ;;  %v18284_v35 = vld [vmem:[#allocation9 + $0xc0] ss:$16 sps:$4 sm:$0xff]  }
 0x207   :  { %v1325_v24 = vpop.f32.mrf.mxu1 }
 0x208   :  { %v1382_v2 = vadd.f32 %v1371_v10, %v1344_v20  ;;  %v1345_v25 = vadd.f32 %v1325_v24, %v996_v15  ;;  %2536 = vmatpush2.bf16.msra.mxu0 %v18254_v13  ;;  %v18281_v15 = vld [vmem:[#allocation9 + $0x6c8] ss:$16 sps:$4 sm:$0xff]   ;;  %v18289_v20 = vld [vmem:[#allocation9 + $0x6ac] ss:$16 sps:$4 sm:$0xff]   ;;  %v18278_v24 = vld [vmem:[#allocation9 + $0xe0] ss:$16 sps:$4 sm:$0xff]  }
 0x209   :  { %v1327_v52 = vpop.f32.mrf.mxu1  ;;  %2537 = vmatprep.subr.bf16.mxu0 %v18262_v22 }
 0x20a   :  { %v1398_v28 = vmax.f32 %v1382_v2, 0.0  ;;  %v1383_v29 = vadd.f32 %v1375_v21, %v1345_v25 }
 0x20b   :  { %v1329_v33 = vpop.f32.mrf.mxu1 }
 0x20c   :  { %v1434_v31 = vsel %vm21204_vm13, %v1398_v28, 0.0  ;;  %v1399_v54 = vmax.f32 %v1383_v29, 0.0  ;;  %2538 = vmatpush2.bf16.msra.mxu0 %v18260_v51  ;;  %v21315_v13 = vpack.c.bf16 %v21300_v49, %v1398_v28  ;;  %v2643_v51 = vshrl.u32 %v1489_v50, 16 }
 0x20d   :  { %1450 = vst [vmem:[#allocation3 + $0x90] sm:$0xff] %v1434_v31  ;;  %v1333_v36 = vpop.f32.mrf.mxu1  ;;  %2539 = vmatprep.subr.bf16.mxu0 %v18268_v5  ;;  %v1486_v46 = vpack.c.bf16 %v1434_v31, %v1466_v32  ;;  %v2646_v5 = vshll.u32 %v1489_v50, 16  ;;  %v2706_v29 = vrot.slane %v2704_v8, 3  ;;  %v2709_v32 = vrot.slane %v2707_v9, 4  ;;  %v18293_v9 = vld [vmem:[#allocation9 + $0x688] ss:$16 sps:$4 sm:$0xff]  }
 0x20e   :  { %v21297_v44 = vsel %vm21204_vm13, %v1399_v54, 0.0  ;;  %v1352_v12 = vadd.f32 %v1333_v36, %v1004_v56  ;;  %v21307_v40 = vpack.c.bf16 %v21300_v49, %v1399_v54  ;;  %v2635_v56 = vshrl.u32 %v1485_v11, 16 }
 0x20f   :  { %1451 = vst [vmem:[#allocation3 + $0x118] sm:$0xff] %v21297_v44  ;;  %v1335_v47 = vpop.f32.mrf.mxu1  ;;  %v2652_v22 = vshrl.u32 %v1486_v46, 16  ;;  %v2655_v25 = vshll.u32 %v1486_v46, 16  ;;  %v2638_v31 = vshll.u32 %v1485_v11, 16  ;;  %v2645_v41 = vrot.slane %v2643_v51, 3 }
 0x210   :  { %v21304_v1 = vadd.f32 %v1371_v10, %v1352_v12  ;;  %v1353_v19 = vadd.f32 %v1335_v47, %v1006_v42  ;;  %2540 = vmatpush2.bf16.msra.mxu0 %v18266_v38  ;;  %20223 = vmatprep.mubr.msk.bf16.mxu1 %vm21229_vm3, %v21307_v40  ;;  %v2648_v42 = vrot.slane %v2646_v5, 4  ;;  %v18295_v46 = vld [vmem:[#allocation9 + $0x68c] ss:$16 sps:$4 sm:$0xff]   ;;  %v2710_v47 = vor.u32 %v2709_v32, %v2706_v29  ;;  %v18310_v51 = vld [vmem:[#allocation9 + $0x44] ss:$16 sps:$4 sm:$0xff]  }
 0x211   :  { %v1337_v6 = vpop.f32.mrf.mxu1  ;;  %2541 = vmatprep.subr.bf16.mxu0 %v18274_v39  ;;  %20226 = vmatmul.mubr.msk.bf16.vlgmr.msra.gmra.mxu1 %vm21229_vm3, %v21315_v13  ;;  %v2654_v54 = vrot.slane %v2652_v22, 3  ;;  %v2657_v39 = vrot.slane %v2655_v25, 4  ;;  %v18296_v22 = vld [vmem:[#allocation9 + $0x80] ss:$16 sps:$4 sm:$0xff]   ;;  %v18304_v25 = vld [vmem:[#allocation9 + $0x64] ss:$16 sps:$4 sm:$0xff]  }
 0x212   :  { %v1406_v7 = vmax.f32 %v21304_v1, 0.0  ;;  %v1391_v10 = vadd.f32 %v1375_v21, %v1353_v19  ;;  %2565 = vmatpush1.bf16.msra.mxu1 %v18275_v58  ;;  %v18286_v21 = vld [vmem:[#allocation9 + $0xc4] ss:$16 sps:$4 sm:$0xff]   ;;  %v18287_v58 = vld [vmem:[#allocation9 + $0x6a8] ss:$16 sps:$4 sm:$0xff]   ;;  %v2637_v1 = vrot.slane %v2635_v56, 3  ;;  %v21346_v8 = vor.u32 %v2648_v42, %v2645_v41 }
 0x213   :  { %v1339_v2 = vpop.f32.mrf.mxu1  ;;  %2566 = vmatprep.subr.bf16.mxu1 %v18283_v37  ;;  %v2640_v19 = vrot.slane %v2638_v31, 4  ;;  %v18308_v5 = vld [vmem:[#allocation9 + $0x40] ss:$16 sps:$4 sm:$0xff]   ;;  %v18319_v29 = vld [vmem:[#allocation9 + $0x60c] ss:$16 sps:$4 sm:$0xff]  }
 0x214   :  { %v1442_v30 = vsel %vm21222_vm15, %v1406_v7, 0.0  ;;  %v1407_v52 = vmax.f32 %v1391_v10, 0.0  ;;  %2542 = vmatpush2.bf16.msra.mxu0 %v18272_v17  ;;  %v18290_v17 = vld [vmem:[#allocation9 + $0xa0] ss:$16 sps:$4 sm:$0xff]   ;;  %v18307_v2 = vld [vmem:[#allocation9 + $0x64c] ss:$16 sps:$4 sm:$0xff]  }
 0x215   :  { %1458 = vst [vmem:[#allocation3 + $0x20] sm:$0xff] %v1442_v30  ;;  %v1490_v28 = vpack.c.bf16 %v1442_v30, %v21300_v49  ;;  %3369 = vmatprep.subr.bf16.mxu0 %v18280_v59  ;;  %v21341_v59 = vpack.c.bf16 %v21300_v49, %v1406_v7  ;;  %v2641_v10 = vor.u32 %v2640_v19, %v2637_v1  ;;  %v18305_v30 = vld [vmem:[#allocation9 + $0x648] ss:$16 sps:$4 sm:$0xff]   ;;  %v18314_v56 = vld [vmem:[#allocation9 + $0x20] ss:$16 sps:$4 sm:$0xff]  }
 0x216   :  { %v21325_v33 = vsel %vm21222_vm15, %v1407_v52, 0.0  ;;  %2567 = vmatpush1.bf16.msra.mxu1 %v18281_v15  ;;  %v21335_v50 = vpack.c.bf16 %v21300_v49, %v1407_v52  ;;  %v18298_v15 = vld [vmem:[#allocation9 + $0x84] ss:$16 sps:$4 sm:$0xff]   ;;  %v18302_v52 = vld [vmem:[#allocation9 + $0x60] ss:$16 sps:$4 sm:$0xff]  }
 0x217   :  { %1459 = vst [vmem:[#allocation3 + $0x88] sm:$0xff] %v21325_v33  ;;  %v2660_v36 = vshrl.u32 %v1490_v28, 16  ;;  %v2663_v38 = vshll.u32 %v1490_v28, 16  ;;  %20229 = vmatmul.mubr.msk.bf16.vlgmr.msra.gmra.mxu0 %vm21229_vm3, %v21237_v43  ;;  %2568 = vmatprep.subr.bf16.mxu1 %v18289_v20  ;;  %v18292_v43 = vld [vmem:[#allocation9 + $0xa4] ss:$16 sps:$4 sm:$0xff]  }
 0x218   :  { %20232 = vmatprep.mubr.msk.bf16.mxu0 %vm21253_vm4, %v21258_v18  ;;  %3370 = vmatpush1.bf16.msra.mxu0 %v18278_v24  ;;  %v2658_v18 = vor.u32 %v2657_v39, %v2654_v54  ;;  %v18301_v20 = vld [vmem:[#allocation9 + $0x66c] ss:$16 sps:$4 sm:$0xff]   ;;  %v18299_v24 = vld [vmem:[#allocation9 + $0x668] ss:$16 sps:$4 sm:$0xff]   ;;  %v18316_v28 = vld [vmem:[#allocation9 + $0x24] ss:$16 sps:$4 sm:$0xff]  }
 0x219   :  { %v2662_v12 = vrot.slane %v2660_v36, 3  ;;  %v2665_v37 = vrot.slane %v2663_v38, 4  ;;  %3371 = vmatprep.subr.bf16.mxu0 %v18286_v21  ;;  %20235 = vmatprep.mubr.msk.bf16.mxu1 %vm21253_vm4, %v21335_v50  ;;  %v18313_v21 = vld [vmem:[#allocation9 + $0x62c] ss:$16 sps:$4 sm:$0xff]   ;;  %v18317_v32 = vld [vmem:[#allocation9 + $0x608] ss:$16 sps:$4 sm:$0xff]  }
 0x21a   :  { %20238 = vmatmul.mubr.msk.bf16.gmra.mxu1 %vm21253_vm4, %v21341_v59  ;;  %v18322_v31 = vld [vmem:[#allocation9 + $0x4] ss:$16 sps:$4 sm:$0xff]   ;;  %v18325_v54 = vld [vmem:[#allocation9 + $0x7ec] ss:$16 sps:$4 sm:$0xff]   ;;  %v18320_v36 = vld [vmem:[#allocation9] ss:$16 sps:$4 sm:$0xff]  }
 0x21b   :  { %v2666_v6 = vor.u32 %v2665_v37, %v2662_v12  ;;  %2569 = vmatpush1.bf16.msra.mxu1 %v18287_v58  ;;  %20241 = vmatprep.mubr.msk.bf16.mxu1 %vm21229_vm3, %v21307_v40  ;;  %v21362_v40 = vsel %vm717_vm0, %v2641_v10, %v21346_v8  ;;  %v18328_v38 = vld [vmem:[#allocation9 + $0x1e4] ss:$16 sps:$4 sm:$0xff]   ;;  %v18331_v39 = vld [vmem:[#allocation9 + $0x7cc] ss:$16 sps:$4 sm:$0xff]   ;;  %v18329_v58 = vld [vmem:[#allocation9 + $0x7c8] ss:$16 sps:$4 sm:$0xff]  }
 0x21c   :  { %3372 = vmatpush1.bf16.msra.mxu0 %v18284_v35  ;;  %2570 = vmatprep.subr.bf16.mxu1 %v18295_v46  ;;  %v18323_v35 = vld [vmem:[#allocation9 + $0x7e8] ss:$16 sps:$4 sm:$0xff]   ;;  %v18326_v41 = vld [vmem:[#allocation9 + $0x1e0] ss:$16 sps:$4 sm:$0xff]   ;;  %v18334_v42 = vld [vmem:[#allocation9 + $0x1c4] ss:$16 sps:$4 sm:$0xff]  }
 0x21d   :  { %v21352_v11 = vsel %vm717_vm0, %v2658_v18, %v2666_v6  ;;  %v21355_v7 = vsel %vm717_vm0, %v2666_v6, %v2710_v47  ;;  %3373 = vmatprep.subr.bf16.mxu0 %v18292_v43  ;;  %v18337_v12 = vld [vmem:[#allocation9 + $0x7ac] ss:$16 sps:$4 sm:$0xff]   ;;  %v18335_v37 = vld [vmem:[#allocation9 + $0x7a8] ss:$16 sps:$4 sm:$0xff]   ;;  %v18332_v46 = vld [vmem:[#allocation9 + $0x1c0] ss:$16 sps:$4 sm:$0xff]  }
 0x21e   :  { %v18340_v47 = vld [vmem:[#allocation9 + $0x1a4] ss:$16 sps:$4 sm:$0xff]   ;;  %v18343_v43 = vld [vmem:[#allocation9 + $0x78c] ss:$16 sps:$4 sm:$0xff]   ;;  %v18341_v1 = vld [vmem:[#allocation9 + $0x788] ss:$16 sps:$4 sm:$0xff]  }
 0x21f   :  { %20244 = vmatmul.mubr.msk.bf16.gmra.mxu0 %vm21253_vm4, %v21264_v23  ;;  %2571 = vmatpush1.bf16.msra.mxu1 %v18293_v9  ;;  %v18311_v23 = vld [vmem:[#allocation9 + $0x628] ss:$16 sps:$4 sm:$0xff]   ;;  %v18338_v19 = vld [vmem:[#allocation9 + $0x1a0] ss:$16 sps:$4 sm:$0xff]   ;;  %v18349_v18 = vld [vmem:[#allocation9 + $0x76c] ss:$16 sps:$4 sm:$0xff]  }
 0x220   :  { %3374 = vmatpush1.bf16.msra.mxu0 %v18290_v17  ;;  %3401 = vmatprep.mubr.bf16.mxu0 %v21362_v40  ;;  %v18346_v17 = vld [vmem:[#allocation9 + $0x184] ss:$16 sps:$4 sm:$0xff]   ;;  %v18347_v6 = vld [vmem:[#allocation9 + $0x768] ss:$16 sps:$4 sm:$0xff]   ;;  %v18344_v9 = vld [vmem:[#allocation9 + $0x180] ss:$16 sps:$4 sm:$0xff]  }
 0x221   :  { %3375 = vmatprep.subr.bf16.mxu0 %v18298_v15  ;;  %2572 = vmatprep.subr.bf16.mxu1 %v18301_v20  ;;  %v18352_v10 = vld [vmem:[#allocation9 + $0x164] ss:$16 sps:$4 sm:$0xff]   ;;  %v18355_v15 = vld [vmem:[#allocation9 + $0x74c] ss:$16 sps:$4 sm:$0xff]   ;;  %v18353_v20 = vld [vmem:[#allocation9 + $0x748] ss:$16 sps:$4 sm:$0xff]  }
 0x223   :  { %2573 = vmatpush1.bf16.msra.mxu1 %v18299_v24  ;;  %v18358_v24 = vld [vmem:[#allocation9 + $0x144] ss:$16 sps:$4 sm:$0xff]  }
 0x224   :  { %3376 = vmatpush1.bf16.msra.mxu0 %v18296_v22  ;;  %2574 = vmatprep.subr.bf16.mxu1 %v18307_v2  ;;  %v18350_v22 = vld [vmem:[#allocation9 + $0x160] ss:$16 sps:$4 sm:$0xff]   ;;  %v18361_v2 = vld [vmem:[#allocation9 + $0x72c] ss:$16 sps:$4 sm:$0xff]  }
 0x225   :  { %3377 = vmatprep.subr.bf16.mxu0 %v18304_v25  ;;  %v18359_v25 = vld [vmem:[#allocation9 + $0x728] ss:$16 sps:$4 sm:$0xff]  }
 0x227   :  { %2575 = vmatpush1.bf16.msra.mxu1 %v18305_v30  ;;  %v1467_v30 = vld [vmem:[#allocation3 + $0x48] sm:$0x80] }
 0x228   :  { %3378 = vmatpush1.bf16.msra.mxu0 %v18302_v52  ;;  %2576 = vmatprep.subr.bf16.mxu1 %v18313_v21  ;;  %v1493_v52 = vpack.c.bf16 %v21171_v4, %v21171_v4  ;;  %v18356_v21 = vld [vmem:[#allocation9 + $0x140] ss:$16 sps:$4 sm:$0xff]   ;;  %v18373_v4 = vld [vmem:[#allocation9 + $0x2e4] ss:$16 sps:$4 sm:$0xff]  }
 0x229   :  { %3379 = vmatprep.subr.bf16.mxu0 %v18310_v51  ;;  %v18364_v51 = vld [vmem:[#allocation9 + $0x124] ss:$16 sps:$4 sm:$0xff]  }
 0x22b   :  { %2577 = vmatpush1.bf16.msra.mxu1 %v18311_v23  ;;  %v18367_v23 = vld [vmem:[#allocation9 + $0x70c] ss:$16 sps:$4 sm:$0xff]  }
 0x22c   :  { %3380 = vmatpush1.bf16.msra.mxu0 %v18308_v5  ;;  %2578 = vmatprep.subr.bf16.mxu1 %v18319_v29  ;;  %v18365_v5 = vld [vmem:[#allocation9 + $0x708] ss:$16 sps:$4 sm:$0xff]   ;;  %v2695_v29 = vshrl.u32 %v1493_v52, 16 }
 0x22d   :  { %3381 = vmatprep.subr.bf16.mxu0 %v18316_v28  ;;  %v1491_v28 = vpack.c.bf16 %v21325_v33, %v21300_v49  ;;  %v18376_v49 = vld [vmem:[#allocation9 + $0xec] ss:$16 sps:$4 sm:$0xff]   ;;  %v18379_v33 = vld [vmem:[#allocation9 + $0x2c4] ss:$16 sps:$4 sm:$0xff]  }
 0x22f   :  { %2579 = vmatpush1.bf16.msra.mxu1 %v18317_v32  ;;  %v2698_v32 = vshll.u32 %v1493_v52, 16  ;;  %v18403_v52 = vld [vmem:[#allocation9 + $0x244] ss:$16 sps:$4 sm:$0xff]  }
 0x230   :  { %3382 = vmatpush1.bf16.msra.mxu0 %v18314_v56  ;;  %2580 = vmatprep.subr.bf16.mxu1 %v18325_v54  ;;  %v1487_v56 = vpack.c.bf16 %v21297_v44, %v1467_v30  ;;  %v18370_v54 = vld [vmem:[#allocation9 + $0x104] ss:$16 sps:$4 sm:$0xff]   ;;  %v18377_v44 = vld [vmem:[#allocation9 + $0x2c0] ss:$16 sps:$4 sm:$0xff]  }
 0x231   :  { %3383 = vmatprep.subr.bf16.mxu0 %v18322_v31  ;;  %v18362_v31 = vld [vmem:[#allocation9 + $0x120] ss:$16 sps:$4 sm:$0xff]  }
 0x232   :  { %v18395_v30 = vld [vmem:[#allocation9 + $0x260] ss:$16 sps:$4 sm:$0xff]  }
 0x233   :  { %2581 = vmatpush2.bf16.msra.mxu1 %v18323_v35  ;;  %v18371_v35 = vld [vmem:[#allocation9 + $0x2e0] ss:$16 sps:$4 sm:$0xff]  }
 0x234   :  { %3384 = vmatpush1.bf16.msra.mxu0 %v18320_v36  ;;  %2582 = vmatprep.subr.bf16.mxu1 %v18331_v39  ;;  %v18368_v36 = vld [vmem:[#allocation9 + $0x100] ss:$16 sps:$4 sm:$0xff]   ;;  %v2680_v39 = vshll.u32 %v1491_v28, 16 }
 0x235   :  { %3385 = vmatprep.subr.bf16.mxu0 %v18328_v38  ;;  %v2677_v38 = vshrl.u32 %v1491_v28, 16  ;;  %v18404_v28 = vld [vmem:[#allocation9 + $0x48] ss:$16 sps:$4 sm:$0xff]  }
 0x237   :  { %2583 = vmatpush2.bf16.msra.mxu1 %v18329_v58  ;;  %v2697_v58 = vrot.slane %v2695_v29, 3  ;;  %v18412_v29 = vld [vmem:[#allocation9 + $0x2c] ss:$16 sps:$4 sm:$0xff]  }
 0x238   :  { %3386 = vmatpush2.bf16.msra.mxu0 %v18326_v41  ;;  %2584 = vmatprep.subr.bf16.mxu1 %v18337_v12  ;;  %v2700_v41 = vrot.slane %v2698_v32, 4  ;;  %v2672_v12 = vshll.u32 %v1487_v56, 16  ;;  %v18415_v32 = vld [vmem:[#allocation9 + $0x204] ss:$16 sps:$4 sm:$0xff]  }
 0x239   :  { %3387 = vmatprep.subr.bf16.mxu0 %v18334_v42  ;;  %v2669_v42 = vshrl.u32 %v1487_v56, 16  ;;  %v18410_v56 = vld [vmem:[#allocation9 + $0x28] ss:$16 sps:$4 sm:$0xff]  }
 0x23b   :  { %2585 = vmatpush2.bf16.msra.mxu1 %v18335_v37  ;;  %v18374_v37 = vld [vmem:[#allocation9 + $0xe8] ss:$16 sps:$4 sm:$0xff]  }
 0x23c   :  { %3388 = vmatpush2.bf16.msra.mxu0 %v18332_v46  ;;  %2586 = vmatprep.subr.bf16.mxu1 %v18343_v43  ;;  %v2679_v46 = vrot.slane %v2677_v38, 3  ;;  %v2701_v43 = vor.u32 %v2700_v41, %v2697_v58  ;;  %v18427_v38 = vld [vmem:[#allocation9 + $0x3c4] ss:$16 sps:$4 sm:$0xff]   ;;  %v18422_v58 = vld [vmem:[#allocation9 + $0x1e8] ss:$16 sps:$4 sm:$0xff]  }
 0x23d   :  { %3389 = vmatprep.subr.bf16.mxu0 %v18340_v47  ;;  %v2682_v47 = vrot.slane %v2680_v39, 4  ;;  %v18425_v39 = vld [vmem:[#allocation9 + $0x3c0] ss:$16 sps:$4 sm:$0xff]   ;;  %v18430_v41 = vld [vmem:[#allocation9 + $0x1cc] ss:$16 sps:$4 sm:$0xff]  }
 0x23f   :  { %2587 = vmatpush2.bf16.msra.mxu1 %v18341_v1  ;;  %v2671_v1 = vrot.slane %v2669_v42, 3  ;;  %v21376_v62 = vor.u32 %v2682_v47, %v2679_v46  ;;  %v18428_v42 = vld [vmem:[#allocation9 + $0x1c8] ss:$16 sps:$4 sm:$0xff]   ;;  %v18442_v47 = vld [vmem:[#allocation9 + $0x18c] ss:$16 sps:$4 sm:$0xff]  }
 0x240   :  { %3390 = vmatpush2.bf16.msra.mxu0 %v18338_v19  ;;  %2588 = vmatprep.subr.bf16.mxu1 %v18349_v18  ;;  %v2674_v19 = vrot.slane %v2672_v12, 4  ;;  %v18385_v18 = vld [vmem:[#allocation9 + $0x2a4] ss:$16 sps:$4 sm:$0xff]   ;;  %v18436_v12 = vld [vmem:[#allocation9 + $0x1ac] ss:$16 sps:$4 sm:$0xff]  }
 0x241   :  { %3391 = vmatprep.subr.bf16.mxu0 %v18346_v17  ;;  %v18382_v17 = vld [vmem:[#allocation9 + $0xcc] ss:$16 sps:$4 sm:$0xff]   ;;  %v18434_v46 = vld [vmem:[#allocation9 + $0x1a8] ss:$16 sps:$4 sm:$0xff]  }
 0x243   :  { %2589 = vmatpush2.bf16.msra.mxu1 %v18347_v6  ;;  %v18380_v6 = vld [vmem:[#allocation9 + $0xc8] ss:$16 sps:$4 sm:$0xff]  }
 0x244   :  { %3392 = vmatpush2.bf16.msra.mxu0 %v18344_v9  ;;  %2590 = vmatprep.subr.bf16.mxu1 %v18355_v15  ;;  %v18383_v9 = vld [vmem:[#allocation9 + $0x2a0] ss:$16 sps:$4 sm:$0xff]   ;;  %v18388_v15 = vld [vmem:[#allocation9 + $0xac] ss:$16 sps:$4 sm:$0xff]  }
 0x245   :  { %3393 = vmatprep.subr.bf16.mxu0 %v18352_v10  ;;  %v21381_v10 = vsel %vm717_vm0, %v21346_v8, %v2701_v43  ;;  %v18394_v8 = vld [vmem:[#allocation9 + $0x8c] ss:$16 sps:$4 sm:$0xff]   ;;  %v18445_v43 = vld [vmem:[#allocation9 + $0x364] ss:$16 sps:$4 sm:$0xff]  }
 0x247   :  { %2591 = vmatpush2.bf16.msra.mxu1 %v18353_v20  ;;  %v18386_v20 = vld [vmem:[#allocation9 + $0xa8] ss:$16 sps:$4 sm:$0xff]  }
 0x248   :  { %3394 = vmatpush2.bf16.msra.mxu0 %v18350_v22  ;;  %2592 = vmatprep.subr.bf16.mxu1 %v18361_v2  ;;  %v18397_v2 = vld [vmem:[#allocation9 + $0x264] ss:$16 sps:$4 sm:$0xff]  }
 0x249   :  { %3395 = vmatprep.subr.bf16.mxu0 %v18358_v24  ;;  %v18389_v24 = vld [vmem:[#allocation9 + $0x280] ss:$16 sps:$4 sm:$0xff]  }
 0x24b   :  { %2593 = vmatpush2.bf16.msra.mxu1 %v18359_v25  ;;  %v18392_v25 = vld [vmem:[#allocation9 + $0x88] ss:$16 sps:$4 sm:$0xff]  }
 0x24c   :  { %3396 = vmatpush2.bf16.msra.mxu0 %v18356_v21  ;;  %2594 = vmatprep.subr.bf16.mxu1 %v18367_v23  ;;  %v18401_v21 = vld [vmem:[#allocation9 + $0x240] ss:$16 sps:$4 sm:$0xff]   ;;  %v18406_v23 = vld [vmem:[#allocation9 + $0x4c] ss:$16 sps:$4 sm:$0xff]  }
 0x24d   :  { %3397 = vmatprep.subr.bf16.mxu0 %v18364_v51  ;;  %v18409_v51 = vld [vmem:[#allocation9 + $0x224] ss:$16 sps:$4 sm:$0xff]  }
 0x24f   :  { %2595 = vmatpush2.bf16.msra.mxu1 %v18365_v5  ;;  %v18407_v5 = vld [vmem:[#allocation9 + $0x220] ss:$16 sps:$4 sm:$0xff]  }
 0x250   :  { %3398 = vmatpush2.bf16.msra.mxu0 %v18362_v31  ;;  %3422 = vmatprep.subr.bf16.mxu1 %v18373_v4  ;;  %v18418_v31 = vld [vmem:[#allocation9 + $0xc] ss:$16 sps:$4 sm:$0xff]   ;;  %v18419_v4 = vld [vmem:[#allocation9 + $0x3e0] ss:$16 sps:$4 sm:$0xff]  }
 0x251   :  { %3399 = vmatprep.subr.bf16.mxu0 %v18370_v54  ;;  %v18421_v54 = vld [vmem:[#allocation9 + $0x3e4] ss:$16 sps:$4 sm:$0xff]  }
 0x252   :  { %20247 = vmatmul.mubr.msk.bf16.vlgmr.msra.gmra.mxu1 %vm21229_vm3, %v21315_v13  ;;  %v18391_v13 = vld [vmem:[#allocation9 + $0x284] ss:$16 sps:$4 sm:$0xff]  }
 0x253   :  { %20250 = vmatprep.mubr.msk.bf16.mxu1 %vm21253_vm4, %v21335_v50  ;;  %3423 = vmatpush1.bf16.msra.mxu1 %v18371_v35  ;;  %v2675_v50 = vor.u32 %v2674_v19, %v2671_v1  ;;  %v18416_v35 = vld [vmem:[#allocation9 + $0x8] ss:$16 sps:$4 sm:$0xff]   ;;  %v18443_v1 = vld [vmem:[#allocation9 + $0x360] ss:$16 sps:$4 sm:$0xff]  }
 0x254   :  { %3400 = vmatpush2.bf16.msra.mxu0 %v18368_v36  ;;  %3424 = vmatprep.subr.bf16.mxu1 %v18379_v33  ;;  %v18424_v36 = vld [vmem:[#allocation9 + $0x1ec] ss:$16 sps:$4 sm:$0xff]   ;;  %v18431_v33 = vld [vmem:[#allocation9 + $0x3a0] ss:$16 sps:$4 sm:$0xff]   ;;  %v18440_v19 = vld [vmem:[#allocation9 + $0x188] ss:$16 sps:$4 sm:$0xff]  }
 0x255   :  { %3475 = vmatprep.subr.bf16.mxu0 %v18376_v49  ;;  %v21389_v22 = vsel %vm717_vm0, %v2675_v50, %v21376_v62  ;;  %v18433_v49 = vld [vmem:[#allocation9 + $0x3a4] ss:$16 sps:$4 sm:$0xff]   ;;  %v18454_v50 = vld [vmem:[#allocation9 + $0x14c] ss:$16 sps:$4 sm:$0xff]  }
 0x257   :  { %3402 = vmatmul.mubr.bf16.vlgmr.msra.gmra.mxu0 %v21272_v26  ;;  %3425 = vmatpush1.bf16.msra.mxu1 %v18377_v44  ;;  %v18439_v44 = vld [vmem:[#allocation9 + $0x384] ss:$16 sps:$4 sm:$0xff]  }
 0x258   :  { %3411 = vmatprep.mubr.bf16.mxu0 %v21381_v10  ;;  %3476 = vmatpush1.bf16.msra.mxu0 %v18374_v37  ;;  %v18437_v37 = vld [vmem:[#allocation9 + $0x380] ss:$16 sps:$4 sm:$0xff]  }
 0x259   :  { %3477 = vmatprep.subr.bf16.mxu0 %v18382_v17  ;;  %3426 = vmatprep.subr.bf16.mxu1 %v18385_v18  ;;  %v18448_v17 = vld [vmem:[#allocation9 + $0x16c] ss:$16 sps:$4 sm:$0xff]   ;;  %v18451_v18 = vld [vmem:[#allocation9 + $0x344] ss:$16 sps:$4 sm:$0xff]  }
 0x25a   :  { %20253 = vmatmul.mubr.msk.bf16.gmra.mxu1 %vm21253_vm4, %v21341_v59  ;;  %v18398_v59 = vld [vmem:[#allocation9 + $0x68] ss:$16 sps:$4 sm:$0xff]  }
 0x25b   :  { %3427 = vmatpush1.bf16.msra.mxu1 %v18383_v9  ;;  %3454 = vmatprep.mubr.bf16.mxu1 %v21389_v22  ;;  %v1495_v9 = vpack.c.bf16 %v21180_v34, %v21180_v34 }
 0x25c   :  { %3478 = vmatpush1.bf16.msra.mxu0 %v18380_v6  ;;  %3428 = vmatprep.subr.bf16.mxu1 %v18391_v13  ;;  %v18449_v6 = vld [vmem:[#allocation9 + $0x340] ss:$16 sps:$4 sm:$0xff]   ;;  %v18446_v13 = vld [vmem:[#allocation9 + $0x168] ss:$16 sps:$4 sm:$0xff]  }
 0x25d   :  { %3479 = vmatprep.subr.bf16.mxu0 %v18388_v15  ;;  %v18457_v15 = vld [vmem:[#allocation9 + $0x324] ss:$16 sps:$4 sm:$0xff]  }
 0x25f   :  { %3412 = vmatmul.mubr.bf16.gmra.mxu0 %v21275_v27  ;;  %3429 = vmatpush1.bf16.msra.mxu1 %v18389_v24  ;;  %v2713_v24 = vshrl.u32 %v1495_v9, 16 }
 0x260   :  { %3480 = vmatpush1.bf16.msra.mxu0 %v18386_v20  ;;  %3507 = vmatprep.mubr.bf16.mxu0 %v21362_v40  ;;  %v18413_v40 = vld [vmem:[#allocation9 + $0x200] ss:$16 sps:$4 sm:$0xff]  }
 0x261   :  { %3481 = vmatprep.subr.bf16.mxu0 %v18394_v8  ;;  %3430 = vmatprep.subr.bf16.mxu1 %v18397_v2  ;;  %v18455_v20 = vld [vmem:[#allocation9 + $0x320] ss:$16 sps:$4 sm:$0xff]   ;;  %v2716_v8 = vshll.u32 %v1495_v9, 16  ;;  %v18452_v2 = vld [vmem:[#allocation9 + $0x148] ss:$16 sps:$4 sm:$0xff]  }
 0x262   :  { %v18493_v9 = vld [vmem:[#allocation9 + $0x26c] ss:$16 sps:$4 sm:$0xff]  }
 0x263   :  { %3431 = vmatpush1.bf16.msra.mxu1 %v18395_v30  ;;  %v18463_v30 = vld [vmem:[#allocation9 + $0x304] ss:$16 sps:$4 sm:$0xff]   ;;  %v2718_v34 = vrot.slane %v2716_v8, 4  ;;  %v18497_v8 = vld [vmem:[#allocation9 + $0x248] ss:$16 sps:$4 sm:$0xff]  }
 0x264   :  { %3482 = vmatpush1.bf16.msra.mxu0 %v18392_v25  ;;  %3432 = vmatprep.subr.bf16.mxu1 %v18403_v52  ;;  %v18460_v25 = vld [vmem:[#allocation9 + $0x12c] ss:$16 sps:$4 sm:$0xff]   ;;  %v18461_v52 = vld [vmem:[#allocation9 + $0x300] ss:$16 sps:$4 sm:$0xff]  }
 0x265   :  { %3483 = vmatprep.subr.bf16.mxu0 %v18400_v16  ;;  %v2715_v16 = vrot.slane %v2713_v24, 3 }
 0x267   :  { %3433 = vmatpush1.bf16.msra.mxu1 %v18401_v21  ;;  %v18466_v21 = vld [vmem:[#allocation9 + $0x10c] ss:$16 sps:$4 sm:$0xff]  }
 0x268   :  { %3484 = vmatpush1.bf16.msra.mxu0 %v18398_v59  ;;  %3434 = vmatprep.subr.bf16.mxu1 %v18409_v51  ;;  %v18458_v59 = vld [vmem:[#allocation9 + $0x128] ss:$16 sps:$4 sm:$0xff]   ;;  %v18469_v51 = vld [vmem:[#allocation9 + $0x2ec] ss:$16 sps:$4 sm:$0xff]  }
 0x269   :  { %3485 = vmatprep.subr.bf16.mxu0 %v18406_v23  ;;  %v3582_v23 = vld [vmem:[#allocation3 + $0x110] sm:$0xfe] }
 0x26b   :  { %3435 = vmatpush1.bf16.msra.mxu1 %v18407_v5  ;;  %v18467_v5 = vld [vmem:[#allocation9 + $0x2e8] ss:$16 sps:$4 sm:$0xff]  }
 0x26c   :  { %3486 = vmatpush1.bf16.msra.mxu0 %v18404_v28  ;;  %3436 = vmatprep.subr.bf16.mxu1 %v18415_v32  ;;  %v2719_v28 = vor.u32 %v2718_v34, %v2715_v16  ;;  %v18464_v32 = vld [vmem:[#allocation9 + $0x108] ss:$16 sps:$4 sm:$0xff]   ;;  %v18500_v16 = vld [vmem:[#allocation9 + $0x840] ss:$16 sps:$4 sm:$0xff]  }
 0x26d   :  { %3487 = vmatprep.subr.bf16.mxu0 %v18412_v29  ;;  %v3590_v29 = vld [vmem:[#allocation3 + $0xf8] sm:$0xff] }
 0x26e   :  { %v18503_v34 = vld [vmem:[#allocation9 + $0x228] ss:$16 sps:$4 sm:$0xff]  }
 0x26f   :  { %3437 = vmatpush1.bf16.msra.mxu1 %v18413_v40  ;;  %v18472_v40 = vld [vmem:[#allocation9 + $0x8e4] ss:$16 sps:$4 sm:$0xff]  }
 0x270   :  { %3488 = vmatpush1.bf16.msra.mxu0 %v18410_v56  ;;  %3438 = vmatprep.subr.bf16.mxu1 %v18421_v54  ;;  %v18475_v56 = vld [vmem:[#allocation9 + $0x2cc] ss:$16 sps:$4 sm:$0xff]  }
 0x271   :  { %3489 = vmatprep.subr.bf16.mxu0 %v18418_v31  ;;  %v18473_v31 = vld [vmem:[#allocation9 + $0x2c8] ss:$16 sps:$4 sm:$0xff]   ;;  %v21396_v54 = vld [vmem:[#allocation2 + $0x20] sm:$0xff] }
 0x273   :  { %3439 = vmatpush2.bf16.msra.mxu1 %v18419_v4  ;;  %v3602_v4 = vpack.c.bf16 %v21396_v54, %v3582_v23  ;;  %v18506_v23 = vld [vmem:[#allocation9 + $0x820] ss:$16 sps:$4 sm:$0xff]  }
 0x274   :  { %3490 = vmatpush1.bf16.msra.mxu0 %v18416_v35  ;;  %3440 = vmatprep.subr.bf16.mxu1 %v18427_v38  ;;  %v18470_v35 = vld [vmem:[#allocation9 + $0x8e0] ss:$16 sps:$4 sm:$0xff]   ;;  %v18478_v38 = vld [vmem:[#allocation9 + $0x8c4] ss:$16 sps:$4 sm:$0xff]  }
 0x275   :  { %3491 = vmatprep.subr.bf16.mxu0 %v18424_v36  ;;  %v21402_v36 = vsel %vm717_vm0, %v21376_v62, %v2719_v28  ;;  %v18517_v28 = vld [vmem:[#allocation9 + $0x3ec] ss:$16 sps:$4 sm:$0xff]  }
 0x277   :  { %3441 = vmatpush2.bf16.msra.mxu1 %v18425_v39  ;;  %v18481_v39 = vld [vmem:[#allocation9 + $0x2ac] ss:$16 sps:$4 sm:$0xff]  }
 0x278   :  { %3492 = vmatpush2.bf16.msra.mxu0 %v18422_v58  ;;  %3442 = vmatprep.subr.bf16.mxu1 %v18433_v49  ;;  %v21406_v58 = vpack.c.bf16 %v21396_v54, %v3590_v29  ;;  %v3757_v49 = vshll.u32 %v3602_v4, 16  ;;  %v18515_v29 = vld [vmem:[#allocation9 + $0x3e8] ss:$16 sps:$4 sm:$0xff]  }
 0x279   :  { %3493 = vmatprep.subr.bf16.mxu0 %v18430_v41  ;;  %v18479_v41 = vld [vmem:[#allocation9 + $0x2a8] ss:$16 sps:$4 sm:$0xff]  }
 0x27a   :  { %v3762_v62 = vshll.u32 %v21406_v58, 16 }
 0x27b   :  { %3443 = vmatpush2.bf16.msra.mxu1 %v18431_v33  ;;  %v18476_v33 = vld [vmem:[#allocation9 + $0x8c0] ss:$16 sps:$4 sm:$0xff]  }
 0x27c   :  { %3494 = vmatpush2.bf16.msra.mxu0 %v18428_v42  ;;  %3444 = vmatprep.subr.bf16.mxu1 %v18439_v44  ;;  %v18487_v42 = vld [vmem:[#allocation9 + $0x28c] ss:$16 sps:$4 sm:$0xff]  }
 0x27d   :  { %3495 = vmatprep.subr.bf16.mxu0 %v18436_v12 }
 0x27f   :  { %3445 = vmatpush2.bf16.msra.mxu1 %v18437_v37  ;;  %v18484_v37 = vld [vmem:[#allocation9 + $0x8a4] ss:$16 sps:$4 sm:$0xff]  }
 0x280   :  { %3496 = vmatpush2.bf16.msra.mxu0 %v18434_v46  ;;  %3446 = vmatprep.subr.bf16.mxu1 %v18445_v43  ;;  %v3759_v46 = vrot.slane %v3757_v49, 1  ;;  %v18485_v43 = vld [vmem:[#allocation9 + $0x288] ss:$16 sps:$4 sm:$0xff]   ;;  %v18532_v49 = vld [vmem:[#allocation9 + $0x9a4] ss:$16 sps:$4 sm:$0xff]  }
 0x281   :  { %3497 = vmatprep.subr.bf16.mxu0 %v18442_v47  ;;  %v18482_v47 = vld [vmem:[#allocation9 + $0x8a0] ss:$16 sps:$4 sm:$0xff]  }
 0x283   :  { %3447 = vmatpush2.bf16.msra.mxu1 %v18443_v1 }
 0x284   :  { %3498 = vmatpush2.bf16.msra.mxu0 %v18440_v19  ;;  %3448 = vmatprep.subr.bf16.mxu1 %v18451_v18  ;;  %v21417_v19 = vrot.slane %v3762_v62, 1  ;;  %v18530_v62 = vld [vmem:[#allocation9 + $0x9a0] ss:$16 sps:$4 sm:$0xff]  }
 0x285   :  { %3499 = vmatprep.subr.bf16.mxu0 %v18448_v17  ;;  %v18490_v17 = vld [vmem:[#allocation9 + $0x884] ss:$16 sps:$4 sm:$0xff]  }
 0x287   :  { %3449 = vmatpush2.bf16.msra.mxu1 %v18449_v6  ;;  %v18491_v6 = vld [vmem:[#allocation9 + $0x268] ss:$16 sps:$4 sm:$0xff]  }
 0x288   :  { %3500 = vmatpush2.bf16.msra.mxu0 %v18446_v13  ;;  %3450 = vmatprep.subr.bf16.mxu1 %v18457_v15  ;;  %v18488_v13 = vld [vmem:[#allocation9 + $0x880] ss:$16 sps:$4 sm:$0xff]  }
 0x289   :  { %3501 = vmatprep.subr.bf16.mxu0 %v18454_v50  ;;  %v18499_v50 = vld [vmem:[#allocation9 + $0x24c] ss:$16 sps:$4 sm:$0xff]  }
 0x28b   :  { %3451 = vmatpush2.bf16.msra.mxu1 %v18455_v20  ;;  %v18496_v20 = vld [vmem:[#allocation9 + $0x864] ss:$16 sps:$4 sm:$0xff]  }
 0x28c   :  { %3502 = vmatpush2.bf16.msra.mxu0 %v18452_v2  ;;  %3452 = vmatprep.subr.bf16.mxu1 %v18463_v30  ;;  %v18494_v2 = vld [vmem:[#allocation9 + $0x860] ss:$16 sps:$4 sm:$0xff]  }
 0x28d   :  { %3503 = vmatprep.subr.bf16.mxu0 %v18460_v25  ;;  %v18505_v25 = vld [vmem:[#allocation9 + $0x22c] ss:$16 sps:$4 sm:$0xff]  }
 0x28f   :  { %3453 = vmatpush2.bf16.msra.mxu1 %v18461_v52  ;;  %v18502_v52 = vld [vmem:[#allocation9 + $0x844] ss:$16 sps:$4 sm:$0xff]  }
 0x290   :  { %3504 = vmatpush2.bf16.msra.mxu0 %v18458_v59  ;;  %3528 = vmatprep.subr.bf16.mxu1 %v18469_v51  ;;  %v18508_v59 = vld [vmem:[#allocation9 + $0x824] ss:$16 sps:$4 sm:$0xff]   ;;  %v18509_v51 = vld [vmem:[#allocation9 + $0x208] ss:$16 sps:$4 sm:$0xff]  }
 0x291   :  { %3505 = vmatprep.subr.bf16.mxu0 %v18466_v21  ;;  %v18511_v21 = vld [vmem:[#allocation9 + $0x20c] ss:$16 sps:$4 sm:$0xff]  }
 0x292   :  { %3455 = vmatmul.mubr.bf16.vlgmr.msra.gmra.mxu1 %v21352_v11 }
 0x293   :  { %3464 = vmatprep.mubr.bf16.mxu1 %v21402_v36  ;;  %3529 = vmatpush1.bf16.msra.mxu1 %v18467_v5  ;;  %v18514_v5 = vld [vmem:[#allocation9 + $0x804] ss:$16 sps:$4 sm:$0xff]  }
 0x294   :  { %3506 = vmatpush2.bf16.msra.mxu0 %v18464_v32  ;;  %3530 = vmatprep.subr.bf16.mxu1 %v18475_v56  ;;  %v18512_v32 = vld [vmem:[#allocation9 + $0x800] ss:$16 sps:$4 sm:$0xff]   ;;  %v18523_v56 = vld [vmem:[#allocation9 + $0x3cc] ss:$16 sps:$4 sm:$0xff]  }
 0x295   :  { %4470 = vmatprep.subr.bf16.mxu0 %v18472_v40  ;;  %v18520_v40 = vld [vmem:[#allocation9 + $0x9e4] ss:$16 sps:$4 sm:$0xff]  }
 0x297   :  { %3508 = vmatmul.mubr.bf16.vlgmr.msra.gmra.mxu0 %v21272_v26  ;;  %v21409_v12 = vpop.f32.mrf.mxu0  ;;  %3531 = vmatpush1.bf16.msra.mxu1 %v18473_v31  ;;  %v3755_v26 = vshrl.u32 %v3602_v4, 16  ;;  %v18521_v31 = vld [vmem:[#allocation9 + $0x3c8] ss:$16 sps:$4 sm:$0xff]   ;;  %v18518_v4 = vld [vmem:[#allocation9 + $0x9e0] ss:$16 sps:$4 sm:$0xff]  }
 0x298   :  { %3517 = vmatprep.mubr.bf16.mxu0 %v21381_v10  ;;  %4471 = vmatpush1.bf16.msra.mxu0 %v18470_v35  ;;  %v18526_v35 = vld [vmem:[#allocation9 + $0x9c4] ss:$16 sps:$4 sm:$0xff]  }
 0x299   :  { %v21413_v44 = vpop.f32.mrf.mxu0  ;;  %4472 = vmatprep.subr.bf16.mxu0 %v18478_v38  ;;  %3532 = vmatprep.subr.bf16.mxu1 %v18481_v39  ;;  %v3760_v18 = vor.u32 %v3759_v46, %v3755_v26  ;;  %v18529_v38 = vld [vmem:[#allocation9 + $0x3ac] ss:$16 sps:$4 sm:$0xff]   ;;  %v18527_v39 = vld [vmem:[#allocation9 + $0x3a8] ss:$16 sps:$4 sm:$0xff]  }
 0x29a   :  { %3465 = vmatmul.mubr.bf16.gmra.mxu1 %v21355_v7  ;;  %v18541_v46 = vld [vmem:[#allocation9 + $0x36c] ss:$16 sps:$4 sm:$0xff]  }
 0x29b   :  { %v2443_v1 = vpop.f32.mrf.mxu0  ;;  %3533 = vmatpush1.bf16.msra.mxu1 %v18479_v41  ;;  %3560 = vmatprep.mubr.bf16.mxu1 %v21389_v22  ;;  %v21424_v22 = vsel %vm1053_vm1, %v3760_v18, %v21417_v19  ;;  %v18524_v41 = vld [vmem:[#allocation9 + $0x9c0] ss:$16 sps:$4 sm:$0xff]   ;;  %v18547_v26 = vld [vmem:[#allocation9 + $0x34c] ss:$16 sps:$4 sm:$0xff]   ;;  %v18550_v18 = vld [vmem:[#allocation9 + $0x944] ss:$16 sps:$4 sm:$0xff]  }
 0x29c   :  { %4473 = vmatpush1.bf16.msra.mxu0 %v18476_v33  ;;  %3534 = vmatprep.subr.bf16.mxu1 %v18487_v42  ;;  %v18535_v33 = vld [vmem:[#allocation9 + $0x38c] ss:$16 sps:$4 sm:$0xff]   ;;  %v18533_v42 = vld [vmem:[#allocation9 + $0x388] ss:$16 sps:$4 sm:$0xff]   ;;  %v18544_v1 = vld [vmem:[#allocation9 + $0x964] ss:$16 sps:$4 sm:$0xff]  }
 0x29d   :  { %v2445_v10 = vpop.f32.mrf.mxu0  ;;  %4474 = vmatprep.subr.bf16.mxu0 %v18484_v37  ;;  %v18538_v37 = vld [vmem:[#allocation9 + $0x984] ss:$16 sps:$4 sm:$0xff]  }
 0x29e   :  { %v18542_v10 = vld [vmem:[#allocation9 + $0x960] ss:$16 sps:$4 sm:$0xff]  }
 0x29f   :  { %3518 = vmatmul.mubr.bf16.gmra.mxu0 %v21275_v27  ;;  %v21420_v15 = vpop.f32.mrf.mxu0  ;;  %3535 = vmatpush1.bf16.msra.mxu1 %v18485_v43  ;;  %v18536_v43 = vld [vmem:[#allocation9 + $0x980] ss:$16 sps:$4 sm:$0xff]  }
 0x2a0   :  { %4475 = vmatpush1.bf16.msra.mxu0 %v18482_v47  ;;  %4502 = vmatprep.mubr.bf16.mxu0 %v21424_v22  ;;  %v18539_v47 = vld [vmem:[#allocation9 + $0x368] ss:$16 sps:$4 sm:$0xff]  }
 0x2a1   :  { %v21427_v24 = vpop.f32.mrf.mxu0  ;;  %4476 = vmatprep.subr.bf16.mxu0 %v18490_v17  ;;  %3536 = vmatprep.subr.bf16.mxu1 %v18493_v9  ;;  %v18545_v17 = vld [vmem:[#allocation9 + $0x348] ss:$16 sps:$4 sm:$0xff]  }
 0x2a2   :  { %v3581_v9 = vld [vmem:[#allocation3 + $0x108] sm:$0xfe] }
 0x2a3   :  { %v2453_v30 = vpop.f32.mrf.mxu0  ;;  %3537 = vmatpush1.bf16.msra.mxu1 %v18491_v6  ;;  %v18553_v6 = vld [vmem:[#allocation9 + $0x32c] ss:$16 sps:$4 sm:$0xff]  }
 0x2a4   :  { %4477 = vmatpush1.bf16.msra.mxu0 %v18488_v13  ;;  %3538 = vmatprep.subr.bf16.mxu1 %v18499_v50  ;;  %v18551_v13 = vld [vmem:[#allocation9 + $0x328] ss:$16 sps:$4 sm:$0xff]  }
 0x2a5   :  { %v2455_v27 = vpop.f32.mrf.mxu0  ;;  %4478 = vmatprep.subr.bf16.mxu0 %v18496_v20  ;;  %v3589_v50 = vld [vmem:[#allocation3 + $0xe8] sm:$0xff]  ;;  %v18548_v20 = vld [vmem:[#allocation9 + $0x940] ss:$16 sps:$4 sm:$0xff]   ;;  %v3584_v30 = vld [vmem:[#allocation3 + $0x118] sm:$0xfe] }
 0x2a6   :  { %v3601_v27 = vpack.c.bf16 %v21396_v54, %v3581_v9  ;;  %v18575_v9 = vld [vmem:[#allocation9 + $0xaa0] ss:$16 sps:$4 sm:$0xff]  }
 0x2a7   :  { %3539 = vmatpush1.bf16.msra.mxu1 %v18497_v8  ;;  %v3598_v8 = vld [vmem:[#allocation3 + $0x78] sm:$0x1] }
 0x2a8   :  { %4479 = vmatpush1.bf16.msra.mxu0 %v18494_v2  ;;  %3540 = vmatprep.subr.bf16.mxu1 %v18505_v25  ;;  %v18556_v2 = vld [vmem:[#allocation9 + $0x924] ss:$16 sps:$4 sm:$0xff]   ;;  %v18559_v25 = vld [vmem:[#allocation9 + $0x30c] ss:$16 sps:$4 sm:$0xff]  }
 0x2a9   :  { %4480 = vmatprep.subr.bf16.mxu0 %v18502_v52  ;;  %v18557_v52 = vld [vmem:[#allocation9 + $0x308] ss:$16 sps:$4 sm:$0xff]  }
 0x2ab   :  { %3541 = vmatpush1.bf16.msra.mxu1 %v18503_v34  ;;  %v18554_v34 = vld [vmem:[#allocation9 + $0x920] ss:$16 sps:$4 sm:$0xff]  }
 0x2ac   :  { %4481 = vmatpush1.bf16.msra.mxu0 %v18500_v16  ;;  %3542 = vmatprep.subr.bf16.mxu1 %v18511_v21  ;;  %v3592_v16 = vld [vmem:[#allocation3 + $0x88] sm:$0xff] }
 0x2ad   :  { %4482 = vmatprep.subr.bf16.mxu0 %v18508_v59  ;;  %v21431_v59 = vpack.c.bf16 %v21396_v54, %v3589_v50  ;;  %v18562_v21 = vld [vmem:[#allocation9 + $0x904] ss:$16 sps:$4 sm:$0xff]  }
 0x2af   :  { %3543 = vmatpush1.bf16.msra.mxu1 %v18509_v51  ;;  %v18565_v51 = vld [vmem:[#allocation9 + $0xae4] ss:$16 sps:$4 sm:$0xff]  }
 0x2b0   :  { %4483 = vmatpush1.bf16.msra.mxu0 %v18506_v23  ;;  %3544 = vmatprep.subr.bf16.mxu1 %v18517_v28  ;;  %v3610_v23 = vpack.c.bf16 %v3598_v8, %v3598_v8  ;;  %v3597_v28 = vld [vmem:[#allocation3] sm:$0x1]  ;;  %v18583_v8 = vld [vmem:[#allocation9 + $0xa84] ss:$16 sps:$4 sm:$0xff]  }
 0x2b1   :  { %4484 = vmatprep.subr.bf16.mxu0 %v18514_v5  ;;  %v3745_v5 = vshll.u32 %v3601_v27, 16 }
 0x2b3   :  { %3545 = vmatpush2.bf16.msra.mxu1 %v18515_v29  ;;  %v3604_v29 = vpack.c.bf16 %v21396_v54, %v3584_v30  ;;  %v18580_v30 = vld [vmem:[#allocation9 + $0x8ac] ss:$16 sps:$4 sm:$0xff]  }
 0x2b4   :  { %4485 = vmatpush1.bf16.msra.mxu0 %v18512_v32  ;;  %3546 = vmatprep.subr.bf16.mxu1 %v18523_v56  ;;  %v18563_v32 = vld [vmem:[#allocation9 + $0xae0] ss:$16 sps:$4 sm:$0xff]   ;;  %v3750_v56 = vshll.u32 %v21431_v59, 16 }
 0x2b5   :  { %4486 = vmatprep.subr.bf16.mxu0 %v18520_v40  ;;  %v18560_v40 = vld [vmem:[#allocation9 + $0x900] ss:$16 sps:$4 sm:$0xff]   ;;  %v3779_v50 = vshrl.u32 %v3604_v29, 16 }
 0x2b7   :  { %3547 = vmatpush2.bf16.msra.mxu1 %v18521_v31  ;;  %v18571_v31 = vld [vmem:[#allocation9 + $0xac4] ss:$16 sps:$4 sm:$0xff]  }
 0x2b8   :  { %4487 = vmatpush2.bf16.msra.mxu0 %v18518_v4  ;;  %3548 = vmatprep.subr.bf16.mxu1 %v18529_v38  ;;  %v21436_v4 = vpack.c.bf16 %v21396_v54, %v3592_v16  ;;  %v3802_v38 = vshll.u32 %v3610_v23, 16  ;;  %v18578_v23 = vld [vmem:[#allocation9 + $0x8a8] ss:$16 sps:$4 sm:$0xff]  }
 0x2b9   :  { %4488 = vmatprep.subr.bf16.mxu0 %v18526_v35  ;;  %v18568_v35 = vld [vmem:[#allocation9 + $0x8ec] ss:$16 sps:$4 sm:$0xff]  }
 0x2bb   :  { %3549 = vmatpush2.bf16.msra.mxu1 %v18527_v39  ;;  %v3747_v39 = vrot.slane %v3745_v5, 1 }
 0x2bc   :  { %4489 = vmatpush2.bf16.msra.mxu0 %v18524_v41  ;;  %3550 = vmatprep.subr.bf16.mxu1 %v18535_v33  ;;  %v3781_v41 = vshll.u32 %v3604_v29, 16  ;;  %v3798_v33 = vshrl.u32 %v21406_v58, 16  ;;  %v18574_v58 = vld [vmem:[#allocation9 + $0x8cc] ss:$16 sps:$4 sm:$0xff]  }
 0x2bd   :  { %4490 = vmatprep.subr.bf16.mxu0 %v18532_v49 }
 0x2bf   :  { %3551 = vmatpush2.bf16.msra.mxu1 %v18533_v42  ;;  %v18569_v42 = vld [vmem:[#allocation9 + $0xac0] ss:$16 sps:$4 sm:$0xff]  }
 0x2c0   :  { %4491 = vmatpush2.bf16.msra.mxu0 %v18530_v62  ;;  %3552 = vmatprep.subr.bf16.mxu1 %v18541_v46  ;;  %v3609_v62 = vpack.c.bf16 %v3597_v28, %v3597_v28  ;;  %v3752_v46 = vrot.slane %v3750_v56, 1 }
 0x2c1   :  { %4492 = vmatprep.subr.bf16.mxu0 %v18538_v37  ;;  %v3743_v37 = vshrl.u32 %v3601_v27, 16  ;;  %v3790_v27 = vshrl.u32 %v21431_v59, 16  ;;  %v18586_v59 = vld [vmem:[#allocation9 + $0x88c] ss:$16 sps:$4 sm:$0xff]  }
 0x2c3   :  { %3553 = vmatpush2.bf16.msra.mxu1 %v18539_v47  ;;  %v18566_v47 = vld [vmem:[#allocation9 + $0x8e8] ss:$16 sps:$4 sm:$0xff]  }
 0x2c4   :  { %4493 = vmatpush2.bf16.msra.mxu0 %v18536_v43  ;;  %3554 = vmatprep.subr.bf16.mxu1 %v18547_v26  ;;  %v3786_v43 = vshll.u32 %v21436_v4, 16  ;;  %v3804_v26 = vrot.slane %v3802_v38, 1 }
 0x2c5   :  { %4494 = vmatprep.subr.bf16.mxu0 %v18544_v1  ;;  %v3800_v1 = vor.u32 %v3798_v33, %v21417_v19  ;;  %v3794_v19 = vshll.u32 %v3609_v62, 16  ;;  %v18592_v33 = vld [vmem:[#allocation9 + $0x86c] ss:$16 sps:$4 sm:$0xff]  }
 0x2c7   :  { %3555 = vmatpush2.bf16.msra.mxu1 %v18545_v17 }
 0x2c8   :  { %4495 = vmatpush2.bf16.msra.mxu0 %v18542_v10  ;;  %3556 = vmatprep.subr.bf16.mxu1 %v18553_v6  ;;  %v18577_v10 = vld [vmem:[#allocation9 + $0xaa4] ss:$16 sps:$4 sm:$0xff]   ;;  %v3783_v6 = vrot.slane %v3781_v41, 1 }
 0x2c9   :  { %4496 = vmatprep.subr.bf16.mxu0 %v18550_v18  ;;  %v3748_v18 = vor.u32 %v3747_v39, %v3743_v37  ;;  %v18584_v39 = vld [vmem:[#allocation9 + $0x888] ss:$16 sps:$4 sm:$0xff]   ;;  %v18595_v41 = vld [vmem:[#allocation9 + $0xa44] ss:$16 sps:$4 sm:$0xff]  }
 0x2ca   :  { %v18590_v37 = vld [vmem:[#allocation9 + $0x868] ss:$16 sps:$4 sm:$0xff]  }
 0x2cb   :  { %3557 = vmatpush2.bf16.msra.mxu1 %v18551_v13  ;;  %v21450_v13 = vsel %vm1053_vm1, %v3748_v18, %v3752_v46  ;;  %v18602_v18 = vld [vmem:[#allocation9 + $0x828] ss:$16 sps:$4 sm:$0xff]  }
 0x2cc   :  { %4497 = vmatpush2.bf16.msra.mxu0 %v18548_v20  ;;  %3558 = vmatprep.subr.bf16.mxu1 %v18559_v25  ;;  %v21452_v20 = vrot.slane %v3786_v43, 1  ;;  %v18598_v43 = vld [vmem:[#allocation9 + $0x84c] ss:$16 sps:$4 sm:$0xff]  }
 0x2cd   :  { %4498 = vmatprep.subr.bf16.mxu0 %v18556_v2 }
 0x2cf   :  { %3559 = vmatpush2.bf16.msra.mxu1 %v18557_v52  ;;  %v3784_v52 = vor.u32 %v3783_v6, %v3779_v50  ;;  %v18613_v6 = vld [vmem:[#allocation9 + $0xbe4] ss:$16 sps:$4 sm:$0xff]   ;;  %v18616_v50 = vld [vmem:[#allocation9 + $0x9ec] ss:$16 sps:$4 sm:$0xff]  }
 0x2d0   :  { %4499 = vmatpush2.bf16.msra.mxu0 %v18554_v34  ;;  %4523 = vmatprep.subr.bf16.mxu1 %v18565_v51  ;;  %v18581_v34 = vld [vmem:[#allocation9 + $0xa80] ss:$16 sps:$4 sm:$0xff]   ;;  %v3796_v51 = vrot.slane %v3794_v19, 1  ;;  %v18619_v19 = vld [vmem:[#allocation9 + $0xbc4] ss:$16 sps:$4 sm:$0xff]  }
 0x2d1   :  { %4500 = vmatprep.subr.bf16.mxu0 %v18562_v21  ;;  %v2492_v49 = vpop.f32.mrf.mxu1  ;;  %v3792_v21 = vor.u32 %v3790_v27, %v3752_v46  ;;  %v21467_v28 = vsel %vm1053_vm1, %v3784_v52, %v21452_v20  ;;  %v18601_v46 = vld [vmem:[#allocation9 + $0xa24] ss:$16 sps:$4 sm:$0xff]   ;;  %v18622_v27 = vld [vmem:[#allocation9 + $0x9cc] ss:$16 sps:$4 sm:$0xff]   ;;  %v18623_v52 = vld [vmem:[#allocation9 + $0xba0] ss:$16 sps:$4 sm:$0xff]  }
 0x2d2   :  { %3561 = vmatmul.mubr.bf16.vlgmr.msra.gmra.mxu1 %v21352_v11  ;;  %v21441_v54 = vadd.f32 %v2492_v49, %v21409_v12 }
 0x2d3   :  { %3570 = vmatprep.mubr.bf16.mxu1 %v21402_v36  ;;  %4524 = vmatpush1.bf16.msra.mxu1 %v18563_v32  ;;  %v2494_v17 = vpop.f32.mrf.mxu1  ;;  %v18572_v36 = vld [vmem:[#allocation9 + $0x8c8] ss:$16 sps:$4 sm:$0xff]   ;;  %v21477_v38 = vsel %vm1053_vm1, %v3792_v21, %v3796_v51  ;;  %v18631_v21 = vld [vmem:[#allocation9 + $0xb84] ss:$16 sps:$4 sm:$0xff]   ;;  %v18628_v51 = vld [vmem:[#allocation9 + $0x9ac] ss:$16 sps:$4 sm:$0xff]  }
 0x2d4   :  { %4501 = vmatpush2.bf16.msra.mxu0 %v18560_v40  ;;  %v21447_v11 = vadd.f32 %v2494_v17, %v21413_v44  ;;  %4525 = vmatprep.subr.bf16.mxu1 %v18571_v31  ;;  %v21458_v44 = vsel %vm1053_vm1, %v3800_v1, %v3804_v26  ;;  %v18589_v40 = vld [vmem:[#allocation9 + $0xa64] ss:$16 sps:$4 sm:$0xff]   ;;  %v18599_v26 = vld [vmem:[#allocation9 + $0xa20] ss:$16 sps:$4 sm:$0xff]   ;;  %v18596_v17 = vld [vmem:[#allocation9 + $0x848] ss:$16 sps:$4 sm:$0xff]  }
 0x2d5   :  { %4576 = vmatprep.subr.bf16.mxu0 %v18568_v35  ;;  %v2496_v12 = vpop.f32.mrf.mxu1  ;;  %v18587_v35 = vld [vmem:[#allocation9 + $0xa60] ss:$16 sps:$4 sm:$0xff]  }
 0x2d6   :  { %v18610_v12 = vld [vmem:[#allocation9 + $0x80c] ss:$16 sps:$4 sm:$0xff]  }
 0x2d7   :  { %v21454_v2 = vpop.f32.mrf.mxu0  ;;  %4503 = vmatmul.mubr.bf16.vlgmr.msra.gmra.mxu0 %v21450_v13  ;;  %4526 = vmatpush1.bf16.msra.mxu1 %v18569_v42  ;;  %v2498_v25 = vpop.f32.mrf.mxu1 }
 0x2d8   :  { %4512 = vmatprep.mubr.bf16.mxu0 %v21458_v44  ;;  %4577 = vmatpush1.bf16.msra.mxu0 %v18566_v47  ;;  %v18614_v25 = vld [vmem:[#allocation9 + $0x9e8] ss:$16 sps:$4 sm:$0xff]  }
 0x2d9   :  { %v21462_v16 = vpop.f32.mrf.mxu0  ;;  %4578 = vmatprep.subr.bf16.mxu0 %v18574_v58  ;;  %4527 = vmatprep.subr.bf16.mxu1 %v18577_v10  ;;  %v18607_v58 = vld [vmem:[#allocation9 + $0xa04] ss:$16 sps:$4 sm:$0xff]   ;;  %v18605_v10 = vld [vmem:[#allocation9 + $0xa00] ss:$16 sps:$4 sm:$0xff]  }
 0x2da   :  { %3571 = vmatmul.mubr.bf16.gmra.mxu1 %v21355_v7  ;;  %v2502_v5 = vpop.f32.mrf.mxu1 }
 0x2db   :  { %v2549_v29 = vpop.f32.mrf.mxu0  ;;  %v21470_v32 = vadd.f32 %v2502_v5, %v21420_v15  ;;  %4528 = vmatpush1.bf16.msra.mxu1 %v18575_v9  ;;  %4555 = vmatprep.mubr.bf16.mxu1 %v21467_v28  ;;  %v18611_v9 = vld [vmem:[#allocation9 + $0xbe0] ss:$16 sps:$4 sm:$0xff]   ;;  %v18626_v5 = vld [vmem:[#allocation9 + $0x9a8] ss:$16 sps:$4 sm:$0xff]  }
 0x2dc   :  { %4579 = vmatpush1.bf16.msra.mxu0 %v18572_v36  ;;  %v2504_v56 = vpop.f32.mrf.mxu1  ;;  %4529 = vmatprep.subr.bf16.mxu1 %v18583_v8  ;;  %v18608_v36 = vld [vmem:[#allocation9 + $0x808] ss:$16 sps:$4 sm:$0xff]   ;;  %v18617_v8 = vld [vmem:[#allocation9 + $0xbc0] ss:$16 sps:$4 sm:$0xff]   ;;  %v18637_v29 = vld [vmem:[#allocation9 + $0xb64] ss:$16 sps:$4 sm:$0xff]  }
 0x2dd   :  { %v2551_v7 = vpop.f32.mrf.mxu0  ;;  %4580 = vmatprep.subr.bf16.mxu0 %v18580_v30  ;;  %v21474_v31 = vadd.f32 %v2504_v56, %v21427_v24  ;;  %v18593_v24 = vld [vmem:[#allocation9 + $0xa40] ss:$16 sps:$4 sm:$0xff]   ;;  %v18625_v30 = vld [vmem:[#allocation9 + $0xba4] ss:$16 sps:$4 sm:$0xff]   ;;  %v18632_v56 = vld [vmem:[#allocation9 + $0x988] ss:$16 sps:$4 sm:$0xff]  }
 0x2de   :  { %v2506_v15 = vpop.f32.mrf.mxu1  ;;  %v18643_v7 = vld [vmem:[#allocation9 + $0xb44] ss:$16 sps:$4 sm:$0xff]  }
 0x2df   :  { %v21479_v49 = vpop.f32.mrf.mxu0  ;;  %4513 = vmatmul.mubr.bf16.gmra.mxu0 %v21477_v38  ;;  %4530 = vmatpush1.bf16.msra.mxu1 %v18581_v34  ;;  %v18620_v34 = vld [vmem:[#allocation9 + $0x9c8] ss:$16 sps:$4 sm:$0xff]   ;;  %v3591_v15 = vld [vmem:[#allocation3 + $0x20] sm:$0xff] }
 0x2e0   :  { %4581 = vmatpush1.bf16.msra.mxu0 %v18578_v23  ;;  %4608 = vmatprep.mubr.bf16.mxu0 %v21424_v22  ;;  %v2508_v42 = vpop.f32.mrf.mxu1  ;;  %v18604_v22 = vld [vmem:[#allocation9 + $0x82c] ss:$16 sps:$4 sm:$0xff]   ;;  %v18629_v23 = vld [vmem:[#allocation9 + $0xb80] ss:$16 sps:$4 sm:$0xff]  }
 0x2e1   :  { %v21483_v62 = vpop.f32.mrf.mxu0  ;;  %4582 = vmatprep.subr.bf16.mxu0 %v18586_v59  ;;  %4531 = vmatprep.subr.bf16.mxu1 %v18589_v40  ;;  %v18634_v59 = vld [vmem:[#allocation9 + $0x98c] ss:$16 sps:$4 sm:$0xff]   ;;  %v18635_v40 = vld [vmem:[#allocation9 + $0xb60] ss:$16 sps:$4 sm:$0xff]   ;;  %v18638_v42 = vld [vmem:[#allocation9 + $0x968] ss:$16 sps:$4 sm:$0xff]  }
 0x2e3   :  { %v2559_v47 = vpop.f32.mrf.mxu0  ;;  %4532 = vmatpush1.bf16.msra.mxu1 %v18587_v35  ;;  %v3583_v35 = vld [vmem:[#allocation3 + $0x90] sm:$0xfe] }
 0x2e4   :  { %4583 = vmatpush1.bf16.msra.mxu0 %v18584_v39  ;;  %4533 = vmatprep.subr.bf16.mxu1 %v18595_v41  ;;  %v18640_v39 = vld [vmem:[#allocation9 + $0x96c] ss:$16 sps:$4 sm:$0xff]   ;;  %v18641_v41 = vld [vmem:[#allocation9 + $0xb40] ss:$16 sps:$4 sm:$0xff]  }
 0x2e5   :  { %v2561_v1 = vpop.f32.mrf.mxu0  ;;  %4584 = vmatprep.subr.bf16.mxu0 %v18592_v33  ;;  %v3600_v33 = vld [vmem:[#allocation3 + $0x68] sm:$0x1] }
 0x2e7   :  { %4534 = vmatpush1.bf16.msra.mxu1 %v18593_v24  ;;  %v18649_v24 = vld [vmem:[#allocation9 + $0xb24] ss:$16 sps:$4 sm:$0xff]  }
 0x2e8   :  { %4585 = vmatpush1.bf16.msra.mxu0 %v18590_v37  ;;  %4535 = vmatprep.subr.bf16.mxu1 %v18601_v46  ;;  %v18646_v37 = vld [vmem:[#allocation9 + $0x94c] ss:$16 sps:$4 sm:$0xff]  }
 0x2e9   :  { %4586 = vmatprep.subr.bf16.mxu0 %v18598_v43  ;;  %v20198_v46 = vld [vmem:[#allocation2 + $0x20] sm:$0xff] }
 0x2ea   :  { %v3603_v47 = vpack.c.bf16 %v20198_v46, %v3583_v35  ;;  %v18647_v43 = vld [vmem:[#allocation9 + $0xb20] ss:$16 sps:$4 sm:$0xff]   ;;  %v3607_v1 = vpack.c.bf16 %v20198_v46, %v3591_v15  ;;  %v18667_v35 = vld [vmem:[#allocation9 + $0xaac] ss:$16 sps:$4 sm:$0xff]  }
 0x2eb   :  { %4536 = vmatpush1.bf16.msra.mxu1 %v18599_v26  ;;  %v18644_v26 = vld [vmem:[#allocation9 + $0x948] ss:$16 sps:$4 sm:$0xff]   ;;  %v18670_v46 = vld [vmem:[#allocation9 + $0xa8c] ss:$16 sps:$4 sm:$0xff]  }
 0x2ec   :  { %4587 = vmatpush1.bf16.msra.mxu0 %v18596_v17  ;;  %4537 = vmatprep.subr.bf16.mxu1 %v18607_v58  ;;  %v18655_v17 = vld [vmem:[#allocation9 + $0xb04] ss:$16 sps:$4 sm:$0xff]   ;;  %v3612_v58 = vpack.c.bf16 %v3600_v33, %v3600_v33 }
 0x2ed   :  { %4588 = vmatprep.subr.bf16.mxu0 %v18604_v22  ;;  %v18652_v22 = vld [vmem:[#allocation9 + $0x92c] ss:$16 sps:$4 sm:$0xff]  }
 0x2ef   :  { %4538 = vmatpush1.bf16.msra.mxu1 %v18605_v10  ;;  %v3769_v10 = vshll.u32 %v3603_v47, 16 }
 0x2f0   :  { %4589 = vmatpush1.bf16.msra.mxu0 %v18602_v18  ;;  %4539 = vmatprep.subr.bf16.mxu1 %v18613_v6  ;;  %v3599_v18 = vld [vmem:[#allocation3 + $0x50] sm:$0x1]  ;;  %v18653_v6 = vld [vmem:[#allocation9 + $0xb00] ss:$16 sps:$4 sm:$0xff]  }
 0x2f1   :  { %4590 = vmatprep.subr.bf16.mxu0 %v18610_v12  ;;  %v3774_v12 = vshll.u32 %v3607_v1, 16 }
 0x2f3   :  { %4540 = vmatpush2.bf16.msra.mxu1 %v18611_v9  ;;  %v18650_v9 = vld [vmem:[#allocation9 + $0x928] ss:$16 sps:$4 sm:$0xff]  }
 0x2f4   :  { %4591 = vmatpush1.bf16.msra.mxu0 %v18608_v36  ;;  %4541 = vmatprep.subr.bf16.mxu1 %v18619_v19  ;;  %v18661_v36 = vld [vmem:[#allocation9 + $0xaec] ss:$16 sps:$4 sm:$0xff]   ;;  %v3818_v19 = vshll.u32 %v3612_v58, 16 }
 0x2f5   :  { %4592 = vmatprep.subr.bf16.mxu0 %v18616_v50  ;;  %v18658_v50 = vld [vmem:[#allocation9 + $0x90c] ss:$16 sps:$4 sm:$0xff]  }
 0x2f7   :  { %4542 = vmatpush2.bf16.msra.mxu1 %v18617_v8  ;;  %v3771_v8 = vrot.slane %v3769_v10, 1 }
 0x2f8   :  { %4593 = vmatpush2.bf16.msra.mxu0 %v18614_v25  ;;  %4543 = vmatprep.subr.bf16.mxu1 %v18625_v30  ;;  %v3814_v25 = vshrl.u32 %v21436_v4, 16  ;;  %v3767_v30 = vshrl.u32 %v3603_v47, 16 }
 0x2f9   :  { %4594 = vmatprep.subr.bf16.mxu0 %v18622_v27  ;;  %v3776_v27 = vrot.slane %v3774_v12, 1  ;;  %v18676_v12 = vld [vmem:[#allocation9 + $0xa4c] ss:$16 sps:$4 sm:$0xff]  }
 0x2fb   :  { %4544 = vmatpush2.bf16.msra.mxu1 %v18623_v52  ;;  %v18659_v52 = vld [vmem:[#allocation9 + $0xae8] ss:$16 sps:$4 sm:$0xff]  }
 0x2fc   :  { %4595 = vmatpush2.bf16.msra.mxu0 %v18620_v34  ;;  %4545 = vmatprep.subr.bf16.mxu1 %v18631_v21  ;;  %v3611_v34 = vpack.c.bf16 %v3599_v18, %v3599_v18  ;;  %v18656_v21 = vld [vmem:[#allocation9 + $0x908] ss:$16 sps:$4 sm:$0xff]  }
 0x2fd   :  { %4596 = vmatprep.subr.bf16.mxu0 %v18628_v51  ;;  %v3816_v51 = vor.u32 %v3814_v25, %v21452_v20 }
 0x2fe   :  { %v3810_v4 = vshll.u32 %v3611_v34, 16  ;;  %v18710_v34 = vld [vmem:[#allocation12 + $0x4c0] ss:$16 sps:$4 sm:$0xff]  }
 0x2ff   :  { %4546 = vmatpush2.bf16.msra.mxu1 %v18629_v23  ;;  %v3820_v23 = vrot.slane %v3818_v19, 1 }
 0x300   :  { %4597 = vmatpush2.bf16.msra.mxu0 %v18626_v5  ;;  %4547 = vmatprep.subr.bf16.mxu1 %v18637_v29  ;;  %v18664_v5 = vld [vmem:[#allocation9 + $0xacc] ss:$16 sps:$4 sm:$0xff]   ;;  %v3772_v29 = vor.u32 %v3771_v8, %v3767_v30  ;;  %v18707_v30 = vld [vmem:[#allocation12 + $0x4e0] ss:$16 sps:$4 sm:$0xff]  }
 0x301   :  { %4598 = vmatprep.subr.bf16.mxu0 %v18634_v59  ;;  %v18679_v8 = vld [vmem:[#allocation9 + $0xa2c] ss:$16 sps:$4 sm:$0xff]  }
 0x302   :  { %v21488_v59 = vsel %vm1053_vm1, %v3772_v29, %v3776_v27  ;;  %v18683_v29 = vld [vmem:[#allocation9 + $0xbe8] ss:$16 sps:$4 sm:$0xff]  }
 0x303   :  { %4548 = vmatpush2.bf16.msra.mxu1 %v18635_v40  ;;  %v18662_v40 = vld [vmem:[#allocation9 + $0xac8] ss:$16 sps:$4 sm:$0xff]  }
 0x304   :  { %4599 = vmatpush2.bf16.msra.mxu0 %v18632_v56  ;;  %4549 = vmatprep.subr.bf16.mxu1 %v18643_v7  ;;  %v21492_v7 = vsel %vm1053_vm1, %v3816_v51, %v3820_v23  ;;  %v18715_v51 = vld [vmem:[#allocation12 + $0x4a4] ss:$16 sps:$4 sm:$0xff]   ;;  %v18713_v23 = vld [vmem:[#allocation12 + $0x4a0] ss:$16 sps:$4 sm:$0xff]  }
 0x305   :  { %4600 = vmatprep.subr.bf16.mxu0 %v18640_v39  ;;  %v3806_v39 = vshrl.u32 %v3607_v1, 16 }
 0x307   :  { %4550 = vmatpush2.bf16.msra.mxu1 %v18641_v41  ;;  %v3808_v33 = vor.u32 %v3806_v39, %v3776_v27  ;;  %v18709_v27 = vld [vmem:[#allocation12 + $0x4e4] ss:$16 sps:$4 sm:$0xff]   ;;  %v18691_v39 = vld [vmem:[#allocation9 + $0xbac] ss:$16 sps:$4 sm:$0xff]  }
 0x308   :  { %4601 = vmatpush2.bf16.msra.mxu0 %v18638_v42  ;;  %4551 = vmatprep.subr.bf16.mxu1 %v18649_v24  ;;  %v3812_v42 = vrot.slane %v3810_v4, 1  ;;  %v18665_v24 = vld [vmem:[#allocation9 + $0xaa8] ss:$16 sps:$4 sm:$0xff]   ;;  %v18716_v4 = vld [vmem:[#allocation12 + $0x480] ss:$16 sps:$4 sm:$0xff]  }
 0x309   :  { %4602 = vmatprep.subr.bf16.mxu0 %v18646_v37 }
 0x30b   :  { %4552 = vmatpush2.bf16.msra.mxu1 %v18647_v43 }
 0x30c   :  { %4603 = vmatpush2.bf16.msra.mxu0 %v18644_v26  ;;  %4553 = vmatprep.subr.bf16.mxu1 %v18655_v17  ;;  %v18668_v26 = vld [vmem:[#allocation9 + $0xa88] ss:$16 sps:$4 sm:$0xff]  }
 0x30d   :  { %4604 = vmatprep.subr.bf16.mxu0 %v18652_v22 }
 0x30f   :  { %4554 = vmatpush2.bf16.msra.mxu1 %v18653_v6  ;;  %v18671_v6 = vld [vmem:[#allocation9 + $0xa68] ss:$16 sps:$4 sm:$0xff]  }
 0x310   :  { %4605 = vmatpush2.bf16.msra.mxu0 %v18650_v9  ;;  %4629 = vmatprep.subr.bf16.mxu1 %v18661_v36 }
 0x311   :  { %4606 = vmatprep.subr.bf16.mxu0 %v18658_v50 }
 0x312   :  { %v2598_v56 = vpop.f32.mrf.mxu1  ;;  %4556 = vmatmul.mubr.bf16.vlgmr.msra.gmra.mxu1 %v21488_v59 }
 0x313   :  { %v21495_v20 = vadd.f32 %v2598_v56, %v21454_v2  ;;  %4565 = vmatprep.mubr.bf16.mxu1 %v21492_v7  ;;  %4630 = vmatpush1.bf16.msra.mxu1 %v18659_v52  ;;  %v18712_v52 = vld [vmem:[#allocation12 + $0x4c4] ss:$16 sps:$4 sm:$0xff]  }
 0x314   :  { %4607 = vmatpush2.bf16.msra.mxu0 %v18656_v21  ;;  %v2600_v15 = vpop.f32.mrf.mxu1  ;;  %4631 = vmatprep.subr.bf16.mxu1 %v18664_v5  ;;  %v18680_v21 = vld [vmem:[#allocation9 + $0xa08] ss:$16 sps:$4 sm:$0xff]  }
 0x315   :  { %v21499_v41 = vadd.f32 %v2600_v15, %v21462_v16  ;;  %v21507_v16 = vsel %vm1053_vm1, %v3808_v33, %v3812_v42  ;;  %5971 = vmatprep.subr.bf16.mxu0 %v18709_v27  ;;  %v18718_v5 = vld [vmem:[#allocation12 + $0x484] ss:$16 sps:$4 sm:$0xff]   ;;  %v18719_v15 = vld [vmem:[#allocation12 + $0x460] ss:$16 sps:$4 sm:$0xff]  }
 0x316   :  { %v2602_v37 = vpop.f32.mrf.mxu1  ;;  %v18721_v56 = vld [vmem:[#allocation12 + $0x464] ss:$16 sps:$4 sm:$0xff]  }
 0x317   :  { %v3403_v47 = vpop.f32.mrf.mxu0  ;;  %4609 = vmatmul.mubr.bf16.vlgmr.msra.gmra.mxu0 %v21450_v13  ;;  %4632 = vmatpush1.bf16.msra.mxu1 %v18662_v40  ;;  %v18673_v13 = vld [vmem:[#allocation9 + $0xa6c] ss:$16 sps:$4 sm:$0xff]   ;;  %v18724_v33 = vld [vmem:[#allocation12 + $0x444] ss:$16 sps:$4 sm:$0xff]   ;;  %v18722_v37 = vld [vmem:[#allocation12 + $0x440] ss:$16 sps:$4 sm:$0xff]  }
 0x318   :  { %v21503_v2 = vadd.f32 %v3403_v47, %v21441_v54  ;;  %4618 = vmatprep.mubr.bf16.mxu0 %v21458_v44  ;;  %v2604_v43 = vpop.f32.mrf.mxu1  ;;  %4633 = vmatprep.subr.bf16.mxu1 %v18667_v35  ;;  %v18688_v40 = vld [vmem:[#allocation9 + $0xbcc] ss:$16 sps:$4 sm:$0xff]   ;;  %v18686_v35 = vld [vmem:[#allocation9 + $0xbc8] ss:$16 sps:$4 sm:$0xff]  }
 0x319   :  { %v3405_v1 = vpop.f32.mrf.mxu0  ;;  %5972 = vmatpush1.bf16.msra.mxu0 %v18707_v30  ;;  %v18689_v42 = vld [vmem:[#allocation9 + $0xba8] ss:$16 sps:$4 sm:$0xff]   ;;  %v18697_v43 = vld [vmem:[#allocation9 + $0xb6c] ss:$16 sps:$4 sm:$0xff]  }
 0x31a   :  { %v21510_v17 = vadd.f32 %v3405_v1, %v21447_v11  ;;  %v2608_v58 = vpop.f32.mrf.mxu1  ;;  %4566 = vmatmul.mubr.bf16.gmra.mxu1 %v21507_v16  ;;  %5973 = vmatprep.subr.bf16.mxu0 %v18712_v52  ;;  %v18692_v47 = vld [vmem:[#allocation9 + $0xb88] ss:$16 sps:$4 sm:$0xff]   ;;  %v18725_v1 = vld [vmem:[#allocation12 + $0x420] ss:$16 sps:$4 sm:$0xff]  }
 0x31b   :  { %v3407_v22 = vpop.f32.mrf.mxu0  ;;  %v21514_v54 = vadd.f32 %v2608_v58, %v21479_v49  ;;  %4634 = vmatpush1.bf16.msra.mxu1 %v18665_v24  ;;  %4661 = vmatprep.mubr.bf16.mxu1 %v21467_v28  ;;  %v18674_v28 = vld [vmem:[#allocation9 + $0xa48] ss:$16 sps:$4 sm:$0xff]   ;;  %v18694_v24 = vld [vmem:[#allocation9 + $0xb8c] ss:$16 sps:$4 sm:$0xff]  }
 0x31c   :  { %v2610_v44 = vpop.f32.mrf.mxu1  ;;  %4635 = vmatprep.subr.bf16.mxu1 %v18670_v46  ;;  %v18727_v46 = vld [vmem:[#allocation12 + $0x424] ss:$16 sps:$4 sm:$0xff]   ;;  %v18700_v58 = vld [vmem:[#allocation9 + $0xb4c] ss:$16 sps:$4 sm:$0xff]  }
 0x31d   :  { %v3409_v10 = vpop.f32.mrf.mxu0  ;;  %v21518_v18 = vadd.f32 %v2610_v44, %v21483_v62  ;;  %5974 = vmatpush1.bf16.msra.mxu0 %v18710_v34  ;;  %v18703_v22 = vld [vmem:[#allocation9 + $0xb2c] ss:$16 sps:$4 sm:$0xff]   ;;  %v18701_v44 = vld [vmem:[#allocation9 + $0xb28] ss:$16 sps:$4 sm:$0xff]  }
 0x31e   :  { %v2612_v11 = vpop.f32.mrf.mxu1  ;;  %5975 = vmatprep.subr.bf16.mxu0 %v18715_v51  ;;  %v18706_v10 = vld [vmem:[#allocation9 + $0xb0c] ss:$16 sps:$4 sm:$0xff]   ;;  %v18736_v27 = vld [vmem:[#allocation12 + $0x5c4] ss:$16 sps:$4 sm:$0xff]  }
 0x31f   :  { %v3413_v9 = vpop.f32.mrf.mxu0  ;;  %4619 = vmatmul.mubr.bf16.gmra.mxu0 %v21477_v38  ;;  %4636 = vmatpush1.bf16.msra.mxu1 %v18668_v26  ;;  %v18677_v38 = vld [vmem:[#allocation9 + $0xa28] ss:$16 sps:$4 sm:$0xff]  }
 0x320   :  { %v21522_v36 = vadd.f32 %v3413_v9, %v21470_v32  ;;  %v2614_v49 = vpop.f32.mrf.mxu1  ;;  %4637 = vmatprep.subr.bf16.mxu1 %v18673_v13  ;;  %v18682_v32 = vld [vmem:[#allocation9 + $0xa0c] ss:$16 sps:$4 sm:$0xff]   ;;  %v18695_v26 = vld [vmem:[#allocation9 + $0xb68] ss:$16 sps:$4 sm:$0xff]  }
 0x321   :  { %v3415_v19 = vpop.f32.mrf.mxu0  ;;  %5976 = vmatpush1.bf16.msra.mxu0 %v18713_v23  ;;  %v18698_v13 = vld [vmem:[#allocation9 + $0xb48] ss:$16 sps:$4 sm:$0xff]  }
 0x322   :  { %v21525_v50 = vadd.f32 %v3415_v19, %v21474_v31  ;;  %v18685_v31 = vld [vmem:[#allocation9 + $0xbec] ss:$16 sps:$4 sm:$0xff]   ;;  %5977 = vmatprep.subr.bf16.mxu0 %v18718_v5  ;;  %v18730_v11 = vld [vmem:[#allocation12 + $0x404] ss:$16 sps:$4 sm:$0xff]  }
 0x323   :  { %v3417_v62 = vpop.f32.mrf.mxu0  ;;  %4638 = vmatpush1.bf16.msra.mxu1 %v18671_v6  ;;  %v18704_v6 = vld [vmem:[#allocation9 + $0xb08] ss:$16 sps:$4 sm:$0xff]  }
 0x324   :  { %4639 = vmatprep.subr.bf16.mxu1 %v18676_v12  ;;  %v18728_v12 = vld [vmem:[#allocation12 + $0x400] ss:$16 sps:$4 sm:$0xff]   ;;  %v18733_v19 = vld [vmem:[#allocation12 + $0x5e4] ss:$16 sps:$4 sm:$0xff]  }
 0x325   :  { %v3419_v25 = vpop.f32.mrf.mxu0  ;;  %5978 = vmatpush1.bf16.msra.mxu0 %v18716_v4  ;;  %v18740_v4 = vld [vmem:[#allocation12 + $0x580] ss:$16 sps:$4 sm:$0xff]  }
 0x326   :  { %5979 = vmatprep.subr.bf16.mxu0 %v18721_v56 }
 0x327   :  { %4640 = vmatpush1.bf16.msra.mxu1 %v18674_v28 }
 0x328   :  { %4641 = vmatprep.subr.bf16.mxu1 %v18679_v8  ;;  %v18731_v8 = vld [vmem:[#allocation12 + $0x5e0] ss:$16 sps:$4 sm:$0xff]  }
 0x329   :  { %5980 = vmatpush1.bf16.msra.mxu0 %v18719_v15 }
 0x32a   :  { %5981 = vmatprep.subr.bf16.mxu0 %v18724_v33  ;;  %v18748_v33 = vld [vmem:[#allocation12 + $0x544] ss:$16 sps:$4 sm:$0xff]  }
 0x32b   :  { %4642 = vmatpush1.bf16.msra.mxu1 %v18677_v38  ;;  %v18734_v38 = vld [vmem:[#allocation12 + $0x5c0] ss:$16 sps:$4 sm:$0xff]  }
 0x32c   :  { %4643 = vmatprep.subr.bf16.mxu1 %v18682_v32 }
 0x32d   :  { %5982 = vmatpush1.bf16.msra.mxu0 %v18722_v37  ;;  %v18754_v37 = vld [vmem:[#allocation12 + $0x504] ss:$16 sps:$4 sm:$0xff]  }
 0x32e   :  { %5983 = vmatprep.subr.bf16.mxu0 %v18727_v46  ;;  %v18752_v46 = vld [vmem:[#allocation12 + $0x500] ss:$16 sps:$4 sm:$0xff]  }
 0x32f   :  { %4644 = vmatpush1.bf16.msra.mxu1 %v18680_v21  ;;  %v18739_v21 = vld [vmem:[#allocation12 + $0x5a4] ss:$16 sps:$4 sm:$0xff]  }
 0x330   :  { %4645 = vmatprep.subr.bf16.mxu1 %v18685_v31  ;;  %v18737_v31 = vld [vmem:[#allocation12 + $0x5a0] ss:$16 sps:$4 sm:$0xff]  }
 0x331   :  { %5984 = vmatpush1.bf16.msra.mxu0 %v18725_v1  ;;  %v21554_v1 = vld [vmem:[#allocation3 + $0x60] sm:$0x7f] }
 0x332   :  { %5985 = vmatprep.subr.bf16.mxu0 %v18730_v11  ;;  %v18773_v11 = vld [vmem:[#allocation12 + $0x680] ss:$16 sps:$4 sm:$0xff]  }
 0x333   :  { %4646 = vmatpush2.bf16.msra.mxu1 %v18683_v29  ;;  %v18742_v29 = vld [vmem:[#allocation12 + $0x584] ss:$16 sps:$4 sm:$0xff]  }
 0x334   :  { %4647 = vmatprep.subr.bf16.mxu1 %v18688_v40 }
 0x335   :  { %5986 = vmatpush1.bf16.msra.mxu0 %v18728_v12  ;;  %v18781_v12 = vld [vmem:[#allocation12 + $0x664] ss:$16 sps:$4 sm:$0xff]  }
 0x336   :  { %5987 = vmatprep.subr.bf16.mxu0 %v18733_v19  ;;  %v18787_v19 = vld [vmem:[#allocation12 + $0x644] ss:$16 sps:$4 sm:$0xff]  }
 0x337   :  { %4648 = vmatpush2.bf16.msra.mxu1 %v18686_v35 }
 0x338   :  { %4649 = vmatprep.subr.bf16.mxu1 %v18691_v39  ;;  %v18745_v39 = vld [vmem:[#allocation12 + $0x564] ss:$16 sps:$4 sm:$0xff]  }
 0x339   :  { %5988 = vmatpush2.bf16.msra.mxu0 %v18731_v8  ;;  %v18793_v8 = vld [vmem:[#allocation12 + $0x624] ss:$16 sps:$4 sm:$0xff]  }
 0x33a   :  { %5989 = vmatprep.subr.bf16.mxu0 %v18736_v27  ;;  %v18797_v27 = vld [vmem:[#allocation12 + $0x600] ss:$16 sps:$4 sm:$0xff]  }
 0x33b   :  { %4650 = vmatpush2.bf16.msra.mxu1 %v18689_v42  ;;  %v18746_v42 = vld [vmem:[#allocation12 + $0x540] ss:$16 sps:$4 sm:$0xff]  }
 0x33c   :  { %4651 = vmatprep.subr.bf16.mxu1 %v18694_v24  ;;  %v18751_v24 = vld [vmem:[#allocation12 + $0x524] ss:$16 sps:$4 sm:$0xff]  }
 0x33d   :  { %5990 = vmatpush2.bf16.msra.mxu0 %v18734_v38 }
 0x33e   :  { %5991 = vmatprep.subr.bf16.mxu0 %v18739_v21 }
 0x33f   :  { %4652 = vmatpush2.bf16.msra.mxu1 %v18692_v47  ;;  %v18757_v47 = vld [vmem:[#allocation12 + $0x6e4] ss:$16 sps:$4 sm:$0xff]  }
 0x340   :  { %4653 = vmatprep.subr.bf16.mxu1 %v18697_v43  ;;  %v18760_v43 = vld [vmem:[#allocation12 + $0x4ec] ss:$16 sps:$4 sm:$0xff]  }
 0x341   :  { %5992 = vmatpush2.bf16.msra.mxu0 %v18737_v31 }
 0x342   :  { %5993 = vmatprep.subr.bf16.mxu0 %v18742_v29 }
 0x343   :  { %4654 = vmatpush2.bf16.msra.mxu1 %v18695_v26  ;;  %v18763_v26 = vld [vmem:[#allocation12 + $0x6c4] ss:$16 sps:$4 sm:$0xff]  }
 0x344   :  { %4655 = vmatprep.subr.bf16.mxu1 %v18700_v58  ;;  %v21556_v58 = vld [vmem:[#allocation2 + $0x20] sm:$0xff] }
 0x345   :  { %5994 = vmatpush2.bf16.msra.mxu0 %v18740_v4  ;;  %10148 = vst [vmem:[#allocation3 + $0x60] sm:$0xff] %v21556_v58 }
 0x346   :  { %5995 = vmatprep.subr.bf16.mxu0 %v18745_v39  ;;  %v18815_v39 = vld [vmem:[#allocation12 + $0x7a0] ss:$16 sps:$4 sm:$0xff]  }
 0x347   :  { %4656 = vmatpush2.bf16.msra.mxu1 %v18698_v13  ;;  %v18761_v13 = vld [vmem:[#allocation12 + $0x6c0] ss:$16 sps:$4 sm:$0xff]  }
 0x348   :  { %4657 = vmatprep.subr.bf16.mxu1 %v18703_v22  ;;  %v21559_v22 = vld [vmem:[#allocation3 + $0xc8] sm:$0x7f] }
 0x349   :  { %10149 = vst [vmem:[#allocation3 + $0xc8] sm:$0xff] %v21556_v58 }
 0x34b   :  { %4658 = vmatpush2.bf16.msra.mxu1 %v18701_v44  ;;  %v18769_v44 = vld [vmem:[#allocation12 + $0x6a4] ss:$16 sps:$4 sm:$0xff]  }
 0x34c   :  { %4659 = vmatprep.subr.bf16.mxu1 %v18706_v10  ;;  %v18767_v10 = vld [vmem:[#allocation12 + $0x6a0] ss:$16 sps:$4 sm:$0xff]  }
 0x34f   :  { %4660 = vmatpush2.bf16.msra.mxu1 %v18704_v6  ;;  %v18775_v6 = vld [vmem:[#allocation12 + $0x684] ss:$16 sps:$4 sm:$0xff]  }
 0x350   :  { %6024 = vmatprep.subr.bf16.mxu1 %v18757_v47 }
 0x352   :  { %v3456_v9 = vpop.f32.mrf.mxu1  ;;  %4662 = vmatmul.mubr.bf16.vlgmr.msra.gmra.mxu1 %v21488_v59 }
 0x353   :  { %v21529_v49 = vadd.f32 %v3456_v9, %v21503_v2  ;;  %4671 = vmatprep.mubr.bf16.mxu1 %v21492_v7  ;;  %v18779_v9 = vld [vmem:[#allocation12 + $0x660] ss:$16 sps:$4 sm:$0xff]  }
 0x354   :  { %v3458_v28 = vpop.f32.mrf.mxu1 }
 0x355   :  { %v21533_v62 = vadd.f32 %v3458_v28, %v21510_v17  ;;  %v18785_v28 = vld [vmem:[#allocation12 + $0x640] ss:$16 sps:$4 sm:$0xff]  }
 0x356   :  { %v3460_v25 = vpop.f32.mrf.mxu1 }
 0x357   :  { %v3509_v30 = vpop.f32.mrf.mxu0  ;;  %v18791_v25 = vld [vmem:[#allocation12 + $0x620] ss:$16 sps:$4 sm:$0xff]  }
 0x358   :  { %v21536_v52 = vadd.f32 %v3509_v30, %v21495_v20  ;;  %v3462_v59 = vpop.f32.mrf.mxu1  ;;  %v18799_v30 = vld [vmem:[#allocation12 + $0x604] ss:$16 sps:$4 sm:$0xff]  }
 0x359   :  { %v3511_v2 = vpop.f32.mrf.mxu0 }
 0x35a   :  { %v21539_v7 = vadd.f32 %v3511_v2, %v21499_v41  ;;  %v3466_v32 = vpop.f32.mrf.mxu1  ;;  %4672 = vmatmul.mubr.bf16.gmra.mxu1 %v21507_v16  ;;  %v18805_v2 = vld [vmem:[#allocation12 + $0x7e4] ss:$16 sps:$4 sm:$0xff]  }
 0x35b   :  { %v3513_v17 = vpop.f32.mrf.mxu0  ;;  %v21543_v34 = vadd.f32 %v3466_v32, %v21522_v36 }
 0x35c   :  { %v3468_v51 = vpop.f32.mrf.mxu1  ;;  %v18803_v17 = vld [vmem:[#allocation12 + $0x7e0] ss:$16 sps:$4 sm:$0xff]  }
 0x35d   :  { %v3515_v20 = vpop.f32.mrf.mxu0  ;;  %v21546_v23 = vadd.f32 %v3468_v51, %v21525_v50  ;;  %v18743_v50 = vld [vmem:[#allocation12 + $0x560] ss:$16 sps:$4 sm:$0xff]  }
 0x35e   :  { %v3470_v5 = vpop.f32.mrf.mxu1  ;;  %5996 = vmatpush2.bf16.msra.mxu0 %v18743_v50  ;;  %v18811_v20 = vld [vmem:[#allocation12 + $0x7c4] ss:$16 sps:$4 sm:$0xff]  }
 0x35f   :  { %v3519_v41 = vpop.f32.mrf.mxu0  ;;  %5997 = vmatprep.subr.bf16.mxu0 %v18748_v33 }
 0x360   :  { %v21549_v40 = vadd.f32 %v3519_v41, %v21514_v54  ;;  %v3472_v16 = vpop.f32.mrf.mxu1  ;;  %v18749_v54 = vld [vmem:[#allocation12 + $0x520] ss:$16 sps:$4 sm:$0xff]  }
 0x361   :  { %v3521_v56 = vpop.f32.mrf.mxu0  ;;  %v18809_v41 = vld [vmem:[#allocation12 + $0x7c0] ss:$16 sps:$4 sm:$0xff]  }
 0x362   :  { %v21552_v36 = vadd.f32 %v3521_v56, %v21518_v18  ;;  %5998 = vmatpush2.bf16.msra.mxu0 %v18746_v42  ;;  %v18755_v18 = vld [vmem:[#allocation12 + $0x6e0] ss:$16 sps:$4 sm:$0xff]   ;;  %v18817_v56 = vld [vmem:[#allocation12 + $0x7a4] ss:$16 sps:$4 sm:$0xff]  }
 0x363   :  { %v3523_v35 = vpop.f32.mrf.mxu0  ;;  %5999 = vmatprep.subr.bf16.mxu0 %v18751_v24  ;;  %6025 = vmatpush1.bf16.msra.mxu1 %v18755_v18  ;;  %v18823_v42 = vld [vmem:[#allocation12 + $0x784] ss:$16 sps:$4 sm:$0xff]   ;;  %v18821_v24 = vld [vmem:[#allocation12 + $0x780] ss:$16 sps:$4 sm:$0xff]  }
 0x364   :  { %6026 = vmatprep.subr.bf16.mxu1 %v18763_v26  ;;  %v18827_v18 = vld [vmem:[#allocation12 + $0x760] ss:$16 sps:$4 sm:$0xff]  }
 0x365   :  { %v3525_v15 = vpop.f32.mrf.mxu0  ;;  %v18833_v26 = vld [vmem:[#allocation12 + $0x740] ss:$16 sps:$4 sm:$0xff]  }
 0x366   :  { %6000 = vmatpush2.bf16.msra.mxu0 %v18749_v54 }
 0x367   :  { %6001 = vmatprep.subr.bf16.mxu0 %v18754_v37  ;;  %6027 = vmatpush1.bf16.msra.mxu1 %v18761_v13  ;;  %v18839_v13 = vld [vmem:[#allocation12 + $0x720] ss:$16 sps:$4 sm:$0xff]  }
 0x368   :  { %6028 = vmatprep.subr.bf16.mxu1 %v18769_v44  ;;  %v18847_v44 = vld [vmem:[#allocation12 + $0x704] ss:$16 sps:$4 sm:$0xff]  }
 0x36a   :  { %6002 = vmatpush2.bf16.msra.mxu0 %v18752_v46 }
 0x36b   :  { %6077 = vmatprep.subr.bf16.mxu0 %v18760_v43  ;;  %6029 = vmatpush1.bf16.msra.mxu1 %v18767_v10  ;;  %v18835_v43 = vld [vmem:[#allocation12 + $0x744] ss:$16 sps:$4 sm:$0xff]   ;;  %v18845_v10 = vld [vmem:[#allocation12 + $0x700] ss:$16 sps:$4 sm:$0xff]  }
 0x36c   :  { %6030 = vmatprep.subr.bf16.mxu1 %v18775_v6  ;;  %v21574_v6 = vld [vmem:[#allocation3 + $0x28] sm:$0x7f] }
 0x36d   :  { %14105 = vst [vmem:[#allocation3 + $0x28] sm:$0xff] %v21556_v58 }
 0x36f   :  { %6031 = vmatpush1.bf16.msra.mxu1 %v18773_v11  ;;  %v18853_v11 = vld [vmem:[#allocation12 + $0x6ec] ss:$16 sps:$4 sm:$0xff]  }
 0x370   :  { %6032 = vmatprep.subr.bf16.mxu1 %v18781_v12  ;;  %v21577_v12 = vld [vmem:[#allocation3 + $0x38] sm:$0x7f] }
 0x371   :  { %14106 = vst [vmem:[#allocation3 + $0x38] sm:$0xff] %v21556_v58 }
 0x373   :  { %6033 = vmatpush1.bf16.msra.mxu1 %v18779_v9  ;;  %v21580_v9 = vld [vmem:[#allocation10] sm:$0xf] }
 0x374   :  { %6034 = vmatprep.subr.bf16.mxu1 %v18787_v19 }
 0x377   :  { %6035 = vmatpush1.bf16.msra.mxu1 %v18785_v28 }
 0x378   :  { %6036 = vmatprep.subr.bf16.mxu1 %v18793_v8  ;;  %v4703_v8 = vrot.slane %v21580_v9, %v21188_v45 }
 0x37b   :  { %6037 = vmatpush1.bf16.msra.mxu1 %v18791_v25 }
 0x37c   :  { %6038 = vmatprep.subr.bf16.mxu1 %v18799_v30 }
 0x37f   :  { %6039 = vmatpush1.bf16.msra.mxu1 %v18797_v27 }
 0x380   :  { %6040 = vmatprep.subr.bf16.mxu1 %v18805_v2 }
 0x383   :  { %6041 = vmatpush2.bf16.msra.mxu1 %v18803_v17 }
 0x384   :  { %6042 = vmatprep.subr.bf16.mxu1 %v18811_v20 }
 0x387   :  { %6043 = vmatpush2.bf16.msra.mxu1 %v18809_v41 }
 0x388   :  { %6044 = vmatprep.subr.bf16.mxu1 %v18817_v56 }
 0x38b   :  { %6045 = vmatpush2.bf16.msra.mxu1 %v18815_v39 }
 0x38c   :  { %6046 = vmatprep.subr.bf16.mxu1 %v18823_v42 }
 0x38f   :  { %6047 = vmatpush2.bf16.msra.mxu1 %v18821_v24  ;;  %v5058_v24 = vpack.c.bf16 %v21554_v1, %v21554_v1 }
 0x391   :  { %v6252_v1 = vshrl.u32 %v5058_v24, 16 }
 0x392   :  { %v3562_v59 = vpop.f32.mrf.mxu1 }
 0x393   :  { %v21563_v38 = vadd.f32 %v3562_v59, %v21536_v52  ;;  %v4707_v59 = vrot.slane %v21580_v9, %v21193_v57 }
 0x394   :  { %v3564_v32 = vpop.f32.mrf.mxu1 }
 0x395   :  { %v21566_v21 = vadd.f32 %v3564_v32, %v21539_v7 }
 0x396   :  { %v3566_v51 = vpop.f32.mrf.mxu1 }
 0x397   :  { %v4504_v31 = vpop.f32.mrf.mxu0 }
 0x398   :  { %v3568_v5 = vpop.f32.mrf.mxu1 }
 0x399   :  { %v4506_v29 = vpop.f32.mrf.mxu0 }
 0x39a   :  { %v3572_v16 = vpop.f32.mrf.mxu1 }
 0x39b   :  { %v4508_v4 = vpop.f32.mrf.mxu0  ;;  %v21569_v52 = vadd.f32 %v3572_v16, %v21549_v40  ;;  %v18829_v40 = vld [vmem:[#allocation12 + $0x764] ss:$16 sps:$4 sm:$0xff]  }
 0x39c   :  { %v3574_v35 = vpop.f32.mrf.mxu1  ;;  %6048 = vmatprep.subr.bf16.mxu1 %v18829_v40 }
 0x39d   :  { %v4510_v7 = vpop.f32.mrf.mxu0  ;;  %v21572_v50 = vadd.f32 %v3574_v35, %v21552_v36  ;;  %6049 = vmatpush2.bf16.msra.mxu1 %v18827_v18  ;;  %v18841_v36 = vld [vmem:[#allocation12 + $0x724] ss:$16 sps:$4 sm:$0xff]   ;;  %v21605_v18 = vrot.slane %v21556_v58, 1 }
 0x39e   :  { %v3576_v15 = vpop.f32.mrf.mxu1  ;;  %6050 = vmatprep.subr.bf16.mxu1 %v18835_v43 }
 0x39f   :  { %v4514_v33 = vpop.f32.mrf.mxu0 }
 0x3a0   :  { %v3578_v54 = vpop.f32.mrf.mxu1 }
 0x3a1   :  { %v4516_v37 = vpop.f32.mrf.mxu0  ;;  %6051 = vmatpush2.bf16.msra.mxu1 %v18833_v26  ;;  %v5059_v54 = vpack.c.bf16 %v21559_v22, %v21559_v22 }
 0x3a2   :  { %6052 = vmatprep.subr.bf16.mxu1 %v18841_v36  ;;  %v6255_v36 = vshll.u32 %v5058_v24, 16 }
 0x3a3   :  { %v4518_v46 = vpop.f32.mrf.mxu0  ;;  %v6261_v26 = vshrl.u32 %v5059_v54, 16 }
 0x3a5   :  { %v4520_v47 = vpop.f32.mrf.mxu0  ;;  %6053 = vmatpush2.bf16.msra.mxu1 %v18839_v13 }
 0x3a6   :  { %6054 = vmatprep.subr.bf16.mxu1 %v18847_v44  ;;  %v21608_v47 = vrot.slane %v21556_v58, 2 }
 0x3a9   :  { %6055 = vmatpush2.bf16.msra.mxu1 %v18845_v10 }
 0x3aa   :  { %6130 = vmatprep.subr.bf16.mxu1 %v18853_v11 }
 0x3d2   :  { %v4557_v19 = vpop.f32.mrf.mxu1 }
 0x3d3   :  { %v4558_v28 = vadd.f32 %v4557_v19, %v4504_v31 }
 0x3d4   :  { %v4559_v25 = vpop.f32.mrf.mxu1 }
 0x3d5   :  { %v4682_v30 = vadd.f32 %v4558_v28, %v21529_v49  ;;  %v4560_v27 = vadd.f32 %v4559_v25, %v4506_v29  ;;  %v6264_v25 = vshll.u32 %v5059_v54, 16 }
 0x3d6   :  { %v4561_v2 = vpop.f32.mrf.mxu1 }
 0x3d7   :  { %v4720_v32 = vadd.f32 %v4703_v8, %v4682_v30  ;;  %v21587_v17 = vpop.f32.mrf.mxu0  ;;  %v4683_v51 = vadd.f32 %v4560_v27, %v21533_v62 }
 0x3d8   :  { %v4563_v20 = vpop.f32.mrf.mxu1 }
 0x3d9   :  { %v4736_v5 = vmax.f32 %v4720_v32, 0.0  ;;  %v4721_v41 = vadd.f32 %v4707_v59, %v4683_v51  ;;  %v21590_v31 = vpop.f32.mrf.mxu0 }
 0x3da   :  { %v4567_v16 = vpop.f32.mrf.mxu1 }
 0x3db   :  { %v4752_v4 = vsel %vm21204_vm13, %v4736_v5, 0.0  ;;  %v4737_v49 = vmax.f32 %v4721_v41, 0.0  ;;  %v4614_v29 = vpop.f32.mrf.mxu0  ;;  %v4568_v56 = vadd.f32 %v4567_v16, %v4514_v33  ;;  %v21618_v41 = vrot.slane %v6252_v1, 3  ;;  %v5031_v1 = vld [vmem:[#allocation3 + $0xd0] sm:$0x80] }
 0x3dc   :  { %4768 = vst [vmem:[#allocation2 + $0x40] sm:$0xff] %v4752_v4  ;;  %v4569_v35 = vpop.f32.mrf.mxu1 }
 0x3dd   :  { %v4753_v39 = vsel %vm21204_vm13, %v4737_v49, 0.0  ;;  %v4616_v7 = vpop.f32.mrf.mxu0  ;;  %v4690_v62 = vadd.f32 %v4568_v56, %v21543_v34  ;;  %v4570_v15 = vadd.f32 %v4569_v35, %v4516_v37 }
 0x3de   :  { %4769 = vst [vmem:[#allocation2 + $0x48] sm:$0xff] %v4753_v39  ;;  %v4571_v42 = vpop.f32.mrf.mxu1 }
 0x3df   :  { %v4728_v46 = vadd.f32 %v4703_v8, %v4690_v62  ;;  %v21601_v40 = vpop.f32.mrf.mxu0  ;;  %v4691_v33 = vadd.f32 %v4570_v15, %v21546_v23  ;;  %v21626_v15 = vrot.slane %v6255_v36, 4 }
 0x3e0   :  { %v4573_v34 = vpop.f32.mrf.mxu1 }
 0x3e1   :  { %v4744_v37 = vmax.f32 %v4728_v46, 0.0  ;;  %v4729_v43 = vadd.f32 %v4707_v59, %v4691_v33  ;;  %v21610_v22 = vpop.f32.mrf.mxu0  ;;  %v5030_v46 = vld [vmem:[#allocation3 + $0xb0] sm:$0x80] }
 0x3e3   :  { %v4800_v13 = vld [vmem:[#allocation2 + $0x40] sm:$0xfe]  ;;  %v4760_v23 = vsel %vm21222_vm15, %v4744_v37, 0.0  ;;  %v4745_v10 = vmax.f32 %v4729_v43, 0.0  ;;  %v4624_v11 = vpop.f32.mrf.mxu0 }
 0x3e4   :  { %v4897_v44 = vld [vmem:[#allocation2 + $0x40] sm:$0xfc]  ;;  %v4829_v19 = vrot.slane %v4800_v13, 1  ;;  %v4841_v8 = vrot.slane %v4760_v23, 1  ;;  %v4926_v32 = vrot.slane %v4760_v23, 2  ;;  %v6263_v13 = vrot.slane %v6261_v26, 3 }
 0x3e5   :  { %v4914_v28 = vrot.slane %v4897_v44, 2  ;;  %v4801_v30 = vld [vmem:[#allocation2 + $0x48] sm:$0xfe]  ;;  %v4761_v59 = vsel %vm21222_vm15, %v4745_v10, 0.0  ;;  %v4626_v2 = vpop.f32.mrf.mxu0  ;;  %v6266_v11 = vrot.slane %v6264_v25, 4 }
 0x3e6   :  { %v4898_v27 = vld [vmem:[#allocation2 + $0x48] sm:$0xfc]  ;;  %v4831_v51 = vsel %vm4828_vm7, %v4829_v19, %v21605_v18  ;;  %v4832_v20 = vrot.slane %v4801_v30, 1  ;;  %v4843_v49 = vrot.slane %v4761_v59, 1  ;;  %v4928_v29 = vrot.slane %v4761_v59, 2 }
 0x3e7   :  { %v4917_v5 = vrot.slane %v4898_v27, 2  ;;  %v4881_v16 = vmax.f32 %v4752_v4, %v4831_v51  ;;  %v4850_v56 = vsel %vm4828_vm7, %v4841_v8, %v21605_v18  ;;  %v4916_v35 = vsel %vm4913_vm8, %v4914_v28, %v21608_v47  ;;  %v18758_v26 = vld [vmem:[#allocation12 + $0x4e8] ss:$16 sps:$4 sm:$0xff]   ;;  %v18766_v2 = vld [vmem:[#allocation12 + $0x4cc] ss:$16 sps:$4 sm:$0xff]  }
 0x3e8   :  { %v4834_v7 = vsel %vm4828_vm7, %v4832_v20, %v21605_v18  ;;  %v4889_v62 = vmax.f32 %v4760_v23, %v4850_v56  ;;  %v4852_v24 = vsel %vm4828_vm7, %v4843_v49, %v21605_v18  ;;  %v4935_v4 = vsel %vm4913_vm8, %v4926_v32, %v21608_v47 }
 0x3e9   :  { %v4966_v42 = vmax.f32 %v4881_v16, %v4916_v35  ;;  %v4882_v54 = vmax.f32 %v4753_v39, %v4834_v7  ;;  %v4919_v33 = vsel %vm4913_vm8, %v4917_v5, %v21608_v47  ;;  %v4890_v34 = vmax.f32 %v4761_v59, %v4852_v24  ;;  %v19835_v24 = vld [vmem:[#allocation21 + $0x60] ss:$16 sps:$4 sm:$0xff]  }
 0x3ea   :  { %v21634_v37 = vmax.f32 %v4889_v62, %v4935_v4  ;;  %v4937_v39 = vsel %vm4913_vm8, %v4928_v29, %v21608_v47  ;;  %v6258_v8 = vor.u32 %v21626_v15, %v21618_v41 }
 0x3eb   :  { %v4967_v43 = vmax.f32 %v4882_v54, %v4919_v33  ;;  %v4998_v36 = vsel %vm21141_vm5, %v4966_v42, 0.0  ;;  %v4975_v44 = vmax.f32 %v4890_v34, %v4937_v39  ;;  %v21662_v56 = vpack.c.bf16 %v21556_v58, %v4966_v42  ;;  %v18764_v54 = vld [vmem:[#allocation12 + $0x4c8] ss:$16 sps:$4 sm:$0xff]   ;;  %v18772_v34 = vld [vmem:[#allocation12 + $0x4ac] ss:$16 sps:$4 sm:$0xff]  }
 0x3ec   :  { %5014 = vst [vmem:[#allocation3 + $0x108] sm:$0xff] %v4998_v36  ;;  %v5006_v23 = vsel %vm21159_vm10, %v21634_v37, 0.0  ;;  %v5050_v10 = vpack.c.bf16 %v4998_v36, %v5030_v46  ;;  %v6267_v39 = vor.u32 %v6266_v11, %v6263_v13  ;;  %v21694_v13 = vpack.c.bf16 %v21556_v58, %v21634_v37  ;;  %v18776_v11 = vld [vmem:[#allocation12 + $0x488] ss:$16 sps:$4 sm:$0xff]   ;;  %v18796_v37 = vld [vmem:[#allocation12 + $0x42c] ss:$16 sps:$4 sm:$0xff]  }
 0x3ed   :  { %v4999_v19 = vsel %vm21141_vm5, %v4967_v43, 0.0  ;;  %5022 = vst [vmem:[#allocation3 + $0xe8] sm:$0xff] %v5006_v23  ;;  %v5054_v28 = vpack.c.bf16 %v5006_v23, %v21556_v58  ;;  %v5007_v27 = vsel %vm21159_vm10, %v4975_v44, 0.0  ;;  %v20255_v5 = vpack.c.bf16 %v21556_v58, %v4967_v43 }
 0x3ee   :  { %5015 = vst [vmem:[#allocation3 + $0x110] sm:$0xff] %v4999_v19  ;;  %v5051_v30 = vpack.c.bf16 %v4999_v19, %v5031_v1  ;;  %v6184_v59 = vshrl.u32 %v5050_v10, 16  ;;  %5023 = vst [vmem:[#allocation3 + $0xf8] sm:$0xff] %v5007_v27  ;;  %v5055_v25 = vpack.c.bf16 %v5007_v27, %v21556_v58  ;;  %v6187_v29 = vshll.u32 %v5050_v10, 16 }
 0x3ef   :  { %v6192_v32 = vshrl.u32 %v5054_v28, 16  ;;  %v6195_v51 = vshll.u32 %v5054_v28, 16  ;;  %20256 = vmatprep.mubr.msk.bf16.mxu0 %vm21654_vm9, %v20255_v5  ;;  %v21675_v42 = vpack.c.bf16 %v21556_v58, %v4975_v44  ;;  %v18770_v44 = vld [vmem:[#allocation12 + $0x4a8] ss:$16 sps:$4 sm:$0xff]  }
 0x3f0   :  { %v6201_v41 = vshrl.u32 %v5051_v30, 16  ;;  %v6204_v16 = vshll.u32 %v5051_v30, 16  ;;  %v6186_v49 = vrot.slane %v6184_v59, 3  ;;  %20259 = vmatmul.mubr.msk.bf16.vlgmr.msra.gmra.mxu0 %vm21654_vm9, %v21662_v56  ;;  %v6209_v62 = vshrl.u32 %v5055_v25, 16 }
 0x3f1   :  { %v6194_v35 = vrot.slane %v6192_v32, 3  ;;  %v6197_v7 = vrot.slane %v6195_v51, 4  ;;  %v6212_v15 = vshll.u32 %v5055_v25, 16  ;;  %6078 = vmatpush1.bf16.msra.mxu0 %v18758_v26  ;;  %20262 = vmatprep.mubr.msk.bf16.mxu0 %vm21670_vm12, %v21675_v42  ;;  %v6189_v33 = vrot.slane %v6187_v29, 4  ;;  %v18778_v26 = vld [vmem:[#allocation12 + $0x48c] ss:$16 sps:$4 sm:$0xff]  }
 0x3f2   :  { %v6203_v4 = vrot.slane %v6201_v41, 3  ;;  %v6206_v46 = vrot.slane %v6204_v16, 4  ;;  %6079 = vmatprep.subr.bf16.mxu0 %v18766_v2  ;;  %v6211_v43 = vrot.slane %v6209_v62, 3  ;;  %v18782_v2 = vld [vmem:[#allocation12 + $0x468] ss:$16 sps:$4 sm:$0xff]  }
 0x3f3   :  { %v6214_v1 = vrot.slane %v6212_v15, 4  ;;  %v6198_v36 = vor.u32 %v6197_v7, %v6194_v35  ;;  %v6190_v10 = vor.u32 %v6189_v33, %v6186_v49  ;;  %v18790_v25 = vld [vmem:[#allocation12 + $0x44c] ss:$16 sps:$4 sm:$0xff]   ;;  %v18788_v32 = vld [vmem:[#allocation12 + $0x448] ss:$16 sps:$4 sm:$0xff]   ;;  %v4711_v15 = vrot.slane %v21580_v9, %v21278_v60 }
 0x3f4   :  { %v6207_v23 = vor.u32 %v6206_v46, %v6203_v4  ;;  %v18794_v51 = vld [vmem:[#allocation12 + $0x428] ss:$16 sps:$4 sm:$0xff]   ;;  %v18802_v41 = vld [vmem:[#allocation12 + $0x40c] ss:$16 sps:$4 sm:$0xff]  }
 0x3f5   :  { %v6215_v19 = vor.u32 %v6214_v1, %v6211_v43  ;;  %v21681_v28 = vsel %vm717_vm0, %v6198_v36, %v6258_v8  ;;  %6080 = vmatpush1.bf16.msra.mxu0 %v18764_v54  ;;  %v21684_v30 = vsel %vm717_vm0, %v6190_v10, %v6198_v36  ;;  %v18784_v8 = vld [vmem:[#allocation12 + $0x46c] ss:$16 sps:$4 sm:$0xff]   ;;  %v18800_v16 = vld [vmem:[#allocation12 + $0x408] ss:$16 sps:$4 sm:$0xff]  }
 0x3f6   :  { %6081 = vmatprep.subr.bf16.mxu0 %v18772_v34  ;;  %v18808_v49 = vld [vmem:[#allocation12 + $0x5ec] ss:$16 sps:$4 sm:$0xff]   ;;  %v18812_v7 = vld [vmem:[#allocation12 + $0x5c8] ss:$16 sps:$4 sm:$0xff]   ;;  %v4715_v34 = vrot.slane %v21580_v9, %v21281_v63 }
 0x3f7   :  { %v21687_v27 = vsel %vm717_vm0, %v6207_v23, %v6215_v19  ;;  %v21690_v59 = vsel %vm717_vm0, %v6215_v19, %v6267_v39  ;;  %v18814_v29 = vld [vmem:[#allocation12 + $0x5cc] ss:$16 sps:$4 sm:$0xff]   ;;  %v18818_v1 = vld [vmem:[#allocation12 + $0x5a8] ss:$16 sps:$4 sm:$0xff]  }
 0x3f8   :  { %20265 = vmatmul.mubr.msk.bf16.gmra.mxu0 %vm21670_vm12, %v21694_v13  ;;  %v18820_v54 = vld [vmem:[#allocation12 + $0x5ac] ss:$16 sps:$4 sm:$0xff]  }
 0x3f9   :  { %6082 = vmatpush1.bf16.msra.mxu0 %v18770_v44  ;;  %20268 = vmatprep.mubr.msk.bf16.mxu0 %vm21654_vm9, %v20255_v5  ;;  %v18806_v5 = vld [vmem:[#allocation12 + $0x5e8] ss:$16 sps:$4 sm:$0xff]  }
 0x3fa   :  { %6083 = vmatprep.subr.bf16.mxu0 %v18778_v26  ;;  %v18824_v26 = vld [vmem:[#allocation12 + $0x588] ss:$16 sps:$4 sm:$0xff]  }
 0x3fd   :  { %6084 = vmatpush1.bf16.msra.mxu0 %v18776_v11  ;;  %v18832_v11 = vld [vmem:[#allocation12 + $0x56c] ss:$16 sps:$4 sm:$0xff]  }
 0x3fe   :  { %6085 = vmatprep.subr.bf16.mxu0 %v18784_v8 }
 0x401   :  { %6086 = vmatpush1.bf16.msra.mxu0 %v18782_v2 }
 0x402   :  { %6087 = vmatprep.subr.bf16.mxu0 %v18790_v25 }
 0x405   :  { %6088 = vmatpush1.bf16.msra.mxu0 %v18788_v32 }
 0x406   :  { %6089 = vmatprep.subr.bf16.mxu0 %v18796_v37  ;;  %v18830_v37 = vld [vmem:[#allocation12 + $0x568] ss:$16 sps:$4 sm:$0xff]  }
 0x409   :  { %6090 = vmatpush1.bf16.msra.mxu0 %v18794_v51  ;;  %v5060_v51 = vpack.c.bf16 %v21574_v6, %v21574_v6 }
 0x40a   :  { %6091 = vmatprep.subr.bf16.mxu0 %v18802_v41 }
 0x40d   :  { %6092 = vmatpush1.bf16.msra.mxu0 %v18800_v16  ;;  %v18838_v16 = vld [vmem:[#allocation12 + $0x54c] ss:$16 sps:$4 sm:$0xff]  }
 0x40e   :  { %6093 = vmatprep.subr.bf16.mxu0 %v18808_v49 }
 0x411   :  { %6094 = vmatpush2.bf16.msra.mxu0 %v18806_v5  ;;  %v18836_v5 = vld [vmem:[#allocation12 + $0x548] ss:$16 sps:$4 sm:$0xff]  }
 0x412   :  { %v4663_v35 = vpop.f32.mrf.mxu1  ;;  %6095 = vmatprep.subr.bf16.mxu0 %v18814_v29  ;;  %v18844_v29 = vld [vmem:[#allocation12 + $0x52c] ss:$16 sps:$4 sm:$0xff]  }
 0x413   :  { %v4664_v62 = vadd.f32 %v4663_v35, %v21587_v17  ;;  %v18826_v17 = vld [vmem:[#allocation12 + $0x58c] ss:$16 sps:$4 sm:$0xff]  }
 0x414   :  { %v4665_v4 = vpop.f32.mrf.mxu1 }
 0x415   :  { %v4684_v46 = vadd.f32 %v4664_v62, %v21563_v38  ;;  %v4666_v33 = vadd.f32 %v4665_v4, %v21590_v31  ;;  %6096 = vmatpush2.bf16.msra.mxu0 %v18812_v7  ;;  %v6270_v7 = vshrl.u32 %v5060_v51, 16  ;;  %v6273_v62 = vshll.u32 %v5060_v51, 16  ;;  %v5032_v51 = vld [vmem:[#allocation3 + $0x10] sm:$0x80] }
 0x416   :  { %v4667_v43 = vpop.f32.mrf.mxu1  ;;  %6097 = vmatprep.subr.bf16.mxu0 %v18820_v54 }
 0x417   :  { %v4722_v36 = vadd.f32 %v4711_v15, %v4684_v46  ;;  %v4685_v39 = vadd.f32 %v4666_v33, %v21566_v21 }
 0x418   :  { %v4669_v23 = vpop.f32.mrf.mxu1 }
 0x419   :  { %v4738_v10 = vmax.f32 %v4722_v36, 0.0  ;;  %v4723_v19 = vadd.f32 %v4715_v34, %v4685_v39  ;;  %6098 = vmatpush2.bf16.msra.mxu0 %v18818_v1 }
 0x41a   :  { %v4673_v44 = vpop.f32.mrf.mxu1  ;;  %6099 = vmatprep.subr.bf16.mxu0 %v18826_v17 }
 0x41b   :  { %v4754_v38 = vsel %vm21204_vm13, %v4738_v10, 0.0  ;;  %v4739_v31 = vmax.f32 %v4723_v19, 0.0  ;;  %v4674_v9 = vadd.f32 %v4673_v44, %v21601_v40  ;;  %v21721_v40 = vpack.c.bf16 %v21577_v12, %v21577_v12  ;;  %v18842_v10 = vld [vmem:[#allocation12 + $0x528] ss:$16 sps:$4 sm:$0xff]  }
 0x41c   :  { %4770 = vst [vmem:[#allocation2 + $0x50] sm:$0xff] %v4754_v38  ;;  %v4675_v8 = vpop.f32.mrf.mxu1  ;;  %v21734_v19 = vrot.slane %v6270_v7, 3 }
 0x41d   :  { %v21714_v21 = vsel %vm21204_vm13, %v4739_v31, 0.0  ;;  %v4692_v2 = vadd.f32 %v4674_v9, %v21569_v52  ;;  %v4676_v25 = vadd.f32 %v4675_v8, %v21610_v22  ;;  %6100 = vmatpush2.bf16.msra.mxu0 %v18824_v26  ;;  %v6279_v35 = vshrl.u32 %v21721_v40, 16 }
 0x41e   :  { %4771 = vst [vmem:[#allocation2 + $0x58] sm:$0xff] %v21714_v21  ;;  %v4677_v32 = vpop.f32.mrf.mxu1  ;;  %6101 = vmatprep.subr.bf16.mxu0 %v18832_v11  ;;  %v6282_v33 = vshll.u32 %v21721_v40, 16  ;;  %v18850_v11 = vld [vmem:[#allocation12 + $0x50c] ss:$16 sps:$4 sm:$0xff]  }
 0x41f   :  { %v4730_v41 = vadd.f32 %v4711_v15, %v4692_v2  ;;  %v4693_v14 = vadd.f32 %v4676_v25, %v21572_v50  ;;  %v21742_v25 = vrot.slane %v6273_v62, 4 }
 0x420   :  { %v4679_v52 = vpop.f32.mrf.mxu1 }
 0x421   :  { %v4746_v49 = vmax.f32 %v4730_v41, 0.0  ;;  %v4731_v22 = vadd.f32 %v4715_v34, %v4693_v14  ;;  %6102 = vmatpush2.bf16.msra.mxu0 %v18830_v37 }
 0x422   :  { %6103 = vmatprep.subr.bf16.mxu0 %v18838_v16  ;;  %v18848_v16 = vld [vmem:[#allocation12 + $0x508] ss:$16 sps:$4 sm:$0xff]  }
 0x423   :  { %v4802_v12 = vld [vmem:[#allocation2 + $0x50] sm:$0xfe]  ;;  %v4762_v6 = vsel %vm21222_vm15, %v4746_v49, 0.0  ;;  %v4747_v15 = vmax.f32 %v4731_v22, 0.0 }
 0x424   :  { %v4899_v54 = vld [vmem:[#allocation2 + $0x50] sm:$0xfc]  ;;  %v4835_v50 = vrot.slane %v4802_v12, 1  ;;  %v4845_v46 = vrot.slane %v4762_v6, 1  ;;  %v4930_v1 = vrot.slane %v4762_v6, 2  ;;  %v21760_v12 = vrot.slane %v6279_v35, 3 }
 0x425   :  { %v4920_v4 = vrot.slane %v4899_v54, 2  ;;  %v4803_v34 = vld [vmem:[#allocation2 + $0x58] sm:$0xfe]  ;;  %v4763_v36 = vsel %vm21222_vm15, %v4747_v15, 0.0  ;;  %6104 = vmatpush2.bf16.msra.mxu0 %v18836_v5  ;;  %v6284_v15 = vrot.slane %v6282_v33, 4 }
 0x426   :  { %v4900_v43 = vld [vmem:[#allocation2 + $0x58] sm:$0xfc]  ;;  %v4837_v39 = vsel %vm4828_vm7, %v4835_v50, %v21605_v18  ;;  %v4838_v17 = vrot.slane %v4803_v34, 1  ;;  %v4854_v26 = vsel %vm4828_vm7, %v4845_v46, %v21605_v18  ;;  %v4847_v31 = vrot.slane %v4763_v36, 1  ;;  %6105 = vmatprep.subr.bf16.mxu0 %v18844_v29 }
 0x427   :  { %v4923_v23 = vrot.slane %v4900_v43, 2  ;;  %v4883_v44 = vmax.f32 %v4754_v38, %v4837_v39  ;;  %v4932_v9 = vrot.slane %v4763_v36, 2  ;;  %v4922_v0 = vsel %vm4913_vm8, %v4920_v4, %v21608_v47  ;;  %v18856_v5 = vld [vmem:[#allocation12 + $0xe4] ss:$16 sps:$4 sm:$0xff]   ;;  %v18851_v4 = vld [vmem:[#allocation12 + $0x6e8] ss:$16 sps:$4 sm:$0xff]  }
 0x428   :  { %v4840_v8 = vsel %vm4828_vm7, %v4838_v17, %v21605_v18  ;;  %v4891_v2 = vmax.f32 %v4762_v6, %v4854_v26  ;;  %v4856_v38 = vsel %vm4828_vm7, %v4847_v31, %v21605_v18  ;;  %v4939_v40 = vsel %vm4913_vm8, %v4930_v1, %v21608_v47  ;;  %v18854_v35 = vld [vmem:[#allocation12 + $0xe0] ss:$16 sps:$4 sm:$0xff]   ;;  %v18859_v43 = vld [vmem:[#allocation12 + $0x6cc] ss:$16 sps:$4 sm:$0xff]   ;;  %v18862_v17 = vld [vmem:[#allocation12 + $0xc4] ss:$16 sps:$4 sm:$0xff]  }
 0x429   :  { %v4968_v32 = vmax.f32 %v4883_v44, %v4922_v0  ;;  %v4884_v37 = vmax.f32 %v21714_v21, %v4840_v8  ;;  %v4925_v41 = vsel %vm4913_vm8, %v4923_v23, %v21608_v47  ;;  %v4892_v14 = vmax.f32 %v4763_v36, %v4856_v38  ;;  %6106 = vmatpush2.bf16.msra.mxu0 %v18842_v10  ;;  %v5033_v21 = vld [vmem:[#allocation3 + $0x48] sm:$0x80]  ;;  %v18857_v8 = vld [vmem:[#allocation12 + $0x6c8] ss:$16 sps:$4 sm:$0xff]  }
 0x42a   :  { %v21751_v52 = vmax.f32 %v4891_v2, %v4939_v40  ;;  %6107 = vmatprep.subr.bf16.mxu0 %v18850_v11  ;;  %v4941_v18 = vsel %vm4913_vm8, %v4932_v9, %v21608_v47  ;;  %v6276_v50 = vor.u32 %v21742_v25, %v21734_v19 }
 0x42b   :  { %v5000_v49 = vsel %vm21141_vm5, %v4968_v32, 0.0  ;;  %v4969_v22 = vmax.f32 %v4884_v37, %v4925_v41  ;;  %v4977_v29 = vmax.f32 %v4892_v14, %v4941_v18  ;;  %v21777_v26 = vpack.c.bf16 %v21556_v58, %v4968_v32  ;;  %v18860_v32 = vld [vmem:[#allocation12 + $0xc0] ss:$16 sps:$4 sm:$0xff]   ;;  %v18865_v37 = vld [vmem:[#allocation12 + $0x6ac] ss:$16 sps:$4 sm:$0xff]  }
 0x42c   :  { %5016 = vst [vmem:[#allocation3 + $0x90] sm:$0xff] %v5000_v49  ;;  %v5008_v7 = vsel %vm21159_vm10, %v21751_v52, 0.0  ;;  %v5052_v62 = vpack.c.bf16 %v5000_v49, %v5032_v51  ;;  %v6285_v41 = vor.u32 %v6284_v15, %v21760_v12  ;;  %v18871_v12 = vld [vmem:[#allocation12 + $0x68c] ss:$16 sps:$4 sm:$0xff]   ;;  %v18869_v15 = vld [vmem:[#allocation12 + $0x688] ss:$16 sps:$4 sm:$0xff]  }
 0x42d   :  { %v5001_v54 = vsel %vm21141_vm5, %v4969_v22, 0.0  ;;  %5024 = vst [vmem:[#allocation3 + $0x20] sm:$0xff] %v5008_v7  ;;  %v5056_v6 = vpack.c.bf16 %v5008_v7, %v21556_v58  ;;  %6108 = vmatpush2.bf16.msra.mxu0 %v18848_v16  ;;  %v5009_v46 = vsel %vm21159_vm10, %v4977_v29, 0.0  ;;  %v20270_v33 = vpack.c.bf16 %v21556_v58, %v4969_v22 }
 0x42e   :  { %5017 = vst [vmem:[#allocation3 + $0x118] sm:$0xff] %v5001_v54  ;;  %v5053_v47 = vpack.c.bf16 %v5001_v54, %v5033_v21  ;;  %v6218_v34 = vshrl.u32 %v5052_v62, 16  ;;  %6935 = vmatprep.subr.bf16.mxu0 %v18856_v5  ;;  %5025 = vst [vmem:[#allocation3 + $0x88] sm:$0xff] %v5009_v46  ;;  %v5057_v1 = vpack.c.bf16 %v5009_v46, %v21556_v58  ;;  %v6221_v44 = vshll.u32 %v5052_v62, 16  ;;  %v18863_v5 = vld [vmem:[#allocation12 + $0x6a8] ss:$16 sps:$4 sm:$0xff]  }
 0x42f   :  { %v6226_v36 = vshrl.u32 %v5056_v6, 16  ;;  %v6229_v39 = vshll.u32 %v5056_v6, 16  ;;  %20271 = vmatprep.mubr.msk.bf16.mxu1 %vm21654_vm9, %v20270_v33  ;;  %v21787_v14 = vpack.c.bf16 %v21556_v58, %v4977_v29  ;;  %v18866_v29 = vld [vmem:[#allocation12 + $0xa0] ss:$16 sps:$4 sm:$0xff]   ;;  %v18874_v54 = vld [vmem:[#allocation12 + $0x84] ss:$16 sps:$4 sm:$0xff]   ;;  %v21809_v6 = vpack.c.bf16 %v21556_v58, %v21751_v52 }
 0x430   :  { %v6235_v23 = vshrl.u32 %v5053_v47, 16  ;;  %v6238_v10 = vshll.u32 %v5053_v47, 16  ;;  %v6220_v19 = vrot.slane %v6218_v34, 3  ;;  %20274 = vmatmul.mubr.msk.bf16.vlgmr.msra.gmra.mxu0 %vm21654_vm9, %v21662_v56  ;;  %20277 = vmatmul.mubr.msk.bf16.vlgmr.msra.gmra.mxu1 %vm21654_vm9, %v21777_v26  ;;  %v6243_v11 = vshrl.u32 %v5057_v1, 16  ;;  %v18877_v47 = vld [vmem:[#allocation12 + $0x66c] ss:$16 sps:$4 sm:$0xff]  }
 0x431   :  { %v6228_v31 = vrot.slane %v6226_v36, 3  ;;  %v6231_v9 = vrot.slane %v6229_v39, 4  ;;  %v6246_v0 = vshll.u32 %v5057_v1, 16  ;;  %20280 = vmatprep.mubr.msk.bf16.mxu0 %vm21670_vm12, %v21675_v42  ;;  %6131 = vmatpush1.bf16.msra.mxu1 %v18851_v4  ;;  %v6223_v56 = vrot.slane %v6221_v44, 4  ;;  %v18868_v42 = vld [vmem:[#allocation12 + $0xa4] ss:$16 sps:$4 sm:$0xff]  }
 0x432   :  { %v6237_v2 = vrot.slane %v6235_v23, 3  ;;  %v6240_v25 = vrot.slane %v6238_v10, 4  ;;  %6936 = vmatpush1.bf16.msra.mxu0 %v18854_v35  ;;  %6132 = vmatprep.subr.bf16.mxu1 %v18859_v43  ;;  %v6245_v38 = vrot.slane %v6243_v11, 3  ;;  %v18875_v58 = vld [vmem:[#allocation12 + $0x668] ss:$16 sps:$4 sm:$0xff]  }
 0x433   :  { %v6248_v40 = vrot.slane %v6246_v0, 4  ;;  %v6232_v51 = vor.u32 %v6231_v9, %v6228_v31  ;;  %6937 = vmatprep.subr.bf16.mxu0 %v18862_v17  ;;  %20283 = vmatprep.mubr.msk.bf16.mxu1 %vm21670_vm12, %v21787_v14  ;;  %v6224_v49 = vor.u32 %v6223_v56, %v6220_v19  ;;  %v18878_v52 = vld [vmem:[#allocation12 + $0x60] ss:$16 sps:$4 sm:$0xff]   ;;  %v18883_v4 = vld [vmem:[#allocation12 + $0x64c] ss:$16 sps:$4 sm:$0xff]  }
 0x434   :  { %v6241_v16 = vor.u32 %v6240_v25, %v6237_v2  ;;  %v18886_v46 = vld [vmem:[#allocation12 + $0x44] ss:$16 sps:$4 sm:$0xff]   ;;  %v18881_v34 = vld [vmem:[#allocation12 + $0x648] ss:$16 sps:$4 sm:$0xff]   ;;  %v18884_v35 = vld [vmem:[#allocation12 + $0x40] ss:$16 sps:$4 sm:$0xff]  }
 0x435   :  { %v6249_v22 = vor.u32 %v6248_v40, %v6245_v38  ;;  %v21793_v21 = vsel %vm717_vm0, %v6232_v51, %v6276_v50  ;;  %6133 = vmatpush1.bf16.msra.mxu1 %v18857_v8  ;;  %v21796_v18 = vsel %vm717_vm0, %v6224_v49, %v6232_v51  ;;  %v18872_v50 = vld [vmem:[#allocation12 + $0x80] ss:$16 sps:$4 sm:$0xff]   ;;  %v18889_v43 = vld [vmem:[#allocation12 + $0x62c] ss:$16 sps:$4 sm:$0xff]   ;;  %v18892_v1 = vld [vmem:[#allocation12 + $0x24] ss:$16 sps:$4 sm:$0xff]  }
 0x436   :  { %6938 = vmatpush1.bf16.msra.mxu0 %v18860_v32  ;;  %6134 = vmatprep.subr.bf16.mxu1 %v18865_v37  ;;  %v18887_v36 = vld [vmem:[#allocation12 + $0x628] ss:$16 sps:$4 sm:$0xff]   ;;  %v18890_v39 = vld [vmem:[#allocation12 + $0x20] ss:$16 sps:$4 sm:$0xff]   ;;  %v18898_v17 = vld [vmem:[#allocation12 + $0x4] ss:$16 sps:$4 sm:$0xff]  }
 0x437   :  { %v21799_v7 = vsel %vm717_vm0, %v6241_v16, %v6249_v22  ;;  %v21802_v62 = vsel %vm717_vm0, %v6249_v22, %v6285_v41  ;;  %6939 = vmatprep.subr.bf16.mxu0 %v18868_v42  ;;  %v18893_v23 = vld [vmem:[#allocation12 + $0x608] ss:$16 sps:$4 sm:$0xff]   ;;  %v18896_v10 = vld [vmem:[#allocation12] ss:$16 sps:$4 sm:$0xff]   ;;  %v18901_v19 = vld [vmem:[#allocation12 + $0x7ec] ss:$16 sps:$4 sm:$0xff]  }
 0x438   :  { %20286 = vmatmul.mubr.msk.bf16.gmra.mxu0 %vm21670_vm12, %v21694_v13  ;;  %20289 = vmatmul.mubr.msk.bf16.gmra.mxu1 %vm21670_vm12, %v21809_v6  ;;  %v18880_v13 = vld [vmem:[#allocation12 + $0x64] ss:$16 sps:$4 sm:$0xff]   ;;  %v18899_v31 = vld [vmem:[#allocation12 + $0x7e8] ss:$16 sps:$4 sm:$0xff]   ;;  %v18902_v9 = vld [vmem:[#allocation12 + $0x1e0] ss:$16 sps:$4 sm:$0xff]  }
 0x439   :  { %6135 = vmatpush1.bf16.msra.mxu1 %v18863_v5  ;;  %6967 = vmatprep.mubr.bf16.mxu0 %v21687_v27  ;;  %v18904_v44 = vld [vmem:[#allocation12 + $0x1e4] ss:$16 sps:$4 sm:$0xff]   ;;  %v18907_v11 = vld [vmem:[#allocation12 + $0x7cc] ss:$16 sps:$4 sm:$0xff]   ;;  %v18905_v8 = vld [vmem:[#allocation12 + $0x7c8] ss:$16 sps:$4 sm:$0xff]  }
 0x43a   :  { %6940 = vmatpush1.bf16.msra.mxu0 %v18866_v29  ;;  %20292 = vmatprep.mubr.msk.bf16.mxu1 %vm21654_vm9, %v20270_v33  ;;  %v18895_v33 = vld [vmem:[#allocation12 + $0x60c] ss:$16 sps:$4 sm:$0xff]   ;;  %v18910_v0 = vld [vmem:[#allocation12 + $0x1c4] ss:$16 sps:$4 sm:$0xff]   ;;  %v18908_v2 = vld [vmem:[#allocation12 + $0x1c0] ss:$16 sps:$4 sm:$0xff]  }
 0x43b   :  { %6136 = vmatprep.subr.bf16.mxu1 %v18871_v12  ;;  %6941 = vmatprep.subr.bf16.mxu0 %v18874_v54  ;;  %v18913_v25 = vld [vmem:[#allocation12 + $0x7ac] ss:$16 sps:$4 sm:$0xff]   ;;  %v18916_v56 = vld [vmem:[#allocation12 + $0x1a4] ss:$16 sps:$4 sm:$0xff]   ;;  %v18911_v32 = vld [vmem:[#allocation12 + $0x7a8] ss:$16 sps:$4 sm:$0xff]  }
 0x43c   :  { %v18914_v37 = vld [vmem:[#allocation12 + $0x1a0] ss:$16 sps:$4 sm:$0xff]   ;;  %v18919_v38 = vld [vmem:[#allocation12 + $0x78c] ss:$16 sps:$4 sm:$0xff]   ;;  %v18922_v40 = vld [vmem:[#allocation12 + $0x184] ss:$16 sps:$4 sm:$0xff]  }
 0x43d   :  { %6137 = vmatpush1.bf16.msra.mxu1 %v18869_v15  ;;  %v18917_v51 = vld [vmem:[#allocation12 + $0x788] ss:$16 sps:$4 sm:$0xff]   ;;  %v18920_v41 = vld [vmem:[#allocation12 + $0x180] ss:$16 sps:$4 sm:$0xff]   ;;  %v18925_v42 = vld [vmem:[#allocation12 + $0x76c] ss:$16 sps:$4 sm:$0xff]  }
 0x43e   :  { %6942 = vmatpush1.bf16.msra.mxu0 %v18872_v50  ;;  %6138 = vmatprep.subr.bf16.mxu1 %v18877_v47  ;;  %v18928_v16 = vld [vmem:[#allocation12 + $0x164] ss:$16 sps:$4 sm:$0xff]   ;;  %v18923_v49 = vld [vmem:[#allocation12 + $0x768] ss:$16 sps:$4 sm:$0xff]   ;;  %v18926_v22 = vld [vmem:[#allocation12 + $0x160] ss:$16 sps:$4 sm:$0xff]  }
 0x43f   :  { %6943 = vmatprep.subr.bf16.mxu0 %v18880_v13  ;;  %v18931_v5 = vld [vmem:[#allocation12 + $0x74c] ss:$16 sps:$4 sm:$0xff]   ;;  %v18934_v29 = vld [vmem:[#allocation12 + $0x144] ss:$16 sps:$4 sm:$0xff]   ;;  %v18929_v12 = vld [vmem:[#allocation12 + $0x748] ss:$16 sps:$4 sm:$0xff]  }
 0x440   :  { %v18932_v54 = vld [vmem:[#allocation12 + $0x140] ss:$16 sps:$4 sm:$0xff]   ;;  %v18937_v15 = vld [vmem:[#allocation12 + $0x72c] ss:$16 sps:$4 sm:$0xff]   ;;  %v18940_v50 = vld [vmem:[#allocation12 + $0x124] ss:$16 sps:$4 sm:$0xff]  }
 0x441   :  { %6139 = vmatpush1.bf16.msra.mxu1 %v18875_v58  ;;  %v18935_v47 = vld [vmem:[#allocation12 + $0x728] ss:$16 sps:$4 sm:$0xff]   ;;  %v18938_v13 = vld [vmem:[#allocation12 + $0x120] ss:$16 sps:$4 sm:$0xff]   ;;  %v18943_v58 = vld [vmem:[#allocation12 + $0x70c] ss:$16 sps:$4 sm:$0xff]  }
 0x442   :  { %6944 = vmatpush1.bf16.msra.mxu0 %v18878_v52  ;;  %6140 = vmatprep.subr.bf16.mxu1 %v18883_v4  ;;  %v18946_v52 = vld [vmem:[#allocation12 + $0x104] ss:$16 sps:$4 sm:$0xff]   ;;  %v18941_v4 = vld [vmem:[#allocation12 + $0x708] ss:$16 sps:$4 sm:$0xff]  }
 0x443   :  { %6945 = vmatprep.subr.bf16.mxu0 %v18886_v46  ;;  %v18944_v46 = vld [vmem:[#allocation12 + $0x100] ss:$16 sps:$4 sm:$0xff]  }
 0x445   :  { %6141 = vmatpush1.bf16.msra.mxu1 %v18881_v34  ;;  %v18949_v34 = vld [vmem:[#allocation12 + $0x2e4] ss:$16 sps:$4 sm:$0xff]  }
 0x446   :  { %6946 = vmatpush1.bf16.msra.mxu0 %v18884_v35  ;;  %6142 = vmatprep.subr.bf16.mxu1 %v18889_v43  ;;  %v18952_v35 = vld [vmem:[#allocation12 + $0xec] ss:$16 sps:$4 sm:$0xff]   ;;  %v18947_v43 = vld [vmem:[#allocation12 + $0x2e0] ss:$16 sps:$4 sm:$0xff]  }
 0x447   :  { %6947 = vmatprep.subr.bf16.mxu0 %v18892_v1  ;;  %v18950_v1 = vld [vmem:[#allocation12 + $0xe8] ss:$16 sps:$4 sm:$0xff]  }
 0x449   :  { %6143 = vmatpush1.bf16.msra.mxu1 %v18887_v36  ;;  %v18955_v36 = vld [vmem:[#allocation12 + $0x2c4] ss:$16 sps:$4 sm:$0xff]  }
 0x44a   :  { %6948 = vmatpush1.bf16.msra.mxu0 %v18890_v39  ;;  %6144 = vmatprep.subr.bf16.mxu1 %v18895_v33  ;;  %v18958_v39 = vld [vmem:[#allocation12 + $0xcc] ss:$16 sps:$4 sm:$0xff]   ;;  %v18953_v33 = vld [vmem:[#allocation12 + $0x2c0] ss:$16 sps:$4 sm:$0xff]  }
 0x44b   :  { %6949 = vmatprep.subr.bf16.mxu0 %v18898_v17  ;;  %v18956_v17 = vld [vmem:[#allocation12 + $0xc8] ss:$16 sps:$4 sm:$0xff]  }
 0x44d   :  { %6145 = vmatpush1.bf16.msra.mxu1 %v18893_v23  ;;  %v18961_v23 = vld [vmem:[#allocation12 + $0x2a4] ss:$16 sps:$4 sm:$0xff]  }
 0x44e   :  { %6950 = vmatpush1.bf16.msra.mxu0 %v18896_v10  ;;  %6146 = vmatprep.subr.bf16.mxu1 %v18901_v19  ;;  %v18964_v10 = vld [vmem:[#allocation12 + $0xac] ss:$16 sps:$4 sm:$0xff]   ;;  %v18959_v19 = vld [vmem:[#allocation12 + $0x2a0] ss:$16 sps:$4 sm:$0xff]  }
 0x44f   :  { %6951 = vmatprep.subr.bf16.mxu0 %v18904_v44  ;;  %v18967_v44 = vld [vmem:[#allocation12 + $0x284] ss:$16 sps:$4 sm:$0xff]  }
 0x451   :  { %6147 = vmatpush2.bf16.msra.mxu1 %v18899_v31  ;;  %v18965_v31 = vld [vmem:[#allocation12 + $0x280] ss:$16 sps:$4 sm:$0xff]  }
 0x452   :  { %6952 = vmatpush2.bf16.msra.mxu0 %v18902_v9  ;;  %6148 = vmatprep.subr.bf16.mxu1 %v18907_v11  ;;  %v18968_v9 = vld [vmem:[#allocation12 + $0x88] ss:$16 sps:$4 sm:$0xff]   ;;  %v18973_v11 = vld [vmem:[#allocation12 + $0x264] ss:$16 sps:$4 sm:$0xff]  }
 0x453   :  { %6953 = vmatprep.subr.bf16.mxu0 %v18910_v0  ;;  %v18976_v0 = vld [vmem:[#allocation12 + $0x6c] ss:$16 sps:$4 sm:$0xff]  }
 0x455   :  { %6149 = vmatpush2.bf16.msra.mxu1 %v18905_v8  ;;  %v18971_v8 = vld [vmem:[#allocation12 + $0x260] ss:$16 sps:$4 sm:$0xff]  }
 0x456   :  { %6954 = vmatpush2.bf16.msra.mxu0 %v18908_v2  ;;  %6150 = vmatprep.subr.bf16.mxu1 %v18913_v25  ;;  %v18979_v2 = vld [vmem:[#allocation12 + $0x244] ss:$16 sps:$4 sm:$0xff]   ;;  %v18982_v25 = vld [vmem:[#allocation12 + $0x4c] ss:$16 sps:$4 sm:$0xff]  }
 0x457   :  { %6955 = vmatprep.subr.bf16.mxu0 %v18916_v56  ;;  %v18977_v56 = vld [vmem:[#allocation12 + $0x240] ss:$16 sps:$4 sm:$0xff]  }
 0x459   :  { %6151 = vmatpush2.bf16.msra.mxu1 %v18911_v32  ;;  %v18985_v32 = vld [vmem:[#allocation12 + $0x224] ss:$16 sps:$4 sm:$0xff]  }
 0x45a   :  { %6956 = vmatpush2.bf16.msra.mxu0 %v18914_v37  ;;  %6152 = vmatprep.subr.bf16.mxu1 %v18919_v38  ;;  %v18988_v37 = vld [vmem:[#allocation12 + $0x2c] ss:$16 sps:$4 sm:$0xff]   ;;  %v18983_v38 = vld [vmem:[#allocation12 + $0x220] ss:$16 sps:$4 sm:$0xff]  }
 0x45b   :  { %6957 = vmatprep.subr.bf16.mxu0 %v18922_v40  ;;  %v18986_v40 = vld [vmem:[#allocation12 + $0x28] ss:$16 sps:$4 sm:$0xff]  }
 0x45d   :  { %6153 = vmatpush2.bf16.msra.mxu1 %v18917_v51  ;;  %v18991_v51 = vld [vmem:[#allocation12 + $0x204] ss:$16 sps:$4 sm:$0xff]  }
 0x45e   :  { %6958 = vmatpush2.bf16.msra.mxu0 %v18920_v41  ;;  %6154 = vmatprep.subr.bf16.mxu1 %v18925_v42  ;;  %v18994_v41 = vld [vmem:[#allocation12 + $0xc] ss:$16 sps:$4 sm:$0xff]   ;;  %v18989_v42 = vld [vmem:[#allocation12 + $0x200] ss:$16 sps:$4 sm:$0xff]  }
 0x45f   :  { %6959 = vmatprep.subr.bf16.mxu0 %v18928_v16  ;;  %v18992_v16 = vld [vmem:[#allocation12 + $0x8] ss:$16 sps:$4 sm:$0xff]  }
 0x461   :  { %6155 = vmatpush2.bf16.msra.mxu1 %v18923_v49  ;;  %v18997_v49 = vld [vmem:[#allocation12 + $0x3e4] ss:$16 sps:$4 sm:$0xff]  }
 0x462   :  { %6960 = vmatpush2.bf16.msra.mxu0 %v18926_v22  ;;  %6156 = vmatprep.subr.bf16.mxu1 %v18931_v5  ;;  %v19000_v22 = vld [vmem:[#allocation12 + $0x1ec] ss:$16 sps:$4 sm:$0xff]   ;;  %v18995_v5 = vld [vmem:[#allocation12 + $0x3e0] ss:$16 sps:$4 sm:$0xff]  }
 0x463   :  { %6961 = vmatprep.subr.bf16.mxu0 %v18934_v29  ;;  %v18998_v29 = vld [vmem:[#allocation12 + $0x1e8] ss:$16 sps:$4 sm:$0xff]  }
 0x465   :  { %6157 = vmatpush2.bf16.msra.mxu1 %v18929_v12  ;;  %v19003_v12 = vld [vmem:[#allocation12 + $0x3c4] ss:$16 sps:$4 sm:$0xff]  }
 0x466   :  { %6962 = vmatpush2.bf16.msra.mxu0 %v18932_v54  ;;  %6158 = vmatprep.subr.bf16.mxu1 %v18937_v15  ;;  %v19006_v54 = vld [vmem:[#allocation12 + $0x1cc] ss:$16 sps:$4 sm:$0xff]   ;;  %v19001_v15 = vld [vmem:[#allocation12 + $0x3c0] ss:$16 sps:$4 sm:$0xff]  }
 0x467   :  { %6963 = vmatprep.subr.bf16.mxu0 %v18940_v50  ;;  %v19004_v50 = vld [vmem:[#allocation12 + $0x1c8] ss:$16 sps:$4 sm:$0xff]  }
 0x469   :  { %6159 = vmatpush2.bf16.msra.mxu1 %v18935_v47  ;;  %v19009_v47 = vld [vmem:[#allocation12 + $0x3a4] ss:$16 sps:$4 sm:$0xff]  }
 0x46a   :  { %6964 = vmatpush2.bf16.msra.mxu0 %v18938_v13  ;;  %6160 = vmatprep.subr.bf16.mxu1 %v18943_v58  ;;  %v19012_v13 = vld [vmem:[#allocation12 + $0x1ac] ss:$16 sps:$4 sm:$0xff]   ;;  %v19007_v58 = vld [vmem:[#allocation12 + $0x3a0] ss:$16 sps:$4 sm:$0xff]  }
 0x46b   :  { %6965 = vmatprep.subr.bf16.mxu0 %v18946_v52  ;;  %v19010_v52 = vld [vmem:[#allocation12 + $0x1a8] ss:$16 sps:$4 sm:$0xff]  }
 0x46d   :  { %6161 = vmatpush2.bf16.msra.mxu1 %v18941_v4  ;;  %v19015_v4 = vld [vmem:[#allocation12 + $0x384] ss:$16 sps:$4 sm:$0xff]  }
 0x46e   :  { %6966 = vmatpush2.bf16.msra.mxu0 %v18944_v46  ;;  %6988 = vmatprep.subr.bf16.mxu1 %v18949_v34  ;;  %v19018_v46 = vld [vmem:[#allocation12 + $0x18c] ss:$16 sps:$4 sm:$0xff]   ;;  %v19013_v34 = vld [vmem:[#allocation12 + $0x380] ss:$16 sps:$4 sm:$0xff]  }
 0x46f   :  { %7041 = vmatprep.subr.bf16.mxu0 %v18952_v35  ;;  %v19016_v35 = vld [vmem:[#allocation12 + $0x188] ss:$16 sps:$4 sm:$0xff]  }
 0x470   :  { %20295 = vmatmul.mubr.msk.bf16.vlgmr.msra.gmra.mxu1 %vm21654_vm9, %v21777_v26  ;;  %v18962_v26 = vld [vmem:[#allocation12 + $0xa8] ss:$16 sps:$4 sm:$0xff]  }
 0x471   :  { %6968 = vmatmul.mubr.bf16.vlgmr.msra.gmra.mxu0 %v21684_v30  ;;  %20298 = vmatprep.mubr.msk.bf16.mxu1 %vm21670_vm12, %v21787_v14  ;;  %v18970_v14 = vld [vmem:[#allocation12 + $0x8c] ss:$16 sps:$4 sm:$0xff]  }
 0x472   :  { %6977 = vmatprep.mubr.bf16.mxu0 %v21690_v59  ;;  %6989 = vmatpush1.bf16.msra.mxu1 %v18947_v43  ;;  %v19021_v43 = vld [vmem:[#allocation12 + $0x364] ss:$16 sps:$4 sm:$0xff]  }
 0x473   :  { %7042 = vmatpush1.bf16.msra.mxu0 %v18950_v1  ;;  %6990 = vmatprep.subr.bf16.mxu1 %v18955_v36  ;;  %v19024_v1 = vld [vmem:[#allocation12 + $0x16c] ss:$16 sps:$4 sm:$0xff]   ;;  %v19019_v36 = vld [vmem:[#allocation12 + $0x360] ss:$16 sps:$4 sm:$0xff]  }
 0x474   :  { %7043 = vmatprep.subr.bf16.mxu0 %v18958_v39  ;;  %v19022_v39 = vld [vmem:[#allocation12 + $0x168] ss:$16 sps:$4 sm:$0xff]  }
 0x476   :  { %6991 = vmatpush1.bf16.msra.mxu1 %v18953_v33  ;;  %v19027_v33 = vld [vmem:[#allocation12 + $0x344] ss:$16 sps:$4 sm:$0xff]  }
 0x477   :  { %7044 = vmatpush1.bf16.msra.mxu0 %v18956_v17  ;;  %6992 = vmatprep.subr.bf16.mxu1 %v18961_v23  ;;  %v19030_v17 = vld [vmem:[#allocation12 + $0x14c] ss:$16 sps:$4 sm:$0xff]   ;;  %v19025_v23 = vld [vmem:[#allocation12 + $0x340] ss:$16 sps:$4 sm:$0xff]  }
 0x478   :  { %20301 = vmatmul.mubr.msk.bf16.gmra.mxu1 %vm21670_vm12, %v21809_v6  ;;  %7045 = vmatprep.subr.bf16.mxu0 %v18964_v10  ;;  %v18974_v6 = vld [vmem:[#allocation12 + $0x68] ss:$16 sps:$4 sm:$0xff]  }
 0x479   :  { %6978 = vmatmul.mubr.bf16.gmra.mxu0 %v21681_v28  ;;  %7020 = vmatprep.mubr.bf16.mxu1 %v21799_v7  ;;  %v19028_v10 = vld [vmem:[#allocation12 + $0x148] ss:$16 sps:$4 sm:$0xff]  }
 0x47a   :  { %6993 = vmatpush1.bf16.msra.mxu1 %v18959_v19  ;;  %7073 = vmatprep.mubr.bf16.mxu0 %v21687_v27  ;;  %v18980_v27 = vld [vmem:[#allocation12 + $0x48] ss:$16 sps:$4 sm:$0xff]   ;;  %v19033_v19 = vld [vmem:[#allocation12 + $0x324] ss:$16 sps:$4 sm:$0xff]  }
 0x47b   :  { %7046 = vmatpush1.bf16.msra.mxu0 %v18962_v26  ;;  %6994 = vmatprep.subr.bf16.mxu1 %v18967_v44  ;;  %v19036_v26 = vld [vmem:[#allocation12 + $0x12c] ss:$16 sps:$4 sm:$0xff]   ;;  %v19031_v44 = vld [vmem:[#allocation12 + $0x320] ss:$16 sps:$4 sm:$0xff]  }
 0x47c   :  { %7047 = vmatprep.subr.bf16.mxu0 %v18970_v14  ;;  %v19034_v14 = vld [vmem:[#allocation12 + $0x128] ss:$16 sps:$4 sm:$0xff]  }
 0x47e   :  { %6995 = vmatpush1.bf16.msra.mxu1 %v18965_v31  ;;  %v19039_v31 = vld [vmem:[#allocation12 + $0x304] ss:$16 sps:$4 sm:$0xff]  }
 0x47f   :  { %7048 = vmatpush1.bf16.msra.mxu0 %v18968_v9  ;;  %6996 = vmatprep.subr.bf16.mxu1 %v18973_v11  ;;  %v7148_v9 = vld [vmem:[#allocation3 + $0x110] sm:$0xfe] }
 0x480   :  { %7049 = vmatprep.subr.bf16.mxu0 %v18976_v0  ;;  %v19042_v11 = vld [vmem:[#allocation12 + $0x10c] ss:$16 sps:$4 sm:$0xff]   ;;  %v19037_v0 = vld [vmem:[#allocation12 + $0x300] ss:$16 sps:$4 sm:$0xff]  }
 0x482   :  { %6997 = vmatpush1.bf16.msra.mxu1 %v18971_v8  ;;  %v21831_v8 = vld [vmem:[#allocation2 + $0x20] sm:$0xff] }
 0x483   :  { %7050 = vmatpush1.bf16.msra.mxu0 %v18974_v6  ;;  %6998 = vmatprep.subr.bf16.mxu1 %v18979_v2  ;;  %v7168_v6 = vpack.c.bf16 %v21831_v8, %v7148_v9  ;;  %v19040_v2 = vld [vmem:[#allocation12 + $0x108] ss:$16 sps:$4 sm:$0xff]   ;;  %v19082_v9 = vld [vmem:[#allocation12 + $0x820] ss:$16 sps:$4 sm:$0xff]  }
 0x484   :  { %7051 = vmatprep.subr.bf16.mxu0 %v18982_v25  ;;  %v19045_v25 = vld [vmem:[#allocation12 + $0x2ec] ss:$16 sps:$4 sm:$0xff]  }
 0x486   :  { %6999 = vmatpush1.bf16.msra.mxu1 %v18977_v56  ;;  %v19048_v56 = vld [vmem:[#allocation12 + $0x8e4] ss:$16 sps:$4 sm:$0xff]  }
 0x487   :  { %7052 = vmatpush1.bf16.msra.mxu0 %v18980_v27  ;;  %7000 = vmatprep.subr.bf16.mxu1 %v18985_v32  ;;  %v7156_v27 = vld [vmem:[#allocation3 + $0xf8] sm:$0xff]  ;;  %v7323_v32 = vshll.u32 %v7168_v6, 16 }
 0x488   :  { %7053 = vmatprep.subr.bf16.mxu0 %v18988_v37  ;;  %v19043_v37 = vld [vmem:[#allocation12 + $0x2e8] ss:$16 sps:$4 sm:$0xff]  }
 0x48a   :  { %7001 = vmatpush1.bf16.msra.mxu1 %v18983_v38  ;;  %v19046_v38 = vld [vmem:[#allocation12 + $0x8e0] ss:$16 sps:$4 sm:$0xff]  }
 0x48b   :  { %7054 = vmatpush1.bf16.msra.mxu0 %v18986_v40  ;;  %7002 = vmatprep.subr.bf16.mxu1 %v18991_v51  ;;  %v19051_v51 = vld [vmem:[#allocation12 + $0x2cc] ss:$16 sps:$4 sm:$0xff]  }
 0x48c   :  { %7055 = vmatprep.subr.bf16.mxu0 %v18994_v41  ;;  %v21837_v41 = vpack.c.bf16 %v21831_v8, %v7156_v27  ;;  %v19091_v27 = vld [vmem:[#allocation12 + $0x3e8] ss:$16 sps:$4 sm:$0xff]  }
 0x48e   :  { %7003 = vmatpush1.bf16.msra.mxu1 %v18989_v42  ;;  %v19054_v42 = vld [vmem:[#allocation12 + $0x8c4] ss:$16 sps:$4 sm:$0xff]  }
 0x48f   :  { %7056 = vmatpush1.bf16.msra.mxu0 %v18992_v16  ;;  %7004 = vmatprep.subr.bf16.mxu1 %v18997_v49  ;;  %v7325_v49 = vrot.slane %v7323_v32, 1  ;;  %v19094_v32 = vld [vmem:[#allocation12 + $0x9e0] ss:$16 sps:$4 sm:$0xff]  }
 0x490   :  { %7057 = vmatprep.subr.bf16.mxu0 %v19000_v22  ;;  %v19049_v22 = vld [vmem:[#allocation12 + $0x2c8] ss:$16 sps:$4 sm:$0xff]  }
 0x492   :  { %7005 = vmatpush2.bf16.msra.mxu1 %v18995_v5  ;;  %v19052_v5 = vld [vmem:[#allocation12 + $0x8c0] ss:$16 sps:$4 sm:$0xff]  }
 0x493   :  { %7058 = vmatpush2.bf16.msra.mxu0 %v18998_v29  ;;  %7006 = vmatprep.subr.bf16.mxu1 %v19003_v12  ;;  %v19057_v12 = vld [vmem:[#allocation12 + $0x2ac] ss:$16 sps:$4 sm:$0xff]  }
 0x494   :  { %7059 = vmatprep.subr.bf16.mxu0 %v19006_v54  ;;  %v7321_v54 = vshrl.u32 %v7168_v6, 16  ;;  %v19085_v6 = vld [vmem:[#allocation12 + $0x208] ss:$16 sps:$4 sm:$0xff]  }
 0x496   :  { %7007 = vmatpush2.bf16.msra.mxu1 %v19001_v15  ;;  %v7328_v15 = vshll.u32 %v21837_v41, 16 }
 0x497   :  { %7060 = vmatpush2.bf16.msra.mxu0 %v19004_v50  ;;  %7008 = vmatprep.subr.bf16.mxu1 %v19009_v47  ;;  %v19060_v50 = vld [vmem:[#allocation12 + $0x8a4] ss:$16 sps:$4 sm:$0xff]   ;;  %v7326_v47 = vor.u32 %v7325_v49, %v7321_v54  ;;  %v19105_v49 = vld [vmem:[#allocation12 + $0x3ac] ss:$16 sps:$4 sm:$0xff]  }
 0x498   :  { %7061 = vmatprep.subr.bf16.mxu0 %v19012_v13  ;;  %v19055_v13 = vld [vmem:[#allocation12 + $0x2a8] ss:$16 sps:$4 sm:$0xff]   ;;  %v19114_v54 = vld [vmem:[#allocation12 + $0x984] ss:$16 sps:$4 sm:$0xff]  }
 0x49a   :  { %7009 = vmatpush2.bf16.msra.mxu1 %v19007_v58  ;;  %v19058_v58 = vld [vmem:[#allocation12 + $0x8a0] ss:$16 sps:$4 sm:$0xff]  }
 0x49b   :  { %7062 = vmatpush2.bf16.msra.mxu0 %v19010_v52  ;;  %7010 = vmatprep.subr.bf16.mxu1 %v19015_v4  ;;  %v21848_v52 = vrot.slane %v7328_v15, 1  ;;  %v19063_v4 = vld [vmem:[#allocation12 + $0x28c] ss:$16 sps:$4 sm:$0xff]   ;;  %v19109_v15 = vld [vmem:[#allocation12 + $0x388] ss:$16 sps:$4 sm:$0xff]  }
 0x49c   :  { %7063 = vmatprep.subr.bf16.mxu0 %v19018_v46  ;;  %v19066_v46 = vld [vmem:[#allocation12 + $0x884] ss:$16 sps:$4 sm:$0xff]  }
 0x49e   :  { %7011 = vmatpush2.bf16.msra.mxu1 %v19013_v34  ;;  %v21855_v34 = vsel %vm1053_vm1, %v7326_v47, %v21848_v52  ;;  %v19120_v47 = vld [vmem:[#allocation12 + $0x964] ss:$16 sps:$4 sm:$0xff]  }
 0x49f   :  { %7064 = vmatpush2.bf16.msra.mxu0 %v19016_v35  ;;  %7012 = vmatprep.subr.bf16.mxu1 %v19021_v43  ;;  %v19061_v43 = vld [vmem:[#allocation12 + $0x288] ss:$16 sps:$4 sm:$0xff]  }
 0x4a0   :  { %7065 = vmatprep.subr.bf16.mxu0 %v19024_v1  ;;  %v19064_v1 = vld [vmem:[#allocation12 + $0x880] ss:$16 sps:$4 sm:$0xff]  }
 0x4a2   :  { %7013 = vmatpush2.bf16.msra.mxu1 %v19019_v36 }
 0x4a3   :  { %7066 = vmatpush2.bf16.msra.mxu0 %v19022_v39  ;;  %7014 = vmatprep.subr.bf16.mxu1 %v19027_v33  ;;  %v19069_v39 = vld [vmem:[#allocation12 + $0x26c] ss:$16 sps:$4 sm:$0xff]   ;;  %v19072_v33 = vld [vmem:[#allocation12 + $0x864] ss:$16 sps:$4 sm:$0xff]  }
 0x4a4   :  { %7067 = vmatprep.subr.bf16.mxu0 %v19030_v17  ;;  %v19070_v17 = vld [vmem:[#allocation12 + $0x860] ss:$16 sps:$4 sm:$0xff]  }
 0x4a6   :  { %7015 = vmatpush2.bf16.msra.mxu1 %v19025_v23  ;;  %v19075_v23 = vld [vmem:[#allocation12 + $0x24c] ss:$16 sps:$4 sm:$0xff]  }
 0x4a7   :  { %7068 = vmatpush2.bf16.msra.mxu0 %v19028_v10  ;;  %7016 = vmatprep.subr.bf16.mxu1 %v19033_v19  ;;  %v19078_v10 = vld [vmem:[#allocation12 + $0x844] ss:$16 sps:$4 sm:$0xff]   ;;  %v19073_v19 = vld [vmem:[#allocation12 + $0x248] ss:$16 sps:$4 sm:$0xff]  }
 0x4a8   :  { %7069 = vmatprep.subr.bf16.mxu0 %v19036_v26  ;;  %v19076_v26 = vld [vmem:[#allocation12 + $0x840] ss:$16 sps:$4 sm:$0xff]  }
 0x4aa   :  { %7017 = vmatpush2.bf16.msra.mxu1 %v19031_v44  ;;  %v19081_v44 = vld [vmem:[#allocation12 + $0x22c] ss:$16 sps:$4 sm:$0xff]  }
 0x4ab   :  { %7070 = vmatpush2.bf16.msra.mxu0 %v19034_v14  ;;  %7018 = vmatprep.subr.bf16.mxu1 %v19039_v31  ;;  %v19084_v14 = vld [vmem:[#allocation12 + $0x824] ss:$16 sps:$4 sm:$0xff]   ;;  %v19079_v31 = vld [vmem:[#allocation12 + $0x228] ss:$16 sps:$4 sm:$0xff]  }
 0x4ac   :  { %7071 = vmatprep.subr.bf16.mxu0 %v19042_v11  ;;  %v19087_v11 = vld [vmem:[#allocation12 + $0x20c] ss:$16 sps:$4 sm:$0xff]  }
 0x4ae   :  { %7019 = vmatpush2.bf16.msra.mxu1 %v19037_v0  ;;  %v19090_v0 = vld [vmem:[#allocation12 + $0x804] ss:$16 sps:$4 sm:$0xff]  }
 0x4af   :  { %7072 = vmatpush2.bf16.msra.mxu0 %v19040_v2  ;;  %7094 = vmatprep.subr.bf16.mxu1 %v19045_v25  ;;  %v19088_v2 = vld [vmem:[#allocation12 + $0x800] ss:$16 sps:$4 sm:$0xff]   ;;  %v19093_v25 = vld [vmem:[#allocation12 + $0x3ec] ss:$16 sps:$4 sm:$0xff]  }
 0x4b0   :  { %8036 = vmatprep.subr.bf16.mxu0 %v19048_v56  ;;  %v21834_v40 = vpop.f32.mrf.mxu0  ;;  %v19096_v56 = vld [vmem:[#allocation12 + $0x9e4] ss:$16 sps:$4 sm:$0xff]  }
 0x4b1   :  { %7021 = vmatmul.mubr.bf16.vlgmr.msra.gmra.mxu1 %v21796_v18 }
 0x4b2   :  { %7074 = vmatmul.mubr.bf16.vlgmr.msra.gmra.mxu0 %v21684_v30  ;;  %7030 = vmatprep.mubr.bf16.mxu1 %v21802_v62  ;;  %v21842_v16 = vpop.f32.mrf.mxu0 }
 0x4b3   :  { %7083 = vmatprep.mubr.bf16.mxu0 %v21690_v59  ;;  %7095 = vmatpush1.bf16.msra.mxu1 %v19043_v37  ;;  %v19099_v37 = vld [vmem:[#allocation12 + $0x3cc] ss:$16 sps:$4 sm:$0xff]  }
 0x4b4   :  { %8037 = vmatpush1.bf16.msra.mxu0 %v19046_v38  ;;  %7096 = vmatprep.subr.bf16.mxu1 %v19051_v51  ;;  %v6009_v29 = vpop.f32.mrf.mxu0  ;;  %v19102_v38 = vld [vmem:[#allocation12 + $0x9c4] ss:$16 sps:$4 sm:$0xff]   ;;  %v19097_v51 = vld [vmem:[#allocation12 + $0x3c8] ss:$16 sps:$4 sm:$0xff]  }
 0x4b5   :  { %8038 = vmatprep.subr.bf16.mxu0 %v19054_v42  ;;  %v19100_v42 = vld [vmem:[#allocation12 + $0x9c0] ss:$16 sps:$4 sm:$0xff]  }
 0x4b6   :  { %v6011_v30 = vpop.f32.mrf.mxu0  ;;  %v19106_v29 = vld [vmem:[#allocation12 + $0x9a0] ss:$16 sps:$4 sm:$0xff]  }
 0x4b7   :  { %7097 = vmatpush1.bf16.msra.mxu1 %v19049_v22  ;;  %v19108_v22 = vld [vmem:[#allocation12 + $0x9a4] ss:$16 sps:$4 sm:$0xff]   ;;  %v19117_v30 = vld [vmem:[#allocation12 + $0x36c] ss:$16 sps:$4 sm:$0xff]  }
 0x4b8   :  { %8039 = vmatpush1.bf16.msra.mxu0 %v19052_v5  ;;  %7098 = vmatprep.subr.bf16.mxu1 %v19057_v12  ;;  %v21846_v59 = vpop.f32.mrf.mxu0  ;;  %v19103_v5 = vld [vmem:[#allocation12 + $0x3a8] ss:$16 sps:$4 sm:$0xff]   ;;  %v19111_v12 = vld [vmem:[#allocation12 + $0x38c] ss:$16 sps:$4 sm:$0xff]  }
 0x4b9   :  { %7031 = vmatmul.mubr.bf16.gmra.mxu1 %v21793_v21  ;;  %8040 = vmatprep.subr.bf16.mxu0 %v19060_v50  ;;  %v19112_v50 = vld [vmem:[#allocation12 + $0x980] ss:$16 sps:$4 sm:$0xff]  }
 0x4ba   :  { %7084 = vmatmul.mubr.bf16.gmra.mxu0 %v21681_v28  ;;  %7126 = vmatprep.mubr.bf16.mxu1 %v21799_v7  ;;  %v21857_v35 = vpop.f32.mrf.mxu0  ;;  %v19067_v7 = vld [vmem:[#allocation12 + $0x268] ss:$16 sps:$4 sm:$0xff]  }
 0x4bb   :  { %7099 = vmatpush1.bf16.msra.mxu1 %v19055_v13  ;;  %8068 = vmatprep.mubr.bf16.mxu0 %v21855_v34  ;;  %v19115_v13 = vld [vmem:[#allocation12 + $0x368] ss:$16 sps:$4 sm:$0xff]  }
 0x4bc   :  { %8041 = vmatpush1.bf16.msra.mxu0 %v19058_v58  ;;  %7100 = vmatprep.subr.bf16.mxu1 %v19063_v4  ;;  %v6019_v36 = vpop.f32.mrf.mxu0  ;;  %v7147_v58 = vld [vmem:[#allocation3 + $0x108] sm:$0xfe] }
 0x4bd   :  { %8042 = vmatprep.subr.bf16.mxu0 %v19066_v46  ;;  %v19118_v4 = vld [vmem:[#allocation12 + $0x960] ss:$16 sps:$4 sm:$0xff]   ;;  %v19123_v46 = vld [vmem:[#allocation12 + $0x34c] ss:$16 sps:$4 sm:$0xff]   ;;  %v19121_v36 = vld [vmem:[#allocation12 + $0x348] ss:$16 sps:$4 sm:$0xff]  }
 0x4be   :  { %v6021_v28 = vpop.f32.mrf.mxu0 }
 0x4bf   :  { %7101 = vmatpush1.bf16.msra.mxu1 %v19061_v43  ;;  %v19126_v43 = vld [vmem:[#allocation12 + $0x944] ss:$16 sps:$4 sm:$0xff]   ;;  %v7164_v28 = vld [vmem:[#allocation3 + $0x78] sm:$0x1] }
 0x4c0   :  { %8043 = vmatpush1.bf16.msra.mxu0 %v19064_v1  ;;  %7102 = vmatprep.subr.bf16.mxu1 %v19069_v39  ;;  %v7167_v1 = vpack.c.bf16 %v21831_v8, %v7147_v58  ;;  %v19124_v39 = vld [vmem:[#allocation12 + $0x940] ss:$16 sps:$4 sm:$0xff]   ;;  %v19147_v58 = vld [vmem:[#allocation12 + $0xac4] ss:$16 sps:$4 sm:$0xff]  }
 0x4c1   :  { %8044 = vmatprep.subr.bf16.mxu0 %v19072_v33  ;;  %v19129_v33 = vld [vmem:[#allocation12 + $0x32c] ss:$16 sps:$4 sm:$0xff]  }
 0x4c3   :  { %7103 = vmatpush1.bf16.msra.mxu1 %v19067_v7  ;;  %v19132_v7 = vld [vmem:[#allocation12 + $0x924] ss:$16 sps:$4 sm:$0xff]  }
 0x4c4   :  { %8045 = vmatpush1.bf16.msra.mxu0 %v19070_v17  ;;  %7104 = vmatprep.subr.bf16.mxu1 %v19075_v23  ;;  %v7155_v17 = vld [vmem:[#allocation3 + $0xe8] sm:$0xff]  ;;  %v7311_v23 = vshll.u32 %v7167_v1, 16 }
 0x4c5   :  { %8046 = vmatprep.subr.bf16.mxu0 %v19078_v10  ;;  %v19127_v10 = vld [vmem:[#allocation12 + $0x328] ss:$16 sps:$4 sm:$0xff]  }
 0x4c7   :  { %7105 = vmatpush1.bf16.msra.mxu1 %v19073_v19  ;;  %v7176_v19 = vpack.c.bf16 %v7164_v28, %v7164_v28 }
 0x4c8   :  { %8047 = vmatpush1.bf16.msra.mxu0 %v19076_v26  ;;  %7106 = vmatprep.subr.bf16.mxu1 %v19081_v44  ;;  %v7150_v26 = vld [vmem:[#allocation3 + $0x118] sm:$0xfe] }
 0x4c9   :  { %8048 = vmatprep.subr.bf16.mxu0 %v19084_v14  ;;  %v19130_v44 = vld [vmem:[#allocation12 + $0x920] ss:$16 sps:$4 sm:$0xff]   ;;  %v19135_v14 = vld [vmem:[#allocation12 + $0x30c] ss:$16 sps:$4 sm:$0xff]  }
 0x4cb   :  { %7107 = vmatpush1.bf16.msra.mxu1 %v19079_v31  ;;  %v21862_v31 = vpack.c.bf16 %v21831_v8, %v7155_v17 }
 0x4cc   :  { %8049 = vmatpush1.bf16.msra.mxu0 %v19082_v9  ;;  %7108 = vmatprep.subr.bf16.mxu1 %v19087_v11  ;;  %v19138_v9 = vld [vmem:[#allocation12 + $0x904] ss:$16 sps:$4 sm:$0xff]   ;;  %v7313_v11 = vrot.slane %v7311_v23, 1 }
 0x4cd   :  { %8050 = vmatprep.subr.bf16.mxu0 %v19090_v0  ;;  %v7170_v0 = vpack.c.bf16 %v21831_v8, %v7150_v26 }
 0x4cf   :  { %7109 = vmatpush1.bf16.msra.mxu1 %v19085_v6  ;;  %v19133_v6 = vld [vmem:[#allocation12 + $0x308] ss:$16 sps:$4 sm:$0xff]   ;;  %v7345_v17 = vshrl.u32 %v7170_v0, 16 }
 0x4d0   :  { %8051 = vmatpush1.bf16.msra.mxu0 %v19088_v2  ;;  %7110 = vmatprep.subr.bf16.mxu1 %v19093_v25  ;;  %v7368_v2 = vshll.u32 %v7176_v19, 16  ;;  %v7163_v25 = vld [vmem:[#allocation3] sm:$0x1] }
 0x4d1   :  { %8052 = vmatprep.subr.bf16.mxu0 %v19096_v56  ;;  %v19136_v56 = vld [vmem:[#allocation12 + $0x900] ss:$16 sps:$4 sm:$0xff]  }
 0x4d3   :  { %7111 = vmatpush2.bf16.msra.mxu1 %v19091_v27  ;;  %v7309_v27 = vshrl.u32 %v7167_v1, 16 }
 0x4d4   :  { %8053 = vmatpush2.bf16.msra.mxu0 %v19094_v32  ;;  %7112 = vmatprep.subr.bf16.mxu1 %v19099_v37  ;;  %v7316_v32 = vshll.u32 %v21862_v31, 16  ;;  %v19141_v37 = vld [vmem:[#allocation12 + $0xae4] ss:$16 sps:$4 sm:$0xff]  }
 0x4d5   :  { %8054 = vmatprep.subr.bf16.mxu0 %v19102_v38  ;;  %v19144_v38 = vld [vmem:[#allocation12 + $0x8ec] ss:$16 sps:$4 sm:$0xff]  }
 0x4d7   :  { %7113 = vmatpush2.bf16.msra.mxu1 %v19097_v51  ;;  %v7364_v51 = vshrl.u32 %v21837_v41, 16 }
 0x4d8   :  { %8055 = vmatpush2.bf16.msra.mxu0 %v19100_v42  ;;  %7114 = vmatprep.subr.bf16.mxu1 %v19105_v49  ;;  %v7158_v42 = vld [vmem:[#allocation3 + $0x88] sm:$0xff]  ;;  %v7314_v49 = vor.u32 %v7313_v11, %v7309_v27 }
 0x4d9   :  { %8056 = vmatprep.subr.bf16.mxu0 %v19108_v22  ;;  %v7175_v22 = vpack.c.bf16 %v7163_v25, %v7163_v25 }
 0x4db   :  { %7115 = vmatpush2.bf16.msra.mxu1 %v19103_v5  ;;  %v7347_v5 = vshll.u32 %v7170_v0, 16  ;;  %v7360_v1 = vshll.u32 %v7175_v22, 16  ;;  %v19154_v0 = vld [vmem:[#allocation12 + $0x8a8] ss:$16 sps:$4 sm:$0xff]  }
 0x4dc   :  { %8057 = vmatpush2.bf16.msra.mxu0 %v19106_v29  ;;  %7116 = vmatprep.subr.bf16.mxu1 %v19111_v12  ;;  %v7366_v29 = vor.u32 %v7364_v51, %v21848_v52  ;;  %v7370_v12 = vrot.slane %v7368_v2, 1  ;;  %v19162_v51 = vld [vmem:[#allocation12 + $0x88c] ss:$16 sps:$4 sm:$0xff]   ;;  %v19160_v22 = vld [vmem:[#allocation12 + $0x888] ss:$16 sps:$4 sm:$0xff]  }
 0x4dd   :  { %8058 = vmatprep.subr.bf16.mxu0 %v19114_v54 }
 0x4df   :  { %7117 = vmatpush2.bf16.msra.mxu1 %v19109_v15  ;;  %v7318_v15 = vrot.slane %v7316_v32, 1 }
 0x4e0   :  { %8059 = vmatpush2.bf16.msra.mxu0 %v19112_v50  ;;  %7118 = vmatprep.subr.bf16.mxu1 %v19117_v30  ;;  %v19139_v50 = vld [vmem:[#allocation12 + $0xae0] ss:$16 sps:$4 sm:$0xff]  }
 0x4e1   :  { %8060 = vmatprep.subr.bf16.mxu0 %v19120_v47  ;;  %v21871_v47 = vpack.c.bf16 %v21831_v8, %v7158_v42  ;;  %v21878_v52 = vsel %vm1053_vm1, %v7314_v49, %v7318_v15  ;;  %v19157_v42 = vld [vmem:[#allocation12 + $0xa80] ss:$16 sps:$4 sm:$0xff]  }
 0x4e3   :  { %7119 = vmatpush2.bf16.msra.mxu1 %v19115_v13  ;;  %v19142_v13 = vld [vmem:[#allocation12 + $0x8e8] ss:$16 sps:$4 sm:$0xff]   ;;  %v7352_v23 = vshll.u32 %v21871_v47, 16 }
 0x4e4   :  { %8061 = vmatpush2.bf16.msra.mxu0 %v19118_v4  ;;  %7120 = vmatprep.subr.bf16.mxu1 %v19123_v46 }
 0x4e5   :  { %8062 = vmatprep.subr.bf16.mxu0 %v19126_v43  ;;  %v19150_v43 = vld [vmem:[#allocation12 + $0x8cc] ss:$16 sps:$4 sm:$0xff]  }
 0x4e7   :  { %7121 = vmatpush2.bf16.msra.mxu1 %v19121_v36  ;;  %v7349_v36 = vrot.slane %v7347_v5, 1  ;;  %v19165_v5 = vld [vmem:[#allocation12 + $0xa64] ss:$16 sps:$4 sm:$0xff]  }
 0x4e8   :  { %8063 = vmatpush2.bf16.msra.mxu0 %v19124_v39  ;;  %7122 = vmatprep.subr.bf16.mxu1 %v19129_v33  ;;  %v21885_v39 = vsel %vm1053_vm1, %v7366_v29, %v7370_v12  ;;  %v19145_v33 = vld [vmem:[#allocation12 + $0xac0] ss:$16 sps:$4 sm:$0xff]  }
 0x4e9   :  { %8064 = vmatprep.subr.bf16.mxu0 %v19132_v7  ;;  %v7356_v7 = vshrl.u32 %v21862_v31, 16  ;;  %v21895_v31 = vrot.slane %v7352_v23, 1  ;;  %v19192_v23 = vld [vmem:[#allocation12 + $0x9ec] ss:$16 sps:$4 sm:$0xff]  }
 0x4eb   :  { %7123 = vmatpush2.bf16.msra.mxu1 %v19127_v10  ;;  %v19153_v10 = vld [vmem:[#allocation12 + $0xaa4] ss:$16 sps:$4 sm:$0xff]  }
 0x4ec   :  { %8065 = vmatpush2.bf16.msra.mxu0 %v19130_v44  ;;  %7124 = vmatprep.subr.bf16.mxu1 %v19135_v14  ;;  %v7362_v44 = vrot.slane %v7360_v1, 1  ;;  %v19156_v14 = vld [vmem:[#allocation12 + $0x8ac] ss:$16 sps:$4 sm:$0xff]   ;;  %v19175_v1 = vld [vmem:[#allocation12 + $0xa20] ss:$16 sps:$4 sm:$0xff]  }
 0x4ed   :  { %8066 = vmatprep.subr.bf16.mxu0 %v19138_v9  ;;  %v7350_v9 = vor.u32 %v7349_v36, %v7345_v17  ;;  %v19178_v36 = vld [vmem:[#allocation12 + $0x828] ss:$16 sps:$4 sm:$0xff]   ;;  %v19189_v17 = vld [vmem:[#allocation12 + $0xbe4] ss:$16 sps:$4 sm:$0xff]  }
 0x4ef   :  { %7125 = vmatpush2.bf16.msra.mxu1 %v19133_v6  ;;  %v19151_v6 = vld [vmem:[#allocation12 + $0xaa0] ss:$16 sps:$4 sm:$0xff]   ;;  %v21906_v32 = vsel %vm1053_vm1, %v7350_v9, %v21895_v31  ;;  %v19204_v9 = vld [vmem:[#allocation12 + $0x9ac] ss:$16 sps:$4 sm:$0xff]  }
 0x4f0   :  { %8067 = vmatpush2.bf16.msra.mxu0 %v19136_v56  ;;  %v21868_v54 = vpop.f32.mrf.mxu0  ;;  %8089 = vmatprep.subr.bf16.mxu1 %v19141_v37  ;;  %v6058_v30 = vpop.f32.mrf.mxu1  ;;  %v19159_v56 = vld [vmem:[#allocation12 + $0xa84] ss:$16 sps:$4 sm:$0xff]  }
 0x4f1   :  { %8142 = vmatprep.subr.bf16.mxu0 %v19144_v38  ;;  %v21874_v41 = vadd.f32 %v6058_v30, %v21834_v40  ;;  %v19171_v30 = vld [vmem:[#allocation12 + $0xa44] ss:$16 sps:$4 sm:$0xff]  }
 0x4f2   :  { %7127 = vmatmul.mubr.bf16.vlgmr.msra.gmra.mxu1 %v21796_v18  ;;  %v21880_v4 = vpop.f32.mrf.mxu0  ;;  %v6060_v46 = vpop.f32.mrf.mxu1 }
 0x4f3   :  { %8069 = vmatmul.mubr.bf16.vlgmr.msra.gmra.mxu0 %v21878_v52  ;;  %7136 = vmatprep.mubr.bf16.mxu1 %v21802_v62  ;;  %v21888_v40 = vadd.f32 %v6060_v46, %v21842_v16  ;;  %v19148_v62 = vld [vmem:[#allocation12 + $0x8c8] ss:$16 sps:$4 sm:$0xff]   ;;  %v7358_v16 = vor.u32 %v7356_v7, %v7318_v15  ;;  %v19168_v15 = vld [vmem:[#allocation12 + $0x86c] ss:$16 sps:$4 sm:$0xff]   ;;  %v19177_v46 = vld [vmem:[#allocation12 + $0xa24] ss:$16 sps:$4 sm:$0xff]  }
 0x4f4   :  { %8078 = vmatprep.mubr.bf16.mxu0 %v21885_v39  ;;  %8090 = vmatpush1.bf16.msra.mxu1 %v19139_v50  ;;  %v6115_v18 = vpop.f32.mrf.mxu0  ;;  %v6062_v28 = vpop.f32.mrf.mxu1  ;;  %v19163_v50 = vld [vmem:[#allocation12 + $0xa60] ss:$16 sps:$4 sm:$0xff]   ;;  %v19184_v7 = vld [vmem:[#allocation12 + $0x808] ss:$16 sps:$4 sm:$0xff]  }
 0x4f5   :  { %8143 = vmatpush1.bf16.msra.mxu0 %v19142_v13  ;;  %8091 = vmatprep.subr.bf16.mxu1 %v19147_v58  ;;  %v21902_v27 = vsel %vm1053_vm1, %v7358_v16, %v7362_v44  ;;  %v19174_v13 = vld [vmem:[#allocation12 + $0x84c] ss:$16 sps:$4 sm:$0xff]   ;;  %v19172_v58 = vld [vmem:[#allocation12 + $0x848] ss:$16 sps:$4 sm:$0xff]   ;;  %v19183_v18 = vld [vmem:[#allocation12 + $0xa04] ss:$16 sps:$4 sm:$0xff]  }
 0x4f6   :  { %8144 = vmatprep.subr.bf16.mxu0 %v19150_v43  ;;  %v6117_v19 = vpop.f32.mrf.mxu0  ;;  %v6064_v26 = vpop.f32.mrf.mxu1  ;;  %v19180_v43 = vld [vmem:[#allocation12 + $0x82c] ss:$16 sps:$4 sm:$0xff]   ;;  %v19181_v28 = vld [vmem:[#allocation12 + $0xa00] ss:$16 sps:$4 sm:$0xff]   ;;  %v19196_v44 = vld [vmem:[#allocation12 + $0x9c8] ss:$16 sps:$4 sm:$0xff]  }
 0x4f7   :  { %v19195_v19 = vld [vmem:[#allocation12 + $0xbc4] ss:$16 sps:$4 sm:$0xff]   ;;  %v19198_v26 = vld [vmem:[#allocation12 + $0x9cc] ss:$16 sps:$4 sm:$0xff]   ;;  %v19193_v16 = vld [vmem:[#allocation12 + $0xbc0] ss:$16 sps:$4 sm:$0xff]  }
 0x4f8   :  { %8092 = vmatpush1.bf16.msra.mxu1 %v19145_v33  ;;  %v21893_v11 = vpop.f32.mrf.mxu0  ;;  %v6068_v2 = vpop.f32.mrf.mxu1  ;;  %v19186_v33 = vld [vmem:[#allocation12 + $0x80c] ss:$16 sps:$4 sm:$0xff]  }
 0x4f9   :  { %8145 = vmatpush1.bf16.msra.mxu0 %v19148_v62  ;;  %8093 = vmatprep.subr.bf16.mxu1 %v19153_v10  ;;  %v21898_v25 = vadd.f32 %v6068_v2, %v21846_v59  ;;  %v19187_v62 = vld [vmem:[#allocation12 + $0xbe0] ss:$16 sps:$4 sm:$0xff]   ;;  %v19190_v10 = vld [vmem:[#allocation12 + $0x9e8] ss:$16 sps:$4 sm:$0xff]  }
 0x4fa   :  { %7137 = vmatmul.mubr.bf16.gmra.mxu1 %v21793_v21  ;;  %8146 = vmatprep.subr.bf16.mxu0 %v19156_v14  ;;  %v21908_v37 = vpop.f32.mrf.mxu0  ;;  %v6070_v38 = vpop.f32.mrf.mxu1  ;;  %v19201_v14 = vld [vmem:[#allocation12 + $0xba4] ss:$16 sps:$4 sm:$0xff]   ;;  %v19202_v2 = vld [vmem:[#allocation12 + $0x9a8] ss:$16 sps:$4 sm:$0xff]  }
 0x4fb   :  { %8079 = vmatmul.mubr.bf16.gmra.mxu0 %v21902_v27  ;;  %8121 = vmatprep.mubr.bf16.mxu1 %v21906_v32  ;;  %v21913_v59 = vadd.f32 %v6070_v38, %v21857_v35  ;;  %v19166_v35 = vld [vmem:[#allocation12 + $0x868] ss:$16 sps:$4 sm:$0xff]   ;;  %v19205_v38 = vld [vmem:[#allocation12 + $0xb80] ss:$16 sps:$4 sm:$0xff]  }
 0x4fc   :  { %8094 = vmatpush1.bf16.msra.mxu1 %v19151_v6  ;;  %8174 = vmatprep.mubr.bf16.mxu0 %v21855_v34  ;;  %v6125_v21 = vpop.f32.mrf.mxu0  ;;  %v6072_v49 = vpop.f32.mrf.mxu1  ;;  %v19169_v34 = vld [vmem:[#allocation12 + $0xa40] ss:$16 sps:$4 sm:$0xff]  }
 0x4fd   :  { %8147 = vmatpush1.bf16.msra.mxu0 %v19154_v0  ;;  %8095 = vmatprep.subr.bf16.mxu1 %v19159_v56  ;;  %v19199_v6 = vld [vmem:[#allocation12 + $0xba0] ss:$16 sps:$4 sm:$0xff]   ;;  %v19207_v0 = vld [vmem:[#allocation12 + $0xb84] ss:$16 sps:$4 sm:$0xff]   ;;  %v19210_v56 = vld [vmem:[#allocation12 + $0x98c] ss:$16 sps:$4 sm:$0xff]  }
 0x4fe   :  { %8148 = vmatprep.subr.bf16.mxu0 %v19162_v51  ;;  %v6127_v29 = vpop.f32.mrf.mxu0  ;;  %v6074_v12 = vpop.f32.mrf.mxu1  ;;  %v19208_v51 = vld [vmem:[#allocation12 + $0x988] ss:$16 sps:$4 sm:$0xff]   ;;  %v19213_v21 = vld [vmem:[#allocation12 + $0xb64] ss:$16 sps:$4 sm:$0xff]  }
 0x4ff   :  { %v7149_v49 = vld [vmem:[#allocation3 + $0x90] sm:$0xfe]  ;;  %v19219_v29 = vld [vmem:[#allocation12 + $0xb44] ss:$16 sps:$4 sm:$0xff]  }
 0x500   :  { %8096 = vmatpush1.bf16.msra.mxu1 %v19157_v42  ;;  %v19216_v42 = vld [vmem:[#allocation12 + $0x96c] ss:$16 sps:$4 sm:$0xff]  }
 0x501   :  { %8149 = vmatpush1.bf16.msra.mxu0 %v19160_v22  ;;  %8097 = vmatprep.subr.bf16.mxu1 %v19165_v5  ;;  %v19211_v22 = vld [vmem:[#allocation12 + $0xb60] ss:$16 sps:$4 sm:$0xff]   ;;  %v19214_v5 = vld [vmem:[#allocation12 + $0x968] ss:$16 sps:$4 sm:$0xff]   ;;  %v19222_v12 = vld [vmem:[#allocation12 + $0x94c] ss:$16 sps:$4 sm:$0xff]  }
 0x502   :  { %8150 = vmatprep.subr.bf16.mxu0 %v19168_v15  ;;  %v7169_v15 = vpack.c.bf16 %v21831_v8, %v7149_v49  ;;  %v19240_v49 = vld [vmem:[#allocation12 + $0xacc] ss:$16 sps:$4 sm:$0xff]  }
 0x504   :  { %8098 = vmatpush1.bf16.msra.mxu1 %v19163_v50  ;;  %v19217_v50 = vld [vmem:[#allocation12 + $0xb40] ss:$16 sps:$4 sm:$0xff]  }
 0x505   :  { %8151 = vmatpush1.bf16.msra.mxu0 %v19166_v35  ;;  %8099 = vmatprep.subr.bf16.mxu1 %v19171_v30  ;;  %v7166_v35 = vld [vmem:[#allocation3 + $0x68] sm:$0x1]  ;;  %v19220_v30 = vld [vmem:[#allocation12 + $0x948] ss:$16 sps:$4 sm:$0xff]  }
 0x506   :  { %8152 = vmatprep.subr.bf16.mxu0 %v19174_v13  ;;  %v19225_v13 = vld [vmem:[#allocation12 + $0xb24] ss:$16 sps:$4 sm:$0xff]  }
 0x508   :  { %8100 = vmatpush1.bf16.msra.mxu1 %v19169_v34  ;;  %v7157_v34 = vld [vmem:[#allocation3 + $0x20] sm:$0xff] }
 0x509   :  { %8153 = vmatpush1.bf16.msra.mxu0 %v19172_v58  ;;  %8101 = vmatprep.subr.bf16.mxu1 %v19177_v46  ;;  %v19228_v58 = vld [vmem:[#allocation12 + $0x92c] ss:$16 sps:$4 sm:$0xff]   ;;  %v7335_v46 = vshll.u32 %v7169_v15, 16 }
 0x50a   :  { %8154 = vmatprep.subr.bf16.mxu0 %v19180_v43  ;;  %v7178_v43 = vpack.c.bf16 %v7166_v35, %v7166_v35 }
 0x50c   :  { %8102 = vmatpush1.bf16.msra.mxu1 %v19175_v1  ;;  %v19223_v1 = vld [vmem:[#allocation12 + $0xb20] ss:$16 sps:$4 sm:$0xff]  }
 0x50d   :  { %8155 = vmatpush1.bf16.msra.mxu0 %v19178_v36  ;;  %8103 = vmatprep.subr.bf16.mxu1 %v19183_v18  ;;  %v7173_v36 = vpack.c.bf16 %v21831_v8, %v7157_v34  ;;  %v19226_v18 = vld [vmem:[#allocation12 + $0x928] ss:$16 sps:$4 sm:$0xff]  }
 0x50e   :  { %8156 = vmatprep.subr.bf16.mxu0 %v19186_v33  ;;  %v19231_v33 = vld [vmem:[#allocation12 + $0xb04] ss:$16 sps:$4 sm:$0xff]  }
 0x510   :  { %8104 = vmatpush1.bf16.msra.mxu1 %v19181_v28  ;;  %v19234_v28 = vld [vmem:[#allocation12 + $0x90c] ss:$16 sps:$4 sm:$0xff]  }
 0x511   :  { %8157 = vmatpush1.bf16.msra.mxu0 %v19184_v7  ;;  %8105 = vmatprep.subr.bf16.mxu1 %v19189_v17  ;;  %v7337_v7 = vrot.slane %v7335_v46, 1  ;;  %v7384_v17 = vshll.u32 %v7178_v43, 16  ;;  %v19241_v46 = vld [vmem:[#allocation12 + $0xaa8] ss:$16 sps:$4 sm:$0xff]  }
 0x512   :  { %8158 = vmatprep.subr.bf16.mxu0 %v19192_v23  ;;  %v7165_v23 = vld [vmem:[#allocation3 + $0x50] sm:$0x1] }
 0x514   :  { %8106 = vmatpush2.bf16.msra.mxu1 %v19187_v62  ;;  %v19229_v62 = vld [vmem:[#allocation12 + $0xb00] ss:$16 sps:$4 sm:$0xff]  }
 0x515   :  { %8159 = vmatpush2.bf16.msra.mxu0 %v19190_v10  ;;  %8107 = vmatprep.subr.bf16.mxu1 %v19195_v19  ;;  %v7333_v10 = vshrl.u32 %v7169_v15, 16  ;;  %v7340_v19 = vshll.u32 %v7173_v36, 16 }
 0x516   :  { %8160 = vmatprep.subr.bf16.mxu0 %v19198_v26  ;;  %v19232_v26 = vld [vmem:[#allocation12 + $0x908] ss:$16 sps:$4 sm:$0xff]  }
 0x517   :  { %v7338_v8 = vor.u32 %v7337_v7, %v7333_v10  ;;  %v19244_v7 = vld [vmem:[#allocation12 + $0xa88] ss:$16 sps:$4 sm:$0xff]  }
 0x518   :  { %8108 = vmatpush2.bf16.msra.mxu1 %v19193_v16  ;;  %v19237_v16 = vld [vmem:[#allocation12 + $0xaec] ss:$16 sps:$4 sm:$0xff]   ;;  %v19247_v10 = vld [vmem:[#allocation12 + $0xa68] ss:$16 sps:$4 sm:$0xff]  }
 0x519   :  { %8161 = vmatpush2.bf16.msra.mxu0 %v19196_v44  ;;  %8109 = vmatprep.subr.bf16.mxu1 %v19201_v14  ;;  %v7380_v44 = vshrl.u32 %v21871_v47, 16  ;;  %v7177_v14 = vpack.c.bf16 %v7165_v23, %v7165_v23  ;;  %v19249_v23 = vld [vmem:[#allocation12 + $0xa6c] ss:$16 sps:$4 sm:$0xff]  }
 0x51a   :  { %8162 = vmatprep.subr.bf16.mxu0 %v19204_v9 }
 0x51b   :  { %v7382_v9 = vor.u32 %v7380_v44, %v21895_v31  ;;  %v7376_v31 = vshll.u32 %v7177_v14, 16  ;;  %v19255_v44 = vld [vmem:[#allocation12 + $0xa2c] ss:$16 sps:$4 sm:$0xff]   ;;  %v19253_v14 = vld [vmem:[#allocation12 + $0xa28] ss:$16 sps:$4 sm:$0xff]  }
 0x51c   :  { %8110 = vmatpush2.bf16.msra.mxu1 %v19199_v6  ;;  %v7386_v6 = vrot.slane %v7384_v17, 1 }
 0x51d   :  { %8163 = vmatpush2.bf16.msra.mxu0 %v19202_v2  ;;  %8111 = vmatprep.subr.bf16.mxu1 %v19207_v0  ;;  %v7342_v0 = vrot.slane %v7340_v19, 1  ;;  %v19285_v19 = vld [vmem:[#allocation15 + $0x274] ss:$8 sps:$4 sm:$0xff]  }
 0x51e   :  { %8164 = vmatprep.subr.bf16.mxu0 %v19210_v56 }
 0x51f   :  { %v21927_v47 = vsel %vm1053_vm1, %v7338_v8, %v7342_v0  ;;  %v19289_v8 = vld [vmem:[#allocation15 + $0x250] ss:$8 sps:$4 sm:$0xff]  }
 0x520   :  { %8112 = vmatpush2.bf16.msra.mxu1 %v19205_v38 }
 0x521   :  { %8165 = vmatpush2.bf16.msra.mxu0 %v19208_v51  ;;  %8113 = vmatprep.subr.bf16.mxu1 %v19213_v21  ;;  %v19235_v51 = vld [vmem:[#allocation12 + $0xae8] ss:$16 sps:$4 sm:$0xff]  }
 0x522   :  { %8166 = vmatprep.subr.bf16.mxu0 %v19216_v42 }
 0x524   :  { %8114 = vmatpush2.bf16.msra.mxu1 %v19211_v22  ;;  %v21931_v22 = vsel %vm1053_vm1, %v7382_v9, %v7386_v6  ;;  %v19294_v9 = vld [vmem:[#allocation15 + $0x244] ss:$8 sps:$4 sm:$0xff]   ;;  %v19258_v6 = vld [vmem:[#allocation12 + $0xa0c] ss:$16 sps:$4 sm:$0xff]  }
 0x525   :  { %8167 = vmatpush2.bf16.msra.mxu0 %v19214_v5  ;;  %8115 = vmatprep.subr.bf16.mxu1 %v19219_v29 }
 0x526   :  { %8168 = vmatprep.subr.bf16.mxu0 %v19222_v12  ;;  %v7372_v12 = vshrl.u32 %v7173_v36, 16  ;;  %v19246_v36 = vld [vmem:[#allocation12 + $0xa8c] ss:$16 sps:$4 sm:$0xff]  }
 0x528   :  { %8116 = vmatpush2.bf16.msra.mxu1 %v19217_v50  ;;  %v19238_v50 = vld [vmem:[#allocation12 + $0xac8] ss:$16 sps:$4 sm:$0xff]  }
 0x529   :  { %8169 = vmatpush2.bf16.msra.mxu0 %v19220_v30  ;;  %8117 = vmatprep.subr.bf16.mxu1 %v19225_v13  ;;  %v7374_v30 = vor.u32 %v7372_v12, %v7342_v0  ;;  %v19243_v13 = vld [vmem:[#allocation12 + $0xaac] ss:$16 sps:$4 sm:$0xff]   ;;  %v19256_v0 = vld [vmem:[#allocation12 + $0xa08] ss:$16 sps:$4 sm:$0xff]  }
 0x52a   :  { %8170 = vmatprep.subr.bf16.mxu0 %v19228_v58  ;;  %v19262_v12 = vld [vmem:[#allocation12 + $0xbc8] ss:$16 sps:$4 sm:$0xff]  }
 0x52c   :  { %8118 = vmatpush2.bf16.msra.mxu1 %v19223_v1 }
 0x52d   :  { %8171 = vmatpush2.bf16.msra.mxu0 %v19226_v18  ;;  %8119 = vmatprep.subr.bf16.mxu1 %v19231_v33 }
 0x52e   :  { %8172 = vmatprep.subr.bf16.mxu0 %v19234_v28 }
 0x530   :  { %8120 = vmatpush2.bf16.msra.mxu1 %v19229_v62  ;;  %v6164_v2 = vpop.f32.mrf.mxu1 }
 0x531   :  { %8173 = vmatpush2.bf16.msra.mxu0 %v19232_v26  ;;  %v21921_v56 = vadd.f32 %v6164_v2, %v21868_v54  ;;  %v6969_v38 = vpop.f32.mrf.mxu0  ;;  %8195 = vmatprep.subr.bf16.mxu1 %v19237_v16  ;;  %v19252_v26 = vld [vmem:[#allocation12 + $0xa4c] ss:$16 sps:$4 sm:$0xff]   ;;  %v19291_v16 = vld [vmem:[#allocation15 + $0x254] ss:$8 sps:$4 sm:$0xff]  }
 0x532   :  { %v21924_v21 = vadd.f32 %v6969_v38, %v21874_v41  ;;  %v6166_v42 = vpop.f32.mrf.mxu1  ;;  %8843 = vmatprep.subr.bf16.mxu0 %v19285_v19  ;;  %v19292_v2 = vld [vmem:[#allocation15 + $0x240] ss:$8 sps:$4 sm:$0xff]   ;;  %v19297_v38 = vld [vmem:[#allocation15 + $0x234] ss:$8 sps:$4 sm:$0xff]  }
 0x533   :  { %8122 = vmatmul.mubr.bf16.vlgmr.msra.gmra.mxu1 %v21927_v47  ;;  %v21934_v54 = vadd.f32 %v6166_v42, %v21880_v4  ;;  %v6971_v5 = vpop.f32.mrf.mxu0  ;;  %v7378_v4 = vrot.slane %v7376_v31, 1  ;;  %v19295_v42 = vld [vmem:[#allocation15 + $0x230] ss:$8 sps:$4 sm:$0xff]   ;;  %v19300_v31 = vld [vmem:[#allocation15 + $0x224] ss:$8 sps:$4 sm:$0xff]  }
 0x534   :  { %8175 = vmatmul.mubr.bf16.vlgmr.msra.gmra.mxu0 %v21878_v52  ;;  %8131 = vmatprep.mubr.bf16.mxu1 %v21931_v22  ;;  %v21939_v41 = vadd.f32 %v6971_v5, %v21888_v40  ;;  %v6168_v29 = vpop.f32.mrf.mxu1  ;;  %v19264_v5 = vld [vmem:[#allocation12 + $0xbcc] ss:$16 sps:$4 sm:$0xff]   ;;  %v19280_v19 = vld [vmem:[#allocation12 + $0xb08] ss:$16 sps:$4 sm:$0xff]  }
 0x535   :  { %8184 = vmatprep.mubr.bf16.mxu0 %v21885_v39  ;;  %8196 = vmatpush1.bf16.msra.mxu1 %v19235_v51  ;;  %v6973_v15 = vpop.f32.mrf.mxu0  ;;  %v21949_v39 = vsel %vm1053_vm1, %v7374_v30, %v7378_v4  ;;  %v19261_v51 = vld [vmem:[#allocation12 + $0xbec] ss:$16 sps:$4 sm:$0xff]   ;;  %v19265_v30 = vld [vmem:[#allocation12 + $0xba8] ss:$16 sps:$4 sm:$0xff]  }
 0x536   :  { %8197 = vmatprep.subr.bf16.mxu1 %v19240_v49  ;;  %v6170_v35 = vpop.f32.mrf.mxu1  ;;  %v19259_v49 = vld [vmem:[#allocation12 + $0xbe8] ss:$16 sps:$4 sm:$0xff]   ;;  %v19298_v29 = vld [vmem:[#allocation15 + $0x220] ss:$8 sps:$4 sm:$0xff]  }
 0x537   :  { %v6975_v34 = vpop.f32.mrf.mxu0  ;;  %v19303_v15 = vld [vmem:[#allocation15 + $0x214] ss:$8 sps:$4 sm:$0xff]   ;;  %v19301_v35 = vld [vmem:[#allocation15 + $0x210] ss:$8 sps:$4 sm:$0xff]   ;;  %v19306_v4 = vld [vmem:[#allocation15 + $0x204] ss:$8 sps:$4 sm:$0xff]  }
 0x538   :  { %v6174_v58 = vpop.f32.mrf.mxu1  ;;  %v19304_v34 = vld [vmem:[#allocation15 + $0x200] ss:$8 sps:$4 sm:$0xff]  }
 0x539   :  { %8198 = vmatpush1.bf16.msra.mxu1 %v19238_v50  ;;  %v21943_v52 = vadd.f32 %v6174_v58, %v21893_v11  ;;  %v6979_v40 = vpop.f32.mrf.mxu0  ;;  %v19267_v50 = vld [vmem:[#allocation12 + $0xbac] ss:$16 sps:$4 sm:$0xff]   ;;  %v19268_v58 = vld [vmem:[#allocation12 + $0xb88] ss:$16 sps:$4 sm:$0xff]  }
 0x53a   :  { %v21946_v43 = vadd.f32 %v6979_v40, %v21898_v25  ;;  %8199 = vmatprep.subr.bf16.mxu1 %v19243_v13  ;;  %v6176_v1 = vpop.f32.mrf.mxu1  ;;  %v19270_v13 = vld [vmem:[#allocation12 + $0xb8c] ss:$16 sps:$4 sm:$0xff]   ;;  %v19309_v40 = vld [vmem:[#allocation15 + $0x2f4] ss:$8 sps:$4 sm:$0xff]  }
 0x53b   :  { %8132 = vmatmul.mubr.bf16.gmra.mxu1 %v21949_v39  ;;  %v21953_v18 = vadd.f32 %v6176_v1, %v21908_v37  ;;  %v6981_v33 = vpop.f32.mrf.mxu0  ;;  %v19283_v37 = vld [vmem:[#allocation15 + $0x270] ss:$8 sps:$4 sm:$0xff]  }
 0x53c   :  { %8185 = vmatmul.mubr.bf16.gmra.mxu0 %v21902_v27  ;;  %8227 = vmatprep.mubr.bf16.mxu1 %v21906_v32  ;;  %v21958_v11 = vadd.f32 %v6981_v33, %v21913_v59  ;;  %v6178_v25 = vpop.f32.mrf.mxu1  ;;  %v19288_v27 = vld [vmem:[#allocation15 + $0x264] ss:$8 sps:$4 sm:$0xff]   ;;  %v19286_v32 = vld [vmem:[#allocation15 + $0x260] ss:$8 sps:$4 sm:$0xff]   ;;  %v19307_v1 = vld [vmem:[#allocation15 + $0x2f0] ss:$8 sps:$4 sm:$0xff]  }
 0x53d   :  { %8200 = vmatpush1.bf16.msra.mxu1 %v19241_v46  ;;  %v6983_v28 = vpop.f32.mrf.mxu0  ;;  %8844 = vmatpush1.bf16.msra.mxu0 %v19283_v37  ;;  %v19250_v59 = vld [vmem:[#allocation12 + $0xa48] ss:$16 sps:$4 sm:$0xff]   ;;  %v19273_v46 = vld [vmem:[#allocation12 + $0xb6c] ss:$16 sps:$4 sm:$0xff]  }
 0x53e   :  { %8201 = vmatprep.subr.bf16.mxu1 %v19246_v36  ;;  %v6180_v17 = vpop.f32.mrf.mxu1  ;;  %8845 = vmatprep.subr.bf16.mxu0 %v19288_v27  ;;  %v19271_v36 = vld [vmem:[#allocation12 + $0xb68] ss:$16 sps:$4 sm:$0xff]   ;;  %v19276_v25 = vld [vmem:[#allocation12 + $0xb4c] ss:$16 sps:$4 sm:$0xff]  }
 0x53f   :  { %v6985_v62 = vpop.f32.mrf.mxu0  ;;  %v19312_v33 = vld [vmem:[#allocation15 + $0x2e4] ss:$8 sps:$4 sm:$0xff]   ;;  %v19310_v28 = vld [vmem:[#allocation15 + $0x2e0] ss:$8 sps:$4 sm:$0xff]   ;;  %v19315_v17 = vld [vmem:[#allocation15 + $0x2d4] ss:$8 sps:$4 sm:$0xff]  }
 0x540   :  { %v19313_v62 = vld [vmem:[#allocation15 + $0x2d0] ss:$8 sps:$4 sm:$0xff]   ;;  %v19316_v27 = vld [vmem:[#allocation15 + $0x2c0] ss:$8 sps:$4 sm:$0xff]  }
 0x541   :  { %8202 = vmatpush1.bf16.msra.mxu1 %v19244_v7  ;;  %8846 = vmatpush1.bf16.msra.mxu0 %v19286_v32  ;;  %v19274_v7 = vld [vmem:[#allocation12 + $0xb48] ss:$16 sps:$4 sm:$0xff]   ;;  %v19282_v37 = vld [vmem:[#allocation12 + $0xb0c] ss:$16 sps:$4 sm:$0xff]  }
 0x542   :  { %8203 = vmatprep.subr.bf16.mxu1 %v19249_v23  ;;  %8847 = vmatprep.subr.bf16.mxu0 %v19291_v16  ;;  %v19279_v23 = vld [vmem:[#allocation12 + $0xb2c] ss:$16 sps:$4 sm:$0xff]  }
 0x545   :  { %8204 = vmatpush1.bf16.msra.mxu1 %v19247_v10  ;;  %8848 = vmatpush1.bf16.msra.mxu0 %v19289_v8  ;;  %v19277_v10 = vld [vmem:[#allocation12 + $0xb28] ss:$16 sps:$4 sm:$0xff]  }
 0x546   :  { %8205 = vmatprep.subr.bf16.mxu1 %v19252_v26  ;;  %8849 = vmatprep.subr.bf16.mxu0 %v19294_v9  ;;  %v19318_v26 = vld [vmem:[#allocation15 + $0x2c4] ss:$8 sps:$4 sm:$0xff]  }
 0x549   :  { %8206 = vmatpush1.bf16.msra.mxu1 %v19250_v59  ;;  %8850 = vmatpush1.bf16.msra.mxu0 %v19292_v2  ;;  %v19319_v2 = vld [vmem:[#allocation15 + $0x2b0] ss:$8 sps:$4 sm:$0xff]  }
 0x54a   :  { %8207 = vmatprep.subr.bf16.mxu1 %v19255_v44  ;;  %8851 = vmatprep.subr.bf16.mxu0 %v19297_v38 }
 0x54d   :  { %8208 = vmatpush1.bf16.msra.mxu1 %v19253_v14  ;;  %8852 = vmatpush1.bf16.msra.mxu0 %v19295_v42  ;;  %v19321_v14 = vld [vmem:[#allocation15 + $0x2b4] ss:$8 sps:$4 sm:$0xff]  }
 0x54e   :  { %8209 = vmatprep.subr.bf16.mxu1 %v19258_v6  ;;  %8853 = vmatprep.subr.bf16.mxu0 %v19300_v31 }
 0x551   :  { %8210 = vmatpush1.bf16.msra.mxu1 %v19256_v0  ;;  %8854 = vmatpush1.bf16.msra.mxu0 %v19298_v29 }
 0x552   :  { %8211 = vmatprep.subr.bf16.mxu1 %v19261_v51  ;;  %8855 = vmatprep.subr.bf16.mxu0 %v19303_v15  ;;  %v19324_v51 = vld [vmem:[#allocation15 + $0x2a4] ss:$8 sps:$4 sm:$0xff]   ;;  %v19325_v15 = vld [vmem:[#allocation15 + $0x290] ss:$8 sps:$4 sm:$0xff]  }
 0x555   :  { %8212 = vmatpush2.bf16.msra.mxu1 %v19259_v49  ;;  %8856 = vmatpush1.bf16.msra.mxu0 %v19301_v35  ;;  %v19322_v49 = vld [vmem:[#allocation15 + $0x2a0] ss:$8 sps:$4 sm:$0xff]  }
 0x556   :  { %8213 = vmatprep.subr.bf16.mxu1 %v19264_v5  ;;  %8857 = vmatprep.subr.bf16.mxu0 %v19306_v4  ;;  %v19327_v5 = vld [vmem:[#allocation15 + $0x294] ss:$8 sps:$4 sm:$0xff]   ;;  %v19330_v4 = vld [vmem:[#allocation15 + $0x284] ss:$8 sps:$4 sm:$0xff]  }
 0x559   :  { %8214 = vmatpush2.bf16.msra.mxu1 %v19262_v12  ;;  %8858 = vmatpush1.bf16.msra.mxu0 %v19304_v34  ;;  %v19333_v34 = vld [vmem:[#allocation15 + $0x374] ss:$8 sps:$4 sm:$0xff]  }
 0x55a   :  { %8215 = vmatprep.subr.bf16.mxu1 %v19267_v50  ;;  %8859 = vmatprep.subr.bf16.mxu0 %v19309_v40  ;;  %v19339_v40 = vld [vmem:[#allocation15 + $0x364] ss:$8 sps:$4 sm:$0xff]  }
 0x55d   :  { %8216 = vmatpush2.bf16.msra.mxu1 %v19265_v30  ;;  %8860 = vmatpush2.bf16.msra.mxu0 %v19307_v1  ;;  %v21989_v1 = vld [vmem:[#allocation2 + $0x20] sm:$0xff] }
 0x55e   :  { %8217 = vmatprep.subr.bf16.mxu1 %v19270_v13  ;;  %8861 = vmatprep.subr.bf16.mxu0 %v19312_v33  ;;  %v19328_v13 = vld [vmem:[#allocation15 + $0x280] ss:$8 sps:$4 sm:$0xff]  }
 0x55f   :  { %v21992_v33 = vld [vmem:[#allocation2 + $0x108] sm:$0x7f] }
 0x560   :  { %11076 = vst [vmem:[#allocation2 + $0x108] sm:$0xff] %v21989_v1 }
 0x561   :  { %8218 = vmatpush2.bf16.msra.mxu1 %v19268_v58  ;;  %8862 = vmatpush2.bf16.msra.mxu0 %v19310_v28  ;;  %v19331_v58 = vld [vmem:[#allocation15 + $0x370] ss:$8 sps:$4 sm:$0xff]   ;;  %v19349_v28 = vld [vmem:[#allocation15 + $0x340] ss:$8 sps:$4 sm:$0xff]  }
 0x562   :  { %8219 = vmatprep.subr.bf16.mxu1 %v19273_v46  ;;  %8863 = vmatprep.subr.bf16.mxu0 %v19315_v17  ;;  %v19345_v46 = vld [vmem:[#allocation15 + $0x354] ss:$8 sps:$4 sm:$0xff]   ;;  %v19355_v17 = vld [vmem:[#allocation15 + $0x330] ss:$8 sps:$4 sm:$0xff]  }
 0x565   :  { %8220 = vmatpush2.bf16.msra.mxu1 %v19271_v36  ;;  %8864 = vmatpush2.bf16.msra.mxu0 %v19313_v62  ;;  %v19343_v36 = vld [vmem:[#allocation15 + $0x350] ss:$8 sps:$4 sm:$0xff]   ;;  %v19361_v62 = vld [vmem:[#allocation15 + $0x320] ss:$8 sps:$4 sm:$0xff]  }
 0x566   :  { %8221 = vmatprep.subr.bf16.mxu1 %v19276_v25  ;;  %8865 = vmatprep.subr.bf16.mxu0 %v19318_v26  ;;  %v19351_v25 = vld [vmem:[#allocation15 + $0x344] ss:$8 sps:$4 sm:$0xff]   ;;  %v19373_v26 = vld [vmem:[#allocation15 + $0x300] ss:$8 sps:$4 sm:$0xff]  }
 0x569   :  { %8222 = vmatpush2.bf16.msra.mxu1 %v19274_v7  ;;  %8866 = vmatpush2.bf16.msra.mxu0 %v19316_v27  ;;  %v19357_v7 = vld [vmem:[#allocation15 + $0x334] ss:$8 sps:$4 sm:$0xff]  }
 0x56a   :  { %8223 = vmatprep.subr.bf16.mxu1 %v19279_v23  ;;  %8867 = vmatprep.subr.bf16.mxu0 %v19321_v14  ;;  %v19363_v23 = vld [vmem:[#allocation15 + $0x324] ss:$8 sps:$4 sm:$0xff]   ;;  %v19381_v27 = vld [vmem:[#allocation15 + $0x3f4] ss:$8 sps:$4 sm:$0xff]  }
 0x56b   :  { %v19393_v14 = vld [vmem:[#allocation15 + $0x3d4] ss:$8 sps:$4 sm:$0xff]  }
 0x56d   :  { %8224 = vmatpush2.bf16.msra.mxu1 %v19277_v10  ;;  %8868 = vmatpush2.bf16.msra.mxu0 %v19319_v2  ;;  %v19369_v10 = vld [vmem:[#allocation15 + $0x314] ss:$8 sps:$4 sm:$0xff]   ;;  %v19399_v2 = vld [vmem:[#allocation15 + $0x3c4] ss:$8 sps:$4 sm:$0xff]  }
 0x56e   :  { %8225 = vmatprep.subr.bf16.mxu1 %v19282_v37  ;;  %8869 = vmatprep.subr.bf16.mxu0 %v19324_v51  ;;  %v19367_v37 = vld [vmem:[#allocation15 + $0x310] ss:$8 sps:$4 sm:$0xff]  }
 0x571   :  { %8226 = vmatpush2.bf16.msra.mxu1 %v19280_v19  ;;  %v7022_v32 = vpop.f32.mrf.mxu1  ;;  %8870 = vmatpush2.bf16.msra.mxu0 %v19322_v49  ;;  %v19375_v19 = vld [vmem:[#allocation15 + $0x304] ss:$8 sps:$4 sm:$0xff]  }
 0x572   :  { %v21961_v59 = vadd.f32 %v7022_v32, %v21924_v21  ;;  %v7075_v16 = vpop.f32.mrf.mxu0  ;;  %8871 = vmatprep.subr.bf16.mxu0 %v19327_v5  ;;  %8896 = vmatprep.subr.bf16.mxu1 %v19333_v34  ;;  %v19379_v32 = vld [vmem:[#allocation15 + $0x3f0] ss:$8 sps:$4 sm:$0xff]  }
 0x573   :  { %v21964_v44 = vadd.f32 %v7075_v16, %v21921_v56  ;;  %v7024_v8 = vpop.f32.mrf.mxu1  ;;  %v19387_v16 = vld [vmem:[#allocation15 + $0x3e4] ss:$8 sps:$4 sm:$0xff]  }
 0x574   :  { %8228 = vmatmul.mubr.bf16.vlgmr.msra.gmra.mxu1 %v21927_v47  ;;  %v21968_v9 = vadd.f32 %v7024_v8, %v21939_v41  ;;  %v7077_v6 = vpop.f32.mrf.mxu0  ;;  %v19385_v8 = vld [vmem:[#allocation15 + $0x3e0] ss:$8 sps:$4 sm:$0xff]  }
 0x575   :  { %8237 = vmatprep.mubr.bf16.mxu1 %v21931_v22  ;;  %v21972_v0 = vadd.f32 %v7077_v6, %v21934_v54  ;;  %v7026_v21 = vpop.f32.mrf.mxu1  ;;  %8872 = vmatpush2.bf16.msra.mxu0 %v19325_v15  ;;  %v19391_v6 = vld [vmem:[#allocation15 + $0x3d0] ss:$8 sps:$4 sm:$0xff]   ;;  %v19411_v15 = vld [vmem:[#allocation15 + $0x3a4] ss:$8 sps:$4 sm:$0xff]  }
 0x576   :  { %v7079_v38 = vpop.f32.mrf.mxu0  ;;  %8873 = vmatprep.subr.bf16.mxu0 %v19330_v4  ;;  %8897 = vmatpush1.bf16.msra.mxu1 %v19331_v58  ;;  %v19397_v21 = vld [vmem:[#allocation15 + $0x3c0] ss:$8 sps:$4 sm:$0xff]  }
 0x577   :  { %v7028_v56 = vpop.f32.mrf.mxu1  ;;  %8898 = vmatprep.subr.bf16.mxu1 %v19339_v40 }
 0x578   :  { %v7081_v42 = vpop.f32.mrf.mxu0 }
 0x579   :  { %v7032_v31 = vpop.f32.mrf.mxu1  ;;  %8874 = vmatpush2.bf16.msra.mxu0 %v19328_v13  ;;  %v19405_v42 = vld [vmem:[#allocation15 + $0x3b4] ss:$8 sps:$4 sm:$0xff]  }
 0x57a   :  { %v21975_v47 = vadd.f32 %v7032_v31, %v21946_v43  ;;  %v7085_v41 = vpop.f32.mrf.mxu0  ;;  %v19403_v31 = vld [vmem:[#allocation15 + $0x3b0] ss:$8 sps:$4 sm:$0xff]   ;;  %v19417_v13 = vld [vmem:[#allocation15 + $0x394] ss:$8 sps:$4 sm:$0xff]  }
 0x57b   :  { %v21978_v22 = vadd.f32 %v7085_v41, %v21943_v52  ;;  %v7034_v54 = vpop.f32.mrf.mxu1 }
 0x57c   :  { %8238 = vmatmul.mubr.bf16.gmra.mxu1 %v21949_v39  ;;  %v21982_v29 = vadd.f32 %v7034_v54, %v21958_v11  ;;  %v7087_v12 = vpop.f32.mrf.mxu0  ;;  %v19336_v39 = vld [vmem:[#allocation15 + $0x74] ss:$8 sps:$4 sm:$0xff]   ;;  %v19337_v11 = vld [vmem:[#allocation15 + $0x360] ss:$8 sps:$4 sm:$0xff]  }
 0x57d   :  { %v21985_v50 = vadd.f32 %v7087_v12, %v21953_v18  ;;  %v7036_v35 = vpop.f32.mrf.mxu1  ;;  %9381 = vmatprep.subr.bf16.mxu0 %v19336_v39  ;;  %v21987_v18 = vld [vmem:[#allocation2 + $0x100] sm:$0x7f]  ;;  %8899 = vmatpush1.bf16.msra.mxu1 %v19337_v11 }
 0x57e   :  { %v7089_v43 = vpop.f32.mrf.mxu0  ;;  %11075 = vst [vmem:[#allocation2 + $0x100] sm:$0xff] %v21989_v1  ;;  %8900 = vmatprep.subr.bf16.mxu1 %v19345_v46  ;;  %v19423_v46 = vld [vmem:[#allocation15 + $0x384] ss:$8 sps:$4 sm:$0xff]  }
 0x57f   :  { %v7038_v30 = vpop.f32.mrf.mxu1  ;;  %v19409_v43 = vld [vmem:[#allocation15 + $0x3a0] ss:$8 sps:$4 sm:$0xff]  }
 0x580   :  { %v7091_v52 = vpop.f32.mrf.mxu0 }
 0x581   :  { %8901 = vmatpush1.bf16.msra.mxu1 %v19343_v36 }
 0x582   :  { %8902 = vmatprep.subr.bf16.mxu1 %v19351_v25  ;;  %v19421_v25 = vld [vmem:[#allocation15 + $0x380] ss:$8 sps:$4 sm:$0xff]  }
 0x585   :  { %8903 = vmatpush1.bf16.msra.mxu1 %v19349_v28 }
 0x586   :  { %8904 = vmatprep.subr.bf16.mxu1 %v19357_v7  ;;  %v22007_v7 = vld [vmem:[#allocation2 + $0x110] sm:$0x7f] }
 0x587   :  { %16191 = vst [vmem:[#allocation2 + $0x110] sm:$0xff] %v21989_v1 }
 0x589   :  { %8905 = vmatpush1.bf16.msra.mxu1 %v19355_v17  ;;  %v22010_v17 = vld [vmem:[#allocation2 + $0x118] sm:$0x7f] }
 0x58a   :  { %8906 = vmatprep.subr.bf16.mxu1 %v19363_v23  ;;  %16192 = vst [vmem:[#allocation2 + $0x118] sm:$0xff] %v21989_v1 }
 0x58d   :  { %8907 = vmatpush1.bf16.msra.mxu1 %v19361_v62 }
 0x58e   :  { %8908 = vmatprep.subr.bf16.mxu1 %v19369_v10 }
 0x591   :  { %8909 = vmatpush1.bf16.msra.mxu1 %v19367_v37 }
 0x592   :  { %8910 = vmatprep.subr.bf16.mxu1 %v19375_v19 }
 0x595   :  { %8911 = vmatpush1.bf16.msra.mxu1 %v19373_v26 }
 0x596   :  { %8912 = vmatprep.subr.bf16.mxu1 %v19381_v27 }
 0x599   :  { %8913 = vmatpush2.bf16.msra.mxu1 %v19379_v32 }
 0x59a   :  { %8914 = vmatprep.subr.bf16.mxu1 %v19387_v16 }
 0x59d   :  { %8915 = vmatpush2.bf16.msra.mxu1 %v19385_v8 }
 0x59e   :  { %8916 = vmatprep.subr.bf16.mxu1 %v19393_v14 }
 0x5a1   :  { %8917 = vmatpush2.bf16.msra.mxu1 %v19391_v6 }
 0x5a2   :  { %8918 = vmatprep.subr.bf16.mxu1 %v19399_v2 }
 0x5a5   :  { %8919 = vmatpush2.bf16.msra.mxu1 %v19397_v21 }
 0x5a6   :  { %8920 = vmatprep.subr.bf16.mxu1 %v19405_v42 }
 0x5a9   :  { %8921 = vmatpush2.bf16.msra.mxu1 %v19403_v31  ;;  %v8350_v31 = vld [vmem:[#allocation2] sm:$0x80] }
 0x5aa   :  { %8922 = vmatprep.subr.bf16.mxu1 %v19411_v15 }
 0x5ad   :  { %8923 = vmatpush2.bf16.msra.mxu1 %v19409_v43  ;;  %v8379_v43 = vpack.c.bf16 %v21992_v33, %v21992_v33  ;;  %v19342_v33 = vld [vmem:[#allocation15 + $0x64] ss:$8 sps:$4 sm:$0xff]  }
 0x5ae   :  { %8924 = vmatprep.subr.bf16.mxu1 %v19417_v13 }
 0x5b2   :  { %v7128_v38 = vpop.f32.mrf.mxu1 }
 0x5b3   :  { %v21996_v56 = vadd.f32 %v7128_v38, %v21964_v44  ;;  %v8070_v51 = vpop.f32.mrf.mxu0 }
 0x5b4   :  { %v7130_v49 = vpop.f32.mrf.mxu1 }
 0x5b5   :  { %v21999_v41 = vadd.f32 %v7130_v49, %v21972_v0  ;;  %v8072_v54 = vpop.f32.mrf.mxu0  ;;  %v19415_v0 = vld [vmem:[#allocation15 + $0x390] ss:$8 sps:$4 sm:$0xff]  }
 0x5b6   :  { %v7132_v5 = vpop.f32.mrf.mxu1  ;;  %8925 = vmatpush2.bf16.msra.mxu1 %v19415_v0 }
 0x5b7   :  { %v8074_v12 = vpop.f32.mrf.mxu0  ;;  %8926 = vmatprep.subr.bf16.mxu1 %v19423_v46 }
 0x5b8   :  { %v7134_v35 = vpop.f32.mrf.mxu1 }
 0x5b9   :  { %v8076_v30 = vpop.f32.mrf.mxu0 }
 0x5ba   :  { %v7138_v4 = vpop.f32.mrf.mxu1  ;;  %8927 = vmatpush2.bf16.msra.mxu1 %v19421_v25 }
 0x5bb   :  { %v22002_v44 = vadd.f32 %v7138_v4, %v21978_v22  ;;  %v8080_v52 = vpop.f32.mrf.mxu0  ;;  %v19429_v22 = vld [vmem:[#allocation15 + $0x174] ss:$8 sps:$4 sm:$0xff]  }
 0x5bc   :  { %v7140_v34 = vpop.f32.mrf.mxu1  ;;  %9434 = vmatprep.subr.bf16.mxu1 %v19429_v22 }
 0x5bd   :  { %v22005_v39 = vadd.f32 %v7140_v34, %v21985_v50  ;;  %v8082_v58 = vpop.f32.mrf.mxu0  ;;  %v22013_v50 = vld [vmem:[#allocation13] sm:$0xf] }
 0x5be   :  { %v7142_v11 = vpop.f32.mrf.mxu1  ;;  %v8269_v10 = vrot.slane %v22013_v50, %v21188_v45  ;;  %v8273_v32 = vrot.slane %v22013_v50, %v21193_v57 }
 0x5bf   :  { %v8084_v40 = vpop.f32.mrf.mxu0 }
 0x5c0   :  { %v7144_v36 = vpop.f32.mrf.mxu1 }
 0x5c1   :  { %v8086_v28 = vpop.f32.mrf.mxu0 }
 0x5f3   :  { %v8123_v23 = vpop.f32.mrf.mxu1 }
 0x5f4   :  { %v8124_v62 = vadd.f32 %v8123_v23, %v8070_v51  ;;  %v22017_v37 = vpop.f32.mrf.mxu0 }
 0x5f5   :  { %v8125_v19 = vpop.f32.mrf.mxu1 }
 0x5f6   :  { %v8248_v26 = vadd.f32 %v8124_v62, %v21961_v59  ;;  %v8126_v27 = vadd.f32 %v8125_v19, %v8072_v54  ;;  %v22022_v16 = vpop.f32.mrf.mxu0  ;;  %v8378_v59 = vpack.c.bf16 %v21987_v18, %v21987_v18 }
 0x5f7   :  { %v8127_v8 = vpop.f32.mrf.mxu1 }
 0x5f8   :  { %v8286_v14 = vadd.f32 %v8269_v10, %v8248_v26  ;;  %v8249_v6 = vadd.f32 %v8126_v27, %v21968_v9  ;;  %v8180_v2 = vpop.f32.mrf.mxu0  ;;  %v8351_v9 = vld [vmem:[#allocation2 + $0x8] sm:$0x80]  ;;  %v9018_v11 = vshrl.u32 %v8378_v59, 16  ;;  %v9021_v40 = vshll.u32 %v8378_v59, 16 }
 0x5f9   :  { %v8129_v21 = vpop.f32.mrf.mxu1  ;;  %v19340_v8 = vld [vmem:[#allocation15 + $0x60] ss:$8 sps:$4 sm:$0xff]  }
 0x5fa   :  { %v8302_v38 = vmax.f32 %v8286_v14, 0.0  ;;  %v8287_v51 = vadd.f32 %v8273_v32, %v8249_v6  ;;  %v8182_v42 = vpop.f32.mrf.mxu0  ;;  %v9020_v14 = vrot.slane %v9018_v11, 3  ;;  %v9023_v6 = vrot.slane %v9021_v40, 4 }
 0x5fb   :  { %v8133_v49 = vpop.f32.mrf.mxu1 }
 0x5fc   :  { %v8318_v54 = vsel %vm21141_vm5, %v8302_v38, 0.0  ;;  %v8303_v5 = vmax.f32 %v8287_v51, 0.0  ;;  %v8134_v12 = vadd.f32 %v8133_v49, %v8080_v52  ;;  %v22029_v15 = vpop.f32.mrf.mxu0  ;;  %v19334_v52 = vld [vmem:[#allocation15 + $0x70] ss:$8 sps:$4 sm:$0xff]   ;;  %v20306_v27 = vpack.c.bf16 %v21989_v1, %v8302_v38  ;;  %v19348_v51 = vld [vmem:[#allocation15 + $0x54] ss:$8 sps:$4 sm:$0xff]  }
 0x5fd   :  { %8334 = vst [vmem:[#allocation2 + $0x40] sm:$0xff] %v8318_v54  ;;  %v8135_v35 = vpop.f32.mrf.mxu1  ;;  %v8370_v34 = vpack.c.bf16 %v8318_v54, %v8350_v31 }
 0x5fe   :  { %v8319_v30 = vsel %vm21141_vm5, %v8303_v5, 0.0  ;;  %v8256_v4 = vadd.f32 %v8134_v12, %v21975_v47  ;;  %v8136_v13 = vadd.f32 %v8135_v35, %v8082_v58  ;;  %v22036_v18 = vpop.f32.mrf.mxu0  ;;  %v20303_v23 = vpack.c.bf16 %v21989_v1, %v8303_v5 }
 0x5ff   :  { %8335 = vst [vmem:[#allocation2 + $0x48] sm:$0xff] %v8319_v30  ;;  %v8137_v0 = vpop.f32.mrf.mxu1  ;;  %v8371_v28 = vpack.c.bf16 %v8319_v30, %v8351_v9  ;;  %v9027_v47 = vshrl.u32 %v8379_v43, 16  ;;  %v9030_v58 = vshll.u32 %v8379_v43, 16  ;;  %v19346_v9 = vld [vmem:[#allocation15 + $0x50] ss:$8 sps:$4 sm:$0xff]  }
 0x600   :  { %v8294_v46 = vadd.f32 %v8269_v10, %v8256_v4  ;;  %v8257_v36 = vadd.f32 %v8136_v13, %v21982_v29  ;;  %v8190_v25 = vpop.f32.mrf.mxu0  ;;  %20304 = vmatprep.mubr.msk.bf16.mxu0 %vm21654_vm9, %v20303_v23  ;;  %v8950_v29 = vshrl.u32 %v8370_v34, 16  ;;  %v8953_v10 = vshll.u32 %v8370_v34, 16  ;;  %v19354_v4 = vld [vmem:[#allocation15 + $0x44] ss:$8 sps:$4 sm:$0xff]  }
 0x601   :  { %v8139_v22 = vpop.f32.mrf.mxu1  ;;  %20307 = vmatmul.mubr.msk.bf16.vlgmr.msra.gmra.mxu0 %vm21654_vm9, %v20306_v27  ;;  %v8967_v42 = vshrl.u32 %v8371_v28, 16  ;;  %v9029_v49 = vrot.slane %v9027_v47, 3  ;;  %v9032_v5 = vrot.slane %v9030_v58, 4  ;;  %v9024_v0 = vor.u32 %v9023_v6, %v9020_v14 }
 0x602   :  { %v8310_v62 = vmax.f32 %v8294_v46, 0.0  ;;  %v8295_v19 = vadd.f32 %v8273_v32, %v8257_v36  ;;  %v8192_v26 = vpop.f32.mrf.mxu0  ;;  %9382 = vmatpush1.bf16.msra.mxu0 %v19334_v52  ;;  %v8970_v32 = vshll.u32 %v8371_v28, 16  ;;  %v8952_v59 = vrot.slane %v8950_v29, 3  ;;  %v19352_v22 = vld [vmem:[#allocation15 + $0x40] ss:$8 sps:$4 sm:$0xff]  }
 0x603   :  { %9383 = vmatprep.subr.bf16.mxu0 %v19342_v33  ;;  %v8955_v54 = vrot.slane %v8953_v10, 4  ;;  %v8969_v13 = vrot.slane %v8967_v42, 3  ;;  %v9033_v28 = vor.u32 %v9032_v5, %v9029_v49  ;;  %v19360_v26 = vld [vmem:[#allocation15 + $0x34] ss:$8 sps:$4 sm:$0xff]   ;;  %v19366_v42 = vld [vmem:[#allocation15 + $0x24] ss:$8 sps:$4 sm:$0xff]  }
 0x604   :  { %v8326_v2 = vsel %vm21159_vm10, %v8310_v62, 0.0  ;;  %v8311_v21 = vmax.f32 %v8295_v19, 0.0  ;;  %v8972_v34 = vrot.slane %v8970_v32, 4  ;;  %v20312_v25 = vpack.c.bf16 %v21989_v1, %v8310_v62  ;;  %v19364_v32 = vld [vmem:[#allocation15 + $0x20] ss:$8 sps:$4 sm:$0xff]  }
 0x605   :  { %8342 = vst [vmem:[#allocation2 + $0xc0] sm:$0xff] %v8326_v2  ;;  %v8374_v38 = vpack.c.bf16 %v8326_v2, %v21989_v1  ;;  %v8956_v58 = vor.u32 %v8955_v54, %v8952_v59  ;;  %v19370_v49 = vld [vmem:[#allocation15 + $0x10] ss:$8 sps:$4 sm:$0xff]   ;;  %v19376_v59 = vld [vmem:[#allocation15] ss:$8 sps:$4 sm:$0xff]  }
 0x606   :  { %v8327_v31 = vsel %vm21159_vm10, %v8311_v21, 0.0  ;;  %9384 = vmatpush1.bf16.msra.mxu0 %v19340_v8  ;;  %v20309_v52 = vpack.c.bf16 %v21989_v1, %v8311_v21  ;;  %v8973_v10 = vor.u32 %v8972_v34, %v8969_v13  ;;  %v19358_v21 = vld [vmem:[#allocation15 + $0x30] ss:$8 sps:$4 sm:$0xff]   ;;  %v19384_v54 = vld [vmem:[#allocation15 + $0xf4] ss:$8 sps:$4 sm:$0xff]  }
 0x607   :  { %v8375_v12 = vpack.c.bf16 %v8327_v31, %v21989_v1  ;;  %v8455_v35 = vpack.c.bf16 %v21989_v1, %v8327_v31  ;;  %v8958_v43 = vshrl.u32 %v8374_v38, 16  ;;  %v8961_v30 = vshll.u32 %v8374_v38, 16  ;;  %9385 = vmatprep.subr.bf16.mxu0 %v19348_v51  ;;  %v19372_v38 = vld [vmem:[#allocation15 + $0x14] ss:$8 sps:$4 sm:$0xff]   ;;  %v19378_v31 = vld [vmem:[#allocation15 + $0x4] ss:$8 sps:$4 sm:$0xff]  }
 0x608   :  { %20310 = vmatprep.mubr.msk.bf16.mxu0 %vm21670_vm12, %v20309_v52  ;;  %v19382_v5 = vld [vmem:[#allocation15 + $0xf0] ss:$8 sps:$4 sm:$0xff]   ;;  %v19408_v13 = vld [vmem:[#allocation15 + $0xb4] ss:$8 sps:$4 sm:$0xff]   ;;  %v19412_v52 = vld [vmem:[#allocation15 + $0xa0] ss:$8 sps:$4 sm:$0xff]  }
 0x609   :  { %v8960_v11 = vrot.slane %v8958_v43, 3  ;;  %v8963_v40 = vrot.slane %v8961_v30, 4  ;;  %v8975_v46 = vshrl.u32 %v8375_v12, 16  ;;  %v8978_v36 = vshll.u32 %v8375_v12, 16  ;;  %20313 = vmatmul.mubr.msk.bf16.gmra.mxu0 %vm21670_vm12, %v20312_v25  ;;  %v19390_v12 = vld [vmem:[#allocation15 + $0xe4] ss:$8 sps:$4 sm:$0xff]  }
 0x60a   :  { %v9604_v33 = vshll.u32 %v8455_v35, 16  ;;  %9386 = vmatpush1.bf16.msra.mxu0 %v19346_v9  ;;  %v9640_v29 = vshrl.u32 %v8455_v35, 16  ;;  %v19388_v35 = vld [vmem:[#allocation15 + $0xe0] ss:$8 sps:$4 sm:$0xff]   ;;  %v19396_v9 = vld [vmem:[#allocation15 + $0xd4] ss:$8 sps:$4 sm:$0xff]  }
 0x60b   :  { %v8977_v23 = vrot.slane %v8975_v46, 3  ;;  %v8980_v47 = vrot.slane %v8978_v36, 4  ;;  %v8964_v19 = vor.u32 %v8963_v40, %v8960_v11  ;;  %9387 = vmatprep.subr.bf16.mxu0 %v19354_v4  ;;  %v19394_v43 = vld [vmem:[#allocation15 + $0xd0] ss:$8 sps:$4 sm:$0xff]   ;;  %v19402_v30 = vld [vmem:[#allocation15 + $0xc4] ss:$8 sps:$4 sm:$0xff]   ;;  %v8277_v36 = vrot.slane %v22013_v50, %v21278_v60 }
 0x60c   :  { %v22058_v27 = vrot.slane %v9604_v33, 1  ;;  %v19400_v4 = vld [vmem:[#allocation15 + $0xc0] ss:$8 sps:$4 sm:$0xff]   ;;  %v19406_v34 = vld [vmem:[#allocation15 + $0xb0] ss:$8 sps:$4 sm:$0xff]  }
 0x60d   :  { %v8981_v8 = vor.u32 %v8980_v47, %v8977_v23  ;;  %v22061_v62 = vsel %vm717_vm0, %v8956_v58, %v8964_v19  ;;  %v22064_v14 = vsel %vm717_vm0, %v8964_v19, %v9024_v0  ;;  %v19414_v0 = vld [vmem:[#allocation15 + $0xa4] ss:$8 sps:$4 sm:$0xff]   ;;  %v19420_v40 = vld [vmem:[#allocation15 + $0x94] ss:$8 sps:$4 sm:$0xff]   ;;  %v8281_v23 = vrot.slane %v22013_v50, %v21281_v63  ;;  %v19418_v47 = vld [vmem:[#allocation15 + $0x90] ss:$8 sps:$4 sm:$0xff]  }
 0x60e   :  { %v22067_v6 = vor.u32 %v9640_v29, %v22058_v27  ;;  %9388 = vmatpush1.bf16.msra.mxu0 %v19352_v22  ;;  %v9488_v25 = vld [vmem:[#allocation2 + $0x48] sm:$0xfe]  ;;  %v19426_v19 = vld [vmem:[#allocation15 + $0x84] ss:$8 sps:$4 sm:$0xff]  }
 0x60f   :  { %v8982_v2 = vsel %vm717_vm0, %v8973_v10, %v8981_v8  ;;  %v22071_v51 = vsel %vm717_vm0, %v8981_v8, %v9033_v28  ;;  %9389 = vmatprep.subr.bf16.mxu0 %v19360_v26  ;;  %v9508_v26 = vpack.c.bf16 %v21989_v1, %v9488_v25  ;;  %v19432_v50 = vld [vmem:[#allocation15 + $0x474] ss:$8 sps:$4 sm:$0xff]  }
 0x610   :  { %9413 = vmatprep.mubr.bf16.mxu0 %v8982_v2 }
 0x612   :  { %9390 = vmatpush1.bf16.msra.mxu0 %v19358_v21 }
 0x613   :  { %9391 = vmatprep.subr.bf16.mxu0 %v19366_v42  ;;  %v9599_v42 = vshll.u32 %v9508_v26, 16 }
 0x616   :  { %9392 = vmatpush1.bf16.msra.mxu0 %v19364_v32  ;;  %v8352_v32 = vld [vmem:[#allocation2 + $0x10] sm:$0x80] }
 0x617   :  { %9393 = vmatprep.subr.bf16.mxu0 %v19372_v38 }
 0x61a   :  { %9394 = vmatpush1.bf16.msra.mxu0 %v19370_v49 }
 0x61b   :  { %9395 = vmatprep.subr.bf16.mxu0 %v19378_v31 }
 0x61e   :  { %9396 = vmatpush1.bf16.msra.mxu0 %v19376_v59 }
 0x61f   :  { %9397 = vmatprep.subr.bf16.mxu0 %v19384_v54  ;;  %v8381_v54 = vpack.c.bf16 %v22010_v17, %v22010_v17 }
 0x621   :  { %v9045_v25 = vshrl.u32 %v8381_v54, 16 }
 0x622   :  { %9398 = vmatpush2.bf16.msra.mxu0 %v19382_v5 }
 0x623   :  { %9399 = vmatprep.subr.bf16.mxu0 %v19390_v12 }
 0x626   :  { %9400 = vmatpush2.bf16.msra.mxu0 %v19388_v35 }
 0x627   :  { %9401 = vmatprep.subr.bf16.mxu0 %v19396_v9 }
 0x62a   :  { %9402 = vmatpush2.bf16.msra.mxu0 %v19394_v43 }
 0x62b   :  { %9403 = vmatprep.subr.bf16.mxu0 %v19402_v30 }
 0x62e   :  { %9404 = vmatpush2.bf16.msra.mxu0 %v19400_v4  ;;  %v19427_v4 = vld [vmem:[#allocation15 + $0x170] ss:$8 sps:$4 sm:$0xff]  }
 0x62f   :  { %9405 = vmatprep.subr.bf16.mxu0 %v19408_v13  ;;  %v9601_v13 = vrot.slane %v9599_v42, 1 }
 0x632   :  { %9406 = vmatpush2.bf16.msra.mxu0 %v19406_v34 }
 0x633   :  { %9407 = vmatprep.subr.bf16.mxu0 %v19414_v0 }
 0x634   :  { %v8229_v11 = vpop.f32.mrf.mxu1 }
 0x635   :  { %v8230_v46 = vadd.f32 %v8229_v11, %v22017_v37  ;;  %v8380_v37 = vpack.c.bf16 %v22007_v7, %v22007_v7  ;;  %v19435_v11 = vld [vmem:[#allocation15 + $0x164] ss:$8 sps:$4 sm:$0xff]  }
 0x636   :  { %v8231_v28 = vpop.f32.mrf.mxu1  ;;  %9408 = vmatpush2.bf16.msra.mxu0 %v19412_v52 }
 0x637   :  { %v8250_v33 = vadd.f32 %v8230_v46, %v21996_v56  ;;  %v8232_v22 = vadd.f32 %v8231_v28, %v22022_v16  ;;  %9409 = vmatprep.subr.bf16.mxu0 %v19420_v40  ;;  %v19424_v16 = vld [vmem:[#allocation15 + $0x80] ss:$8 sps:$4 sm:$0xff]   ;;  %v9036_v38 = vshrl.u32 %v8380_v37, 16  ;;  %v9039_v5 = vshll.u32 %v8380_v37, 16  ;;  %v19438_v40 = vld [vmem:[#allocation15 + $0x464] ss:$8 sps:$4 sm:$0xff]  }
 0x638   :  { %v8233_v58 = vpop.f32.mrf.mxu1  ;;  %v9597_v46 = vshrl.u32 %v9508_v26, 16  ;;  %v9048_v28 = vshll.u32 %v8381_v54, 16  ;;  %v19441_v26 = vld [vmem:[#allocation15 + $0x154] ss:$8 sps:$4 sm:$0xff]  }
 0x639   :  { %v8288_v29 = vadd.f32 %v8277_v36, %v8250_v33  ;;  %v8251_v10 = vadd.f32 %v8232_v22, %v21999_v41  ;;  %v8353_v41 = vld [vmem:[#allocation2 + $0x18] sm:$0x80]  ;;  %v22093_v34 = vrot.slane %v9036_v38, 3  ;;  %v22102_v33 = vrot.slane %v9039_v5, 4 }
 0x63a   :  { %v8235_v8 = vpop.f32.mrf.mxu1  ;;  %9410 = vmatpush2.bf16.msra.mxu0 %v19418_v47  ;;  %v9602_v37 = vor.u32 %v9601_v13, %v9597_v46  ;;  %v19453_v46 = vld [vmem:[#allocation15 + $0x134] ss:$8 sps:$4 sm:$0xff]  }
 0x63b   :  { %v8304_v56 = vmax.f32 %v8288_v29, 0.0  ;;  %v8289_v2 = vadd.f32 %v8281_v23, %v8251_v10  ;;  %9411 = vmatprep.subr.bf16.mxu0 %v19426_v19  ;;  %v19436_v19 = vld [vmem:[#allocation15 + $0x460] ss:$8 sps:$4 sm:$0xff]  }
 0x63c   :  { %v8239_v21 = vpop.f32.mrf.mxu1  ;;  %v9607_v5 = vsel %vm1053_vm1, %v9602_v37, %v22058_v27 }
 0x63d   :  { %v8320_v49 = vsel %vm21141_vm5, %v8304_v56, 0.0  ;;  %v8305_v31 = vmax.f32 %v8289_v2, 0.0  ;;  %v8240_v7 = vadd.f32 %v8239_v21, %v22029_v15  ;;  %v19430_v15 = vld [vmem:[#allocation15 + $0x470] ss:$8 sps:$4 sm:$0xff]  }
 0x63e   :  { %8336 = vst [vmem:[#allocation2 + $0x50] sm:$0xff] %v8320_v49  ;;  %v8241_v59 = vpop.f32.mrf.mxu1  ;;  %9412 = vmatpush2.bf16.msra.mxu0 %v19424_v16  ;;  %v8372_v43 = vpack.c.bf16 %v8320_v49, %v8352_v32  ;;  %v9042_v16 = vor.u32 %v22102_v33, %v22093_v34  ;;  %v9050_v32 = vrot.slane %v9048_v28, 4 }
 0x63f   :  { %v8321_v12 = vsel %vm21141_vm5, %v8305_v31, 0.0  ;;  %v8258_v35 = vadd.f32 %v8240_v7, %v22002_v44  ;;  %v8242_v9 = vadd.f32 %v8241_v59, %v22036_v18  ;;  %9992 = vmatprep.subr.bf16.mxu0 %v19432_v50  ;;  %v20315_v18 = vpack.c.bf16 %v21989_v1, %v8305_v31  ;;  %v19439_v31 = vld [vmem:[#allocation15 + $0x150] ss:$8 sps:$4 sm:$0xff]  }
 0x640   :  { %8337 = vst [vmem:[#allocation2 + $0x58] sm:$0xff] %v8321_v12  ;;  %v8243_v30 = vpop.f32.mrf.mxu1  ;;  %v8373_v52 = vpack.c.bf16 %v8321_v12, %v8353_v41  ;;  %v8984_v47 = vshrl.u32 %v8372_v43, 16  ;;  %v8987_v58 = vshll.u32 %v8372_v43, 16  ;;  %v19442_v7 = vld [vmem:[#allocation15 + $0x450] ss:$8 sps:$4 sm:$0xff]  }
 0x641   :  { %v22095_v0 = vadd.f32 %v8277_v36, %v8258_v35  ;;  %v8259_v17 = vadd.f32 %v8242_v9, %v22005_v39  ;;  %20316 = vmatprep.mubr.msk.bf16.mxu1 %vm21654_vm9, %v20315_v18  ;;  %9414 = vmatmul.mubr.bf16.vlgmr.msra.gmra.mxu0 %v22061_v62  ;;  %v20318_v39 = vpack.c.bf16 %v21989_v1, %v8304_v56  ;;  %v19433_v62 = vld [vmem:[#allocation15 + $0x160] ss:$8 sps:$4 sm:$0xff]   ;;  %v19447_v12 = vld [vmem:[#allocation15 + $0x144] ss:$8 sps:$4 sm:$0xff]  }
 0x642   :  { %v8245_v44 = vpop.f32.mrf.mxu1  ;;  %9423 = vmatprep.mubr.bf16.mxu0 %v22071_v51  ;;  %9993 = vmatpush1.bf16.msra.mxu0 %v19430_v15  ;;  %v9001_v8 = vshrl.u32 %v8373_v52, 16  ;;  %v9004_v56 = vshll.u32 %v8373_v52, 16  ;;  %v9047_v51 = vrot.slane %v9045_v25, 3  ;;  %v8986_v50 = vrot.slane %v8984_v47, 3  ;;  %v19450_v35 = vld [vmem:[#allocation15 + $0x444] ss:$8 sps:$4 sm:$0xff]  }
 0x643   :  { %v8312_v36 = vmax.f32 %v22095_v0, 0.0  ;;  %v8297_v22 = vadd.f32 %v8281_v23, %v8259_v17  ;;  %20319 = vmatmul.mubr.msk.bf16.vlgmr.msra.gmra.mxu1 %vm21654_vm9, %v20318_v39  ;;  %9994 = vmatprep.subr.bf16.mxu0 %v19438_v40  ;;  %v19444_v23 = vld [vmem:[#allocation15 + $0x454] ss:$8 sps:$4 sm:$0xff]   ;;  %v8989_v42 = vrot.slane %v8987_v58, 4  ;;  %v19445_v52 = vld [vmem:[#allocation15 + $0x140] ss:$8 sps:$4 sm:$0xff]  }
 0x644   :  { %9435 = vmatpush1.bf16.msra.mxu1 %v19427_v4  ;;  %v9003_v9 = vrot.slane %v9001_v8, 3  ;;  %v9006_v43 = vrot.slane %v9004_v56, 4  ;;  %v9051_v27 = vor.u32 %v9050_v32, %v9047_v51  ;;  %v19460_v8 = vld [vmem:[#allocation15 + $0x420] ss:$8 sps:$4 sm:$0xff]   ;;  %v19465_v56 = vld [vmem:[#allocation15 + $0x114] ss:$8 sps:$4 sm:$0xff]  }
 0x645   :  { %v8328_v29 = vsel %vm21159_vm10, %v8312_v36, 0.0  ;;  %v8313_v10 = vmax.f32 %v8297_v22, 0.0  ;;  %9436 = vmatprep.subr.bf16.mxu1 %v19435_v11  ;;  %v20324_v0 = vpack.c.bf16 %v21989_v1, %v8312_v36  ;;  %v19448_v11 = vld [vmem:[#allocation15 + $0x440] ss:$8 sps:$4 sm:$0xff]   ;;  %v8990_v18 = vor.u32 %v8989_v42, %v8986_v50  ;;  %v19456_v22 = vld [vmem:[#allocation15 + $0x434] ss:$8 sps:$4 sm:$0xff]  }
 0x646   :  { %v8376_v2 = vpack.c.bf16 %v8328_v29, %v21989_v1  ;;  %9995 = vmatpush1.bf16.msra.mxu0 %v19436_v19  ;;  %v22119_v54 = vpack.c.bf16 %v21989_v1, %v8328_v29  ;;  %v9007_v33 = vor.u32 %v9006_v43, %v9003_v9  ;;  %v19451_v19 = vld [vmem:[#allocation15 + $0x130] ss:$8 sps:$4 sm:$0xff]   ;;  %v19459_v29 = vld [vmem:[#allocation15 + $0x124] ss:$8 sps:$4 sm:$0xff]   ;;  %v19469_v42 = vld [vmem:[#allocation15 + $0x100] ss:$8 sps:$4 sm:$0xff]  }
 0x647   :  { %v8329_v21 = vsel %vm21159_vm10, %v8313_v10, 0.0  ;;  %9996 = vmatprep.subr.bf16.mxu0 %v19444_v23  ;;  %v20321_v30 = vpack.c.bf16 %v21989_v1, %v8313_v10  ;;  %v19462_v10 = vld [vmem:[#allocation15 + $0x424] ss:$8 sps:$4 sm:$0xff]   ;;  %v19457_v23 = vld [vmem:[#allocation15 + $0x120] ss:$8 sps:$4 sm:$0xff]  }
 0x648   :  { %9437 = vmatpush1.bf16.msra.mxu1 %v19433_v62  ;;  %v8377_v38 = vpack.c.bf16 %v8329_v21, %v21989_v1  ;;  %v8457_v49 = vpack.c.bf16 %v21989_v1, %v8329_v21  ;;  %v8992_v59 = vshrl.u32 %v8376_v2, 16  ;;  %v8995_v41 = vshll.u32 %v8376_v2, 16  ;;  %v19468_v2 = vld [vmem:[#allocation15 + $0x414] ss:$8 sps:$4 sm:$0xff]   ;;  %v19463_v51 = vld [vmem:[#allocation15 + $0x110] ss:$8 sps:$4 sm:$0xff]  }
 0x649   :  { %9438 = vmatprep.subr.bf16.mxu1 %v19441_v26  ;;  %20322 = vmatprep.mubr.msk.bf16.mxu1 %vm21670_vm12, %v20321_v30  ;;  %v19454_v26 = vld [vmem:[#allocation15 + $0x430] ss:$8 sps:$4 sm:$0xff]   ;;  %v19471_v21 = vld [vmem:[#allocation15 + $0x104] ss:$8 sps:$4 sm:$0xff]   ;;  %v19472_v32 = vld [vmem:[#allocation15 + $0x400] ss:$8 sps:$4 sm:$0xff]  }
 0x64a   :  { %9424 = vmatmul.mubr.bf16.gmra.mxu0 %v22064_v14  ;;  %v8994_v4 = vrot.slane %v8992_v59, 3  ;;  %v8997_v15 = vrot.slane %v8995_v41, 4  ;;  %v9009_v13 = vshrl.u32 %v8377_v38, 16  ;;  %v9012_v34 = vshll.u32 %v8377_v38, 16  ;;  %v19474_v50 = vld [vmem:[#allocation15 + $0x404] ss:$8 sps:$4 sm:$0xff]  }
 0x64b   :  { %20325 = vmatmul.mubr.msk.bf16.gmra.mxu1 %vm21670_vm12, %v20324_v0  ;;  %10024 = vmatprep.mubr.bf16.mxu0 %v9607_v5  ;;  %v9628_v17 = vshll.u32 %v8457_v49, 16  ;;  %v9656_v28 = vshrl.u32 %v8457_v49, 16  ;;  %v19477_v38 = vld [vmem:[#allocation15 + $0x1f4] ss:$8 sps:$4 sm:$0xff]   ;;  %v19483_v59 = vld [vmem:[#allocation15 + $0x1e4] ss:$8 sps:$4 sm:$0xff]  }
 0x64c   :  { %9439 = vmatpush1.bf16.msra.mxu1 %v19439_v31  ;;  %9997 = vmatpush1.bf16.msra.mxu0 %v19442_v7  ;;  %v9011_v40 = vrot.slane %v9009_v13, 3  ;;  %v9014_v44 = vrot.slane %v9012_v34, 4  ;;  %v8998_v14 = vor.u32 %v8997_v15, %v8994_v4  ;;  %v19480_v49 = vld [vmem:[#allocation15 + $0x4f4] ss:$8 sps:$4 sm:$0xff]   ;;  %v19475_v31 = vld [vmem:[#allocation15 + $0x1f0] ss:$8 sps:$4 sm:$0xff]  }
 0x64d   :  { %9440 = vmatprep.subr.bf16.mxu1 %v19447_v12  ;;  %9998 = vmatprep.subr.bf16.mxu0 %v19450_v35  ;;  %v22130_v25 = vrot.slane %v9628_v17, 1  ;;  %v19478_v7 = vld [vmem:[#allocation15 + $0x4f0] ss:$8 sps:$4 sm:$0xff]   ;;  %v19486_v41 = vld [vmem:[#allocation15 + $0x4e4] ss:$8 sps:$4 sm:$0xff]  }
 0x64e   :  { %v9015_v36 = vor.u32 %v9014_v44, %v9011_v40  ;;  %v22133_v39 = vsel %vm717_vm0, %v8990_v18, %v8998_v14  ;;  %v22136_v47 = vsel %vm717_vm0, %v8998_v14, %v9042_v16  ;;  %v19466_v16 = vld [vmem:[#allocation15 + $0x410] ss:$8 sps:$4 sm:$0xff]   ;;  %v19481_v5 = vld [vmem:[#allocation15 + $0x1e0] ss:$8 sps:$4 sm:$0xff]   ;;  %v19489_v35 = vld [vmem:[#allocation15 + $0x1d4] ss:$8 sps:$4 sm:$0xff]  }
 0x64f   :  { %v22139_v58 = vor.u32 %v9656_v28, %v22130_v25  ;;  %v19484_v12 = vld [vmem:[#allocation15 + $0x4e0] ss:$8 sps:$4 sm:$0xff]   ;;  %v19492_v9 = vld [vmem:[#allocation15 + $0x4d4] ss:$8 sps:$4 sm:$0xff]   ;;  %v19487_v43 = vld [vmem:[#allocation15 + $0x1d0] ss:$8 sps:$4 sm:$0xff]  }
 0x650   :  { %9441 = vmatpush1.bf16.msra.mxu1 %v19445_v52  ;;  %9999 = vmatpush1.bf16.msra.mxu0 %v19448_v11  ;;  %v9016_v62 = vsel %vm717_vm0, %v9007_v33, %v9015_v36  ;;  %v22143_v37 = vsel %vm717_vm0, %v9015_v36, %v9051_v27  ;;  %v19490_v30 = vld [vmem:[#allocation15 + $0x4d0] ss:$8 sps:$4 sm:$0xff]   ;;  %v19495_v4 = vld [vmem:[#allocation15 + $0x1c4] ss:$8 sps:$4 sm:$0xff]   ;;  %v19493_v13 = vld [vmem:[#allocation15 + $0x1c0] ss:$8 sps:$4 sm:$0xff]  }
 0x651   :  { %9466 = vmatprep.mubr.bf16.mxu1 %v9016_v62  ;;  %9442 = vmatprep.subr.bf16.mxu1 %v19453_v46  ;;  %v19498_v15 = vld [vmem:[#allocation15 + $0x4c4] ss:$8 sps:$4 sm:$0xff]   ;;  %v19496_v34 = vld [vmem:[#allocation15 + $0x4c0] ss:$8 sps:$4 sm:$0xff]   ;;  %v19501_v0 = vld [vmem:[#allocation15 + $0x1b4] ss:$8 sps:$4 sm:$0xff]  }
 0x652   :  { %10000 = vmatprep.subr.bf16.mxu0 %v19456_v22  ;;  %v19504_v27 = vld [vmem:[#allocation15 + $0x4b4] ss:$8 sps:$4 sm:$0xff]   ;;  %v19499_v17 = vld [vmem:[#allocation15 + $0x1b0] ss:$8 sps:$4 sm:$0xff]   ;;  %v19507_v11 = vld [vmem:[#allocation15 + $0x1a4] ss:$8 sps:$4 sm:$0xff]  }
 0x653   :  { %v19502_v52 = vld [vmem:[#allocation15 + $0x4b0] ss:$8 sps:$4 sm:$0xff]   ;;  %v19510_v40 = vld [vmem:[#allocation15 + $0x4a4] ss:$8 sps:$4 sm:$0xff]   ;;  %v19505_v14 = vld [vmem:[#allocation15 + $0x1a0] ss:$8 sps:$4 sm:$0xff]  }
 0x654   :  { %9443 = vmatpush1.bf16.msra.mxu1 %v19451_v19  ;;  %10001 = vmatpush1.bf16.msra.mxu0 %v19454_v26  ;;  %v9487_v44 = vld [vmem:[#allocation2 + $0x40] sm:$0xfe]  ;;  %v19508_v46 = vld [vmem:[#allocation15 + $0x4a0] ss:$8 sps:$4 sm:$0xff]   ;;  %v9504_v33 = vld [vmem:[#allocation2 + $0x148] sm:$0x1] }
 0x655   :  { %9444 = vmatprep.subr.bf16.mxu1 %v19459_v29  ;;  %10002 = vmatprep.subr.bf16.mxu0 %v19462_v10  ;;  %v9495_v18 = vld [vmem:[#allocation2 + $0xc0] sm:$0xff]  ;;  %v9507_v28 = vpack.c.bf16 %v21989_v1, %v9487_v44  ;;  %v9516_v26 = vpack.c.bf16 %v9504_v33, %v9504_v33  ;;  %v19544_v33 = vld [vmem:[#allocation15 + $0x500] ss:$8 sps:$4 sm:$0xff]  }
 0x656   :  { %v19513_v36 = vld [vmem:[#allocation15 + $0x194] ss:$8 sps:$4 sm:$0xff]   ;;  %v9511_v62 = vpack.c.bf16 %v21989_v1, %v9495_v18  ;;  %v19511_v19 = vld [vmem:[#allocation15 + $0x190] ss:$8 sps:$4 sm:$0xff]   ;;  %v19540_v18 = vld [vmem:[#allocation15 + $0x524] ss:$8 sps:$4 sm:$0xff]  }
 0x657   :  { %v19516_v22 = vld [vmem:[#allocation15 + $0x494] ss:$8 sps:$4 sm:$0xff]   ;;  %v19514_v29 = vld [vmem:[#allocation15 + $0x490] ss:$8 sps:$4 sm:$0xff]   ;;  %v9587_v10 = vshll.u32 %v9507_v28, 16 }
 0x658   :  { %9445 = vmatpush1.bf16.msra.mxu1 %v19457_v23  ;;  %10003 = vmatpush1.bf16.msra.mxu0 %v19460_v8  ;;  %v9490_v23 = vld [vmem:[#allocation2 + $0x58] sm:$0xfe] }
 0x659   :  { %9446 = vmatprep.subr.bf16.mxu1 %v19465_v56  ;;  %10004 = vmatprep.subr.bf16.mxu0 %v19468_v2  ;;  %v19519_v8 = vld [vmem:[#allocation15 + $0x184] ss:$8 sps:$4 sm:$0xff]   ;;  %v9592_v2 = vshll.u32 %v9511_v62, 16  ;;  %v19535_v44 = vld [vmem:[#allocation15 + $0x530] ss:$8 sps:$4 sm:$0xff]  }
 0x65a   :  { %v19522_v56 = vld [vmem:[#allocation15 + $0x484] ss:$8 sps:$4 sm:$0xff]  }
 0x65c   :  { %9447 = vmatpush1.bf16.msra.mxu1 %v19463_v51  ;;  %10005 = vmatpush1.bf16.msra.mxu0 %v19466_v16  ;;  %v9644_v51 = vshll.u32 %v9516_v26, 16  ;;  %v9503_v16 = vld [vmem:[#allocation2 + $0x140] sm:$0x1]  ;;  %v19553_v26 = vld [vmem:[#allocation15 + $0x5d0] ss:$8 sps:$4 sm:$0xff]  }
 0x65d   :  { %9448 = vmatprep.subr.bf16.mxu1 %v19471_v21  ;;  %10006 = vmatprep.subr.bf16.mxu0 %v19474_v50  ;;  %v9510_v21 = vpack.c.bf16 %v21989_v1, %v9490_v23  ;;  %v19517_v50 = vld [vmem:[#allocation15 + $0x180] ss:$8 sps:$4 sm:$0xff]   ;;  %v19561_v23 = vld [vmem:[#allocation15 + $0x5b4] ss:$8 sps:$4 sm:$0xff]  }
 0x660   :  { %9449 = vmatpush1.bf16.msra.mxu1 %v19469_v42  ;;  %10007 = vmatpush1.bf16.msra.mxu0 %v19472_v32  ;;  %v19520_v42 = vld [vmem:[#allocation15 + $0x480] ss:$8 sps:$4 sm:$0xff]   ;;  %v9589_v32 = vrot.slane %v9587_v10, 1 }
 0x661   :  { %9450 = vmatprep.subr.bf16.mxu1 %v19477_v38  ;;  %10008 = vmatprep.subr.bf16.mxu0 %v19480_v49  ;;  %v19525_v38 = vld [vmem:[#allocation15 + $0x574] ss:$8 sps:$4 sm:$0xff]   ;;  %v9585_v49 = vshrl.u32 %v9507_v28, 16  ;;  %v19541_v28 = vld [vmem:[#allocation15 + $0x510] ss:$8 sps:$4 sm:$0xff]  }
 0x662   :  { %v19556_v10 = vld [vmem:[#allocation15 + $0x5c0] ss:$8 sps:$4 sm:$0xff]  }
 0x664   :  { %9451 = vmatpush2.bf16.msra.mxu1 %v19475_v31  ;;  %10009 = vmatpush2.bf16.msra.mxu0 %v19478_v7  ;;  %v9594_v31 = vrot.slane %v9592_v2, 1  ;;  %v9515_v7 = vpack.c.bf16 %v9503_v16, %v9503_v16  ;;  %v19564_v2 = vld [vmem:[#allocation15 + $0x5a4] ss:$8 sps:$4 sm:$0xff]  }
 0x665   :  { %9452 = vmatprep.subr.bf16.mxu1 %v19483_v59  ;;  %10010 = vmatprep.subr.bf16.mxu0 %v19486_v41  ;;  %v9646_v59 = vrot.slane %v9644_v51, 1  ;;  %v9623_v41 = vshll.u32 %v9510_v21, 16  ;;  %v22157_v51 = vld [vmem:[#allocation2 + $0x20] sm:$0xff] }
 0x668   :  { %9453 = vmatpush2.bf16.msra.mxu1 %v19481_v5  ;;  %10011 = vmatpush2.bf16.msra.mxu0 %v19484_v12  ;;  %v9590_v5 = vor.u32 %v9589_v32, %v9585_v49  ;;  %v19523_v12 = vld [vmem:[#allocation15 + $0x570] ss:$8 sps:$4 sm:$0xff]  }
 0x669   :  { %9454 = vmatprep.subr.bf16.mxu1 %v19489_v35  ;;  %10012 = vmatprep.subr.bf16.mxu0 %v19492_v9  ;;  %v19528_v35 = vld [vmem:[#allocation15 + $0x564] ss:$8 sps:$4 sm:$0xff]   ;;  %v9636_v9 = vshll.u32 %v9515_v7, 16  ;;  %v19565_v49 = vld [vmem:[#allocation15 + $0x590] ss:$8 sps:$4 sm:$0xff]  }
 0x66a   :  { %v9595_v1 = vsel %vm1053_vm1, %v9590_v5, %v9594_v31  ;;  %v19568_v5 = vld [vmem:[#allocation15 + $0x580] ss:$8 sps:$4 sm:$0xff]  }
 0x66c   :  { %9455 = vmatpush2.bf16.msra.mxu1 %v19487_v43  ;;  %10013 = vmatpush2.bf16.msra.mxu0 %v19490_v30  ;;  %v9647_v43 = vsel %vm1053_vm1, %v22067_v6, %v9646_v59  ;;  %v9625_v30 = vrot.slane %v9623_v41, 1  ;;  %v9505_v41 = vld [vmem:[#allocation2 + $0x150] sm:$0x1] }
 0x66d   :  { %9456 = vmatprep.subr.bf16.mxu1 %v19495_v4  ;;  %10014 = vmatprep.subr.bf16.mxu0 %v19498_v15  ;;  %v9632_v4 = vshrl.u32 %v9511_v62, 16  ;;  %v19526_v15 = vld [vmem:[#allocation15 + $0x560] ss:$8 sps:$4 sm:$0xff]  }
 0x66e   :  { %v19550_v62 = vld [vmem:[#allocation15 + $0x5e0] ss:$8 sps:$4 sm:$0xff]  }
 0x670   :  { %9457 = vmatpush2.bf16.msra.mxu1 %v19493_v13  ;;  %10015 = vmatpush2.bf16.msra.mxu0 %v19496_v34  ;;  %v9621_v13 = vshrl.u32 %v9510_v21, 16  ;;  %v9634_v34 = vor.u32 %v9632_v4, %v9594_v31  ;;  %v19562_v21 = vld [vmem:[#allocation15 + $0x5a0] ss:$8 sps:$4 sm:$0xff]   ;;  %v19570_v31 = vld [vmem:[#allocation15 + $0x584] ss:$8 sps:$4 sm:$0xff]  }
 0x671   :  { %9458 = vmatprep.subr.bf16.mxu1 %v19501_v0  ;;  %10016 = vmatprep.subr.bf16.mxu0 %v19504_v27  ;;  %v9638_v0 = vrot.slane %v9636_v9, 1  ;;  %v19531_v27 = vld [vmem:[#allocation15 + $0x554] ss:$8 sps:$4 sm:$0xff]   ;;  %v9517_v9 = vpack.c.bf16 %v9505_v41, %v9505_v41  ;;  %v19601_v41 = vld [vmem:[#allocation18 + $0x100] ss:$8 sps:$4 sm:$0xff]  }
 0x674   :  { %9459 = vmatpush2.bf16.msra.mxu1 %v19499_v17  ;;  %10017 = vmatpush2.bf16.msra.mxu0 %v19502_v52  ;;  %v9626_v17 = vor.u32 %v9625_v30, %v9621_v13  ;;  %v19529_v52 = vld [vmem:[#allocation15 + $0x550] ss:$8 sps:$4 sm:$0xff]   ;;  %v9652_v13 = vshll.u32 %v9517_v9, 16 }
 0x675   :  { %9460 = vmatprep.subr.bf16.mxu1 %v19507_v11  ;;  %10018 = vmatprep.subr.bf16.mxu0 %v19510_v40  ;;  %v19534_v11 = vld [vmem:[#allocation15 + $0x544] ss:$8 sps:$4 sm:$0xff]   ;;  %v19537_v40 = vld [vmem:[#allocation15 + $0x534] ss:$8 sps:$4 sm:$0xff]  }
 0x676   :  { %v9631_v6 = vsel %vm1053_vm1, %v9626_v17, %v22130_v25  ;;  %v19549_v25 = vld [vmem:[#allocation15 + $0x5f4] ss:$8 sps:$4 sm:$0xff]  }
 0x677   :  { %v19621_v9 = vld [vmem:[#allocation18 + $0x1d4] ss:$8 sps:$4 sm:$0xff]  }
 0x678   :  { %9461 = vmatpush2.bf16.msra.mxu1 %v19505_v14  ;;  %10019 = vmatpush2.bf16.msra.mxu0 %v19508_v46  ;;  %v19538_v14 = vld [vmem:[#allocation15 + $0x520] ss:$8 sps:$4 sm:$0xff]   ;;  %v19543_v46 = vld [vmem:[#allocation15 + $0x514] ss:$8 sps:$4 sm:$0xff]  }
 0x679   :  { %9462 = vmatprep.subr.bf16.mxu1 %v19513_v36  ;;  %10020 = vmatprep.subr.bf16.mxu0 %v19516_v22  ;;  %v19547_v36 = vld [vmem:[#allocation15 + $0x5f0] ss:$8 sps:$4 sm:$0xff]   ;;  %v19552_v22 = vld [vmem:[#allocation15 + $0x5e4] ss:$8 sps:$4 sm:$0xff]  }
 0x67c   :  { %9463 = vmatpush2.bf16.msra.mxu1 %v19511_v19  ;;  %10021 = vmatpush2.bf16.msra.mxu0 %v19514_v29  ;;  %v19555_v19 = vld [vmem:[#allocation15 + $0x5d4] ss:$8 sps:$4 sm:$0xff]   ;;  %v19558_v29 = vld [vmem:[#allocation15 + $0x5c4] ss:$8 sps:$4 sm:$0xff]  }
 0x67d   :  { %9464 = vmatprep.subr.bf16.mxu1 %v19519_v8  ;;  %10022 = vmatprep.subr.bf16.mxu0 %v19522_v56  ;;  %v9489_v8 = vld [vmem:[#allocation2 + $0x50] sm:$0xfe]  ;;  %v19559_v56 = vld [vmem:[#allocation15 + $0x5b0] ss:$8 sps:$4 sm:$0xff]  }
 0x67e   :  { %v9509_v16 = vpack.c.bf16 %v22157_v51, %v9489_v8  ;;  %v19604_v8 = vld [vmem:[#allocation18 + $0x40] ss:$8 sps:$4 sm:$0xff]  }
 0x680   :  { %9465 = vmatpush2.bf16.msra.mxu1 %v19517_v50  ;;  %10023 = vmatpush2.bf16.msra.mxu0 %v19520_v42  ;;  %v9506_v50 = vld [vmem:[#allocation2 + $0x158] sm:$0x1]  ;;  %v19567_v42 = vld [vmem:[#allocation15 + $0x594] ss:$8 sps:$4 sm:$0xff]   ;;  %v9611_v32 = vshll.u32 %v9509_v16, 16 }
 0x681   :  { %10045 = vmatprep.subr.bf16.mxu1 %v19525_v38  ;;  %v9518_v38 = vpack.c.bf16 %v9506_v50, %v9506_v50  ;;  %v19589_v50 = vld [vmem:[#allocation18 + $0x120] ss:$8 sps:$4 sm:$0xff]  }
 0x682   :  { %v9613_v7 = vrot.slane %v9611_v32, 1  ;;  %v19597_v32 = vld [vmem:[#allocation18 + $0x114] ss:$8 sps:$4 sm:$0xff]  }
 0x683   :  { %9467 = vmatmul.mubr.bf16.vlgmr.msra.gmra.mxu1 %v22133_v39  ;;  %10025 = vmatmul.mubr.bf16.vlgmr.msra.gmra.mxu0 %v9595_v1  ;;  %v9639_v39 = vsel %vm1053_vm1, %v9634_v34, %v9638_v0  ;;  %v9660_v59 = vshll.u32 %v9518_v38, 16  ;;  %v9616_v1 = vshll.u32 %v22119_v54, 16  ;;  %v19616_v38 = vld [vmem:[#allocation18 + $0x20] ss:$8 sps:$4 sm:$0xff]  }
 0x684   :  { %9476 = vmatprep.mubr.bf16.mxu1 %v22143_v37  ;;  %10034 = vmatprep.mubr.bf16.mxu0 %v9647_v43  ;;  %v19532_v37 = vld [vmem:[#allocation15 + $0x540] ss:$8 sps:$4 sm:$0xff]  }
 0x685   :  { %10046 = vmatpush1.bf16.msra.mxu1 %v19523_v12  ;;  %v9609_v12 = vshrl.u32 %v9509_v16, 16  ;;  %v9662_v43 = vrot.slane %v9660_v59, 1  ;;  %v9618_v30 = vrot.slane %v9616_v1, 1  ;;  %v19591_v16 = vld [vmem:[#allocation18 + $0x124] ss:$8 sps:$4 sm:$0xff]  }
 0x686   :  { %10047 = vmatprep.subr.bf16.mxu1 %v19528_v35  ;;  %v19622_v59 = vld [vmem:[#allocation18 + $0x10] ss:$8 sps:$4 sm:$0xff]   ;;  %v19615_v1 = vld [vmem:[#allocation18 + $0x1e4] ss:$8 sps:$4 sm:$0xff]  }
 0x687   :  { %v9614_v35 = vor.u32 %v9613_v7, %v9609_v12  ;;  %v9663_v34 = vsel %vm1053_vm1, %v22139_v58, %v9662_v43  ;;  %v19573_v58 = vld [vmem:[#allocation18 + $0x174] ss:$8 sps:$4 sm:$0xff]   ;;  %v19603_v7 = vld [vmem:[#allocation18 + $0x104] ss:$8 sps:$4 sm:$0xff]   ;;  %v19607_v12 = vld [vmem:[#allocation18 + $0x1f0] ss:$8 sps:$4 sm:$0xff]  }
 0x688   :  { %10397 = vmatprep.subr.bf16.mxu0 %v19573_v58  ;;  %v19619_v43 = vld [vmem:[#allocation18 + $0x1d0] ss:$8 sps:$4 sm:$0xff]  }
 0x689   :  { %10048 = vmatpush1.bf16.msra.mxu1 %v19526_v15  ;;  %v9619_v15 = vsel %vm1053_vm1, %v9614_v35, %v9618_v30  ;;  %v19613_v35 = vld [vmem:[#allocation18 + $0x1e0] ss:$8 sps:$4 sm:$0xff]  }
 0x68a   :  { %10049 = vmatprep.subr.bf16.mxu1 %v19531_v27  ;;  %v9648_v27 = vshrl.u32 %v22119_v54, 16  ;;  %v19586_v54 = vld [vmem:[#allocation18 + $0x70] ss:$8 sps:$4 sm:$0xff]  }
 0x68b   :  { %9477 = vmatmul.mubr.bf16.gmra.mxu1 %v22136_v47  ;;  %10035 = vmatmul.mubr.bf16.gmra.mxu0 %v9639_v39  ;;  %v19546_v47 = vld [vmem:[#allocation15 + $0x504] ss:$8 sps:$4 sm:$0xff]   ;;  %v9654_v39 = vrot.slane %v9652_v13, 1 }
 0x68c   :  { %10077 = vmatprep.mubr.bf16.mxu1 %v9631_v6  ;;  %v19625_v13 = vld [vmem:[#allocation18 + $0x1c0] ss:$8 sps:$4 sm:$0xff]  }
 0x68d   :  { %10050 = vmatpush1.bf16.msra.mxu1 %v19529_v52  ;;  %v9650_v52 = vor.u32 %v9648_v27, %v9618_v30  ;;  %v19627_v30 = vld [vmem:[#allocation18 + $0x1c4] ss:$8 sps:$4 sm:$0xff]  }
 0x68e   :  { %10051 = vmatprep.subr.bf16.mxu1 %v19534_v11 }
 0x691   :  { %10052 = vmatpush1.bf16.msra.mxu1 %v19532_v37  ;;  %v9655_v37 = vsel %vm1053_vm1, %v9650_v52, %v9654_v39 }
 0x692   :  { %10053 = vmatprep.subr.bf16.mxu1 %v19537_v40 }
 0x695   :  { %10054 = vmatpush1.bf16.msra.mxu1 %v19535_v44 }
 0x696   :  { %10055 = vmatprep.subr.bf16.mxu1 %v19540_v18 }
 0x699   :  { %10056 = vmatpush1.bf16.msra.mxu1 %v19538_v14  ;;  %v19571_v14 = vld [vmem:[#allocation18 + $0x170] ss:$8 sps:$4 sm:$0xff]  }
 0x69a   :  { %10057 = vmatprep.subr.bf16.mxu1 %v19543_v46  ;;  %v19576_v46 = vld [vmem:[#allocation18 + $0x164] ss:$8 sps:$4 sm:$0xff]   ;;  %10398 = vmatpush1.bf16.msra.mxu0 %v19571_v14  ;;  %v19634_v14 = vld [vmem:[#allocation18 + $0xf0] ss:$8 sps:$4 sm:$0xff]  }
 0x69b   :  { %10399 = vmatprep.subr.bf16.mxu0 %v19576_v46 }
 0x69d   :  { %10058 = vmatpush1.bf16.msra.mxu1 %v19541_v28  ;;  %v19574_v28 = vld [vmem:[#allocation18 + $0x160] ss:$8 sps:$4 sm:$0xff]  }
 0x69e   :  { %10059 = vmatprep.subr.bf16.mxu1 %v19546_v47  ;;  %v19588_v47 = vld [vmem:[#allocation18 + $0x74] ss:$8 sps:$4 sm:$0xff]   ;;  %10400 = vmatpush1.bf16.msra.mxu0 %v19574_v28 }
 0x6a1   :  { %10060 = vmatpush1.bf16.msra.mxu1 %v19544_v33  ;;  %v19579_v33 = vld [vmem:[#allocation18 + $0x154] ss:$8 sps:$4 sm:$0xff]  }
 0x6a2   :  { %10061 = vmatprep.subr.bf16.mxu1 %v19549_v25  ;;  %v19594_v25 = vld [vmem:[#allocation18 + $0x64] ss:$8 sps:$4 sm:$0xff]   ;;  %10401 = vmatprep.subr.bf16.mxu0 %v19579_v33 }
 0x6a5   :  { %10062 = vmatpush2.bf16.msra.mxu1 %v19547_v36  ;;  %v19592_v36 = vld [vmem:[#allocation18 + $0x60] ss:$8 sps:$4 sm:$0xff]  }
 0x6a6   :  { %10063 = vmatprep.subr.bf16.mxu1 %v19552_v22  ;;  %v19577_v22 = vld [vmem:[#allocation18 + $0x150] ss:$8 sps:$4 sm:$0xff]  }
 0x6a7   :  { %10402 = vmatpush1.bf16.msra.mxu0 %v19577_v22  ;;  %v19637_v22 = vld [vmem:[#allocation18 + $0x1a0] ss:$8 sps:$4 sm:$0xff]  }
 0x6a9   :  { %10064 = vmatpush2.bf16.msra.mxu1 %v19550_v62  ;;  %v19600_v62 = vld [vmem:[#allocation18 + $0x54] ss:$8 sps:$4 sm:$0xff]  }
 0x6aa   :  { %10065 = vmatprep.subr.bf16.mxu1 %v19555_v19  ;;  %v19582_v19 = vld [vmem:[#allocation18 + $0x144] ss:$8 sps:$4 sm:$0xff]  }
 0x6ab   :  { %10403 = vmatprep.subr.bf16.mxu0 %v19582_v19 }
 0x6ad   :  { %10066 = vmatpush2.bf16.msra.mxu1 %v19553_v26  ;;  %v19598_v26 = vld [vmem:[#allocation18 + $0x50] ss:$8 sps:$4 sm:$0xff]  }
 0x6ae   :  { %10067 = vmatprep.subr.bf16.mxu1 %v19558_v29  ;;  %v19580_v29 = vld [vmem:[#allocation18 + $0x140] ss:$8 sps:$4 sm:$0xff]  }
 0x6af   :  { %10404 = vmatpush1.bf16.msra.mxu0 %v19580_v29 }
 0x6b1   :  { %10068 = vmatpush2.bf16.msra.mxu1 %v19556_v10  ;;  %v19606_v10 = vld [vmem:[#allocation18 + $0x44] ss:$8 sps:$4 sm:$0xff]  }
 0x6b2   :  { %10069 = vmatprep.subr.bf16.mxu1 %v19561_v23  ;;  %v19585_v23 = vld [vmem:[#allocation18 + $0x134] ss:$8 sps:$4 sm:$0xff]  }
 0x6b3   :  { %10405 = vmatprep.subr.bf16.mxu0 %v19585_v23  ;;  %v19648_v23 = vld [vmem:[#allocation18 + $0xd4] ss:$8 sps:$4 sm:$0xff]  }
 0x6b5   :  { %10070 = vmatpush2.bf16.msra.mxu1 %v19559_v56  ;;  %v19583_v56 = vld [vmem:[#allocation18 + $0x130] ss:$8 sps:$4 sm:$0xff]  }
 0x6b6   :  { %10071 = vmatprep.subr.bf16.mxu1 %v19564_v2  ;;  %v19612_v2 = vld [vmem:[#allocation18 + $0x34] ss:$8 sps:$4 sm:$0xff]   ;;  %10406 = vmatpush1.bf16.msra.mxu0 %v19583_v56  ;;  %v19643_v56 = vld [vmem:[#allocation18 + $0x190] ss:$8 sps:$4 sm:$0xff]  }
 0x6b7   :  { %10407 = vmatprep.subr.bf16.mxu0 %v19591_v16 }
 0x6b9   :  { %10072 = vmatpush2.bf16.msra.mxu1 %v19562_v21  ;;  %v19610_v21 = vld [vmem:[#allocation18 + $0x30] ss:$8 sps:$4 sm:$0xff]  }
 0x6ba   :  { %10073 = vmatprep.subr.bf16.mxu1 %v19567_v42  ;;  %v19618_v42 = vld [vmem:[#allocation18 + $0x24] ss:$8 sps:$4 sm:$0xff]   ;;  %10408 = vmatpush1.bf16.msra.mxu0 %v19589_v50 }
 0x6bb   :  { %10409 = vmatprep.subr.bf16.mxu0 %v19597_v32 }
 0x6bd   :  { %10074 = vmatpush2.bf16.msra.mxu1 %v19565_v49  ;;  %v19595_v49 = vld [vmem:[#allocation18 + $0x110] ss:$8 sps:$4 sm:$0xff]  }
 0x6be   :  { %10075 = vmatprep.subr.bf16.mxu1 %v19570_v31  ;;  %v19624_v31 = vld [vmem:[#allocation18 + $0x14] ss:$8 sps:$4 sm:$0xff]   ;;  %10410 = vmatpush1.bf16.msra.mxu0 %v19595_v49  ;;  %v19651_v49 = vld [vmem:[#allocation18 + $0x184] ss:$8 sps:$4 sm:$0xff]  }
 0x6bf   :  { %10411 = vmatprep.subr.bf16.mxu0 %v19603_v7  ;;  %v19649_v7 = vld [vmem:[#allocation18 + $0x180] ss:$8 sps:$4 sm:$0xff]  }
 0x6c1   :  { %10076 = vmatpush2.bf16.msra.mxu1 %v19568_v5  ;;  %v22161_v4 = vpop.f32.mrf.mxu0  ;;  %v19609_v5 = vld [vmem:[#allocation18 + $0x1f4] ss:$8 sps:$4 sm:$0xff]  }
 0x6c2   :  { %10666 = vmatprep.subr.bf16.mxu1 %v19588_v47  ;;  %10412 = vmatpush1.bf16.msra.mxu0 %v19601_v41  ;;  %v19657_v41 = vld [vmem:[#allocation18 + $0xb4] ss:$8 sps:$4 sm:$0xff]  }
 0x6c3   :  { %v22166_v0 = vpop.f32.mrf.mxu0  ;;  %10413 = vmatprep.subr.bf16.mxu0 %v19609_v5  ;;  %v19655_v5 = vld [vmem:[#allocation18 + $0xb0] ss:$8 sps:$4 sm:$0xff]  }
 0x6c4   :  { %10078 = vmatmul.mubr.bf16.vlgmr.msra.gmra.mxu1 %v9619_v15  ;;  %v19630_v15 = vld [vmem:[#allocation18 + $0x4] ss:$8 sps:$4 sm:$0xff]  }
 0x6c5   :  { %10087 = vmatprep.mubr.bf16.mxu1 %v9663_v34  ;;  %v8881_v17 = vpop.f32.mrf.mxu0  ;;  %10667 = vmatpush1.bf16.msra.mxu1 %v19586_v54  ;;  %v19628_v34 = vld [vmem:[#allocation18] ss:$8 sps:$4 sm:$0xff]  }
 0x6c6   :  { %10668 = vmatprep.subr.bf16.mxu1 %v19594_v25  ;;  %10414 = vmatpush2.bf16.msra.mxu0 %v19607_v12  ;;  %v19642_v25 = vld [vmem:[#allocation18 + $0xe4] ss:$8 sps:$4 sm:$0xff]   ;;  %v19661_v12 = vld [vmem:[#allocation18 + $0xa0] ss:$8 sps:$4 sm:$0xff]  }
 0x6c7   :  { %v8883_v11 = vpop.f32.mrf.mxu0  ;;  %10415 = vmatprep.subr.bf16.mxu0 %v19615_v1  ;;  %v19663_v1 = vld [vmem:[#allocation18 + $0xa4] ss:$8 sps:$4 sm:$0xff]  }
 0x6c8   :  { %v19633_v11 = vld [vmem:[#allocation18 + $0x1b4] ss:$8 sps:$4 sm:$0xff]  }
 0x6c9   :  { %v22169_v6 = vpop.f32.mrf.mxu0  ;;  %10669 = vmatpush1.bf16.msra.mxu1 %v19592_v36 }
 0x6ca   :  { %10670 = vmatprep.subr.bf16.mxu1 %v19600_v62  ;;  %10416 = vmatpush2.bf16.msra.mxu0 %v19613_v35  ;;  %v19640_v62 = vld [vmem:[#allocation18 + $0xe0] ss:$8 sps:$4 sm:$0xff]   ;;  %v10158_v35 = vld [vmem:[#allocation3 + $0x60] sm:$0x7f] }
 0x6cb   :  { %v22172_v40 = vpop.f32.mrf.mxu0  ;;  %10417 = vmatprep.subr.bf16.mxu0 %v19621_v9  ;;  %v19669_v9 = vld [vmem:[#allocation18 + $0x94] ss:$8 sps:$4 sm:$0xff]   ;;  %14103 = vst [vmem:[#allocation3 + $0x60] sm:$0xff] %v22157_v51 }
 0x6cc   :  { %10088 = vmatmul.mubr.bf16.gmra.mxu1 %v9655_v37  ;;  %v19636_v37 = vld [vmem:[#allocation18 + $0xf4] ss:$8 sps:$4 sm:$0xff]  }
 0x6cd   :  { %v8891_v44 = vpop.f32.mrf.mxu0  ;;  %10671 = vmatpush1.bf16.msra.mxu1 %v19598_v26 }
 0x6ce   :  { %10672 = vmatprep.subr.bf16.mxu1 %v19606_v10  ;;  %10418 = vmatpush2.bf16.msra.mxu0 %v19619_v43  ;;  %v19645_v10 = vld [vmem:[#allocation18 + $0x194] ss:$8 sps:$4 sm:$0xff]   ;;  %v19667_v43 = vld [vmem:[#allocation18 + $0x90] ss:$8 sps:$4 sm:$0xff]  }
 0x6cf   :  { %v8893_v18 = vpop.f32.mrf.mxu0  ;;  %10419 = vmatprep.subr.bf16.mxu0 %v19627_v30  ;;  %v10159_v30 = vld [vmem:[#allocation3 + $0xc8] sm:$0x7f] }
 0x6d0   :  { %v19631_v18 = vld [vmem:[#allocation18 + $0x1b0] ss:$8 sps:$4 sm:$0xff]   ;;  %14104 = vst [vmem:[#allocation3 + $0xc8] sm:$0xff] %v22157_v51 }
 0x6d1   :  { %10673 = vmatpush1.bf16.msra.mxu1 %v19604_v8 }
 0x6d2   :  { %10674 = vmatprep.subr.bf16.mxu1 %v19612_v2  ;;  %10420 = vmatpush2.bf16.msra.mxu0 %v19625_v13  ;;  %v19646_v2 = vld [vmem:[#allocation18 + $0xd0] ss:$8 sps:$4 sm:$0xff]   ;;  %v19673_v13 = vld [vmem:[#allocation18 + $0x80] ss:$8 sps:$4 sm:$0xff]  }
 0x6d3   :  { %10421 = vmatprep.subr.bf16.mxu0 %v19633_v11 }
 0x6d5   :  { %10675 = vmatpush1.bf16.msra.mxu1 %v19610_v21 }
 0x6d6   :  { %10676 = vmatprep.subr.bf16.mxu1 %v19618_v42  ;;  %10422 = vmatpush2.bf16.msra.mxu0 %v19631_v18 }
 0x6d9   :  { %10677 = vmatpush1.bf16.msra.mxu1 %v19616_v38 }
 0x6da   :  { %10678 = vmatprep.subr.bf16.mxu1 %v19624_v31  ;;  %v19654_v31 = vld [vmem:[#allocation18 + $0xc4] ss:$8 sps:$4 sm:$0xff]  }
 0x6dd   :  { %10679 = vmatpush1.bf16.msra.mxu1 %v19622_v59  ;;  %v19652_v59 = vld [vmem:[#allocation18 + $0xc0] ss:$8 sps:$4 sm:$0xff]  }
 0x6de   :  { %10680 = vmatprep.subr.bf16.mxu1 %v19630_v15  ;;  %v19675_v15 = vld [vmem:[#allocation18 + $0x84] ss:$8 sps:$4 sm:$0xff]  }
 0x6e1   :  { %10681 = vmatpush1.bf16.msra.mxu1 %v19628_v34 }
 0x6e2   :  { %10682 = vmatprep.subr.bf16.mxu1 %v19636_v37 }
 0x6e5   :  { %10683 = vmatpush2.bf16.msra.mxu1 %v19634_v14 }
 0x6e6   :  { %10684 = vmatprep.subr.bf16.mxu1 %v19642_v25 }
 0x6e9   :  { %10685 = vmatpush2.bf16.msra.mxu1 %v19640_v62 }
 0x6ea   :  { %10686 = vmatprep.subr.bf16.mxu1 %v19648_v23 }
 0x6ed   :  { %10687 = vmatpush2.bf16.msra.mxu1 %v19646_v2 }
 0x6ee   :  { %10688 = vmatprep.subr.bf16.mxu1 %v19654_v31 }
 0x6f1   :  { %10689 = vmatpush2.bf16.msra.mxu1 %v19652_v59 }
 0x6f2   :  { %10690 = vmatprep.subr.bf16.mxu1 %v19657_v41  ;;  %v10165_v41 = vpack.c.bf16 %v10159_v30, %v10159_v30 }
 0x6f4   :  { %v10494_v30 = vshrl.u32 %v10165_v41, 16 }
 0x6f5   :  { %10691 = vmatpush2.bf16.msra.mxu1 %v19655_v5 }
 0x6f6   :  { %10692 = vmatprep.subr.bf16.mxu1 %v19663_v1  ;;  %v10151_v1 = vld [vmem:[#allocation3 + $0xd0] sm:$0x80] }
 0x6f9   :  { %10693 = vmatpush2.bf16.msra.mxu1 %v19661_v12 }
 0x6fa   :  { %10694 = vmatprep.subr.bf16.mxu1 %v19669_v9 }
 0x6fd   :  { %10695 = vmatpush2.bf16.msra.mxu1 %v19667_v43 }
 0x6fe   :  { %10696 = vmatprep.subr.bf16.mxu1 %v19675_v15  ;;  %v19658_v15 = vld [vmem:[#allocation18 + $0x270] ss:$8 sps:$4 sm:$0xff]  }
 0x701   :  { %v9415_v27 = vpop.f32.mrf.mxu0  ;;  %10697 = vmatpush2.bf16.msra.mxu1 %v19673_v13 }
 0x703   :  { %v8930_v17 = vpop.f32.mrf.mxu1  ;;  %v9417_v39 = vpop.f32.mrf.mxu0 }
 0x704   :  { %v8931_v52 = vadd.f32 %v8930_v17, %v22161_v4  ;;  %v19639_v4 = vld [vmem:[#allocation18 + $0x1a4] ss:$8 sps:$4 sm:$0xff]  }
 0x705   :  { %v8932_v44 = vpop.f32.mrf.mxu1  ;;  %v9419_v46 = vpop.f32.mrf.mxu0  ;;  %10423 = vmatprep.subr.bf16.mxu0 %v19639_v4 }
 0x706   :  { %v8933_v58 = vadd.f32 %v8932_v44, %v22166_v0  ;;  %v22176_v28 = vadd.f32 %v9415_v27, %v8931_v52  ;;  %10424 = vmatpush2.bf16.msra.mxu0 %v19637_v22 }
 0x707   :  { %v8934_v54 = vpop.f32.mrf.mxu1  ;;  %v9421_v47 = vpop.f32.mrf.mxu0  ;;  %10425 = vmatprep.subr.bf16.mxu0 %v19645_v10 }
 0x708   :  { %v22178_v33 = vadd.f32 %v9417_v39, %v8933_v58 }
 0x709   :  { %v8936_v36 = vpop.f32.mrf.mxu1 }
 0x70a   :  { %v9425_v19 = vpop.f32.mrf.mxu0  ;;  %10426 = vmatpush2.bf16.msra.mxu0 %v19643_v56 }
 0x70b   :  { %v8940_v0 = vpop.f32.mrf.mxu1  ;;  %10427 = vmatprep.subr.bf16.mxu0 %v19651_v49  ;;  %v10164_v49 = vpack.c.bf16 %v10158_v35, %v10158_v35 }
 0x70c   :  { %v8941_v26 = vadd.f32 %v8940_v0, %v22169_v6  ;;  %v9427_v29 = vpop.f32.mrf.mxu0  ;;  %v10106_v0 = vld [vmem:[#allocation16] sm:$0x3] }
 0x70d   :  { %v8942_v8 = vpop.f32.mrf.mxu1  ;;  %v10485_v13 = vshrl.u32 %v10164_v49, 16 }
 0x70e   :  { %v8943_v16 = vadd.f32 %v8942_v8, %v22172_v40  ;;  %v9429_v21 = vpop.f32.mrf.mxu0  ;;  %v9426_v50 = vadd.f32 %v9425_v19, %v8941_v26  ;;  %10428 = vmatpush2.bf16.msra.mxu0 %v19649_v7  ;;  %v19660_v40 = vld [vmem:[#allocation18 + $0x274] ss:$8 sps:$4 sm:$0xff]   ;;  %v10115_v8 = vrot.slane %v10106_v0, %v21193_v57 }
 0x70f   :  { %v8944_v42 = vpop.f32.mrf.mxu1  ;;  %10972 = vmatprep.subr.bf16.mxu0 %v19660_v40 }
 0x710   :  { %v9431_v32 = vpop.f32.mrf.mxu0  ;;  %v9428_v38 = vadd.f32 %v9427_v29, %v8943_v16  ;;  %v10111_v29 = vrot.slane %v10106_v0, %v21188_v45  ;;  %v10496_v0 = vrot.slane %v10494_v30, 3 }
 0x711   :  { %v8946_v6 = vpop.f32.mrf.mxu1 }
 0x743   :  { %v9468_v34 = vpop.f32.mrf.mxu1  ;;  %v10026_v27 = vpop.f32.mrf.mxu0 }
 0x744   :  { %v9469_v17 = vadd.f32 %v9468_v34, %v22176_v28 }
 0x745   :  { %v9470_v52 = vpop.f32.mrf.mxu1  ;;  %v10028_v39 = vpop.f32.mrf.mxu0 }
 0x746   :  { %v9471_v11 = vadd.f32 %v9470_v52, %v22178_v33 }
 0x747   :  { %v9472_v37 = vpop.f32.mrf.mxu1  ;;  %v10030_v44 = vpop.f32.mrf.mxu0 }
 0x749   :  { %v9474_v18 = vpop.f32.mrf.mxu1  ;;  %v10032_v14 = vpop.f32.mrf.mxu0 }
 0x74b   :  { %v9478_v58 = vpop.f32.mrf.mxu1  ;;  %v10036_v46 = vpop.f32.mrf.mxu0 }
 0x74c   :  { %v9479_v54 = vadd.f32 %v9478_v58, %v9426_v50 }
 0x74d   :  { %v9480_v47 = vpop.f32.mrf.mxu1  ;;  %v10038_v4 = vpop.f32.mrf.mxu0 }
 0x74e   :  { %v9481_v25 = vadd.f32 %v9480_v47, %v9428_v38  ;;  %v10150_v38 = vld [vmem:[#allocation3 + $0xb0] sm:$0x80] }
 0x74f   :  { %v9482_v36 = vpop.f32.mrf.mxu1  ;;  %v10040_v22 = vpop.f32.mrf.mxu0 }
 0x750   :  { %v10487_v36 = vrot.slane %v10485_v13, 3 }
 0x751   :  { %v9484_v62 = vpop.f32.mrf.mxu1  ;;  %v10042_v19 = vpop.f32.mrf.mxu0 }
 0x784   :  { %v10079_v28 = vpop.f32.mrf.mxu1 }
 0x785   :  { %v10080_v26 = vadd.f32 %v10079_v28, %v10026_v27  ;;  %v19666_v27 = vld [vmem:[#allocation18 + $0x264] ss:$8 sps:$4 sm:$0xff]  }
 0x786   :  { %v10081_v33 = vpop.f32.mrf.mxu1 }
 0x787   :  { %v10098_v10 = vadd.f32 %v10080_v26, %v9469_v17  ;;  %v10082_v23 = vadd.f32 %v10081_v33, %v10028_v39  ;;  %v10488_v17 = vshll.u32 %v10164_v49, 16 }
 0x788   :  { %v10083_v56 = vpop.f32.mrf.mxu1 }
 0x789   :  { %v10118_v2 = vadd.f32 %v10111_v29, %v10098_v10  ;;  %v10099_v16 = vadd.f32 %v10082_v23, %v9471_v11  ;;  %v10490_v22 = vrot.slane %v10488_v17, 4  ;;  %v19670_v56 = vld [vmem:[#allocation18 + $0x250] ss:$8 sps:$4 sm:$0xff]   ;;  %v19681_v17 = vld [vmem:[#allocation18 + $0x234] ss:$8 sps:$4 sm:$0xff]  }
 0x78a   :  { %v10085_v21 = vpop.f32.mrf.mxu1 }
 0x78b   :  { %v10126_v50 = vmax.f32 %v10118_v2, 0.0  ;;  %v10119_v42 = vadd.f32 %v10115_v8, %v10099_v16 }
 0x78c   :  { %v10089_v32 = vpop.f32.mrf.mxu1 }
 0x78d   :  { %v10134_v31 = vsel %vm21141_vm5, %v10126_v50, 0.0  ;;  %v10127_v6 = vmax.f32 %v10119_v42, 0.0  ;;  %v10090_v7 = vadd.f32 %v10089_v32, %v10036_v46  ;;  %v20330_v18 = vpack.c.bf16 %v22157_v51, %v10126_v50  ;;  %v19664_v46 = vld [vmem:[#allocation18 + $0x260] ss:$8 sps:$4 sm:$0xff]   ;;  %v19678_v50 = vld [vmem:[#allocation18 + $0x244] ss:$8 sps:$4 sm:$0xff]  }
 0x78e   :  { %10142 = vst [vmem:[#allocation3 + $0x108] sm:$0xff] %v10134_v31  ;;  %v10091_v59 = vpop.f32.mrf.mxu1  ;;  %v10160_v9 = vpack.c.bf16 %v10134_v31, %v10150_v38  ;;  %v10491_v38 = vor.u32 %v10490_v22, %v10487_v36  ;;  %v19685_v36 = vld [vmem:[#allocation18 + $0x210] ss:$8 sps:$4 sm:$0xff]   ;;  %v19690_v22 = vld [vmem:[#allocation18 + $0x204] ss:$8 sps:$4 sm:$0xff]  }
 0x78f   :  { %v10135_v40 = vsel %vm21141_vm5, %v10127_v6, 0.0  ;;  %v10102_v5 = vadd.f32 %v10090_v7, %v9479_v54  ;;  %v10092_v12 = vadd.f32 %v10091_v59, %v10038_v4  ;;  %v20327_v11 = vpack.c.bf16 %v22157_v51, %v10127_v6 }
 0x790   :  { %10143 = vst [vmem:[#allocation3 + $0x110] sm:$0xff] %v10135_v40  ;;  %v10093_v43 = vpop.f32.mrf.mxu1  ;;  %v10161_v39 = vpack.c.bf16 %v10135_v40, %v10151_v1  ;;  %v10451_v14 = vshrl.u32 %v10160_v9, 16  ;;  %v10454_v58 = vshll.u32 %v10160_v9, 16  ;;  %v10497_v54 = vshll.u32 %v10165_v41, 16  ;;  %v19676_v9 = vld [vmem:[#allocation18 + $0x240] ss:$8 sps:$4 sm:$0xff]  }
 0x791   :  { %v10122_v35 = vadd.f32 %v10111_v29, %v10102_v5  ;;  %v10103_v34 = vadd.f32 %v10092_v12, %v9481_v25  ;;  %20328 = vmatprep.mubr.msk.bf16.mxu0 %vm21654_vm9, %v20327_v11  ;;  %v19672_v25 = vld [vmem:[#allocation18 + $0x254] ss:$8 sps:$4 sm:$0xff]  }
 0x792   :  { %v10095_v52 = vpop.f32.mrf.mxu1  ;;  %20331 = vmatmul.mubr.msk.bf16.vlgmr.msra.gmra.mxu0 %vm21654_vm9, %v20330_v18  ;;  %v10468_v19 = vshrl.u32 %v10161_v39, 16  ;;  %v10471_v29 = vshll.u32 %v10161_v39, 16  ;;  %v10453_v33 = vrot.slane %v10451_v14, 3  ;;  %v10456_v10 = vrot.slane %v10454_v58, 4  ;;  %v19679_v14 = vld [vmem:[#allocation18 + $0x230] ss:$8 sps:$4 sm:$0xff]  }
 0x793   :  { %v10130_v37 = vmax.f32 %v10122_v35, 0.0  ;;  %v10123_v44 = vadd.f32 %v10115_v8, %v10103_v34  ;;  %10973 = vmatpush1.bf16.msra.mxu0 %v19658_v15  ;;  %v10499_v32 = vrot.slane %v10497_v54, 4 }
 0x794   :  { %10974 = vmatprep.subr.bf16.mxu0 %v19666_v27  ;;  %v10470_v7 = vrot.slane %v10468_v19, 3  ;;  %v10473_v12 = vrot.slane %v10471_v29, 4  ;;  %v10457_v15 = vor.u32 %v10456_v10, %v10453_v33  ;;  %v19693_v19 = vld [vmem:[#allocation18 + $0x2f4] ss:$8 sps:$4 sm:$0xff]   ;;  %v19697_v33 = vld [vmem:[#allocation18 + $0x2d0] ss:$8 sps:$4 sm:$0xff]  }
 0x795   :  { %v10138_v47 = vsel %vm21159_vm10, %v10130_v37, 0.0  ;;  %v10131_v4 = vmax.f32 %v10123_v44, 0.0  ;;  %v20336_v41 = vpack.c.bf16 %v22157_v51, %v10130_v37  ;;  %v10500_v52 = vor.u32 %v10499_v32, %v10496_v0  ;;  %v19691_v0 = vld [vmem:[#allocation18 + $0x2f0] ss:$8 sps:$4 sm:$0xff]   ;;  %v19699_v29 = vld [vmem:[#allocation18 + $0x2d4] ss:$8 sps:$4 sm:$0xff]  }
 0x796   :  { %v10162_v62 = vpack.c.bf16 %v10138_v47, %v22157_v51  ;;  %v22208_v21 = vpack.c.bf16 %v22157_v51, %v10138_v47  ;;  %v10474_v44 = vor.u32 %v10473_v12, %v10470_v7  ;;  %v19684_v47 = vld [vmem:[#allocation18 + $0x224] ss:$8 sps:$4 sm:$0xff]   ;;  %v19706_v32 = vld [vmem:[#allocation18 + $0x2a0] ss:$8 sps:$4 sm:$0xff]   ;;  %v19709_v7 = vld [vmem:[#allocation18 + $0x290] ss:$8 sps:$4 sm:$0xff]  }
 0x797   :  { %v10139_v28 = vsel %vm21159_vm10, %v10131_v4, 0.0  ;;  %v10720_v26 = vld [vmem:[#allocation3 + $0x110] sm:$0xfe]  ;;  %10975 = vmatpush1.bf16.msra.mxu0 %v19664_v46  ;;  %v20333_v49 = vpack.c.bf16 %v22157_v51, %v10131_v4 }
 0x798   :  { %v10163_v23 = vpack.c.bf16 %v10139_v28, %v22157_v51  ;;  %v22205_v8 = vpack.c.bf16 %v22157_v51, %v10139_v28  ;;  %v10459_v2 = vshrl.u32 %v10162_v62, 16  ;;  %v10462_v16 = vshll.u32 %v10162_v62, 16  ;;  %10976 = vmatprep.subr.bf16.mxu0 %v19672_v25  ;;  %v19682_v4 = vld [vmem:[#allocation18 + $0x220] ss:$8 sps:$4 sm:$0xff]   ;;  %v19687_v25 = vld [vmem:[#allocation18 + $0x214] ss:$8 sps:$4 sm:$0xff]  }
 0x799   :  { %v10730_v42 = vpack.c.bf16 %v22157_v51, %v10720_v26  ;;  %20334 = vmatprep.mubr.msk.bf16.mxu0 %vm21670_vm12, %v20333_v49  ;;  %v19688_v62 = vld [vmem:[#allocation18 + $0x200] ss:$8 sps:$4 sm:$0xff]   ;;  %v19696_v28 = vld [vmem:[#allocation18 + $0x2e4] ss:$8 sps:$4 sm:$0xff]   ;;  %v19711_v49 = vld [vmem:[#allocation18 + $0x294] ss:$8 sps:$4 sm:$0xff]  }
 0x79a   :  { %v10461_v31 = vrot.slane %v10459_v2, 3  ;;  %v10464_v6 = vrot.slane %v10462_v16, 4  ;;  %v10476_v59 = vshrl.u32 %v10163_v23, 16  ;;  %20337 = vmatmul.mubr.msk.bf16.gmra.mxu0 %vm21670_vm12, %v20336_v41  ;;  %v10788_v5 = vshll.u32 %v22205_v8, 16  ;;  %v19694_v26 = vld [vmem:[#allocation18 + $0x2e0] ss:$8 sps:$4 sm:$0xff]  }
 0x79b   :  { %v10783_v40 = vshll.u32 %v10730_v42, 16  ;;  %v10479_v1 = vshll.u32 %v10163_v23, 16  ;;  %10977 = vmatpush1.bf16.msra.mxu0 %v19670_v56  ;;  %v10781_v35 = vshrl.u32 %v10730_v42, 16  ;;  %v19702_v10 = vld [vmem:[#allocation18 + $0x2c4] ss:$8 sps:$4 sm:$0xff]  }
 0x79c   :  { %v10478_v43 = vrot.slane %v10476_v59, 3  ;;  %v10465_v13 = vor.u32 %v10464_v6, %v10461_v31  ;;  %10978 = vmatprep.subr.bf16.mxu0 %v19678_v50  ;;  %v22220_v37 = vrot.slane %v10788_v5, 1  ;;  %v19700_v23 = vld [vmem:[#allocation18 + $0x2c0] ss:$8 sps:$4 sm:$0xff]   ;;  %v19705_v56 = vld [vmem:[#allocation18 + $0x2b4] ss:$8 sps:$4 sm:$0xff]  }
 0x79d   :  { %v10785_v34 = vrot.slane %v10783_v40, 1  ;;  %v10481_v27 = vrot.slane %v10479_v1, 4  ;;  %v10719_v2 = vld [vmem:[#allocation3 + $0x108] sm:$0xfe]  ;;  %v19708_v50 = vld [vmem:[#allocation18 + $0x2a4] ss:$8 sps:$4 sm:$0xff]  }
 0x79e   :  { %v10466_v39 = vsel %vm717_vm0, %v10457_v15, %v10465_v13  ;;  %v10492_v11 = vsel %vm717_vm0, %v10465_v13, %v10491_v38  ;;  %v19703_v16 = vld [vmem:[#allocation18 + $0x2b0] ss:$8 sps:$4 sm:$0xff]   ;;  %v10729_v42 = vpack.c.bf16 %v22157_v51, %v10719_v2  ;;  %v10728_v38 = vld [vmem:[#allocation3 + $0x78] sm:$0x1]  ;;  %v19714_v59 = vld [vmem:[#allocation18 + $0x284] ss:$8 sps:$4 sm:$0xff]  }
 0x79f   :  { %v10786_v30 = vor.u32 %v10785_v34, %v10781_v35  ;;  %v10482_v18 = vor.u32 %v10481_v27, %v10478_v43  ;;  %10979 = vmatpush1.bf16.msra.mxu0 %v19676_v9  ;;  %v10734_v6 = vpack.c.bf16 %v10728_v38, %v10728_v38  ;;  %v10727_v5 = vld [vmem:[#allocation3] sm:$0x1]  ;;  %v19712_v12 = vld [vmem:[#allocation18 + $0x280] ss:$8 sps:$4 sm:$0xff]   ;;  %v10776_v9 = vshll.u32 %v22208_v21, 16 }
 0x7a0   :  { %10980 = vmatprep.subr.bf16.mxu0 %v19681_v17  ;;  %v10771_v31 = vshll.u32 %v10729_v42, 16  ;;  %v10769_v1 = vshrl.u32 %v10729_v42, 16  ;;  %v10800_v51 = vshrl.u32 %v22205_v8, 16  ;;  %v10733_v15 = vpack.c.bf16 %v10727_v5, %v10727_v5  ;;  %v19748_v2 = vld [vmem:[#allocation21 + $0x248] ss:$16 sps:$4 sm:$0xff]  }
 0x7a1   :  { %v10791_v58 = vsel %vm1053_vm1, %v10786_v30, %v22220_v37  ;;  %v10483_v46 = vsel %vm717_vm0, %v10474_v44, %v10482_v18  ;;  %v10501_v54 = vsel %vm717_vm0, %v10482_v18, %v10500_v52  ;;  %v10804_v40 = vshll.u32 %v10734_v6, 16  ;;  %v19717_v44 = vld [vmem:[#allocation21 + $0x2e4] ss:$16 sps:$4 sm:$0xff]   ;;  %v19720_v18 = vld [vmem:[#allocation21 + $0x2ec] ss:$16 sps:$4 sm:$0xff]  }
 0x7a2   :  { %11004 = vmatprep.mubr.bf16.mxu0 %v10791_v58  ;;  %10698 = vmatprep.mubr.bf16.mxu1 %v10483_v46  ;;  %v10773_v41 = vrot.slane %v10771_v31, 1  ;;  %v10802_v13 = vor.u32 %v10800_v51, %v22220_v37  ;;  %v10778_v34 = vrot.slane %v10776_v9, 1  ;;  %v10796_v17 = vshll.u32 %v10733_v15, 16  ;;  %v19715_v37 = vld [vmem:[#allocation21 + $0x2e0] ss:$16 sps:$4 sm:$0xff]  }
 0x7a3   :  { %10699 = vmatmul.mubr.bf16.vlgmr.msra.gmra.mxu1 %v10466_v39  ;;  %10981 = vmatpush1.bf16.msra.mxu0 %v19679_v14  ;;  %v10806_v35 = vrot.slane %v10804_v40, 1  ;;  %v10792_v39 = vshrl.u32 %v22208_v21, 16  ;;  %v19718_v14 = vld [vmem:[#allocation21 + $0x2e8] ss:$16 sps:$4 sm:$0xff]   ;;  %v19723_v58 = vld [vmem:[#allocation21 + $0x2c4] ss:$16 sps:$4 sm:$0xff]  }
 0x7a4   :  { %10708 = vmatprep.mubr.bf16.mxu1 %v10501_v54  ;;  %10982 = vmatprep.subr.bf16.mxu0 %v19684_v47  ;;  %v10774_v43 = vor.u32 %v10773_v41, %v10769_v1  ;;  %v10798_v30 = vrot.slane %v10796_v17, 1  ;;  %v19726_v46 = vld [vmem:[#allocation21 + $0x2cc] ss:$16 sps:$4 sm:$0xff]   ;;  %v19721_v54 = vld [vmem:[#allocation21 + $0x2c0] ss:$16 sps:$4 sm:$0xff]  }
 0x7a5   :  { %v10807_v52 = vsel %vm1053_vm1, %v10802_v13, %v10806_v35  ;;  %11548 = vmatprep.subr.bf16.mxu1 %v19717_v44  ;;  %v19724_v47 = vld [vmem:[#allocation21 + $0x2c8] ss:$16 sps:$4 sm:$0xff]   ;;  %v19729_v21 = vld [vmem:[#allocation21 + $0x2a4] ss:$16 sps:$4 sm:$0xff]   ;;  %v19751_v42 = vld [vmem:[#allocation21 + $0x220] ss:$16 sps:$4 sm:$0xff]  }
 0x7a6   :  { %v10779_v27 = vsel %vm1053_vm1, %v10774_v43, %v10778_v34  ;;  %11549 = vmatpush1.bf16.msra.mxu1 %v19715_v37  ;;  %v19759_v38 = vld [vmem:[#allocation21 + $0x204] ss:$16 sps:$4 sm:$0xff]   ;;  %v19757_v31 = vld [vmem:[#allocation21 + $0x200] ss:$16 sps:$4 sm:$0xff]   ;;  %v19760_v6 = vld [vmem:[#allocation21 + $0x208] ss:$16 sps:$4 sm:$0xff]  }
 0x7a7   :  { %10983 = vmatpush1.bf16.msra.mxu0 %v19682_v4  ;;  %11550 = vmatprep.subr.bf16.mxu1 %v19723_v58  ;;  %v19732_v4 = vld [vmem:[#allocation21 + $0x2ac] ss:$16 sps:$4 sm:$0xff]   ;;  %v19763_v41 = vld [vmem:[#allocation21 + $0x3e0] ss:$16 sps:$4 sm:$0xff]   ;;  %v19766_v40 = vld [vmem:[#allocation21 + $0x3e8] ss:$16 sps:$4 sm:$0xff]  }
 0x7a8   :  { %10984 = vmatprep.subr.bf16.mxu0 %v19687_v25  ;;  %v19727_v25 = vld [vmem:[#allocation21 + $0x2a0] ss:$16 sps:$4 sm:$0xff]   ;;  %v19771_v5 = vld [vmem:[#allocation21 + $0x3c4] ss:$16 sps:$4 sm:$0xff]   ;;  %v19772_v9 = vld [vmem:[#allocation21 + $0x3c8] ss:$16 sps:$4 sm:$0xff]  }
 0x7a9   :  { %v19769_v1 = vld [vmem:[#allocation21 + $0x3c0] ss:$16 sps:$4 sm:$0xff]   ;;  %v19777_v51 = vld [vmem:[#allocation21 + $0x3a4] ss:$16 sps:$4 sm:$0xff]   ;;  %v19780_v43 = vld [vmem:[#allocation21 + $0x3ac] ss:$16 sps:$4 sm:$0xff]  }
 0x7aa   :  { %11551 = vmatpush1.bf16.msra.mxu1 %v19721_v54  ;;  %v19775_v15 = vld [vmem:[#allocation21 + $0x3a0] ss:$16 sps:$4 sm:$0xff]   ;;  %v19778_v13 = vld [vmem:[#allocation21 + $0x3a8] ss:$16 sps:$4 sm:$0xff]   ;;  %v19783_v35 = vld [vmem:[#allocation21 + $0x384] ss:$16 sps:$4 sm:$0xff]  }
 0x7ab   :  { %10709 = vmatmul.mubr.bf16.gmra.mxu1 %v10492_v11  ;;  %10985 = vmatpush1.bf16.msra.mxu0 %v19685_v36  ;;  %v10794_v11 = vor.u32 %v10792_v39, %v10778_v34  ;;  %v19730_v36 = vld [vmem:[#allocation21 + $0x2a8] ss:$16 sps:$4 sm:$0xff]   ;;  %v19786_v34 = vld [vmem:[#allocation21 + $0x38c] ss:$16 sps:$4 sm:$0xff]  }
 0x7ac   :  { %10986 = vmatprep.subr.bf16.mxu0 %v19690_v22  ;;  %11552 = vmatprep.subr.bf16.mxu1 %v19729_v21  ;;  %v19735_v22 = vld [vmem:[#allocation21 + $0x284] ss:$16 sps:$4 sm:$0xff]   ;;  %v19784_v17 = vld [vmem:[#allocation21 + $0x388] ss:$16 sps:$4 sm:$0xff]   ;;  %v19792_v39 = vld [vmem:[#allocation21 + $0x36c] ss:$16 sps:$4 sm:$0xff]  }
 0x7ad   :  { %v10799_v8 = vsel %vm1053_vm1, %v10794_v11, %v10798_v30  ;;  %v19787_v11 = vld [vmem:[#allocation21 + $0x360] ss:$16 sps:$4 sm:$0xff]   ;;  %v19790_v30 = vld [vmem:[#allocation21 + $0x368] ss:$16 sps:$4 sm:$0xff]   ;;  %v19798_v44 = vld [vmem:[#allocation21 + $0x34c] ss:$16 sps:$4 sm:$0xff]  }
 0x7ae   :  { %11553 = vmatpush1.bf16.msra.mxu1 %v19727_v25  ;;  %v19796_v37 = vld [vmem:[#allocation21 + $0x348] ss:$16 sps:$4 sm:$0xff]   ;;  %v19804_v58 = vld [vmem:[#allocation21 + $0x32c] ss:$16 sps:$4 sm:$0xff]  }
 0x7af   :  { %10987 = vmatpush1.bf16.msra.mxu0 %v19688_v62  ;;  %v19738_v62 = vld [vmem:[#allocation21 + $0x28c] ss:$16 sps:$4 sm:$0xff]   ;;  %11554 = vmatprep.subr.bf16.mxu1 %v19735_v22  ;;  %v19802_v54 = vld [vmem:[#allocation21 + $0x328] ss:$16 sps:$4 sm:$0xff]  }
 0x7b0   :  { %10988 = vmatprep.subr.bf16.mxu0 %v19693_v19  ;;  %v19733_v19 = vld [vmem:[#allocation21 + $0x280] ss:$16 sps:$4 sm:$0xff]   ;;  %v19810_v21 = vld [vmem:[#allocation21 + $0x30c] ss:$16 sps:$4 sm:$0xff]   ;;  %v19808_v25 = vld [vmem:[#allocation21 + $0x308] ss:$16 sps:$4 sm:$0xff]  }
 0x7b1   :  { %v19816_v22 = vld [vmem:[#allocation21 + $0xec] ss:$16 sps:$4 sm:$0xff]  }
 0x7b2   :  { %11555 = vmatpush1.bf16.msra.mxu1 %v19733_v19  ;;  %v22236_v19 = vld [vmem:[#allocation2 + $0x108] sm:$0x7f] }
 0x7b3   :  { %10989 = vmatpush2.bf16.msra.mxu0 %v19691_v0  ;;  %v19736_v0 = vld [vmem:[#allocation21 + $0x288] ss:$16 sps:$4 sm:$0xff]  }
 0x7b4   :  { %10990 = vmatprep.subr.bf16.mxu0 %v19696_v28  ;;  %v19739_v28 = vld [vmem:[#allocation21 + $0x260] ss:$16 sps:$4 sm:$0xff]  }
 0x7b7   :  { %10991 = vmatpush2.bf16.msra.mxu0 %v19694_v26  ;;  %v19741_v26 = vld [vmem:[#allocation21 + $0x264] ss:$16 sps:$4 sm:$0xff]  }
 0x7b8   :  { %10992 = vmatprep.subr.bf16.mxu0 %v19699_v29  ;;  %v19742_v29 = vld [vmem:[#allocation21 + $0x268] ss:$16 sps:$4 sm:$0xff]   ;;  %11556 = vmatprep.subr.bf16.mxu1 %v19741_v26 }
 0x7b9   :  { %11557 = vmatpush1.bf16.msra.mxu1 %v19739_v28 }
 0x7bb   :  { %10993 = vmatpush2.bf16.msra.mxu0 %v19697_v33  ;;  %v19744_v33 = vld [vmem:[#allocation21 + $0x26c] ss:$16 sps:$4 sm:$0xff]  }
 0x7bc   :  { %10994 = vmatprep.subr.bf16.mxu0 %v19702_v10  ;;  %v19747_v10 = vld [vmem:[#allocation21 + $0x244] ss:$16 sps:$4 sm:$0xff]  }
 0x7bd   :  { %11558 = vmatprep.subr.bf16.mxu1 %v19747_v10 }
 0x7bf   :  { %10995 = vmatpush2.bf16.msra.mxu0 %v19700_v23  ;;  %v19750_v23 = vld [vmem:[#allocation21 + $0x24c] ss:$16 sps:$4 sm:$0xff]  }
 0x7c0   :  { %10996 = vmatprep.subr.bf16.mxu0 %v19705_v56  ;;  %v19745_v56 = vld [vmem:[#allocation21 + $0x240] ss:$16 sps:$4 sm:$0xff]  }
 0x7c1   :  { %11559 = vmatpush1.bf16.msra.mxu1 %v19745_v56 }
 0x7c3   :  { %10997 = vmatpush2.bf16.msra.mxu0 %v19703_v16  ;;  %v19753_v16 = vld [vmem:[#allocation21 + $0x224] ss:$16 sps:$4 sm:$0xff]  }
 0x7c4   :  { %10998 = vmatprep.subr.bf16.mxu0 %v19708_v50  ;;  %v19756_v50 = vld [vmem:[#allocation21 + $0x22c] ss:$16 sps:$4 sm:$0xff]   ;;  %11560 = vmatprep.subr.bf16.mxu1 %v19753_v16 }
 0x7c5   :  { %11561 = vmatpush1.bf16.msra.mxu1 %v19751_v42 }
 0x7c6   :  { %11562 = vmatprep.subr.bf16.mxu1 %v19759_v38 }
 0x7c7   :  { %10999 = vmatpush2.bf16.msra.mxu0 %v19706_v32  ;;  %v19754_v32 = vld [vmem:[#allocation21 + $0x228] ss:$16 sps:$4 sm:$0xff]  }
 0x7c8   :  { %11000 = vmatprep.subr.bf16.mxu0 %v19711_v49  ;;  %v19762_v49 = vld [vmem:[#allocation21 + $0x20c] ss:$16 sps:$4 sm:$0xff]  }
 0x7c9   :  { %11563 = vmatpush1.bf16.msra.mxu1 %v19757_v31 }
 0x7cb   :  { %11001 = vmatpush2.bf16.msra.mxu0 %v19709_v7  ;;  %v19765_v7 = vld [vmem:[#allocation21 + $0x3e4] ss:$16 sps:$4 sm:$0xff]  }
 0x7cc   :  { %11002 = vmatprep.subr.bf16.mxu0 %v19714_v59  ;;  %v19768_v59 = vld [vmem:[#allocation21 + $0x3ec] ss:$16 sps:$4 sm:$0xff]   ;;  %11564 = vmatprep.subr.bf16.mxu1 %v19765_v7 }
 0x7cd   :  { %11565 = vmatpush2.bf16.msra.mxu1 %v19763_v41  ;;  %v11033_v7 = vld [vmem:[#allocation19] sm:$0x3] }
 0x7ce   :  { %11566 = vmatprep.subr.bf16.mxu1 %v19771_v5  ;;  %v11038_v41 = vrot.slane %v11033_v7, %v21188_v45 }
 0x7cf   :  { %11003 = vmatpush2.bf16.msra.mxu0 %v19712_v12  ;;  %v19774_v12 = vld [vmem:[#allocation21 + $0x3cc] ss:$16 sps:$4 sm:$0xff]  }
 0x7d0   :  { %11601 = vmatprep.subr.bf16.mxu0 %v19720_v18  ;;  %v19793_v18 = vld [vmem:[#allocation21 + $0x340] ss:$16 sps:$4 sm:$0xff]  }
 0x7d1   :  { %11567 = vmatpush2.bf16.msra.mxu1 %v19769_v1  ;;  %v11042_v1 = vrot.slane %v11033_v7, %v21193_v57 }
 0x7d2   :  { %11005 = vmatmul.mubr.bf16.vlgmr.msra.gmra.mxu0 %v10779_v27  ;;  %11568 = vmatprep.subr.bf16.mxu1 %v19777_v51  ;;  %v19781_v27 = vld [vmem:[#allocation21 + $0x380] ss:$16 sps:$4 sm:$0xff]  }
 0x7d3   :  { %11014 = vmatprep.mubr.bf16.mxu0 %v10807_v52  ;;  %11602 = vmatpush1.bf16.msra.mxu0 %v19718_v14  ;;  %v19789_v52 = vld [vmem:[#allocation21 + $0x364] ss:$16 sps:$4 sm:$0xff]  }
 0x7d4   :  { %11603 = vmatprep.subr.bf16.mxu0 %v19726_v46  ;;  %v19801_v14 = vld [vmem:[#allocation21 + $0x324] ss:$16 sps:$4 sm:$0xff]   ;;  %v19799_v46 = vld [vmem:[#allocation21 + $0x320] ss:$16 sps:$4 sm:$0xff]  }
 0x7d5   :  { %11569 = vmatpush2.bf16.msra.mxu1 %v19775_v15 }
 0x7d6   :  { %11570 = vmatprep.subr.bf16.mxu1 %v19783_v35 }
 0x7d7   :  { %11604 = vmatpush1.bf16.msra.mxu0 %v19724_v47  ;;  %v19807_v47 = vld [vmem:[#allocation21 + $0x304] ss:$16 sps:$4 sm:$0xff]  }
 0x7d8   :  { %11605 = vmatprep.subr.bf16.mxu0 %v19732_v4  ;;  %v19805_v4 = vld [vmem:[#allocation21 + $0x300] ss:$16 sps:$4 sm:$0xff]  }
 0x7d9   :  { %11571 = vmatpush2.bf16.msra.mxu1 %v19781_v27 }
 0x7da   :  { %11015 = vmatmul.mubr.bf16.gmra.mxu0 %v10799_v8  ;;  %11572 = vmatprep.subr.bf16.mxu1 %v19789_v52  ;;  %v19795_v8 = vld [vmem:[#allocation21 + $0x344] ss:$16 sps:$4 sm:$0xff]  }
 0x7db   :  { %11606 = vmatpush1.bf16.msra.mxu0 %v19730_v36  ;;  %v19813_v36 = vld [vmem:[#allocation21 + $0xe4] ss:$16 sps:$4 sm:$0xff]  }
 0x7dc   :  { %11607 = vmatprep.subr.bf16.mxu0 %v19738_v62  ;;  %v22234_v62 = vld [vmem:[#allocation2 + $0x100] sm:$0x7f] }
 0x7dd   :  { %11573 = vmatpush2.bf16.msra.mxu1 %v19787_v11 }
 0x7de   :  { %11574 = vmatprep.subr.bf16.mxu1 %v19795_v8 }
 0x7df   :  { %11608 = vmatpush1.bf16.msra.mxu0 %v19736_v0  ;;  %v22238_v0 = vld [vmem:[#allocation2 + $0x20] sm:$0xff] }
 0x7e0   :  { %11609 = vmatprep.subr.bf16.mxu0 %v19744_v33  ;;  %16189 = vst [vmem:[#allocation2 + $0x100] sm:$0xff] %v22238_v0  ;;  %16190 = vst [vmem:[#allocation2 + $0x108] sm:$0xff] %v22238_v0 }
 0x7e1   :  { %11575 = vmatpush2.bf16.msra.mxu1 %v19793_v18 }
 0x7e2   :  { %11576 = vmatprep.subr.bf16.mxu1 %v19801_v14  ;;  %v19814_v14 = vld [vmem:[#allocation21 + $0xe8] ss:$16 sps:$4 sm:$0xff]  }
 0x7e3   :  { %11610 = vmatpush1.bf16.msra.mxu0 %v19742_v29 }
 0x7e4   :  { %11611 = vmatprep.subr.bf16.mxu0 %v19750_v23 }
 0x7e5   :  { %11577 = vmatpush2.bf16.msra.mxu1 %v19799_v46 }
 0x7e6   :  { %11578 = vmatprep.subr.bf16.mxu1 %v19807_v47  ;;  %v19822_v47 = vld [vmem:[#allocation21 + $0xcc] ss:$16 sps:$4 sm:$0xff]  }
 0x7e7   :  { %11612 = vmatpush1.bf16.msra.mxu0 %v19748_v2 }
 0x7e8   :  { %11613 = vmatprep.subr.bf16.mxu0 %v19756_v50 }
 0x7e9   :  { %11579 = vmatpush2.bf16.msra.mxu1 %v19805_v4 }
 0x7ea   :  { %12030 = vmatprep.subr.bf16.mxu1 %v19813_v36 }
 0x7eb   :  { %11614 = vmatpush1.bf16.msra.mxu0 %v19754_v32 }
 0x7ec   :  { %11615 = vmatprep.subr.bf16.mxu0 %v19762_v49 }
 0x7ef   :  { %11616 = vmatpush1.bf16.msra.mxu0 %v19760_v6 }
 0x7f0   :  { %11617 = vmatprep.subr.bf16.mxu0 %v19768_v59 }
 0x7f3   :  { %11618 = vmatpush2.bf16.msra.mxu0 %v19766_v40 }
 0x7f4   :  { %11619 = vmatprep.subr.bf16.mxu0 %v19774_v12 }
 0x7f7   :  { %11620 = vmatpush2.bf16.msra.mxu0 %v19772_v9 }
 0x7f8   :  { %11621 = vmatprep.subr.bf16.mxu0 %v19780_v43 }
 0x7fb   :  { %11622 = vmatpush2.bf16.msra.mxu0 %v19778_v13 }
 0x7fc   :  { %11623 = vmatprep.subr.bf16.mxu0 %v19786_v34 }
 0x7ff   :  { %11624 = vmatpush2.bf16.msra.mxu0 %v19784_v17 }
 0x800   :  { %11625 = vmatprep.subr.bf16.mxu0 %v19792_v39 }
 0x803   :  { %11626 = vmatpush2.bf16.msra.mxu0 %v19790_v30 }
 0x804   :  { %11627 = vmatprep.subr.bf16.mxu0 %v19798_v44  ;;  %v11078_v44 = vld [vmem:[#allocation2 + $0x8] sm:$0x80] }
 0x807   :  { %11628 = vmatpush2.bf16.msra.mxu0 %v19796_v37  ;;  %v19811_v37 = vld [vmem:[#allocation21 + $0xe0] ss:$16 sps:$4 sm:$0xff]  }
 0x808   :  { %11629 = vmatprep.subr.bf16.mxu0 %v19804_v58 }
 0x80b   :  { %11630 = vmatpush2.bf16.msra.mxu0 %v19802_v54  ;;  %v19819_v54 = vld [vmem:[#allocation21 + $0xc4] ss:$16 sps:$4 sm:$0xff]  }
 0x80c   :  { %11631 = vmatprep.subr.bf16.mxu0 %v19810_v21 }
 0x80f   :  { %11632 = vmatpush2.bf16.msra.mxu0 %v19808_v25 }
 0x810   :  { %12083 = vmatprep.subr.bf16.mxu0 %v19816_v22 }
 0x852   :  { %v10431_v28 = vpop.f32.mrf.mxu0 }
 0x854   :  { %v10433_v26 = vpop.f32.mrf.mxu0 }
 0x856   :  { %v10435_v29 = vpop.f32.mrf.mxu0 }
 0x857   :  { %v19817_v29 = vld [vmem:[#allocation21 + $0xc0] ss:$16 sps:$4 sm:$0xff]  }
 0x858   :  { %v10437_v33 = vpop.f32.mrf.mxu0 }
 0x859   :  { %v19820_v33 = vld [vmem:[#allocation21 + $0xc8] ss:$16 sps:$4 sm:$0xff]  }
 0x85a   :  { %v10441_v10 = vpop.f32.mrf.mxu0 }
 0x85c   :  { %v10443_v23 = vpop.f32.mrf.mxu0 }
 0x85e   :  { %v10445_v56 = vpop.f32.mrf.mxu0 }
 0x85f   :  { %v19825_v56 = vld [vmem:[#allocation21 + $0xa4] ss:$16 sps:$4 sm:$0xff]  }
 0x860   :  { %v10447_v2 = vpop.f32.mrf.mxu0 }
 0x861   :  { %v19828_v2 = vld [vmem:[#allocation21 + $0xac] ss:$16 sps:$4 sm:$0xff]  }
 0x863   :  { %v10700_v16 = vpop.f32.mrf.mxu1 }
 0x864   :  { %v10701_v59 = vadd.f32 %v10700_v16, %v10431_v28 }
 0x865   :  { %v10702_v50 = vpop.f32.mrf.mxu1 }
 0x866   :  { %v10703_v5 = vadd.f32 %v10702_v50, %v10433_v26 }
 0x867   :  { %v10704_v42 = vpop.f32.mrf.mxu1 }
 0x869   :  { %v10706_v32 = vpop.f32.mrf.mxu1 }
 0x86b   :  { %v10710_v38 = vpop.f32.mrf.mxu1 }
 0x86c   :  { %v10711_v27 = vadd.f32 %v10710_v38, %v10441_v10  ;;  %v19823_v38 = vld [vmem:[#allocation21 + $0xa0] ss:$16 sps:$4 sm:$0xff]  }
 0x86d   :  { %v10712_v49 = vpop.f32.mrf.mxu1 }
 0x86e   :  { %v10713_v11 = vadd.f32 %v10712_v49, %v10443_v23  ;;  %v19826_v49 = vld [vmem:[#allocation21 + $0xa8] ss:$16 sps:$4 sm:$0xff]  }
 0x86f   :  { %v10714_v31 = vpop.f32.mrf.mxu1 }
 0x870   :  { %v19831_v31 = vld [vmem:[#allocation21 + $0x84] ss:$16 sps:$4 sm:$0xff]  }
 0x871   :  { %v10716_v6 = vpop.f32.mrf.mxu1 }
 0x872   :  { %v19834_v6 = vld [vmem:[#allocation21 + $0x8c] ss:$16 sps:$4 sm:$0xff]  }
 0x892   :  { %v11006_v40 = vpop.f32.mrf.mxu0 }
 0x893   :  { %v11025_v12 = vadd.f32 %v11006_v40, %v10701_v59 }
 0x894   :  { %v11008_v9 = vpop.f32.mrf.mxu0 }
 0x895   :  { %v11045_v51 = vadd.f32 %v11038_v41, %v11025_v12  ;;  %v11026_v43 = vadd.f32 %v11008_v9, %v10703_v5  ;;  %v19832_v9 = vld [vmem:[#allocation21 + $0x88] ss:$16 sps:$4 sm:$0xff]  }
 0x896   :  { %v11010_v15 = vpop.f32.mrf.mxu0 }
 0x897   :  { %v11053_v13 = vmax.f32 %v11045_v51, 0.0  ;;  %v11046_v35 = vadd.f32 %v11042_v1, %v11026_v43 }
 0x898   :  { %v11012_v34 = vpop.f32.mrf.mxu0 }
 0x899   :  { %v22246_v17 = vsel %vm21141_vm5, %v11053_v13, 0.0  ;;  %v11054_v52 = vmax.f32 %v11046_v35, 0.0  ;;  %v20345_v28 = vpack.c.bf16 %v22238_v0, %v11053_v13  ;;  %v19837_v35 = vld [vmem:[#allocation21 + $0x64] ss:$16 sps:$4 sm:$0xff]   ;;  %v19840_v34 = vld [vmem:[#allocation21 + $0x6c] ss:$16 sps:$4 sm:$0xff]  }
 0x89a   :  { %11069 = vst [vmem:[#allocation2 + $0x40] sm:$0xff] %v22246_v17  ;;  %v11016_v39 = vpop.f32.mrf.mxu0 }
 0x89b   :  { %v11062_v30 = vsel %vm21141_vm5, %v11054_v52, 0.0  ;;  %v11029_v8 = vadd.f32 %v11016_v39, %v10711_v27  ;;  %v20339_v25 = vpack.c.bf16 %v22238_v0, %v11054_v52  ;;  %v19838_v52 = vld [vmem:[#allocation21 + $0x68] ss:$16 sps:$4 sm:$0xff]   ;;  %v19843_v39 = vld [vmem:[#allocation21 + $0x44] ss:$16 sps:$4 sm:$0xff]  }
 0x89c   :  { %11070 = vst [vmem:[#allocation2 + $0x48] sm:$0xff] %v11062_v30  ;;  %v11018_v18 = vpop.f32.mrf.mxu0  ;;  %v11088_v4 = vpack.c.bf16 %v11062_v30, %v11078_v44  ;;  %v19841_v30 = vld [vmem:[#allocation21 + $0x40] ss:$16 sps:$4 sm:$0xff]   ;;  %v19849_v44 = vld [vmem:[#allocation21 + $0x24] ss:$16 sps:$4 sm:$0xff]  }
 0x89d   :  { %v11049_v58 = vadd.f32 %v11038_v41, %v11029_v8  ;;  %v11030_v46 = vadd.f32 %v11018_v18, %v10713_v11  ;;  %20340 = vmatprep.mubr.msk.bf16.mxu1 %vm21654_vm9, %v20339_v25  ;;  %20343 = vmatprep.mubr.msk.bf16.mxu0 %vm21654_vm9, %v20339_v25  ;;  %v19846_v11 = vld [vmem:[#allocation21 + $0x4c] ss:$16 sps:$4 sm:$0xff]   ;;  %v19844_v8 = vld [vmem:[#allocation21 + $0x48] ss:$16 sps:$4 sm:$0xff]   ;;  %v19859_v25 = vld [vmem:[#allocation21 + $0x1e0] ss:$16 sps:$4 sm:$0xff]  }
 0x89e   :  { %v11020_v21 = vpop.f32.mrf.mxu0  ;;  %20346 = vmatmul.mubr.msk.bf16.vlgmr.msra.gmra.mxu1 %vm21654_vm9, %v20345_v28  ;;  %20349 = vmatmul.mubr.msk.bf16.vlgmr.msra.gmra.mxu0 %vm21654_vm9, %v20345_v28  ;;  %v11672_v16 = vshrl.u32 %v11088_v4, 16  ;;  %v11675_v50 = vshll.u32 %v11088_v4, 16  ;;  %v19852_v18 = vld [vmem:[#allocation21 + $0x2c] ss:$16 sps:$4 sm:$0xff]  }
 0x89f   :  { %v11057_v36 = vmax.f32 %v11049_v58, 0.0  ;;  %v11050_v22 = vadd.f32 %v11042_v1, %v11030_v46  ;;  %12031 = vmatpush1.bf16.msra.mxu1 %v19811_v37  ;;  %12084 = vmatpush1.bf16.msra.mxu0 %v19814_v14  ;;  %v19829_v1 = vld [vmem:[#allocation21 + $0x80] ss:$16 sps:$4 sm:$0xff]   ;;  %v19850_v14 = vld [vmem:[#allocation21 + $0x28] ss:$16 sps:$4 sm:$0xff]  }
 0x8a0   :  { %v11022_v26 = vpop.f32.mrf.mxu0  ;;  %12032 = vmatprep.subr.bf16.mxu1 %v19819_v54  ;;  %12085 = vmatprep.subr.bf16.mxu0 %v19822_v47  ;;  %v11674_v59 = vrot.slane %v11672_v16, 3  ;;  %v11677_v41 = vrot.slane %v11675_v50, 4  ;;  %v19847_v37 = vld [vmem:[#allocation21 + $0x20] ss:$16 sps:$4 sm:$0xff]   ;;  %v19855_v58 = vld [vmem:[#allocation21 + $0x4] ss:$16 sps:$4 sm:$0xff]  }
 0x8a1   :  { %v22263_v10 = vsel %vm21159_vm10, %v11057_v36, 0.0  ;;  %v11058_v23 = vmax.f32 %v11050_v22, 0.0  ;;  %v20357_v12 = vpack.c.bf16 %v22238_v0, %v11057_v36  ;;  %v19858_v46 = vld [vmem:[#allocation21 + $0xc] ss:$16 sps:$4 sm:$0xff]   ;;  %v19853_v54 = vld [vmem:[#allocation21] ss:$16 sps:$4 sm:$0xff]  }
 0x8a2   :  { %11073 = vst [vmem:[#allocation2 + $0xc0] sm:$0xff] %v22263_v10  ;;  %v11678_v15 = vor.u32 %v11677_v41, %v11674_v59  ;;  %v19856_v47 = vld [vmem:[#allocation21 + $0x8] ss:$16 sps:$4 sm:$0xff]   ;;  %v19861_v21 = vld [vmem:[#allocation21 + $0x1e4] ss:$16 sps:$4 sm:$0xff]  }
 0x8a3   :  { %v11066_v20 = vsel %vm21159_vm10, %v11058_v23, 0.0  ;;  %12033 = vmatpush1.bf16.msra.mxu1 %v19817_v29  ;;  %12086 = vmatpush1.bf16.msra.mxu0 %v19820_v33  ;;  %v20351_v7 = vpack.c.bf16 %v22238_v0, %v11058_v23  ;;  %v19864_v4 = vld [vmem:[#allocation21 + $0x1ec] ss:$16 sps:$4 sm:$0xff]   ;;  %v19862_v36 = vld [vmem:[#allocation21 + $0x1e8] ss:$16 sps:$4 sm:$0xff]  }
 0x8a4   :  { %v11090_v42 = vpack.c.bf16 %v11066_v20, %v22238_v0  ;;  %v22270_v32 = vpack.c.bf16 %v22238_v0, %v11066_v20  ;;  %12034 = vmatprep.subr.bf16.mxu1 %v19825_v56  ;;  %12087 = vmatprep.subr.bf16.mxu0 %v19828_v2  ;;  %v19867_v22 = vld [vmem:[#allocation21 + $0x1c4] ss:$16 sps:$4 sm:$0xff]   ;;  %v19870_v28 = vld [vmem:[#allocation21 + $0x1cc] ss:$16 sps:$4 sm:$0xff]   ;;  %v19865_v26 = vld [vmem:[#allocation21 + $0x1c0] ss:$16 sps:$4 sm:$0xff]  }
 0x8a5   :  { %20352 = vmatprep.mubr.msk.bf16.mxu1 %vm21670_vm12, %v20351_v7  ;;  %20355 = vmatprep.mubr.msk.bf16.mxu0 %vm21670_vm12, %v20351_v7  ;;  %v19868_v29 = vld [vmem:[#allocation21 + $0x1c8] ss:$16 sps:$4 sm:$0xff]   ;;  %v19873_v33 = vld [vmem:[#allocation21 + $0x1a4] ss:$16 sps:$4 sm:$0xff]   ;;  %v19876_v23 = vld [vmem:[#allocation21 + $0x1ac] ss:$16 sps:$4 sm:$0xff]  }
 0x8a6   :  { %v11680_v40 = vshrl.u32 %v11090_v42, 16  ;;  %v11683_v5 = vshll.u32 %v11090_v42, 16  ;;  %20358 = vmatmul.mubr.msk.bf16.gmra.mxu1 %vm21670_vm12, %v20357_v12  ;;  %20361 = vmatmul.mubr.msk.bf16.gmra.mxu0 %vm21670_vm12, %v20357_v12  ;;  %v19871_v56 = vld [vmem:[#allocation21 + $0x1a0] ss:$16 sps:$4 sm:$0xff]   ;;  %v19874_v2 = vld [vmem:[#allocation21 + $0x1a8] ss:$16 sps:$4 sm:$0xff]  }
 0x8a7   :  { %12035 = vmatpush1.bf16.msra.mxu1 %v19823_v38  ;;  %12088 = vmatpush1.bf16.msra.mxu0 %v19826_v49  ;;  %v19879_v16 = vld [vmem:[#allocation21 + $0x184] ss:$16 sps:$4 sm:$0xff]   ;;  %v19882_v50 = vld [vmem:[#allocation21 + $0x18c] ss:$16 sps:$4 sm:$0xff]   ;;  %v19877_v20 = vld [vmem:[#allocation21 + $0x180] ss:$16 sps:$4 sm:$0xff]  }
 0x8a8   :  { %v11682_v51 = vrot.slane %v11680_v40, 3  ;;  %v11685_v43 = vrot.slane %v11683_v5, 4  ;;  %12036 = vmatprep.subr.bf16.mxu1 %v19831_v31  ;;  %12089 = vmatprep.subr.bf16.mxu0 %v19834_v6  ;;  %v19880_v42 = vld [vmem:[#allocation21 + $0x188] ss:$16 sps:$4 sm:$0xff]   ;;  %v19885_v38 = vld [vmem:[#allocation21 + $0x164] ss:$16 sps:$4 sm:$0xff]   ;;  %v11089_v40 = vpack.c.bf16 %v22263_v10, %v22238_v0  ;;  %v11092_v5 = vpack.c.bf16 %v22236_v19, %v22236_v19 }
 0x8a9   :  { %v19888_v49 = vld [vmem:[#allocation21 + $0x16c] ss:$16 sps:$4 sm:$0xff]   ;;  %v19883_v31 = vld [vmem:[#allocation21 + $0x160] ss:$16 sps:$4 sm:$0xff]   ;;  %v19886_v6 = vld [vmem:[#allocation21 + $0x168] ss:$16 sps:$4 sm:$0xff]  }
 0x8aa   :  { %v22282_v13 = vor.u32 %v11685_v43, %v11682_v51  ;;  %v19891_v7 = vld [vmem:[#allocation21 + $0x144] ss:$16 sps:$4 sm:$0xff]   ;;  %v19894_v59 = vld [vmem:[#allocation21 + $0x14c] ss:$16 sps:$4 sm:$0xff]   ;;  %v19889_v12 = vld [vmem:[#allocation21 + $0x140] ss:$16 sps:$4 sm:$0xff]  }
 0x8ab   :  { %12037 = vmatpush1.bf16.msra.mxu1 %v19829_v1  ;;  %12090 = vmatpush1.bf16.msra.mxu0 %v19832_v9  ;;  %v11077_v41 = vld [vmem:[#allocation2] sm:$0x80]  ;;  %v19892_v1 = vld [vmem:[#allocation21 + $0x148] ss:$16 sps:$4 sm:$0xff]   ;;  %v19900_v43 = vld [vmem:[#allocation21 + $0x12c] ss:$16 sps:$4 sm:$0xff]  }
 0x8ac   :  { %v11687_v27 = vsel %vm717_vm0, %v11678_v15, %v22282_v13  ;;  %12038 = vmatprep.subr.bf16.mxu1 %v19837_v35  ;;  %12091 = vmatprep.subr.bf16.mxu0 %v19840_v34  ;;  %v11087_v9 = vpack.c.bf16 %v22246_v17, %v11077_v41  ;;  %v19897_v51 = vld [vmem:[#allocation21 + $0x124] ss:$16 sps:$4 sm:$0xff]   ;;  %v11663_v15 = vshrl.u32 %v11089_v40, 16  ;;  %v11666_v35 = vshll.u32 %v11089_v40, 16  ;;  %v19895_v34 = vld [vmem:[#allocation21 + $0x120] ss:$16 sps:$4 sm:$0xff]  }
 0x8ad   :  { %12062 = vmatprep.mubr.bf16.mxu1 %v11687_v27  ;;  %12115 = vmatprep.mubr.bf16.mxu0 %v11687_v27  ;;  %v11698_v27 = vshrl.u32 %v11092_v5, 16  ;;  %v19898_v10 = vld [vmem:[#allocation21 + $0x128] ss:$16 sps:$4 sm:$0xff]   ;;  %v19924_v41 = vld [vmem:[#allocation21 + $0x4ac] ss:$16 sps:$4 sm:$0xff]  }
 0x8ae   :  { %v11658_v19 = vshll.u32 %v11087_v9, 16  ;;  %v11665_v17 = vrot.slane %v11663_v15, 3  ;;  %v19925_v15 = vld [vmem:[#allocation21 + $0x480] ss:$16 sps:$4 sm:$0xff]  }
 0x8af   :  { %12039 = vmatpush1.bf16.msra.mxu1 %v19835_v24  ;;  %12092 = vmatpush1.bf16.msra.mxu0 %v19838_v52  ;;  %v11701_v24 = vshll.u32 %v11092_v5, 16  ;;  %v11655_v52 = vshrl.u32 %v11087_v9, 16  ;;  %v19919_v5 = vld [vmem:[#allocation21 + $0x4a0] ss:$16 sps:$4 sm:$0xff]   ;;  %v19927_v9 = vld [vmem:[#allocation21 + $0x484] ss:$16 sps:$4 sm:$0xff]  }
 0x8b0   :  { %12040 = vmatprep.subr.bf16.mxu1 %v19843_v39  ;;  %12093 = vmatprep.subr.bf16.mxu0 %v19846_v11  ;;  %v12137_v39 = vld [vmem:[#allocation2 + $0x48] sm:$0xfe]  ;;  %v19903_v11 = vld [vmem:[#allocation21 + $0x104] ss:$16 sps:$4 sm:$0xff]  }
 0x8b3   :  { %12041 = vmatpush1.bf16.msra.mxu1 %v19841_v30  ;;  %12094 = vmatpush1.bf16.msra.mxu0 %v19844_v8  ;;  %v19906_v30 = vld [vmem:[#allocation21 + $0x10c] ss:$16 sps:$4 sm:$0xff]   ;;  %v11668_v8 = vrot.slane %v11666_v35, 4  ;;  %v19928_v35 = vld [vmem:[#allocation21 + $0x488] ss:$16 sps:$4 sm:$0xff]  }
 0x8b4   :  { %12042 = vmatprep.subr.bf16.mxu1 %v19849_v44  ;;  %12095 = vmatprep.subr.bf16.mxu0 %v19852_v18  ;;  %v11091_v44 = vpack.c.bf16 %v22234_v62, %v22234_v62  ;;  %v11700_v18 = vrot.slane %v11698_v27, 3  ;;  %v19936_v27 = vld [vmem:[#allocation21 + $0x46c] ss:$16 sps:$4 sm:$0xff]  }
 0x8b7   :  { %12043 = vmatpush1.bf16.msra.mxu1 %v19847_v37  ;;  %12096 = vmatpush1.bf16.msra.mxu0 %v19850_v14  ;;  %v11703_v37 = vrot.slane %v11701_v24, 4  ;;  %v12147_v14 = vpack.c.bf16 %v22238_v0, %v12137_v39  ;;  %v19931_v24 = vld [vmem:[#allocation21 + $0x460] ss:$16 sps:$4 sm:$0xff]  }
 0x8b8   :  { %12044 = vmatprep.subr.bf16.mxu1 %v19855_v58  ;;  %12097 = vmatprep.subr.bf16.mxu0 %v19858_v46  ;;  %v19901_v58 = vld [vmem:[#allocation21 + $0x100] ss:$16 sps:$4 sm:$0xff]   ;;  %v19904_v46 = vld [vmem:[#allocation21 + $0x108] ss:$16 sps:$4 sm:$0xff]  }
 0x8b9   :  { %v19937_v39 = vld [vmem:[#allocation21 + $0x440] ss:$16 sps:$4 sm:$0xff]  }
 0x8bb   :  { %12045 = vmatpush1.bf16.msra.mxu1 %v19853_v54  ;;  %12098 = vmatpush1.bf16.msra.mxu0 %v19856_v47  ;;  %v11657_v54 = vrot.slane %v11655_v52, 3  ;;  %v11660_v47 = vrot.slane %v11658_v19, 4  ;;  %v19939_v52 = vld [vmem:[#allocation21 + $0x444] ss:$16 sps:$4 sm:$0xff]   ;;  %v19942_v19 = vld [vmem:[#allocation21 + $0x44c] ss:$16 sps:$4 sm:$0xff]  }
 0x8bc   :  { %12046 = vmatprep.subr.bf16.mxu1 %v19861_v21  ;;  %12099 = vmatprep.subr.bf16.mxu0 %v19864_v4  ;;  %v19909_v21 = vld [vmem:[#allocation21 + $0x4e4] ss:$16 sps:$4 sm:$0xff]   ;;  %v19912_v4 = vld [vmem:[#allocation21 + $0x4ec] ss:$16 sps:$4 sm:$0xff]  }
 0x8bd   :  { %v11661_v62 = vor.u32 %v11660_v47, %v11657_v54  ;;  %v19960_v54 = vld [vmem:[#allocation21 + $0x5ec] ss:$16 sps:$4 sm:$0xff]   ;;  %v19955_v47 = vld [vmem:[#allocation21 + $0x5e0] ss:$16 sps:$4 sm:$0xff]  }
 0x8bf   :  { %12047 = vmatpush2.bf16.msra.mxu1 %v19859_v25  ;;  %12100 = vmatpush2.bf16.msra.mxu0 %v19862_v36  ;;  %v11669_v25 = vor.u32 %v11668_v8, %v11665_v17  ;;  %v11689_v36 = vshrl.u32 %v11091_v44, 16  ;;  %v19948_v17 = vld [vmem:[#allocation21 + $0x42c] ss:$16 sps:$4 sm:$0xff]   ;;  %v19943_v8 = vld [vmem:[#allocation21 + $0x420] ss:$16 sps:$4 sm:$0xff]  }
 0x8c0   :  { %12048 = vmatprep.subr.bf16.mxu1 %v19867_v22  ;;  %12101 = vmatprep.subr.bf16.mxu0 %v19870_v28  ;;  %v11692_v22 = vshll.u32 %v11091_v44, 16  ;;  %v11704_v28 = vor.u32 %v11703_v37, %v11700_v18  ;;  %v19946_v44 = vld [vmem:[#allocation21 + $0x428] ss:$16 sps:$4 sm:$0xff]   ;;  %v19951_v18 = vld [vmem:[#allocation21 + $0x404] ss:$16 sps:$4 sm:$0xff]  }
 0x8c1   :  { %v19954_v37 = vld [vmem:[#allocation21 + $0x40c] ss:$16 sps:$4 sm:$0xff]  }
 0x8c3   :  { %12049 = vmatpush2.bf16.msra.mxu1 %v19865_v26  ;;  %12102 = vmatpush2.bf16.msra.mxu0 %v19868_v29  ;;  %v12232_v26 = vshll.u32 %v12147_v14, 16  ;;  %v19907_v29 = vld [vmem:[#allocation21 + $0x4e0] ss:$16 sps:$4 sm:$0xff]  }
 0x8c4   :  { %12050 = vmatprep.subr.bf16.mxu1 %v19873_v33  ;;  %12103 = vmatprep.subr.bf16.mxu0 %v19876_v23  ;;  %v19910_v33 = vld [vmem:[#allocation21 + $0x4e8] ss:$16 sps:$4 sm:$0xff]   ;;  %v11670_v23 = vsel %vm717_vm0, %v11661_v62, %v11669_v25  ;;  %v19967_v62 = vld [vmem:[#allocation21 + $0x5a0] ss:$16 sps:$4 sm:$0xff]  }
 0x8c7   :  { %12051 = vmatpush2.bf16.msra.mxu1 %v19871_v56  ;;  %12104 = vmatpush2.bf16.msra.mxu0 %v19874_v2  ;;  %v19915_v56 = vld [vmem:[#allocation21 + $0x4c4] ss:$16 sps:$4 sm:$0xff]   ;;  %v19918_v2 = vld [vmem:[#allocation21 + $0x4cc] ss:$16 sps:$4 sm:$0xff]  }
 0x8c8   :  { %12052 = vmatprep.subr.bf16.mxu1 %v19879_v16  ;;  %12105 = vmatprep.subr.bf16.mxu0 %v19882_v50  ;;  %v11691_v16 = vrot.slane %v11689_v36, 3  ;;  %v11694_v50 = vrot.slane %v11692_v22, 4  ;;  %v19961_v36 = vld [vmem:[#allocation21 + $0x5c0] ss:$16 sps:$4 sm:$0xff]   ;;  %v19964_v22 = vld [vmem:[#allocation21 + $0x5c8] ss:$16 sps:$4 sm:$0xff]  }
 0x8cb   :  { %12053 = vmatpush2.bf16.msra.mxu1 %v19877_v20  ;;  %12106 = vmatpush2.bf16.msra.mxu0 %v19880_v42  ;;  %v11705_v20 = vsel %vm717_vm0, %v22282_v13, %v11704_v28  ;;  %v12234_v42 = vrot.slane %v12232_v26, 1  ;;  %v19922_v13 = vld [vmem:[#allocation21 + $0x4a8] ss:$16 sps:$4 sm:$0xff]   ;;  %v19969_v28 = vld [vmem:[#allocation21 + $0x5a4] ss:$16 sps:$4 sm:$0xff]  }
 0x8cc   :  { %12054 = vmatprep.subr.bf16.mxu1 %v19885_v38  ;;  %12107 = vmatprep.subr.bf16.mxu0 %v19888_v49  ;;  %v19913_v38 = vld [vmem:[#allocation21 + $0x4c0] ss:$16 sps:$4 sm:$0xff]   ;;  %v19916_v49 = vld [vmem:[#allocation21 + $0x4c8] ss:$16 sps:$4 sm:$0xff]   ;;  %v19972_v26 = vld [vmem:[#allocation21 + $0x5ac] ss:$16 sps:$4 sm:$0xff]  }
 0x8cf   :  { %12055 = vmatpush2.bf16.msra.mxu1 %v19883_v31  ;;  %12108 = vmatpush2.bf16.msra.mxu0 %v19886_v6  ;;  %v12230_v31 = vshrl.u32 %v12147_v14, 16  ;;  %v12237_v6 = vshll.u32 %v22270_v32, 16  ;;  %v19949_v14 = vld [vmem:[#allocation21 + $0x400] ss:$16 sps:$4 sm:$0xff]  }
 0x8d0   :  { %12056 = vmatprep.subr.bf16.mxu1 %v19891_v7  ;;  %12109 = vmatprep.subr.bf16.mxu0 %v19894_v59  ;;  %v11695_v7 = vor.u32 %v11694_v50, %v11691_v16  ;;  %v19921_v59 = vld [vmem:[#allocation21 + $0x4a4] ss:$16 sps:$4 sm:$0xff]   ;;  %v19984_v50 = vld [vmem:[#allocation21 + $0x56c] ss:$16 sps:$4 sm:$0xff]  }
 0x8d1   :  { %v12235_v40 = vor.u32 %v12234_v42, %v12230_v31  ;;  %v19981_v16 = vld [vmem:[#allocation21 + $0x564] ss:$16 sps:$4 sm:$0xff]   ;;  %v19982_v42 = vld [vmem:[#allocation21 + $0x568] ss:$16 sps:$4 sm:$0xff]  }
 0x8d2   :  { %v12136_v31 = vld [vmem:[#allocation2 + $0x40] sm:$0xfe] }
 0x8d3   :  { %12057 = vmatpush2.bf16.msra.mxu1 %v19889_v12  ;;  %12110 = vmatpush2.bf16.msra.mxu0 %v19892_v1  ;;  %v22298_v12 = vrot.slane %v12237_v6, 1  ;;  %v11696_v1 = vsel %vm717_vm0, %v11669_v25, %v11695_v7  ;;  %v19966_v25 = vld [vmem:[#allocation21 + $0x5cc] ss:$16 sps:$4 sm:$0xff]   ;;  %v12140_v6 = vld [vmem:[#allocation2 + $0xc0] sm:$0xff]  ;;  %vm22385_vm0 = vmpackc.low %vm20890_vm2, %vm21148_vm6 }
 0x8d4   :  { %12058 = vmatprep.subr.bf16.mxu1 %v19897_v51  ;;  %12111 = vmatprep.subr.bf16.mxu0 %v19900_v43  ;;  %v19930_v51 = vld [vmem:[#allocation21 + $0x48c] ss:$16 sps:$4 sm:$0xff]   ;;  %v19985_v7 = vld [vmem:[#allocation21 + $0x540] ss:$16 sps:$4 sm:$0xff]  }
 0x8d5   :  { %v12240_v43 = vsel %vm1053_vm1, %v12235_v40, %v22298_v12  ;;  %v12145_v40 = vld [vmem:[#allocation2 + $0x148] sm:$0x1] }
 0x8d7   :  { %12059 = vmatpush2.bf16.msra.mxu1 %v19895_v34  ;;  %12112 = vmatpush2.bf16.msra.mxu0 %v19898_v10  ;;  %v19933_v34 = vld [vmem:[#allocation21 + $0x464] ss:$16 sps:$4 sm:$0xff]   ;;  %v19934_v10 = vld [vmem:[#allocation21 + $0x468] ss:$16 sps:$4 sm:$0xff]  }
 0x8d8   :  { %12060 = vmatprep.subr.bf16.mxu1 %v19903_v11  ;;  %12113 = vmatprep.subr.bf16.mxu0 %v19906_v30  ;;  %v19940_v11 = vld [vmem:[#allocation21 + $0x448] ss:$16 sps:$4 sm:$0xff]   ;;  %v19945_v30 = vld [vmem:[#allocation21 + $0x424] ss:$16 sps:$4 sm:$0xff]  }
 0x8db   :  { %12061 = vmatpush2.bf16.msra.mxu1 %v19901_v58  ;;  %12114 = vmatpush2.bf16.msra.mxu0 %v19904_v46  ;;  %v19952_v58 = vld [vmem:[#allocation21 + $0x408] ss:$16 sps:$4 sm:$0xff]   ;;  %v19957_v46 = vld [vmem:[#allocation21 + $0x5e4] ss:$16 sps:$4 sm:$0xff]  }
 0x8dc   :  { %12581 = vmatprep.subr.bf16.mxu1 %v19909_v21  ;;  %12634 = vmatprep.subr.bf16.mxu0 %v19912_v4  ;;  %v19958_v21 = vld [vmem:[#allocation21 + $0x5e8] ss:$16 sps:$4 sm:$0xff]   ;;  %v19963_v4 = vld [vmem:[#allocation21 + $0x5c4] ss:$16 sps:$4 sm:$0xff]  }
 0x8de   :  { %12063 = vmatmul.mubr.bf16.vlgmr.msra.gmra.mxu1 %v11670_v23  ;;  %12116 = vmatmul.mubr.bf16.vlgmr.msra.gmra.mxu0 %v11670_v23  ;;  %v19978_v23 = vld [vmem:[#allocation21 + $0x58c] ss:$16 sps:$4 sm:$0xff]  }
 0x8df   :  { %12072 = vmatprep.mubr.bf16.mxu1 %v11705_v20  ;;  %12125 = vmatprep.mubr.bf16.mxu0 %v11705_v20  ;;  %v19979_v20 = vld [vmem:[#allocation21 + $0x560] ss:$16 sps:$4 sm:$0xff]  }
 0x8e0   :  { %12582 = vmatpush1.bf16.msra.mxu1 %v19907_v29  ;;  %12635 = vmatpush1.bf16.msra.mxu0 %v19910_v33  ;;  %v19970_v29 = vld [vmem:[#allocation21 + $0x5a8] ss:$16 sps:$4 sm:$0xff]   ;;  %v19975_v33 = vld [vmem:[#allocation21 + $0x584] ss:$16 sps:$4 sm:$0xff]  }
 0x8e1   :  { %12583 = vmatprep.subr.bf16.mxu1 %v19915_v56  ;;  %12636 = vmatprep.subr.bf16.mxu0 %v19918_v2  ;;  %v19973_v56 = vld [vmem:[#allocation21 + $0x580] ss:$16 sps:$4 sm:$0xff]   ;;  %v19976_v2 = vld [vmem:[#allocation21 + $0x588] ss:$16 sps:$4 sm:$0xff]  }
 0x8e4   :  { %12584 = vmatpush1.bf16.msra.mxu1 %v19913_v38  ;;  %12637 = vmatpush1.bf16.msra.mxu0 %v19916_v49  ;;  %v19987_v38 = vld [vmem:[#allocation21 + $0x544] ss:$16 sps:$4 sm:$0xff]   ;;  %v19990_v49 = vld [vmem:[#allocation21 + $0x54c] ss:$16 sps:$4 sm:$0xff]  }
 0x8e5   :  { %12585 = vmatprep.subr.bf16.mxu1 %v19921_v59  ;;  %12638 = vmatprep.subr.bf16.mxu0 %v19924_v41  ;;  %v19988_v59 = vld [vmem:[#allocation21 + $0x548] ss:$16 sps:$4 sm:$0xff]   ;;  %v12146_v41 = vpack.c.bf16 %v22238_v0, %v12136_v31 }
 0x8e6   :  { %12073 = vmatmul.mubr.bf16.gmra.mxu1 %v11696_v1  ;;  %12126 = vmatmul.mubr.bf16.gmra.mxu0 %v11696_v1  ;;  %v12148_v1 = vpack.c.bf16 %v22238_v0, %v12140_v6  ;;  %v12249_v0 = vshrl.u32 %v22270_v32, 16  ;;  %v20035_v31 = vld [vmem:[#allocation24 + $0x44] ss:$16 sps:$4 sm:$0xff]  }
 0x8e7   :  { %12613 = vmatprep.mubr.bf16.mxu1 %v12240_v43  ;;  %12666 = vmatprep.mubr.bf16.mxu0 %v12240_v43  ;;  %v19994_v43 = vld [vmem:[#allocation21 + $0x528] ss:$16 sps:$4 sm:$0xff]  }
 0x8e8   :  { %12586 = vmatpush1.bf16.msra.mxu1 %v19919_v5  ;;  %12639 = vmatpush1.bf16.msra.mxu0 %v19922_v13  ;;  %v19993_v5 = vld [vmem:[#allocation21 + $0x524] ss:$16 sps:$4 sm:$0xff]   ;;  %v19996_v13 = vld [vmem:[#allocation21 + $0x52c] ss:$16 sps:$4 sm:$0xff]   ;;  %v20038_v6 = vld [vmem:[#allocation24 + $0x244] ss:$16 sps:$4 sm:$0xff]  }
 0x8e9   :  { %12587 = vmatprep.subr.bf16.mxu1 %v19927_v9  ;;  %12640 = vmatprep.subr.bf16.mxu0 %v19930_v51  ;;  %v12151_v9 = vpack.c.bf16 %v12145_v40, %v12145_v40  ;;  %v19991_v51 = vld [vmem:[#allocation21 + $0x520] ss:$16 sps:$4 sm:$0xff]   ;;  %v20044_v40 = vld [vmem:[#allocation24 + $0x224] ss:$16 sps:$4 sm:$0xff]  }
 0x8ec   :  { %12588 = vmatpush1.bf16.msra.mxu1 %v19925_v15  ;;  %12641 = vmatpush1.bf16.msra.mxu0 %v19928_v35  ;;  %v12220_v15 = vshll.u32 %v12146_v41, 16  ;;  %v19999_v35 = vld [vmem:[#allocation21 + $0x504] ss:$16 sps:$4 sm:$0xff]  }
 0x8ed   :  { %12589 = vmatprep.subr.bf16.mxu1 %v19933_v34  ;;  %12642 = vmatprep.subr.bf16.mxu0 %v19936_v27  ;;  %v20002_v34 = vld [vmem:[#allocation21 + $0x50c] ss:$16 sps:$4 sm:$0xff]   ;;  %v12225_v27 = vshll.u32 %v12148_v1, 16 }
 0x8f0   :  { %12590 = vmatpush1.bf16.msra.mxu1 %v19931_v24  ;;  %12643 = vmatpush1.bf16.msra.mxu0 %v19934_v10  ;;  %v12253_v24 = vshll.u32 %v12151_v9, 16  ;;  %v12144_v10 = vld [vmem:[#allocation2 + $0x140] sm:$0x1]  ;;  %v20050_v9 = vld [vmem:[#allocation24 + $0x204] ss:$16 sps:$4 sm:$0xff]  }
 0x8f1   :  { %12591 = vmatprep.subr.bf16.mxu1 %v19939_v52  ;;  %12644 = vmatprep.subr.bf16.mxu0 %v19942_v19  ;;  %v19997_v52 = vld [vmem:[#allocation21 + $0x500] ss:$16 sps:$4 sm:$0xff]   ;;  %v20000_v19 = vld [vmem:[#allocation21 + $0x508] ss:$16 sps:$4 sm:$0xff]  }
 0x8f4   :  { %12592 = vmatpush1.bf16.msra.mxu1 %v19937_v39  ;;  %12645 = vmatpush1.bf16.msra.mxu0 %v19940_v11  ;;  %v12222_v39 = vrot.slane %v12220_v15, 1  ;;  %v12218_v11 = vshrl.u32 %v12146_v41, 16  ;;  %v20041_v41 = vld [vmem:[#allocation24 + $0x24] ss:$16 sps:$4 sm:$0xff]  }
 0x8f5   :  { %12593 = vmatprep.subr.bf16.mxu1 %v19945_v30  ;;  %12646 = vmatprep.subr.bf16.mxu0 %v19948_v17  ;;  %v12227_v30 = vrot.slane %v12225_v27, 1  ;;  %v12150_v17 = vpack.c.bf16 %v12144_v10, %v12144_v10  ;;  %v20053_v15 = vld [vmem:[#allocation24 + $0x1e4] ss:$16 sps:$4 sm:$0xff]   ;;  %v20054_v27 = vld [vmem:[#allocation24 + $0x3e0] ss:$16 sps:$4 sm:$0xff]  }
 0x8f8   :  { %12594 = vmatpush1.bf16.msra.mxu1 %v19943_v8  ;;  %12647 = vmatpush1.bf16.msra.mxu0 %v19946_v44  ;;  %v12251_v8 = vor.u32 %v12249_v0, %v22298_v12  ;;  %v12255_v44 = vrot.slane %v12253_v24, 1  ;;  %v20003_v12 = vld [vmem:[#allocation24 + $0xe0] ss:$16 sps:$4 sm:$0xff]  }
 0x8f9   :  { %12595 = vmatprep.subr.bf16.mxu1 %v19951_v18  ;;  %12648 = vmatprep.subr.bf16.mxu0 %v19954_v37  ;;  %v12223_v18 = vor.u32 %v12222_v39, %v12218_v11 }
 0x8fb   :  { %v12228_v37 = vsel %vm1053_vm1, %v12223_v18, %v12227_v30  ;;  %v20062_v18 = vld [vmem:[#allocation24 + $0x3c4] ss:$16 sps:$4 sm:$0xff]  }
 0x8fc   :  { %12596 = vmatpush1.bf16.msra.mxu1 %v19949_v14  ;;  %12649 = vmatpush1.bf16.msra.mxu0 %v19952_v58  ;;  %v12245_v14 = vshll.u32 %v12150_v17, 16  ;;  %v12256_v58 = vsel %vm1053_vm1, %v12251_v8, %v12255_v44  ;;  %v20059_v44 = vld [vmem:[#allocation24 + $0x1c4] ss:$16 sps:$4 sm:$0xff]  }
 0x8fd   :  { %12597 = vmatprep.subr.bf16.mxu1 %v19957_v46  ;;  %12650 = vmatprep.subr.bf16.mxu0 %v19960_v54  ;;  %v12241_v46 = vshrl.u32 %v12148_v1, 16  ;;  %v20047_v1 = vld [vmem:[#allocation24 + $0x4] ss:$16 sps:$4 sm:$0xff]  }
 0x8fe   :  { %v12247_v54 = vrot.slane %v12245_v14, 1  ;;  %v20060_v14 = vld [vmem:[#allocation24 + $0x3c0] ss:$16 sps:$4 sm:$0xff]  }
 0x8ff   :  { %v12243_v32 = vor.u32 %v12241_v46, %v12227_v30 }
 0x900   :  { %12598 = vmatpush2.bf16.msra.mxu1 %v19955_v47  ;;  %12651 = vmatpush2.bf16.msra.mxu0 %v19958_v21  ;;  %v20005_v21 = vld [vmem:[#allocation24 + $0xe4] ss:$16 sps:$4 sm:$0xff]  }
 0x901   :  { %12599 = vmatprep.subr.bf16.mxu1 %v19963_v4  ;;  %12652 = vmatprep.subr.bf16.mxu0 %v19966_v25  ;;  %v12248_v47 = vsel %vm1053_vm1, %v12243_v32, %v12247_v54  ;;  %v20006_v4 = vld [vmem:[#allocation24 + $0x2e0] ss:$16 sps:$4 sm:$0xff]   ;;  %v20008_v25 = vld [vmem:[#allocation24 + $0x2e4] ss:$16 sps:$4 sm:$0xff]   ;;  %vm22422_vm1 = vmpackc.low %vm20890_vm2, %vm21167_vm11 }
 0x904   :  { %12600 = vmatpush2.bf16.msra.mxu1 %v19961_v36  ;;  %12653 = vmatpush2.bf16.msra.mxu0 %v19964_v22  ;;  %v20011_v36 = vld [vmem:[#allocation24 + $0xc4] ss:$16 sps:$4 sm:$0xff]  }
 0x905   :  { %12601 = vmatprep.subr.bf16.mxu1 %v19969_v28  ;;  %12654 = vmatprep.subr.bf16.mxu0 %v19972_v26  ;;  %v20014_v22 = vld [vmem:[#allocation24 + $0x2c4] ss:$16 sps:$4 sm:$0xff]   ;;  %v20009_v28 = vld [vmem:[#allocation24 + $0xc0] ss:$16 sps:$4 sm:$0xff]  }
 0x906   :  { %v20012_v26 = vld [vmem:[#allocation24 + $0x2c0] ss:$16 sps:$4 sm:$0xff]  }
 0x908   :  { %12602 = vmatpush2.bf16.msra.mxu1 %v19967_v62  ;;  %12655 = vmatpush2.bf16.msra.mxu0 %v19970_v29  ;;  %v20017_v62 = vld [vmem:[#allocation24 + $0xa4] ss:$16 sps:$4 sm:$0xff]  }
 0x909   :  { %12603 = vmatprep.subr.bf16.mxu1 %v19975_v33  ;;  %12656 = vmatprep.subr.bf16.mxu0 %v19978_v23  ;;  %v20020_v29 = vld [vmem:[#allocation24 + $0x2a4] ss:$16 sps:$4 sm:$0xff]   ;;  %v20015_v33 = vld [vmem:[#allocation24 + $0xa0] ss:$16 sps:$4 sm:$0xff]  }
 0x90a   :  { %v20018_v23 = vld [vmem:[#allocation24 + $0x2a0] ss:$16 sps:$4 sm:$0xff]  }
 0x90c   :  { %12604 = vmatpush2.bf16.msra.mxu1 %v19973_v56  ;;  %12657 = vmatpush2.bf16.msra.mxu0 %v19976_v2  ;;  %v20023_v56 = vld [vmem:[#allocation24 + $0x84] ss:$16 sps:$4 sm:$0xff]  }
 0x90d   :  { %12605 = vmatprep.subr.bf16.mxu1 %v19981_v16  ;;  %12658 = vmatprep.subr.bf16.mxu0 %v19984_v50  ;;  %v20026_v2 = vld [vmem:[#allocation24 + $0x284] ss:$16 sps:$4 sm:$0xff]   ;;  %v20021_v16 = vld [vmem:[#allocation24 + $0x80] ss:$16 sps:$4 sm:$0xff]  }
 0x90e   :  { %v20024_v50 = vld [vmem:[#allocation24 + $0x280] ss:$16 sps:$4 sm:$0xff]  }
 0x910   :  { %12606 = vmatpush2.bf16.msra.mxu1 %v19979_v20  ;;  %12659 = vmatpush2.bf16.msra.mxu0 %v19982_v42  ;;  %v20029_v20 = vld [vmem:[#allocation24 + $0x64] ss:$16 sps:$4 sm:$0xff]  }
 0x911   :  { %12607 = vmatprep.subr.bf16.mxu1 %v19987_v38  ;;  %12660 = vmatprep.subr.bf16.mxu0 %v19990_v49  ;;  %v20032_v42 = vld [vmem:[#allocation24 + $0x264] ss:$16 sps:$4 sm:$0xff]   ;;  %v20027_v38 = vld [vmem:[#allocation24 + $0x60] ss:$16 sps:$4 sm:$0xff]  }
 0x912   :  { %v20030_v49 = vld [vmem:[#allocation24 + $0x260] ss:$16 sps:$4 sm:$0xff]  }
 0x914   :  { %12608 = vmatpush2.bf16.msra.mxu1 %v19985_v7  ;;  %12661 = vmatpush2.bf16.msra.mxu0 %v19988_v59  ;;  %v20033_v7 = vld [vmem:[#allocation24 + $0x40] ss:$16 sps:$4 sm:$0xff]  }
 0x915   :  { %12609 = vmatprep.subr.bf16.mxu1 %v19993_v5  ;;  %12662 = vmatprep.subr.bf16.mxu0 %v19996_v13  ;;  %v20036_v59 = vld [vmem:[#allocation24 + $0x240] ss:$16 sps:$4 sm:$0xff]  }
 0x916   :  { %v20039_v5 = vld [vmem:[#allocation24 + $0x20] ss:$16 sps:$4 sm:$0xff]  }
 0x917   :  { %v20042_v13 = vld [vmem:[#allocation24 + $0x220] ss:$16 sps:$4 sm:$0xff]  }
 0x918   :  { %12610 = vmatpush2.bf16.msra.mxu1 %v19991_v51  ;;  %12663 = vmatpush2.bf16.msra.mxu0 %v19994_v43  ;;  %v20045_v51 = vld [vmem:[#allocation24] ss:$16 sps:$4 sm:$0xff]  }
 0x919   :  { %12611 = vmatprep.subr.bf16.mxu1 %v19999_v35  ;;  %12664 = vmatprep.subr.bf16.mxu0 %v20002_v34  ;;  %v20048_v43 = vld [vmem:[#allocation24 + $0x200] ss:$16 sps:$4 sm:$0xff]   ;;  %v20056_v35 = vld [vmem:[#allocation24 + $0x3e4] ss:$16 sps:$4 sm:$0xff]  }
 0x91a   :  { %v20051_v34 = vld [vmem:[#allocation24 + $0x1e0] ss:$16 sps:$4 sm:$0xff]  }
 0x91c   :  { %12612 = vmatpush2.bf16.msra.mxu1 %v19997_v52  ;;  %12665 = vmatpush2.bf16.msra.mxu0 %v20000_v19 }
 0x91d   :  { %13847 = vmatprep.subr.bf16.mxu1 %v20005_v21  ;;  %13900 = vmatprep.subr.bf16.mxu0 %v20008_v25  ;;  %v20063_v25 = vld [vmem:[#allocation24 + $0x1a0] ss:$16 sps:$4 sm:$0xff]  }
 0x91f   :  { %12614 = vmatmul.mubr.bf16.vlgmr.msra.gmra.mxu1 %v12228_v37  ;;  %12667 = vmatmul.mubr.bf16.vlgmr.msra.gmra.mxu0 %v12228_v37  ;;  %v20057_v37 = vld [vmem:[#allocation24 + $0x1c0] ss:$16 sps:$4 sm:$0xff]  }
 0x920   :  { %12623 = vmatprep.mubr.bf16.mxu1 %v12256_v58  ;;  %12676 = vmatprep.mubr.bf16.mxu0 %v12256_v58 }
 0x921   :  { %13848 = vmatpush1.bf16.msra.mxu1 %v20003_v12  ;;  %13901 = vmatpush1.bf16.msra.mxu0 %v20006_v4  ;;  %v20068_v12 = vld [vmem:[#allocation24 + $0x3a4] ss:$16 sps:$4 sm:$0xff]  }
 0x922   :  { %13849 = vmatprep.subr.bf16.mxu1 %v20011_v36  ;;  %13902 = vmatprep.subr.bf16.mxu0 %v20014_v22  ;;  %v20066_v36 = vld [vmem:[#allocation24 + $0x3a0] ss:$16 sps:$4 sm:$0xff]   ;;  %v20071_v22 = vld [vmem:[#allocation24 + $0x184] ss:$16 sps:$4 sm:$0xff]  }
 0x925   :  { %13850 = vmatpush1.bf16.msra.mxu1 %v20009_v28  ;;  %13903 = vmatpush1.bf16.msra.mxu0 %v20012_v26  ;;  %v20074_v28 = vld [vmem:[#allocation24 + $0x384] ss:$16 sps:$4 sm:$0xff]   ;;  %v20069_v26 = vld [vmem:[#allocation24 + $0x180] ss:$16 sps:$4 sm:$0xff]  }
 0x926   :  { %13851 = vmatprep.subr.bf16.mxu1 %v20017_v62  ;;  %13904 = vmatprep.subr.bf16.mxu0 %v20020_v29  ;;  %v20072_v62 = vld [vmem:[#allocation24 + $0x380] ss:$16 sps:$4 sm:$0xff]   ;;  %v20077_v29 = vld [vmem:[#allocation24 + $0x164] ss:$16 sps:$4 sm:$0xff]  }
 0x927   :  { %12624 = vmatmul.mubr.bf16.gmra.mxu1 %v12248_v47  ;;  %12677 = vmatmul.mubr.bf16.gmra.mxu0 %v12248_v47  ;;  %v20065_v47 = vld [vmem:[#allocation24 + $0x1a4] ss:$16 sps:$4 sm:$0xff]  }
 0x929   :  { %13852 = vmatpush1.bf16.msra.mxu1 %v20015_v33  ;;  %13905 = vmatpush1.bf16.msra.mxu0 %v20018_v23  ;;  %v20080_v33 = vld [vmem:[#allocation24 + $0x364] ss:$16 sps:$4 sm:$0xff]   ;;  %v20075_v23 = vld [vmem:[#allocation24 + $0x160] ss:$16 sps:$4 sm:$0xff]  }
 0x92a   :  { %13853 = vmatprep.subr.bf16.mxu1 %v20023_v56  ;;  %13906 = vmatprep.subr.bf16.mxu0 %v20026_v2  ;;  %v20078_v56 = vld [vmem:[#allocation24 + $0x360] ss:$16 sps:$4 sm:$0xff]   ;;  %v20083_v2 = vld [vmem:[#allocation24 + $0x144] ss:$16 sps:$4 sm:$0xff]  }
 0x92d   :  { %13854 = vmatpush1.bf16.msra.mxu1 %v20021_v16  ;;  %13907 = vmatpush1.bf16.msra.mxu0 %v20024_v50  ;;  %v20086_v16 = vld [vmem:[#allocation24 + $0x344] ss:$16 sps:$4 sm:$0xff]   ;;  %v20081_v50 = vld [vmem:[#allocation24 + $0x140] ss:$16 sps:$4 sm:$0xff]  }
 0x92e   :  { %13855 = vmatprep.subr.bf16.mxu1 %v20029_v20  ;;  %13908 = vmatprep.subr.bf16.mxu0 %v20032_v42  ;;  %v20084_v20 = vld [vmem:[#allocation24 + $0x340] ss:$16 sps:$4 sm:$0xff]  }
 0x92f   :  { %v20087_v42 = vld [vmem:[#allocation24 + $0x120] ss:$16 sps:$4 sm:$0xff]  }
 0x931   :  { %13856 = vmatpush1.bf16.msra.mxu1 %v20027_v38  ;;  %13909 = vmatpush1.bf16.msra.mxu0 %v20030_v49  ;;  %v20089_v38 = vld [vmem:[#allocation24 + $0x124] ss:$16 sps:$4 sm:$0xff]   ;;  %v20090_v49 = vld [vmem:[#allocation24 + $0x320] ss:$16 sps:$4 sm:$0xff]  }
 0x932   :  { %13857 = vmatprep.subr.bf16.mxu1 %v20035_v31  ;;  %13910 = vmatprep.subr.bf16.mxu0 %v20038_v6  ;;  %v20092_v31 = vld [vmem:[#allocation24 + $0x324] ss:$16 sps:$4 sm:$0xff]  }
 0x933   :  { %v20095_v6 = vld [vmem:[#allocation24 + $0x104] ss:$16 sps:$4 sm:$0xff]  }
 0x935   :  { %13858 = vmatpush1.bf16.msra.mxu1 %v20033_v7  ;;  %13911 = vmatpush1.bf16.msra.mxu0 %v20036_v59  ;;  %v20098_v7 = vld [vmem:[#allocation24 + $0x304] ss:$16 sps:$4 sm:$0xff]   ;;  %v20093_v59 = vld [vmem:[#allocation24 + $0x100] ss:$16 sps:$4 sm:$0xff]  }
 0x936   :  { %13859 = vmatprep.subr.bf16.mxu1 %v20041_v41  ;;  %13912 = vmatprep.subr.bf16.mxu0 %v20044_v40  ;;  %v20096_v41 = vld [vmem:[#allocation24 + $0x300] ss:$16 sps:$4 sm:$0xff]   ;;  %v20101_v40 = vld [vmem:[#allocation24 + $0xec] ss:$16 sps:$4 sm:$0xff]  }
 0x939   :  { %13860 = vmatpush1.bf16.msra.mxu1 %v20039_v5  ;;  %13913 = vmatpush1.bf16.msra.mxu0 %v20042_v13  ;;  %v20104_v5 = vld [vmem:[#allocation24 + $0x2ec] ss:$16 sps:$4 sm:$0xff]  }
 0x93a   :  { %13861 = vmatprep.subr.bf16.mxu1 %v20047_v1  ;;  %13914 = vmatprep.subr.bf16.mxu0 %v20050_v9 }
 0x93d   :  { %13862 = vmatpush1.bf16.msra.mxu1 %v20045_v51  ;;  %13915 = vmatpush1.bf16.msra.mxu0 %v20048_v43 }
 0x93e   :  { %13863 = vmatprep.subr.bf16.mxu1 %v20053_v15  ;;  %13916 = vmatprep.subr.bf16.mxu0 %v20056_v35 }
 0x941   :  { %13864 = vmatpush2.bf16.msra.mxu1 %v20051_v34  ;;  %13917 = vmatpush2.bf16.msra.mxu0 %v20054_v27 }
 0x942   :  { %13865 = vmatprep.subr.bf16.mxu1 %v20059_v44  ;;  %13918 = vmatprep.subr.bf16.mxu0 %v20062_v18 }
 0x945   :  { %13866 = vmatpush2.bf16.msra.mxu1 %v20057_v37  ;;  %13919 = vmatpush2.bf16.msra.mxu0 %v20060_v14 }
 0x946   :  { %13867 = vmatprep.subr.bf16.mxu1 %v20065_v47  ;;  %13920 = vmatprep.subr.bf16.mxu0 %v20068_v12  ;;  %v12703_v12 = vld [vmem:[#allocation22] sm:$0xf] }
 0x949   :  { %13868 = vmatpush2.bf16.msra.mxu1 %v20063_v25  ;;  %13921 = vmatpush2.bf16.msra.mxu0 %v20066_v36  ;;  %v12708_v25 = vrot.slane %v12703_v12, %v21188_v45 }
 0x94a   :  { %13869 = vmatprep.subr.bf16.mxu1 %v20071_v22  ;;  %13922 = vmatprep.subr.bf16.mxu0 %v20074_v28  ;;  %v12712_v22 = vrot.slane %v12703_v12, %v21193_v57 }
 0x94d   :  { %13870 = vmatpush2.bf16.msra.mxu1 %v20069_v26  ;;  %13923 = vmatpush2.bf16.msra.mxu0 %v20072_v62 }
 0x94e   :  { %13871 = vmatprep.subr.bf16.mxu1 %v20077_v29  ;;  %13924 = vmatprep.subr.bf16.mxu0 %v20080_v33 }
 0x951   :  { %13872 = vmatpush2.bf16.msra.mxu1 %v20075_v23  ;;  %13925 = vmatpush2.bf16.msra.mxu0 %v20078_v56 }
 0x952   :  { %13873 = vmatprep.subr.bf16.mxu1 %v20083_v2  ;;  %13926 = vmatprep.subr.bf16.mxu0 %v20086_v16 }
 0x955   :  { %13874 = vmatpush2.bf16.msra.mxu1 %v20081_v50  ;;  %13927 = vmatpush2.bf16.msra.mxu0 %v20084_v20 }
 0x956   :  { %13875 = vmatprep.subr.bf16.mxu1 %v20089_v38  ;;  %13928 = vmatprep.subr.bf16.mxu0 %v20092_v31 }
 0x959   :  { %13876 = vmatpush2.bf16.msra.mxu1 %v20087_v42  ;;  %13929 = vmatpush2.bf16.msra.mxu0 %v20090_v49 }
 0x95a   :  { %13877 = vmatprep.subr.bf16.mxu1 %v20095_v6  ;;  %13930 = vmatprep.subr.bf16.mxu0 %v20098_v7 }
 0x95d   :  { %13878 = vmatpush2.bf16.msra.mxu1 %v20093_v59  ;;  %13931 = vmatpush2.bf16.msra.mxu0 %v20096_v41 }
 0x95e   :  { %v22310_v24 = vpop.f32.mrf.mxu1  ;;  %v22312_v10 = vpop.f32.mrf.mxu0  ;;  %13953 = vmatprep.subr.bf16.mxu1 %v20101_v40  ;;  %14006 = vmatprep.subr.bf16.mxu0 %v20104_v5 }
 0x960   :  { %v22314_v52 = vpop.f32.mrf.mxu1  ;;  %v22316_v19 = vpop.f32.mrf.mxu0 }
 0x962   :  { %v11586_v39 = vpop.f32.mrf.mxu1  ;;  %v11639_v0 = vpop.f32.mrf.mxu0 }
 0x964   :  { %v11588_v11 = vpop.f32.mrf.mxu1  ;;  %v11641_v30 = vpop.f32.mrf.mxu0 }
 0x966   :  { %v22318_v17 = vpop.f32.mrf.mxu1  ;;  %v22320_v8 = vpop.f32.mrf.mxu0 }
 0x968   :  { %v22322_v58 = vpop.f32.mrf.mxu1  ;;  %v22324_v46 = vpop.f32.mrf.mxu0 }
 0x96a   :  { %v11596_v32 = vpop.f32.mrf.mxu1  ;;  %v11649_v54 = vpop.f32.mrf.mxu0 }
 0x96c   :  { %v11598_v21 = vpop.f32.mrf.mxu1  ;;  %v11651_v4 = vpop.f32.mrf.mxu0 }
 0x99e   :  { %v12064_v13 = vpop.f32.mrf.mxu1  ;;  %v12117_v1 = vpop.f32.mrf.mxu0 }
 0x99f   :  { %v12065_v21 = vadd.f32 %v12064_v13, %v22310_v24  ;;  %v12118_v4 = vadd.f32 %v12117_v1, %v22312_v10 }
 0x9a0   :  { %v12066_v9 = vpop.f32.mrf.mxu1  ;;  %v12119_v51 = vpop.f32.mrf.mxu0 }
 0x9a1   :  { %v12120_v28 = vadd.f32 %v12119_v51, %v22316_v19 }
 0x9a2   :  { %v12068_v43 = vpop.f32.mrf.mxu1  ;;  %v12121_v15 = vpop.f32.mrf.mxu0 }
 0x9a4   :  { %v12070_v35 = vpop.f32.mrf.mxu1  ;;  %v12123_v34 = vpop.f32.mrf.mxu0 }
 0x9a6   :  { %v12074_v27 = vpop.f32.mrf.mxu1  ;;  %v12127_v39 = vpop.f32.mrf.mxu0 }
 0x9a7   :  { %v12075_v0 = vadd.f32 %v12074_v27, %v22318_v17  ;;  %v12128_v11 = vadd.f32 %v12127_v39, %v22320_v8  ;;  %v12716_v17 = vrot.slane %v12703_v12, %v21278_v60  ;;  %v22346_v27 = vld [vmem:[#allocation2 + $0x20] sm:$0xff] }
 0x9a8   :  { %v12076_v30 = vpop.f32.mrf.mxu1  ;;  %v12129_v44 = vpop.f32.mrf.mxu0  ;;  %v22349_v39 = vrot.slane %v22346_v27, 1  ;;  %v22352_v53 = vrot.slane %v22346_v27, 2 }
 0x9a9   :  { %v12077_v18 = vadd.f32 %v12076_v30, %v22322_v58  ;;  %v12130_v37 = vadd.f32 %v12129_v44, %v22324_v46  ;;  %v12720_v58 = vrot.slane %v12703_v12, %v21281_v63  ;;  %v12067_v46 = vadd.f32 %v12066_v9, %v22314_v52 }
 0x9aa   :  { %v12078_v14 = vpop.f32.mrf.mxu1  ;;  %v12131_v32 = vpop.f32.mrf.mxu0 }
 0x9ac   :  { %v12080_v54 = vpop.f32.mrf.mxu1  ;;  %v12133_v47 = vpop.f32.mrf.mxu0 }
 0x9df   :  { %v12615_v8 = vpop.f32.mrf.mxu1  ;;  %v12668_v36 = vpop.f32.mrf.mxu0 }
 0x9e0   :  { %v12687_v26 = vadd.f32 %v12615_v8, %v12065_v21  ;;  %v12689_v62 = vadd.f32 %v12668_v36, %v12118_v4 }
 0x9e1   :  { %v12617_v29 = vpop.f32.mrf.mxu1  ;;  %v12670_v24 = vpop.f32.mrf.mxu0 }
 0x9e2   :  { %v12725_v33 = vadd.f32 %v12708_v25, %v12687_v26  ;;  %v12727_v10 = vadd.f32 %v12716_v17, %v12689_v62  ;;  %v12688_v23 = vadd.f32 %v12617_v29, %v12067_v46  ;;  %v12690_v56 = vadd.f32 %v12670_v24, %v12120_v28 }
 0x9e3   :  { %v12619_v2 = vpop.f32.mrf.mxu1  ;;  %v12672_v16 = vpop.f32.mrf.mxu0 }
 0x9e4   :  { %v12741_v50 = vmax.f32 %v12725_v33, 0.0  ;;  %v12743_v20 = vmax.f32 %v12727_v10, 0.0  ;;  %v12726_v42 = vadd.f32 %v12712_v22, %v12688_v23  ;;  %v12728_v38 = vadd.f32 %v12720_v58, %v12690_v56 }
 0x9e5   :  { %v12621_v49 = vpop.f32.mrf.mxu1  ;;  %v12674_v31 = vpop.f32.mrf.mxu0 }
 0x9e6   :  { %v12757_v52 = vsel %vm21141_vm5, %v12741_v50, 0.0  ;;  %v12759_v19 = vsel %vm21141_vm5, %v12743_v20, 0.0  ;;  %v12742_v6 = vmax.f32 %v12726_v42, 0.0  ;;  %v12744_v7 = vmax.f32 %v12728_v38, 0.0 }
 0x9e7   :  { %12773 = vst [vmem:[#allocation3 + $0x108] sm:$0xff] %v12757_v52  ;;  %12775 = vst [vmem:[#allocation3 + $0x90] sm:$0xff] %v12759_v19  ;;  %v12625_v59 = vpop.f32.mrf.mxu1  ;;  %v12678_v41 = vpop.f32.mrf.mxu0 }
 0x9e8   :  { %v12758_v40 = vsel %vm21141_vm5, %v12742_v6, 0.0  ;;  %v12760_v5 = vsel %vm21141_vm5, %v12744_v7, 0.0  ;;  %v12695_v13 = vadd.f32 %v12625_v59, %v12075_v0  ;;  %v12697_v1 = vadd.f32 %v12678_v41, %v12128_v11 }
 0x9e9   :  { %12774 = vst [vmem:[#allocation3 + $0x110] sm:$0xff] %v12758_v40  ;;  %12776 = vst [vmem:[#allocation3 + $0x118] sm:$0xff] %v12760_v5  ;;  %v12627_v9 = vpop.f32.mrf.mxu1  ;;  %v12680_v51 = vpop.f32.mrf.mxu0 }
 0x9ea   :  { %v12733_v43 = vadd.f32 %v12708_v25, %v12695_v13  ;;  %v12735_v15 = vadd.f32 %v12716_v17, %v12697_v1  ;;  %v12696_v44 = vadd.f32 %v12627_v9, %v12077_v18  ;;  %v12698_v14 = vadd.f32 %v12680_v51, %v12130_v37 }
 0x9eb   :  { %v12629_v35 = vpop.f32.mrf.mxu1  ;;  %v12682_v34 = vpop.f32.mrf.mxu0 }
 0x9ec   :  { %v12749_v30 = vmax.f32 %v12733_v43, 0.0  ;;  %v12751_v0 = vmax.f32 %v12735_v15, 0.0  ;;  %v12734_v28 = vadd.f32 %v12712_v22, %v12696_v44  ;;  %v12736_v26 = vadd.f32 %v12720_v58, %v12698_v14 }
 0x9ed   :  { %v12631_v11 = vpop.f32.mrf.mxu1  ;;  %v12684_v32 = vpop.f32.mrf.mxu0 }
 0x9ee   :  { %v12805_v54 = vld [vmem:[#allocation3 + $0x108] sm:$0xfe]  ;;  %v12807_v12 = vld [vmem:[#allocation3 + $0x90] sm:$0xfe]  ;;  %v12765_v8 = vsel %vm21159_vm10, %v12749_v30, 0.0  ;;  %v12767_v1 = vsel %vm21159_vm10, %v12751_v0, 0.0 }
 0x9ef   :  { %v12901_v47 = vld [vmem:[#allocation3 + $0x108] sm:$0xfc]  ;;  %v12833_v21 = vrot.slane %v12805_v54, 1  ;;  %v12839_v25 = vrot.slane %v12807_v12, 1  ;;  %v12903_v17 = vld [vmem:[#allocation3 + $0x90] sm:$0xfc] }
 0x9f0   :  { %v12917_v4 = vrot.slane %v12901_v47, 2  ;;  %v12923_v36 = vrot.slane %v12903_v17, 2  ;;  %v12806_v46 = vld [vmem:[#allocation3 + $0x110] sm:$0xfe]  ;;  %v12845_v37 = vrot.slane %v12765_v8, 1  ;;  %v12929_v13 = vrot.slane %v12765_v8, 2 }
 0x9f1   :  { %v12902_v18 = vld [vmem:[#allocation3 + $0x110] sm:$0xfc]  ;;  %v12835_v62 = vsel %vm4828_vm7, %v12833_v21, %v22349_v39  ;;  %v12841_v24 = vsel %vm4828_vm7, %v12839_v25, %v22349_v39  ;;  %v12836_v33 = vrot.slane %v12806_v46, 1  ;;  %v12808_v10 = vld [vmem:[#allocation3 + $0x118] sm:$0xfe]  ;;  %v12750_v9 = vmax.f32 %v12734_v28, 0.0 }
 0x9f2   :  { %v12919_v29 = vsel %vm4913_vm8, %v12917_v4, %v22352_v53  ;;  %v12904_v23 = vld [vmem:[#allocation3 + $0x118] sm:$0xfc]  ;;  %v12885_v56 = vmax.f32 %v12757_v52, %v12835_v62  ;;  %v12887_v2 = vmax.f32 %v12759_v19, %v12841_v24  ;;  %v12925_v16 = vsel %vm4913_vm8, %v12923_v36, %v22352_v53  ;;  %v20107_v32 = vld [vmem:[#allocation24 + $0xcc] ss:$16 sps:$4 sm:$0xff]  }
 0x9f3   :  { %v12920_v50 = vrot.slane %v12902_v18, 2  ;;  %v12838_v22 = vsel %vm4828_vm7, %v12836_v33, %v22349_v39  ;;  %v12842_v58 = vrot.slane %v12808_v10, 1  ;;  %v12926_v20 = vrot.slane %v12904_v23, 2  ;;  %v20099_v30 = vld [vmem:[#allocation24 + $0xe8] ss:$16 sps:$4 sm:$0xff]  }
 0x9f4   :  { %v12854_v42 = vsel %vm4828_vm7, %v12845_v37, %v22349_v39  ;;  %v12969_v38 = vmax.f32 %v12885_v56, %v12919_v29  ;;  %v12971_v49 = vmax.f32 %v12887_v2, %v12925_v16  ;;  %v12886_v31 = vmax.f32 %v12758_v40, %v12838_v22  ;;  %v20102_v12 = vld [vmem:[#allocation24 + $0x2e8] ss:$16 sps:$4 sm:$0xff]   ;;  %v20110_v36 = vld [vmem:[#allocation24 + $0x2cc] ss:$16 sps:$4 sm:$0xff]  }
 0x9f5   :  { %v12922_v6 = vsel %vm4913_vm8, %v12920_v50, %v22352_v53  ;;  %v12844_v52 = vsel %vm4828_vm7, %v12842_v58, %v22349_v39  ;;  %v12928_v19 = vsel %vm4913_vm8, %v12926_v20, %v22352_v53  ;;  %v12893_v7 = vmax.f32 %v12765_v8, %v12854_v42  ;;  %v20105_v8 = vld [vmem:[#allocation24 + $0xc8] ss:$16 sps:$4 sm:$0xff]   ;;  %v20113_v62 = vld [vmem:[#allocation24 + $0xac] ss:$16 sps:$4 sm:$0xff]  }
 0x9f6   :  { %v12970_v59 = vmax.f32 %v12886_v31, %v12922_v6  ;;  %v12888_v41 = vmax.f32 %v12760_v5, %v12844_v52  ;;  %v12752_v51 = vmax.f32 %v12736_v26, 0.0  ;;  %v12849_v40 = vrot.slane %v12767_v1, 1  ;;  %v20108_v56 = vld [vmem:[#allocation24 + $0x2c8] ss:$16 sps:$4 sm:$0xff]   ;;  %v20116_v2 = vld [vmem:[#allocation24 + $0x2ac] ss:$16 sps:$4 sm:$0xff]  }
 0x9f7   :  { %v12933_v15 = vrot.slane %v12767_v1, 2  ;;  %v12766_v35 = vsel %vm21159_vm10, %v12750_v9, 0.0  ;;  %v22393_v21 = vpack.c.bf16 %v22346_v27, %v12969_v38  ;;  %v12938_v17 = vsel %vm4913_vm8, %v12929_v13, %v22352_v53  ;;  %v20111_v16 = vld [vmem:[#allocation24 + $0xa8] ss:$16 sps:$4 sm:$0xff]   ;;  %v20119_v20 = vld [vmem:[#allocation24 + $0x8c] ss:$16 sps:$4 sm:$0xff]  }
 0x9f8   :  { %v12972_v43 = vmax.f32 %v12888_v41, %v12928_v19  ;;  %v12768_v34 = vsel %vm21159_vm10, %v12752_v51, 0.0  ;;  %v12858_v44 = vsel %vm4828_vm7, %v12849_v40, %v22349_v39  ;;  %v12847_v5 = vrot.slane %v12766_v35, 1  ;;  %v20114_v22 = vld [vmem:[#allocation24 + $0x2a8] ss:$16 sps:$4 sm:$0xff]   ;;  %v20122_v38 = vld [vmem:[#allocation24 + $0x28c] ss:$16 sps:$4 sm:$0xff]  }
 0x9f9   :  { %v12931_v14 = vrot.slane %v12766_v35, 2  ;;  %v12851_v11 = vrot.slane %v12768_v34, 1  ;;  %v12895_v0 = vmax.f32 %v12767_v1, %v12858_v44  ;;  %v12935_v54 = vrot.slane %v12768_v34, 2  ;;  %v20117_v31 = vld [vmem:[#allocation24 + $0x88] ss:$16 sps:$4 sm:$0xff]  }
 0x9fa   :  { %v20363_v61 = vpack.c.bf16 %v22346_v27, %v12970_v59  ;;  %v12856_v4 = vsel %vm4828_vm7, %v12847_v5, %v22349_v39  ;;  %v12977_v37 = vmax.f32 %v12893_v7, %v12938_v17  ;;  %v20369_v28 = vpack.c.bf16 %v22346_v27, %v12972_v43  ;;  %v20120_v6 = vld [vmem:[#allocation24 + $0x288] ss:$16 sps:$4 sm:$0xff]   ;;  %v20125_v52 = vld [vmem:[#allocation24 + $0x6c] ss:$16 sps:$4 sm:$0xff]  }
 0x9fb   :  { %v12860_v25 = vsel %vm4828_vm7, %v12851_v11, %v22349_v39  ;;  %v12894_v46 = vmax.f32 %v12766_v35, %v12856_v4  ;;  %v12940_v26 = vsel %vm4913_vm8, %v12931_v14, %v22352_v53  ;;  %v12944_v39 = vsel %vm4913_vm8, %v12935_v54, %v22352_v53  ;;  %v20128_v19 = vld [vmem:[#allocation24 + $0x26c] ss:$16 sps:$4 sm:$0xff]   ;;  %v20123_v7 = vld [vmem:[#allocation24 + $0x68] ss:$16 sps:$4 sm:$0xff]  }
 0x9fc   :  { %20364 = vmatprep.mubr.msk.bf16.mxu1 %vm22385_vm0, %v20363_v61  ;;  %v12896_v18 = vmax.f32 %v12768_v34, %v12860_v25  ;;  %20370 = vmatprep.mubr.msk.bf16.mxu0 %vm22385_vm0, %v20369_v28  ;;  %v12942_v29 = vsel %vm4913_vm8, %v12933_v15, %v22352_v53  ;;  %v22414_v24 = vpack.c.bf16 %v22346_v27, %v12971_v49  ;;  %v20126_v59 = vld [vmem:[#allocation24 + $0x268] ss:$16 sps:$4 sm:$0xff]   ;;  %v20131_v41 = vld [vmem:[#allocation24 + $0x4c] ss:$16 sps:$4 sm:$0xff]  }
 0x9fd   :  { %20367 = vmatmul.mubr.msk.bf16.vlgmr.msra.gmra.mxu1 %vm22385_vm0, %v22393_v21  ;;  %v12978_v33 = vmax.f32 %v12894_v46, %v12940_v26  ;;  %v12979_v23 = vmax.f32 %v12895_v0, %v12942_v29  ;;  %v22439_v42 = vpack.c.bf16 %v22346_v27, %v12977_v37  ;;  %v20134_v13 = vld [vmem:[#allocation24 + $0x24c] ss:$16 sps:$4 sm:$0xff]   ;;  %v20129_v1 = vld [vmem:[#allocation24 + $0x48] ss:$16 sps:$4 sm:$0xff]  }
 0x9fe   :  { %13954 = vmatpush1.bf16.msra.mxu1 %v20099_v30  ;;  %20373 = vmatmul.mubr.msk.bf16.vlgmr.msra.gmra.mxu0 %vm22385_vm0, %v22414_v24  ;;  %v12980_v10 = vmax.f32 %v12896_v18, %v12944_v39  ;;  %v20132_v9 = vld [vmem:[#allocation24 + $0x248] ss:$16 sps:$4 sm:$0xff]   ;;  %v20137_v51 = vld [vmem:[#allocation24 + $0x2c] ss:$16 sps:$4 sm:$0xff]  }
 0x9ff   :  { %13955 = vmatprep.subr.bf16.mxu1 %v20107_v32  ;;  %14007 = vmatpush1.bf16.msra.mxu0 %v20102_v12  ;;  %v22427_v50 = vpack.c.bf16 %v22346_v27, %v12978_v33  ;;  %v22445_v49 = vpack.c.bf16 %v22346_v27, %v12979_v23  ;;  %v20140_v43 = vld [vmem:[#allocation24 + $0x22c] ss:$16 sps:$4 sm:$0xff]   ;;  %v20135_v40 = vld [vmem:[#allocation24 + $0x28] ss:$16 sps:$4 sm:$0xff]  }
 0xa00   :  { %14008 = vmatprep.subr.bf16.mxu0 %v20110_v36  ;;  %v22433_v58 = vpack.c.bf16 %v22346_v27, %v12980_v10  ;;  %v20138_v15 = vld [vmem:[#allocation24 + $0x228] ss:$16 sps:$4 sm:$0xff]   ;;  %v20143_v35 = vld [vmem:[#allocation24 + $0xc] ss:$16 sps:$4 sm:$0xff]  }
 0xa01   :  { %20376 = vmatprep.mubr.msk.bf16.mxu1 %vm22422_vm1, %v22427_v50  ;;  %v20146_v34 = vld [vmem:[#allocation24 + $0x20c] ss:$16 sps:$4 sm:$0xff]   ;;  %v20141_v30 = vld [vmem:[#allocation24 + $0x8] ss:$16 sps:$4 sm:$0xff]  }
 0xa02   :  { %13956 = vmatpush1.bf16.msra.mxu1 %v20105_v8  ;;  %20379 = vmatprep.mubr.msk.bf16.mxu0 %vm22422_vm1, %v22433_v58  ;;  %v20144_v44 = vld [vmem:[#allocation24 + $0x208] ss:$16 sps:$4 sm:$0xff]   ;;  %v20149_v5 = vld [vmem:[#allocation24 + $0x1ec] ss:$16 sps:$4 sm:$0xff]  }
 0xa03   :  { %13957 = vmatprep.subr.bf16.mxu1 %v20113_v62  ;;  %14009 = vmatpush1.bf16.msra.mxu0 %v20108_v56  ;;  %v20152_v14 = vld [vmem:[#allocation24 + $0x3ec] ss:$16 sps:$4 sm:$0xff]   ;;  %v20147_v11 = vld [vmem:[#allocation24 + $0x1e8] ss:$16 sps:$4 sm:$0xff]  }
 0xa04   :  { %14010 = vmatprep.subr.bf16.mxu0 %v20116_v2  ;;  %v20150_v32 = vld [vmem:[#allocation24 + $0x3e8] ss:$16 sps:$4 sm:$0xff]   ;;  %v20155_v0 = vld [vmem:[#allocation24 + $0x1cc] ss:$16 sps:$4 sm:$0xff]  }
 0xa05   :  { %20382 = vmatmul.mubr.msk.bf16.gmra.mxu1 %vm22422_vm1, %v22439_v42  ;;  %v20158_v54 = vld [vmem:[#allocation24 + $0x3cc] ss:$16 sps:$4 sm:$0xff]   ;;  %v20156_v12 = vld [vmem:[#allocation24 + $0x3c8] ss:$16 sps:$4 sm:$0xff]  }
 0xa06   :  { %20385 = vmatmul.mubr.msk.bf16.gmra.mxu0 %vm22422_vm1, %v22445_v49  ;;  %13958 = vmatpush1.bf16.msra.mxu1 %v20111_v16  ;;  %v20161_v4 = vld [vmem:[#allocation24 + $0x1ac] ss:$16 sps:$4 sm:$0xff]   ;;  %v20159_v17 = vld [vmem:[#allocation24 + $0x1a8] ss:$16 sps:$4 sm:$0xff]  }
 0xa07   :  { %14011 = vmatpush1.bf16.msra.mxu0 %v20114_v22  ;;  %20388 = vmatprep.mubr.msk.bf16.mxu1 %vm22385_vm0, %v20363_v61  ;;  %v20153_v61 = vld [vmem:[#allocation24 + $0x1c8] ss:$16 sps:$4 sm:$0xff]   ;;  %v20164_v25 = vld [vmem:[#allocation24 + $0x3ac] ss:$16 sps:$4 sm:$0xff]  }
 0xa08   :  { %20391 = vmatprep.mubr.msk.bf16.mxu0 %vm22385_vm0, %v20369_v28  ;;  %13959 = vmatprep.subr.bf16.mxu1 %v20119_v20  ;;  %v20162_v8 = vld [vmem:[#allocation24 + $0x3a8] ss:$16 sps:$4 sm:$0xff]   ;;  %v20167_v36 = vld [vmem:[#allocation24 + $0x18c] ss:$16 sps:$4 sm:$0xff]  }
 0xa09   :  { %14012 = vmatprep.subr.bf16.mxu0 %v20122_v38  ;;  %v20170_v46 = vld [vmem:[#allocation24 + $0x38c] ss:$16 sps:$4 sm:$0xff]   ;;  %v20165_v18 = vld [vmem:[#allocation24 + $0x188] ss:$16 sps:$4 sm:$0xff]  }
 0xa0a   :  { %13960 = vmatpush1.bf16.msra.mxu1 %v20117_v31  ;;  %v20168_v37 = vld [vmem:[#allocation24 + $0x388] ss:$16 sps:$4 sm:$0xff]   ;;  %v20173_v28 = vld [vmem:[#allocation24 + $0x16c] ss:$16 sps:$4 sm:$0xff]  }
 0xa0b   :  { %14013 = vmatpush1.bf16.msra.mxu0 %v20120_v6  ;;  %13961 = vmatprep.subr.bf16.mxu1 %v20125_v52  ;;  %v20176_v26 = vld [vmem:[#allocation24 + $0x36c] ss:$16 sps:$4 sm:$0xff]   ;;  %v20171_v39 = vld [vmem:[#allocation24 + $0x168] ss:$16 sps:$4 sm:$0xff]  }
 0xa0c   :  { %14014 = vmatprep.subr.bf16.mxu0 %v20128_v19  ;;  %v20174_v62 = vld [vmem:[#allocation24 + $0x368] ss:$16 sps:$4 sm:$0xff]   ;;  %v20179_v29 = vld [vmem:[#allocation24 + $0x14c] ss:$16 sps:$4 sm:$0xff]  }
 0xa0d   :  { %v20182_v33 = vld [vmem:[#allocation24 + $0x34c] ss:$16 sps:$4 sm:$0xff]   ;;  %v20177_v10 = vld [vmem:[#allocation24 + $0x148] ss:$16 sps:$4 sm:$0xff]  }
 0xa0e   :  { %13962 = vmatpush1.bf16.msra.mxu1 %v20123_v7  ;;  %v20180_v23 = vld [vmem:[#allocation24 + $0x348] ss:$16 sps:$4 sm:$0xff]   ;;  %v20185_v56 = vld [vmem:[#allocation24 + $0x12c] ss:$16 sps:$4 sm:$0xff]  }
 0xa0f   :  { %14015 = vmatpush1.bf16.msra.mxu0 %v20126_v59  ;;  %13963 = vmatprep.subr.bf16.mxu1 %v20131_v41  ;;  %v20188_v2 = vld [vmem:[#allocation24 + $0x32c] ss:$16 sps:$4 sm:$0xff]   ;;  %v20183_v16 = vld [vmem:[#allocation24 + $0x128] ss:$16 sps:$4 sm:$0xff]  }
 0xa10   :  { %14016 = vmatprep.subr.bf16.mxu0 %v20134_v13  ;;  %v20186_v22 = vld [vmem:[#allocation24 + $0x328] ss:$16 sps:$4 sm:$0xff]   ;;  %v20191_v20 = vld [vmem:[#allocation24 + $0x10c] ss:$16 sps:$4 sm:$0xff]  }
 0xa11   :  { %v20194_v38 = vld [vmem:[#allocation24 + $0x30c] ss:$16 sps:$4 sm:$0xff]   ;;  %v14187_v31 = vld [vmem:[#allocation27 + $0x1c0] sm:$0xff] }
 0xa12   :  { %13964 = vmatpush1.bf16.msra.mxu1 %v20129_v1  ;;  %v14191_v6 = vld [vmem:[#allocation27 + $0x1e0] sm:$0xff] }
 0xa13   :  { %14017 = vmatpush1.bf16.msra.mxu0 %v20132_v9  ;;  %13965 = vmatprep.subr.bf16.mxu1 %v20137_v51  ;;  %v20189_v52 = vld [vmem:[#allocation24 + $0x108] ss:$16 sps:$4 sm:$0xff]   ;;  %v17763_v7 = vcombine.high %v14187_v31, %v14191_v6  ;;  %v17762_v13 = vcombine.low %v14187_v31, %v14191_v6 }
 0xa14   :  { %14018 = vmatprep.subr.bf16.mxu0 %v20140_v43  ;;  %v20192_v19 = vld [vmem:[#allocation24 + $0x308] ss:$16 sps:$4 sm:$0xff]  }
 0xa15   :  { %v14179_v59 = vld [vmem:[#allocation27 + $0x180] sm:$0xff] }
 0xa16   :  { %13966 = vmatpush1.bf16.msra.mxu1 %v20135_v40  ;;  %v14183_v41 = vld [vmem:[#allocation27 + $0x1a0] sm:$0xff] }
 0xa17   :  { %14019 = vmatpush1.bf16.msra.mxu0 %v20138_v15  ;;  %13967 = vmatprep.subr.bf16.mxu1 %v20143_v35  ;;  %v17755_v1 = vcombine.high %v14179_v59, %v14183_v41  ;;  %v14171_v9 = vld [vmem:[#allocation27 + $0x140] sm:$0xff]  ;;  %v17754_v43 = vcombine.low %v14179_v59, %v14183_v41 }
 0xa18   :  { %14020 = vmatprep.subr.bf16.mxu0 %v20146_v34  ;;  %v14175_v51 = vld [vmem:[#allocation27 + $0x160] sm:$0xff] }
 0xa19   :  { %v17747_v40 = vcombine.high %v14171_v9, %v14175_v51  ;;  %v14163_v15 = vld [vmem:[#allocation27 + $0x100] sm:$0xff]  ;;  %v17746_v35 = vcombine.low %v14171_v9, %v14175_v51 }
 0xa1a   :  { %13968 = vmatpush1.bf16.msra.mxu1 %v20141_v30  ;;  %v14243_v31 = vld [vmem:[#allocation27 + $0x380] sm:$0xff] }
 0xa1b   :  { %14021 = vmatpush1.bf16.msra.mxu0 %v20144_v44  ;;  %13969 = vmatprep.subr.bf16.mxu1 %v20149_v5  ;;  %v14147_v44 = vld [vmem:[#allocation27 + $0x80] sm:$0xff] }
 0xa1c   :  { %14022 = vmatprep.subr.bf16.mxu0 %v20152_v14  ;;  %v14151_v5 = vld [vmem:[#allocation27 + $0xa0] sm:$0xff] }
 0xa1d   :  { %v14239_v51 = vld [vmem:[#allocation27 + $0x360] sm:$0xff] }
 0xa1e   :  { %13970 = vmatpush2.bf16.msra.mxu1 %v20147_v11  ;;  %v17723_v11 = vcombine.high %v14147_v44, %v14151_v5 }
 0xa1f   :  { %14023 = vmatpush2.bf16.msra.mxu0 %v20150_v32  ;;  %13971 = vmatprep.subr.bf16.mxu1 %v20155_v0  ;;  %v14139_v32 = vld [vmem:[#allocation27 + $0x40] sm:$0xff] }
 0xa20   :  { %14024 = vmatprep.subr.bf16.mxu0 %v20158_v54  ;;  %v14143_v0 = vld [vmem:[#allocation27 + $0x60] sm:$0xff] }
 0xa21   :  { %v14315_v54 = vld [vmem:[#allocation27 + $0x5c0] sm:$0xff] }
 0xa22   :  { %13972 = vmatpush2.bf16.msra.mxu1 %v20153_v61  ;;  %v14319_v61 = vld [vmem:[#allocation27 + $0x5e0] sm:$0xff] }
 0xa23   :  { %14025 = vmatpush2.bf16.msra.mxu0 %v20156_v12  ;;  %13973 = vmatprep.subr.bf16.mxu1 %v20161_v4  ;;  %v22472_v12 = vld [vmem:[#allocation27 + $0x1c8] sm:$0xff]  ;;  %v17890_v4 = vcombine.low %v14315_v54, %v14319_v61 }
 0xa24   :  { %14026 = vmatprep.subr.bf16.mxu0 %v20164_v25  ;;  %v17891_v25 = vcombine.high %v14315_v54, %v14319_v61  ;;  %v14263_v54 = vld [vmem:[#allocation27 + $0x420] sm:$0xff] }
 0xa26   :  { %13974 = vmatpush2.bf16.msra.mxu1 %v20159_v17  ;;  %v22474_v17 = vld [vmem:[#allocation27 + $0x1e8] sm:$0xff] }
 0xa27   :  { %14027 = vmatpush2.bf16.msra.mxu0 %v20162_v8  ;;  %13975 = vmatprep.subr.bf16.mxu1 %v20167_v36  ;;  %v14307_v8 = vld [vmem:[#allocation27 + $0x580] sm:$0xff] }
 0xa28   :  { %14028 = vmatprep.subr.bf16.mxu0 %v20170_v46  ;;  %v14311_v36 = vld [vmem:[#allocation27 + $0x5a0] sm:$0xff] }
 0xa29   :  { %v14131_v46 = vld [vmem:[#allocation27] sm:$0xff] }
 0xa2a   :  { %13976 = vmatpush2.bf16.msra.mxu1 %v20165_v18  ;;  %v14135_v18 = vld [vmem:[#allocation27 + $0x20] sm:$0xff] }
 0xa2b   :  { %14029 = vmatpush2.bf16.msra.mxu0 %v20168_v37  ;;  %13977 = vmatprep.subr.bf16.mxu1 %v20173_v28  ;;  %v17764_v37 = vcombine.low %v22472_v12, %v22474_v17  ;;  %v17883_v28 = vcombine.high %v14307_v8, %v14311_v36 }
 0xa2c   :  { %14030 = vmatprep.subr.bf16.mxu0 %v20176_v26  ;;  %v14299_v26 = vld [vmem:[#allocation27 + $0x540] sm:$0xff] }
 0xa2e   :  { %13978 = vmatpush2.bf16.msra.mxu1 %v20171_v39  ;;  %v14303_v39 = vld [vmem:[#allocation27 + $0x560] sm:$0xff] }
 0xa2f   :  { %14031 = vmatpush2.bf16.msra.mxu0 %v20174_v62  ;;  %13979 = vmatprep.subr.bf16.mxu1 %v20179_v29  ;;  %v17714_v62 = vcombine.low %v14139_v32, %v14143_v0  ;;  %v17882_v29 = vcombine.low %v14307_v8, %v14311_v36  ;;  %v14215_v36 = vld [vmem:[#allocation27 + $0x2a0] sm:$0xff] }
 0xa30   :  { %14032 = vmatprep.subr.bf16.mxu0 %v20182_v33  ;;  %v17707_v33 = vcombine.high %v14131_v46, %v14135_v18 }
 0xa32   :  { %13980 = vmatpush2.bf16.msra.mxu1 %v20177_v10  ;;  %v14251_v10 = vld [vmem:[#allocation27 + $0x3c0] sm:$0xff] }
 0xa33   :  { %14033 = vmatpush2.bf16.msra.mxu0 %v20180_v23  ;;  %13981 = vmatprep.subr.bf16.mxu1 %v20185_v56  ;;  %v17875_v23 = vcombine.high %v14299_v26, %v14303_v39  ;;  %v14255_v56 = vld [vmem:[#allocation27 + $0x3e0] sm:$0xff] }
 0xa34   :  { %14034 = vmatprep.subr.bf16.mxu0 %v20188_v2  ;;  %v14291_v2 = vld [vmem:[#allocation27 + $0x500] sm:$0xff]  ;;  %v17826_v59 = vcombine.low %v14251_v10, %v14255_v56 }
 0xa36   :  { %13982 = vmatpush2.bf16.msra.mxu1 %v20183_v16  ;;  %v14295_v16 = vld [vmem:[#allocation27 + $0x520] sm:$0xff] }
 0xa37   :  { %14035 = vmatpush2.bf16.msra.mxu0 %v20186_v22  ;;  %13983 = vmatprep.subr.bf16.mxu1 %v20191_v20  ;;  %v17706_v22 = vcombine.low %v14131_v46, %v14135_v18  ;;  %v17874_v20 = vcombine.low %v14299_v26, %v14303_v39  ;;  %v17867_v6 = vcombine.high %v14291_v2, %v14295_v16  ;;  %v14379_v46 = vld [vmem:[#allocation27 + $0x7c0] sm:$0xff] }
 0xa38   :  { %14036 = vmatprep.subr.bf16.mxu0 %v20194_v38  ;;  %v17827_v38 = vcombine.high %v14251_v10, %v14255_v56  ;;  %v17866_v41 = vcombine.low %v14291_v2, %v14295_v16  ;;  %v14383_v18 = vld [vmem:[#allocation27 + $0x7e0] sm:$0xff] }
 0xa39   :  { %v14371_v10 = vld [vmem:[#allocation27 + $0x780] sm:$0xff]  ;;  %v17954_v2 = vcombine.low %v14379_v46, %v14383_v18 }
 0xa3a   :  { %13984 = vmatpush2.bf16.msra.mxu1 %v20189_v52  ;;  %v14247_v52 = vld [vmem:[#allocation27 + $0x3a0] sm:$0xff] }
 0xa3b   :  { %14037 = vmatpush2.bf16.msra.mxu0 %v20192_v19  ;;  %15709 = vmatprep.subr.bf16.mxu1 %v17763_v7  ;;  %v14283_v19 = vld [vmem:[#allocation27 + $0x4c0] sm:$0xff] }
 0xa3c   :  { %15762 = vmatprep.subr.bf16.mxu0 %v17891_v25  ;;  %v14287_v7 = vld [vmem:[#allocation27 + $0x4e0] sm:$0xff] }
 0xa3d   :  { %20394 = vmatmul.mubr.msk.bf16.vlgmr.msra.gmra.mxu1 %vm22385_vm0, %v22393_v21  ;;  %v14167_v21 = vld [vmem:[#allocation27 + $0x120] sm:$0xff]  ;;  %v17859_v9 = vcombine.high %v14283_v19, %v14287_v7 }
 0xa3e   :  { %20397 = vmatmul.mubr.msk.bf16.vlgmr.msra.gmra.mxu0 %vm22385_vm0, %v22414_v24  ;;  %20400 = vmatprep.mubr.msk.bf16.mxu1 %vm22422_vm1, %v22427_v50  ;;  %v17739_v34 = vcombine.high %v14163_v15, %v14167_v21  ;;  %v14155_v24 = vld [vmem:[#allocation27 + $0xc0] sm:$0xff] }
 0xa3f   :  { %20403 = vmatprep.mubr.msk.bf16.mxu0 %vm22422_vm1, %v22433_v58  ;;  %15710 = vmatpush1.bf16.msra.mxu1 %v17762_v13  ;;  %v14159_v50 = vld [vmem:[#allocation27 + $0xe0] sm:$0xff]  ;;  %v17738_v58 = vcombine.low %v14163_v15, %v14167_v21  ;;  %v17819_v13 = vcombine.high %v14243_v31, %v14247_v52  ;;  %v17818_v15 = vcombine.low %v14243_v31, %v14247_v52 }
 0xa40   :  { %15711 = vmatprep.subr.bf16.mxu1 %v17755_v1  ;;  %v17731_v30 = vcombine.high %v14155_v24, %v14159_v50  ;;  %v17730_v14 = vcombine.low %v14155_v24, %v14159_v50  ;;  %15763 = vmatpush1.bf16.msra.mxu0 %v17890_v4  ;;  %v14235_v1 = vld [vmem:[#allocation27 + $0x340] sm:$0xff]  ;;  %v17858_v21 = vcombine.low %v14283_v19, %v14287_v7 }
 0xa41   :  { %15764 = vmatprep.subr.bf16.mxu0 %v17883_v28  ;;  %v14231_v50 = vld [vmem:[#allocation27 + $0x320] sm:$0xff] }
 0xa42   :  { %v14211_v25 = vld [vmem:[#allocation27 + $0x280] sm:$0xff] }
 0xa43   :  { %15712 = vmatpush1.bf16.msra.mxu1 %v17754_v43  ;;  %v14275_v43 = vld [vmem:[#allocation27 + $0x480] sm:$0xff]  ;;  %v17787_v39 = vcombine.high %v14211_v25, %v14215_v36  ;;  %v17786_v56 = vcombine.low %v14211_v25, %v14215_v36 }
 0xa44   :  { %15713 = vmatprep.subr.bf16.mxu1 %v17747_v40  ;;  %15765 = vmatpush1.bf16.msra.mxu0 %v17882_v29  ;;  %v14279_v40 = vld [vmem:[#allocation27 + $0x4a0] sm:$0xff]  ;;  %v17955_v29 = vcombine.high %v14379_v46, %v14383_v18 }
 0xa45   :  { %20406 = vmatmul.mubr.msk.bf16.gmra.mxu1 %vm22422_vm1, %v22439_v42  ;;  %v17722_v42 = vcombine.low %v14147_v44, %v14151_v5  ;;  %15766 = vmatprep.subr.bf16.mxu0 %v17875_v23  ;;  %v17851_v24 = vcombine.high %v14275_v43, %v14279_v40  ;;  %v17810_v44 = vcombine.low %v14235_v1, %v14239_v51  ;;  %v14375_v23 = vld [vmem:[#allocation27 + $0x7a0] sm:$0xff] }
 0xa46   :  { %20409 = vmatmul.mubr.msk.bf16.gmra.mxu0 %vm22422_vm1, %v22445_v49  ;;  %v17715_v49 = vcombine.high %v14139_v32, %v14143_v0  ;;  %v17850_v5 = vcombine.low %v14275_v43, %v14279_v40  ;;  %v14223_v0 = vld [vmem:[#allocation27 + $0x2e0] sm:$0xff]  ;;  %v17946_v19 = vcombine.low %v14371_v10, %v14375_v23 }
 0xa47   :  { %15714 = vmatpush1.bf16.msra.mxu1 %v17746_v35  ;;  %v17811_v35 = vcombine.high %v14235_v1, %v14239_v51  ;;  %v14363_v31 = vld [vmem:[#allocation27 + $0x740] sm:$0xff]  ;;  %v17765_v1 = vcombine.high %v22472_v12, %v22474_v17 }
 0xa48   :  { %15715 = vmatprep.subr.bf16.mxu1 %v17739_v34  ;;  %15767 = vmatpush1.bf16.msra.mxu0 %v17874_v20  ;;  %v14227_v34 = vld [vmem:[#allocation27 + $0x300] sm:$0xff]  ;;  %v17947_v20 = vcombine.high %v14371_v10, %v14375_v23 }
 0xa49   :  { %15768 = vmatprep.subr.bf16.mxu0 %v17867_v6  ;;  %v17802_v61 = vcombine.low %v14227_v34, %v14231_v50  ;;  %v14367_v6 = vld [vmem:[#allocation27 + $0x760] sm:$0xff] }
 0xa4a   :  { %v14359_v51 = vld [vmem:[#allocation27 + $0x720] sm:$0xff] }
 0xa4b   :  { %15716 = vmatpush1.bf16.msra.mxu1 %v17738_v58  ;;  %v14267_v58 = vld [vmem:[#allocation27 + $0x440] sm:$0xff] }
 0xa4c   :  { %15717 = vmatprep.subr.bf16.mxu1 %v17731_v30  ;;  %15769 = vmatpush1.bf16.msra.mxu0 %v17866_v41  ;;  %v14271_v30 = vld [vmem:[#allocation27 + $0x460] sm:$0xff] }
 0xa4d   :  { %15770 = vmatprep.subr.bf16.mxu0 %v17859_v9  ;;  %v17843_v32 = vcombine.high %v14267_v58, %v14271_v30  ;;  %v14355_v9 = vld [vmem:[#allocation27 + $0x700] sm:$0xff] }
 0xa4e   :  { %v17931_v43 = vcombine.high %v14355_v9, %v14359_v51  ;;  %v17930_v40 = vcombine.low %v14355_v9, %v14359_v51 }
 0xa4f   :  { %15718 = vmatpush1.bf16.msra.mxu1 %v17730_v14  ;;  %v17803_v14 = vcombine.high %v14227_v34, %v14231_v50  ;;  %v14343_v50 = vld [vmem:[#allocation27 + $0x6a0] sm:$0xff] }
 0xa50   :  { %15719 = vmatprep.subr.bf16.mxu1 %v17723_v11  ;;  %15771 = vmatpush1.bf16.msra.mxu0 %v17858_v21  ;;  %v14219_v11 = vld [vmem:[#allocation27 + $0x2c0] sm:$0xff] }
 0xa51   :  { %15772 = vmatprep.subr.bf16.mxu0 %v17851_v24  ;;  %v17795_v4 = vcombine.high %v14219_v11, %v14223_v0  ;;  %v17794_v28 = vcombine.low %v14219_v11, %v14223_v0  ;;  %v14351_v21 = vld [vmem:[#allocation27 + $0x6e0] sm:$0xff] }
 0xa52   :  { %v14339_v24 = vld [vmem:[#allocation27 + $0x680] sm:$0xff] }
 0xa53   :  { %15720 = vmatpush1.bf16.msra.mxu1 %v17722_v42  ;;  %v14259_v42 = vld [vmem:[#allocation27 + $0x400] sm:$0xff] }
 0xa54   :  { %15721 = vmatprep.subr.bf16.mxu1 %v17715_v49  ;;  %15773 = vmatpush1.bf16.msra.mxu0 %v17850_v5  ;;  %v17842_v49 = vcombine.low %v14267_v58, %v14271_v30  ;;  %v17835_v8 = vcombine.high %v14259_v42, %v14263_v54  ;;  %v17834_v26 = vcombine.low %v14259_v42, %v14263_v54  ;;  %v14335_v5 = vld [vmem:[#allocation27 + $0x660] sm:$0xff] }
 0xa55   :  { %15774 = vmatprep.subr.bf16.mxu0 %v17843_v32  ;;  %v17915_v58 = vcombine.high %v14339_v24, %v14343_v50  ;;  %v17914_v30 = vcombine.low %v14339_v24, %v14343_v50  ;;  %v14323_v32 = vld [vmem:[#allocation27 + $0x600] sm:$0xff] }
 0xa56   :  { %v14327_v0 = vld [vmem:[#allocation27 + $0x620] sm:$0xff] }
 0xa57   :  { %15722 = vmatpush1.bf16.msra.mxu1 %v17714_v62  ;;  %v14203_v62 = vld [vmem:[#allocation27 + $0x240] sm:$0xff]  ;;  %v17899_v42 = vcombine.high %v14323_v32, %v14327_v0  ;;  %v17898_v54 = vcombine.low %v14323_v32, %v14327_v0  ;;  %v14164_v32 = vld [vmem:[#allocation27 + $0x108] sm:$0xff] }
 0xa58   :  { %15723 = vmatprep.subr.bf16.mxu1 %v17707_v33  ;;  %15775 = vmatpush1.bf16.msra.mxu0 %v17842_v49  ;;  %v14207_v33 = vld [vmem:[#allocation27 + $0x260] sm:$0xff]  ;;  %v22482_v49 = vld [vmem:[#allocation27 + $0x5e8] sm:$0xff] }
 0xa59   :  { %15776 = vmatprep.subr.bf16.mxu0 %v17835_v8  ;;  %v17779_v16 = vcombine.high %v14203_v62, %v14207_v33  ;;  %v17778_v52 = vcombine.low %v14203_v62, %v14207_v33  ;;  %v22488_v8 = vld [vmem:[#allocation25] sm:$0xf]  ;;  %v14168_v0 = vld [vmem:[#allocation27 + $0x128] sm:$0xff] }
 0xa5a   :  { %v13190_v36 = vrot.slane %v22488_v8, %v21188_v45  ;;  %v13194_v46 = vrot.slane %v22488_v8, %v21193_v57  ;;  %v17741_v12 = vcombine.high %v14164_v32, %v14168_v0 }
 0xa5b   :  { %15724 = vmatpush1.bf16.msra.mxu1 %v17706_v22  ;;  %v14195_v22 = vld [vmem:[#allocation27 + $0x200] sm:$0xff] }
 0xa5c   :  { %15725 = vmatprep.subr.bf16.mxu1 %v17827_v38  ;;  %15777 = vmatpush1.bf16.msra.mxu0 %v17834_v26  ;;  %v14199_v38 = vld [vmem:[#allocation27 + $0x220] sm:$0xff] }
 0xa5d   :  { %15778 = vmatprep.subr.bf16.mxu0 %v17955_v29  ;;  %v17771_v7 = vcombine.high %v14195_v22, %v14199_v38  ;;  %v17770_v41 = vcombine.low %v14195_v22, %v14199_v38 }
 0xa5f   :  { %15726 = vmatpush2.bf16.msra.mxu1 %v17826_v59  ;;  %v17939_v59 = vcombine.high %v14363_v31, %v14367_v6 }
 0xa60   :  { %15727 = vmatprep.subr.bf16.mxu1 %v17819_v13  ;;  %15779 = vmatpush2.bf16.msra.mxu0 %v17954_v2  ;;  %v17938_v13 = vcombine.low %v14363_v31, %v14367_v6  ;;  %v14180_v31 = vld [vmem:[#allocation27 + $0x188] sm:$0xff] }
 0xa61   :  { %15780 = vmatprep.subr.bf16.mxu0 %v17947_v20  ;;  %v14184_v6 = vld [vmem:[#allocation27 + $0x1a8] sm:$0xff] }
 0xa63   :  { %15728 = vmatpush2.bf16.msra.mxu1 %v17818_v15  ;;  %v14347_v15 = vld [vmem:[#allocation27 + $0x6c0] sm:$0xff] }
 0xa64   :  { %15729 = vmatprep.subr.bf16.mxu1 %v17811_v35  ;;  %15781 = vmatpush2.bf16.msra.mxu0 %v17946_v19  ;;  %v17923_v35 = vcombine.high %v14347_v15, %v14351_v21  ;;  %v17922_v34 = vcombine.low %v14347_v15, %v14351_v21  ;;  %v14176_v15 = vld [vmem:[#allocation27 + $0x168] sm:$0xff] }
 0xa65   :  { %15782 = vmatprep.subr.bf16.mxu0 %v17939_v59 }
 0xa67   :  { %15730 = vmatpush2.bf16.msra.mxu1 %v17810_v44  ;;  %v14331_v44 = vld [vmem:[#allocation27 + $0x640] sm:$0xff] }
 0xa68   :  { %15731 = vmatprep.subr.bf16.mxu1 %v17803_v14  ;;  %15783 = vmatpush2.bf16.msra.mxu0 %v17938_v13  ;;  %v17907_v14 = vcombine.high %v14331_v44, %v14335_v5  ;;  %v17906_v11 = vcombine.low %v14331_v44, %v14335_v5  ;;  %v17757_v13 = vcombine.high %v14180_v31, %v14184_v6 }
 0xa69   :  { %15784 = vmatprep.subr.bf16.mxu0 %v17931_v43 }
 0xa6b   :  { %15732 = vmatpush2.bf16.msra.mxu1 %v17802_v61  ;;  %v22480_v61 = vld [vmem:[#allocation27 + $0x5c8] sm:$0xff] }
 0xa6c   :  { %15733 = vmatprep.subr.bf16.mxu1 %v17795_v4  ;;  %15785 = vmatpush2.bf16.msra.mxu0 %v17930_v40  ;;  %v17892_v4 = vcombine.low %v22480_v61, %v22482_v49  ;;  %v17893_v25 = vcombine.high %v22480_v61, %v22482_v49  ;;  %v14172_v40 = vld [vmem:[#allocation27 + $0x148] sm:$0xff] }
 0xa6d   :  { %15786 = vmatprep.subr.bf16.mxu0 %v17923_v35  ;;  %v17749_v44 = vcombine.high %v14172_v40, %v14176_v15  ;;  %v14296_v49 = vld [vmem:[#allocation27 + $0x528] sm:$0xff] }
 0xa6f   :  { %15734 = vmatpush2.bf16.msra.mxu1 %v17794_v28 }
 0xa70   :  { %15735 = vmatprep.subr.bf16.mxu1 %v17787_v39  ;;  %15787 = vmatpush2.bf16.msra.mxu0 %v17922_v34 }
 0xa71   :  { %15788 = vmatprep.subr.bf16.mxu0 %v17915_v58  ;;  %v17756_v58 = vcombine.low %v14180_v31, %v14184_v6  ;;  %v14244_v6 = vld [vmem:[#allocation27 + $0x388] sm:$0xff] }
 0xa73   :  { %15736 = vmatpush2.bf16.msra.mxu1 %v17786_v56 }
 0xa74   :  { %15737 = vmatprep.subr.bf16.mxu1 %v17779_v16  ;;  %15789 = vmatpush2.bf16.msra.mxu0 %v17914_v30 }
 0xa75   :  { %15790 = vmatprep.subr.bf16.mxu0 %v17907_v14 }
 0xa77   :  { %15738 = vmatpush2.bf16.msra.mxu1 %v17778_v52 }
 0xa78   :  { %15739 = vmatprep.subr.bf16.mxu1 %v17771_v7  ;;  %15791 = vmatpush2.bf16.msra.mxu0 %v17906_v11 }
 0xa79   :  { %15792 = vmatprep.subr.bf16.mxu0 %v17899_v42 }
 0xa7b   :  { %15740 = vmatpush2.bf16.msra.mxu1 %v17770_v41 }
 0xa7c   :  { %15815 = vmatprep.subr.bf16.mxu1 %v17765_v1  ;;  %15793 = vmatpush2.bf16.msra.mxu0 %v17898_v54  ;;  %v17748_v54 = vcombine.low %v14172_v40, %v14176_v15 }
 0xa7d   :  { %15868 = vmatprep.subr.bf16.mxu0 %v17893_v25  ;;  %v14160_v25 = vld [vmem:[#allocation27 + $0xe8] sm:$0xff] }
 0xabd   :  { %v13881_v18 = vpop.f32.mrf.mxu1 }
 0xabe   :  { %v13882_v28 = vadd.f32 %v13881_v18, %v13190_v36  ;;  %v13934_v39 = vpop.f32.mrf.mxu0 }
 0xabf   :  { %v13883_v26 = vpop.f32.mrf.mxu1 }
 0xac0   :  { %v13884_v62 = vadd.f32 %v13883_v26, %v13194_v46  ;;  %v13935_v29 = vadd.f32 %v13934_v39, %v13882_v28  ;;  %v13936_v10 = vpop.f32.mrf.mxu0  ;;  %v14148_v28 = vld [vmem:[#allocation27 + $0x88] sm:$0xff] }
 0xac1   :  { %v13885_v33 = vpop.f32.mrf.mxu1  ;;  %v14152_v26 = vld [vmem:[#allocation27 + $0xa8] sm:$0xff] }
 0xac2   :  { %v14059_v23 = vmax.f32 %v13935_v29, 0.0  ;;  %v13937_v56 = vadd.f32 %v13936_v10, %v13884_v62  ;;  %v13938_v16 = vpop.f32.mrf.mxu0  ;;  %v17725_v62 = vcombine.high %v14148_v28, %v14152_v26  ;;  %v14144_v29 = vld [vmem:[#allocation27 + $0x68] sm:$0xff]  ;;  %v17724_v33 = vcombine.low %v14148_v28, %v14152_v26 }
 0xac3   :  { %v13887_v2 = vpop.f32.mrf.mxu1 }
 0xac4   :  { %v14075_v22 = vsel %vm21148_vm6, %v14059_v23, 0.0  ;;  %v14060_v20 = vmax.f32 %v13937_v56, 0.0  ;;  %v13940_v38 = vpop.f32.mrf.mxu0  ;;  %v22505_v35 = vpack.c.bf16 %v22346_v27, %v14059_v23  ;;  %v14132_v23 = vld [vmem:[#allocation27 + $0x8] sm:$0xff] }
 0xac5   :  { %14091 = vst [vmem:[#allocation3 + $0x108] sm:$0xff] %v14075_v22  ;;  %v13891_v19 = vpop.f32.mrf.mxu1  ;;  %v14136_v56 = vld [vmem:[#allocation27 + $0x28] sm:$0xff] }
 0xac6   :  { %v14076_v52 = vsel %vm21148_vm6, %v14060_v20, 0.0  ;;  %v13892_v7 = vadd.f32 %v13891_v19, %v13190_v36  ;;  %v13944_v59 = vpop.f32.mrf.mxu0  ;;  %v22499_v43 = vpack.c.bf16 %v22346_v27, %v14060_v20  ;;  %v17709_v16 = vcombine.high %v14132_v23, %v14136_v56  ;;  %v14252_v22 = vld [vmem:[#allocation27 + $0x3c8] sm:$0xff] }
 0xac7   :  { %14092 = vst [vmem:[#allocation3 + $0x110] sm:$0xff] %v14076_v52  ;;  %v13893_v41 = vpop.f32.mrf.mxu1  ;;  %v14256_v20 = vld [vmem:[#allocation27 + $0x3e8] sm:$0xff]  ;;  %v17708_v38 = vcombine.low %v14132_v23, %v14136_v56  ;;  %v14193_v23 = vld [vmem:[#allocation27 + $0x1f0] sm:$0xff] }
 0xac8   :  { %v13945_v1 = vadd.f32 %v13944_v59, %v13892_v7  ;;  %v13894_v9 = vadd.f32 %v13893_v41, %v13194_v46  ;;  %v13946_v51 = vpop.f32.mrf.mxu0  ;;  %20412 = vmatprep.mubr.msk.bf16.mxu1 %vm22385_vm0, %v22499_v43  ;;  %v17740_v46 = vcombine.low %v14164_v32, %v14168_v0  ;;  %v17829_v31 = vcombine.high %v14252_v22, %v14256_v20  ;;  %v14248_v52 = vld [vmem:[#allocation27 + $0x3a8] sm:$0xff] }
 0xac9   :  { %v13895_v21 = vpop.f32.mrf.mxu1  ;;  %20415 = vmatmul.mubr.msk.bf16.vlgmr.msra.gmra.mxu1 %vm22385_vm0, %v22505_v35  ;;  %v17828_v19 = vcombine.low %v14252_v22, %v14256_v20  ;;  %v17821_v7 = vcombine.high %v14244_v6, %v14248_v52  ;;  %v14236_v59 = vld [vmem:[#allocation27 + $0x348] sm:$0xff]  ;;  %v13198_v32 = vrot.slane %v22488_v8, %v21278_v60 }
 0xaca   :  { %v14067_v34 = vmax.f32 %v13945_v1, 0.0  ;;  %v13947_v24 = vadd.f32 %v13946_v51, %v13894_v9  ;;  %v13948_v50 = vpop.f32.mrf.mxu0  ;;  %15816 = vmatpush1.bf16.msra.mxu1 %v17764_v37  ;;  %v14156_v37 = vld [vmem:[#allocation27 + $0xc8] sm:$0xff] }
 0xacb   :  { %v13897_v30 = vpop.f32.mrf.mxu1  ;;  %15817 = vmatprep.subr.bf16.mxu1 %v17757_v13  ;;  %v17733_v18 = vcombine.high %v14156_v37, %v14160_v25  ;;  %v17732_v39 = vcombine.low %v14156_v37, %v14160_v25  ;;  %v14240_v41 = vld [vmem:[#allocation27 + $0x368] sm:$0xff]  ;;  %v17820_v13 = vcombine.low %v14244_v6, %v14248_v52 }
 0xacc   :  { %v14083_v5 = vsel %vm21167_vm11, %v14067_v34, 0.0  ;;  %v14068_v14 = vmax.f32 %v13947_v24, 0.0  ;;  %v13950_v11 = vpop.f32.mrf.mxu0  ;;  %v22524_v36 = vpack.c.bf16 %v22346_v27, %v14067_v34  ;;  %v17813_v1 = vcombine.high %v14236_v59, %v14240_v41  ;;  %v14228_v9 = vld [vmem:[#allocation27 + $0x308] sm:$0xff] }
 0xacd   :  { %14099 = vst [vmem:[#allocation3 + $0xe8] sm:$0xff] %v14083_v5  ;;  %v14232_v51 = vld [vmem:[#allocation27 + $0x328] sm:$0xff]  ;;  %v17812_v40 = vcombine.low %v14236_v59, %v14240_v41 }
 0xace   :  { %v14084_v42 = vsel %vm21167_vm11, %v14068_v14, 0.0  ;;  %15818 = vmatpush1.bf16.msra.mxu1 %v17756_v58  ;;  %v22518_v17 = vpack.c.bf16 %v22346_v27, %v14068_v14  ;;  %v14140_v27 = vld [vmem:[#allocation27 + $0x48] sm:$0xff]  ;;  %v17805_v15 = vcombine.high %v14228_v9, %v14232_v51  ;;  %v17804_v24 = vcombine.low %v14228_v9, %v14232_v51  ;;  %v14185_v9 = vld [vmem:[#allocation27 + $0x1b0] sm:$0xff] }
 0xacf   :  { %14100 = vst [vmem:[#allocation3 + $0xf8] sm:$0xff] %v14084_v42  ;;  %15819 = vmatprep.subr.bf16.mxu1 %v17749_v44  ;;  %v17717_v10 = vcombine.high %v14140_v27, %v14144_v29  ;;  %v17716_v2 = vcombine.low %v14140_v27, %v14144_v29  ;;  %v14220_v21 = vld [vmem:[#allocation27 + $0x2c8] sm:$0xff]  ;;  %v13202_v42 = vrot.slane %v22488_v8, %v21281_v63 }
 0xad0   :  { %20418 = vmatprep.mubr.msk.bf16.mxu1 %vm22422_vm1, %v22518_v17  ;;  %v14224_v34 = vld [vmem:[#allocation27 + $0x2e8] sm:$0xff] }
 0xad1   :  { %20421 = vmatmul.mubr.msk.bf16.gmra.mxu1 %vm22422_vm1, %v22524_v36  ;;  %v17797_v50 = vcombine.high %v14220_v21, %v14224_v34  ;;  %v14212_v58 = vld [vmem:[#allocation27 + $0x288] sm:$0xff]  ;;  %v17796_v44 = vcombine.low %v14220_v21, %v14224_v34 }
 0xad2   :  { %15820 = vmatpush1.bf16.msra.mxu1 %v17748_v54  ;;  %20424 = vmatprep.mubr.msk.bf16.mxu1 %vm22385_vm0, %v22499_v43  ;;  %v14216_v30 = vld [vmem:[#allocation27 + $0x2a8] sm:$0xff] }
 0xad3   :  { %15821 = vmatprep.subr.bf16.mxu1 %v17741_v12  ;;  %v17789_v5 = vcombine.high %v14212_v58, %v14216_v30  ;;  %v14204_v14 = vld [vmem:[#allocation27 + $0x248] sm:$0xff]  ;;  %v17788_v0 = vcombine.low %v14212_v58, %v14216_v30 }
 0xad4   :  { %v14208_v11 = vld [vmem:[#allocation27 + $0x268] sm:$0xff] }
 0xad5   :  { %v17781_v54 = vcombine.high %v14204_v14, %v14208_v11  ;;  %v14196_v37 = vld [vmem:[#allocation27 + $0x208] sm:$0xff]  ;;  %v17780_v26 = vcombine.low %v14204_v14, %v14208_v11 }
 0xad6   :  { %15822 = vmatpush1.bf16.msra.mxu1 %v17740_v46  ;;  %v14200_v25 = vld [vmem:[#allocation27 + $0x228] sm:$0xff] }
 0xad7   :  { %15823 = vmatprep.subr.bf16.mxu1 %v17733_v18  ;;  %v17773_v29 = vcombine.high %v14196_v37, %v14200_v25  ;;  %v17772_v22 = vcombine.low %v14196_v37, %v14200_v25  ;;  %v14304_v14 = vld [vmem:[#allocation27 + $0x568] sm:$0xff] }
 0xada   :  { %15824 = vmatpush1.bf16.msra.mxu1 %v17732_v39 }
 0xadb   :  { %15825 = vmatprep.subr.bf16.mxu1 %v17725_v62 }
 0xade   :  { %15826 = vmatpush1.bf16.msra.mxu1 %v17724_v33 }
 0xadf   :  { %15827 = vmatprep.subr.bf16.mxu1 %v17717_v10  ;;  %v14189_v10 = vld [vmem:[#allocation27 + $0x1d0] sm:$0xff] }
 0xae0   :  { %v17767_v6 = vcombine.high %v14189_v10, %v14193_v23 }
 0xae2   :  { %15828 = vmatpush1.bf16.msra.mxu1 %v17716_v2 }
 0xae3   :  { %15829 = vmatprep.subr.bf16.mxu1 %v17709_v16 }
 0xae6   :  { %15830 = vmatpush1.bf16.msra.mxu1 %v17708_v38 }
 0xae7   :  { %15831 = vmatprep.subr.bf16.mxu1 %v17829_v31 }
 0xaea   :  { %15832 = vmatpush2.bf16.msra.mxu1 %v17828_v19  ;;  %v14308_v19 = vld [vmem:[#allocation27 + $0x588] sm:$0xff] }
 0xaeb   :  { %15833 = vmatprep.subr.bf16.mxu1 %v17821_v7  ;;  %v14312_v7 = vld [vmem:[#allocation27 + $0x5a8] sm:$0xff] }
 0xaec   :  { %v17884_v25 = vcombine.low %v14308_v19, %v14312_v7 }
 0xaee   :  { %15834 = vmatpush2.bf16.msra.mxu1 %v17820_v13 }
 0xaef   :  { %15835 = vmatprep.subr.bf16.mxu1 %v17813_v1  ;;  %v14181_v1 = vld [vmem:[#allocation27 + $0x190] sm:$0xff] }
 0xaf2   :  { %15836 = vmatpush2.bf16.msra.mxu1 %v17812_v40  ;;  %v20205_v40 = vld [vmem:[#allocation2 + $0x20] sm:$0xff] }
 0xaf3   :  { %15837 = vmatprep.subr.bf16.mxu1 %v17805_v15  ;;  %v17766_v15 = vcombine.low %v14189_v10, %v14193_v23 }
 0xaf6   :  { %15838 = vmatpush2.bf16.msra.mxu1 %v17804_v24 }
 0xaf7   :  { %15839 = vmatprep.subr.bf16.mxu1 %v17797_v50  ;;  %v17885_v50 = vcombine.high %v14308_v19, %v14312_v7  ;;  %v14276_v7 = vld [vmem:[#allocation27 + $0x488] sm:$0xff] }
 0xafa   :  { %15840 = vmatpush2.bf16.msra.mxu1 %v17796_v44  ;;  %v17759_v44 = vcombine.high %v14181_v1, %v14185_v9 }
 0xafb   :  { %15841 = vmatprep.subr.bf16.mxu1 %v17789_v5  ;;  %v14300_v5 = vld [vmem:[#allocation27 + $0x548] sm:$0xff] }
 0xafd   :  { %v13987_v12 = vpop.f32.mrf.mxu1 }
 0xafe   :  { %v13988_v46 = vadd.f32 %v13987_v12, %v13198_v32  ;;  %v14040_v18 = vpop.f32.mrf.mxu0  ;;  %15842 = vmatpush2.bf16.msra.mxu1 %v17788_v0  ;;  %v14177_v12 = vld [vmem:[#allocation27 + $0x170] sm:$0xff] }
 0xaff   :  { %v13989_v28 = vpop.f32.mrf.mxu1  ;;  %15843 = vmatprep.subr.bf16.mxu1 %v17781_v54 }
 0xb00   :  { %v14041_v39 = vadd.f32 %v14040_v18, %v13988_v46  ;;  %v13990_v62 = vadd.f32 %v13989_v28, %v13202_v42  ;;  %v14042_v27 = vpop.f32.mrf.mxu0 }
 0xb01   :  { %v13991_v33 = vpop.f32.mrf.mxu1 }
 0xb02   :  { %v14061_v56 = vmax.f32 %v14041_v39, 0.0  ;;  %v14043_v8 = vadd.f32 %v14042_v27, %v13990_v62  ;;  %v14044_v2 = vpop.f32.mrf.mxu0  ;;  %15844 = vmatpush2.bf16.msra.mxu1 %v17780_v26  ;;  %v17758_v26 = vcombine.low %v14181_v1, %v14185_v9  ;;  %v17877_v39 = vcombine.high %v14300_v5, %v14304_v14  ;;  %v14292_v27 = vld [vmem:[#allocation27 + $0x508] sm:$0xff] }
 0xb03   :  { %v13993_v16 = vpop.f32.mrf.mxu1  ;;  %15845 = vmatprep.subr.bf16.mxu1 %v17773_v29  ;;  %v14169_v29 = vld [vmem:[#allocation27 + $0x130] sm:$0xff]  ;;  %v17876_v33 = vcombine.low %v14300_v5, %v14304_v14  ;;  %v14284_v2 = vld [vmem:[#allocation27 + $0x4c8] sm:$0xff] }
 0xb04   :  { %v14077_v20 = vsel %vm21148_vm6, %v14061_v56, 0.0  ;;  %v14062_v38 = vmax.f32 %v14043_v8, 0.0  ;;  %v14046_v31 = vpop.f32.mrf.mxu0  ;;  %v22545_v54 = vpack.c.bf16 %v20205_v40, %v14061_v56  ;;  %v17869_v56 = vcombine.high %v14292_v27, %v14296_v49  ;;  %v14288_v16 = vld [vmem:[#allocation27 + $0x4e8] sm:$0xff] }
 0xb05   :  { %14093 = vst [vmem:[#allocation3 + $0x90] sm:$0xff] %v14077_v20  ;;  %v13997_v52 = vpop.f32.mrf.mxu1  ;;  %v14157_v20 = vld [vmem:[#allocation27 + $0xd0] sm:$0xff]  ;;  %v17868_v31 = vcombine.low %v14292_v27, %v14296_v49  ;;  %v17860_v1 = vcombine.low %v14284_v2, %v14288_v16  ;;  %v14260_v14 = vld [vmem:[#allocation27 + $0x408] sm:$0xff] }
 0xb06   :  { %v14078_v59 = vsel %vm21148_vm6, %v14062_v38, 0.0  ;;  %v13998_v41 = vadd.f32 %v13997_v52, %v13198_v32  ;;  %v14050_v13 = vpop.f32.mrf.mxu0  ;;  %15846 = vmatpush2.bf16.msra.mxu1 %v17772_v22  ;;  %v22540_v30 = vpack.c.bf16 %v20205_v40, %v14062_v38  ;;  %v14161_v38 = vld [vmem:[#allocation27 + $0xf0] sm:$0xff]  ;;  %v17861_v52 = vcombine.high %v14284_v2, %v14288_v16  ;;  %v14372_v49 = vld [vmem:[#allocation27 + $0x788] sm:$0xff] }
 0xb07   :  { %14094 = vst [vmem:[#allocation3 + $0x118] sm:$0xff] %v14078_v59  ;;  %v13999_v51 = vpop.f32.mrf.mxu1  ;;  %15921 = vmatprep.subr.bf16.mxu1 %v17767_v6  ;;  %v17735_v19 = vcombine.high %v14157_v20, %v14161_v38  ;;  %v14280_v59 = vld [vmem:[#allocation27 + $0x4a8] sm:$0xff]  ;;  %v17734_v9 = vcombine.low %v14157_v20, %v14161_v38  ;;  %v14237_v38 = vld [vmem:[#allocation27 + $0x350] sm:$0xff] }
 0xb08   :  { %v14051_v21 = vadd.f32 %v14050_v13, %v13998_v41  ;;  %v14000_v34 = vadd.f32 %v13999_v51, %v13202_v42  ;;  %v14052_v24 = vpop.f32.mrf.mxu0  ;;  %20427 = vmatprep.mubr.msk.bf16.mxu0 %vm22385_vm0, %v22540_v30  ;;  %v14173_v42 = vld [vmem:[#allocation27 + $0x150] sm:$0xff]  ;;  %v17853_v51 = vcombine.high %v14276_v7, %v14280_v59  ;;  %v14364_v16 = vld [vmem:[#allocation27 + $0x748] sm:$0xff] }
 0xb09   :  { %v14001_v58 = vpop.f32.mrf.mxu1  ;;  %20430 = vmatmul.mubr.msk.bf16.vlgmr.msra.gmra.mxu0 %vm22385_vm0, %v22545_v54  ;;  %20433 = vmatmul.mubr.msk.bf16.vlgmr.msra.gmra.mxu1 %vm22385_vm0, %v22505_v35  ;;  %v17751_v62 = vcombine.high %v14173_v42, %v14177_v12  ;;  %v17750_v10 = vcombine.low %v14173_v42, %v14177_v12  ;;  %v14149_v41 = vld [vmem:[#allocation27 + $0x90] sm:$0xff]  ;;  %v14368_v20 = vld [vmem:[#allocation27 + $0x768] sm:$0xff] }
 0xb0a   :  { %v14069_v11 = vmax.f32 %v14051_v21, 0.0  ;;  %v14053_v32 = vadd.f32 %v14052_v24, %v14000_v34  ;;  %v14054_v0 = vpop.f32.mrf.mxu0  ;;  %15869 = vmatpush1.bf16.msra.mxu0 %v17892_v4  ;;  %20436 = vmatprep.mubr.msk.bf16.mxu1 %vm22422_vm1, %v22518_v17  ;;  %v14165_v4 = vld [vmem:[#allocation27 + $0x110] sm:$0xff]  ;;  %v14272_v21 = vld [vmem:[#allocation27 + $0x468] sm:$0xff] }
 0xb0b   :  { %v14003_v37 = vpop.f32.mrf.mxu1  ;;  %15922 = vmatpush1.bf16.msra.mxu1 %v17766_v15  ;;  %15870 = vmatprep.subr.bf16.mxu0 %v17885_v50  ;;  %v17743_v8 = vcombine.high %v14165_v4, %v14169_v29  ;;  %v17742_v6 = vcombine.low %v14165_v4, %v14169_v29  ;;  %v14153_v13 = vld [vmem:[#allocation27 + $0xb0] sm:$0xff]  ;;  %v14268_v15 = vld [vmem:[#allocation27 + $0x448] sm:$0xff]  ;;  %v17852_v50 = vcombine.low %v14276_v7, %v14280_v59 }
 0xb0c   :  { %v14085_v46 = vsel %vm21167_vm11, %v14069_v11, 0.0  ;;  %v14070_v18 = vmax.f32 %v14053_v32, 0.0  ;;  %v14056_v28 = vpop.f32.mrf.mxu0  ;;  %15923 = vmatprep.subr.bf16.mxu1 %v17759_v44  ;;  %v22568_v22 = vpack.c.bf16 %v20205_v40, %v14069_v11  ;;  %v14141_v34 = vld [vmem:[#allocation27 + $0x50] sm:$0xff]  ;;  %v17726_v58 = vcombine.low %v14149_v41, %v14153_v13  ;;  %v14264_v11 = vld [vmem:[#allocation27 + $0x428] sm:$0xff] }
 0xb0d   :  { %14101 = vst [vmem:[#allocation3 + $0x20] sm:$0xff] %v14085_v46  ;;  %v14145_v24 = vld [vmem:[#allocation27 + $0x70] sm:$0xff]  ;;  %v17845_v44 = vcombine.high %v14268_v15, %v14272_v21  ;;  %v17844_v42 = vcombine.low %v14268_v15, %v14272_v21  ;;  %v17837_v37 = vcombine.high %v14260_v14, %v14264_v11  ;;  %v14380_v46 = vld [vmem:[#allocation27 + $0x7c8] sm:$0xff] }
 0xb0e   :  { %v14086_v61 = vsel %vm21167_vm11, %v14070_v18, 0.0  ;;  %15871 = vmatpush1.bf16.msra.mxu0 %v17884_v25  ;;  %v22563_v23 = vpack.c.bf16 %v20205_v40, %v14070_v18  ;;  %v17727_v40 = vcombine.high %v14149_v41, %v14153_v13  ;;  %v17719_v5 = vcombine.high %v14141_v34, %v14145_v24  ;;  %v14133_v32 = vld [vmem:[#allocation27 + $0x10] sm:$0xff]  ;;  %v14384_v18 = vld [vmem:[#allocation27 + $0x7e8] sm:$0xff] }
 0xb0f   :  { %14102 = vst [vmem:[#allocation3 + $0x88] sm:$0xff] %v14086_v61  ;;  %15924 = vmatpush1.bf16.msra.mxu1 %v17758_v26  ;;  %15872 = vmatprep.subr.bf16.mxu0 %v17877_v39  ;;  %v14137_v0 = vld [vmem:[#allocation27 + $0x30] sm:$0xff]  ;;  %v17718_v12 = vcombine.low %v14141_v34, %v14145_v24  ;;  %v17836_v39 = vcombine.low %v14260_v14, %v14264_v11  ;;  %v14376_v4 = vld [vmem:[#allocation27 + $0x7a8] sm:$0xff] }
 0xb10   :  { %20439 = vmatprep.mubr.msk.bf16.mxu0 %vm22422_vm1, %v22563_v23  ;;  %15925 = vmatprep.subr.bf16.mxu1 %v17751_v62  ;;  %v17711_v25 = vcombine.high %v14133_v32, %v14137_v0  ;;  %v14253_v28 = vld [vmem:[#allocation27 + $0x3d0] sm:$0xff]  ;;  %v17710_v62 = vcombine.low %v14133_v32, %v14137_v0  ;;  %v17957_v27 = vcombine.high %v14380_v46, %v14384_v18  ;;  %v14356_v59 = vld [vmem:[#allocation27 + $0x708] sm:$0xff] }
 0xb11   :  { %20442 = vmatmul.mubr.msk.bf16.gmra.mxu0 %vm22422_vm1, %v22568_v22  ;;  %20445 = vmatmul.mubr.msk.bf16.gmra.mxu1 %vm22422_vm1, %v22524_v36  ;;  %v14257_v26 = vld [vmem:[#allocation27 + $0x3f0] sm:$0xff]  ;;  %v14360_v41 = vld [vmem:[#allocation27 + $0x728] sm:$0xff] }
 0xb12   :  { %15873 = vmatpush1.bf16.msra.mxu0 %v17876_v33  ;;  %20448 = vmatprep.mubr.msk.bf16.mxu0 %vm22385_vm0, %v22540_v30  ;;  %v17831_v61 = vcombine.high %v14253_v28, %v14257_v26  ;;  %v14245_v29 = vld [vmem:[#allocation27 + $0x390] sm:$0xff]  ;;  %v14348_v21 = vld [vmem:[#allocation27 + $0x6c8] sm:$0xff] }
 0xb13   :  { %15926 = vmatpush1.bf16.msra.mxu1 %v17750_v10  ;;  %20451 = vmatprep.mubr.msk.bf16.mxu1 %vm22385_vm0, %v22499_v43  ;;  %v14249_v33 = vld [vmem:[#allocation27 + $0x3b0] sm:$0xff]  ;;  %v17956_v10 = vcombine.low %v14380_v46, %v14384_v18  ;;  %v14352_v34 = vld [vmem:[#allocation27 + $0x6e8] sm:$0xff] }
 0xb14   :  { %15874 = vmatprep.subr.bf16.mxu0 %v17869_v56  ;;  %15927 = vmatprep.subr.bf16.mxu1 %v17743_v8  ;;  %v17830_v56 = vcombine.low %v14253_v28, %v14257_v26  ;;  %v17949_v8 = vcombine.high %v14372_v49, %v14376_v4  ;;  %v17823_v2 = vcombine.high %v14245_v29, %v14249_v33  ;;  %v14229_v13 = vld [vmem:[#allocation27 + $0x310] sm:$0xff]  ;;  %v14340_v11 = vld [vmem:[#allocation27 + $0x688] sm:$0xff] }
 0xb15   :  { %v14221_v24 = vld [vmem:[#allocation27 + $0x2d0] sm:$0xff]  ;;  %v14344_v32 = vld [vmem:[#allocation27 + $0x6a8] sm:$0xff] }
 0xb16   :  { %15875 = vmatpush1.bf16.msra.mxu0 %v17868_v31  ;;  %v14241_v31 = vld [vmem:[#allocation27 + $0x370] sm:$0xff]  ;;  %v14332_v18 = vld [vmem:[#allocation27 + $0x648] sm:$0xff] }
 0xb17   :  { %15928 = vmatpush1.bf16.msra.mxu1 %v17742_v6  ;;  %15876 = vmatprep.subr.bf16.mxu0 %v17861_v52  ;;  %v17948_v6 = vcombine.low %v14372_v49, %v14376_v4  ;;  %v17822_v52 = vcombine.low %v14245_v29, %v14249_v33  ;;  %v17815_v7 = vcombine.high %v14237_v38, %v14241_v31  ;;  %v14213_v0 = vld [vmem:[#allocation27 + $0x290] sm:$0xff]  ;;  %v14336_v28 = vld [vmem:[#allocation27 + $0x668] sm:$0xff] }
 0xb18   :  { %15929 = vmatprep.subr.bf16.mxu1 %v17735_v19  ;;  %v17941_v19 = vcombine.high %v14364_v16, %v14368_v20  ;;  %v14205_v26 = vld [vmem:[#allocation27 + $0x250] sm:$0xff]  ;;  %v14324_v4 = vld [vmem:[#allocation27 + $0x608] sm:$0xff] }
 0xb19   :  { %v14328_v29 = vld [vmem:[#allocation27 + $0x628] sm:$0xff]  ;;  %v14197_v33 = vld [vmem:[#allocation27 + $0x210] sm:$0xff] }
 0xb1a   :  { %15877 = vmatpush1.bf16.msra.mxu0 %v17860_v1  ;;  %v14233_v1 = vld [vmem:[#allocation27 + $0x330] sm:$0xff] }
 0xb1b   :  { %15930 = vmatpush1.bf16.msra.mxu1 %v17734_v9  ;;  %15878 = vmatprep.subr.bf16.mxu0 %v17853_v51  ;;  %v17940_v9 = vcombine.low %v14364_v16, %v14368_v20  ;;  %v17814_v51 = vcombine.low %v14237_v38, %v14241_v31  ;;  %v17807_v15 = vcombine.high %v14229_v13, %v14233_v1  ;;  %v14317_v20 = vld [vmem:[#allocation27 + $0x5d0] sm:$0xff]  ;;  %v14190_v31 = vld [vmem:[#allocation27 + $0x1d8] sm:$0xff] }
 0xb1c   :  { %15931 = vmatprep.subr.bf16.mxu1 %v17727_v40  ;;  %v17933_v40 = vcombine.high %v14356_v59, %v14360_v41  ;;  %v14321_v38 = vld [vmem:[#allocation27 + $0x5f0] sm:$0xff] }
 0xb1e   :  { %15879 = vmatpush1.bf16.msra.mxu0 %v17852_v50  ;;  %v14225_v50 = vld [vmem:[#allocation27 + $0x2f0] sm:$0xff] }
 0xb1f   :  { %15932 = vmatpush1.bf16.msra.mxu1 %v17726_v58  ;;  %15880 = vmatprep.subr.bf16.mxu0 %v17845_v44  ;;  %v17932_v58 = vcombine.low %v14356_v59, %v14360_v41  ;;  %v17806_v44 = vcombine.low %v14229_v13, %v14233_v1  ;;  %v17799_v14 = vcombine.high %v14221_v24, %v14225_v50  ;;  %v14309_v41 = vld [vmem:[#allocation27 + $0x590] sm:$0xff]  ;;  %v14182_v1 = vld [vmem:[#allocation27 + $0x198] sm:$0xff] }
 0xb20   :  { %15933 = vmatprep.subr.bf16.mxu1 %v17719_v5  ;;  %v17925_v5 = vcombine.high %v14348_v21, %v14352_v34  ;;  %v14313_v13 = vld [vmem:[#allocation27 + $0x5b0] sm:$0xff] }
 0xb22   :  { %15881 = vmatpush1.bf16.msra.mxu0 %v17844_v42  ;;  %v14217_v42 = vld [vmem:[#allocation27 + $0x2b0] sm:$0xff] }
 0xb23   :  { %15934 = vmatpush1.bf16.msra.mxu1 %v17718_v12  ;;  %15882 = vmatprep.subr.bf16.mxu0 %v17837_v37  ;;  %v17924_v12 = vcombine.low %v14348_v21, %v14352_v34  ;;  %v17798_v37 = vcombine.low %v14221_v24, %v14225_v50  ;;  %v17791_v46 = vcombine.high %v14213_v0, %v14217_v42  ;;  %v14301_v34 = vld [vmem:[#allocation27 + $0x550] sm:$0xff]  ;;  %v14174_v50 = vld [vmem:[#allocation27 + $0x158] sm:$0xff] }
 0xb24   :  { %15935 = vmatprep.subr.bf16.mxu1 %v17711_v25  ;;  %v17917_v25 = vcombine.high %v14340_v11, %v14344_v32  ;;  %v14305_v24 = vld [vmem:[#allocation27 + $0x570] sm:$0xff] }
 0xb26   :  { %15883 = vmatpush1.bf16.msra.mxu0 %v17836_v39  ;;  %v14209_v39 = vld [vmem:[#allocation27 + $0x270] sm:$0xff] }
 0xb27   :  { %15936 = vmatpush1.bf16.msra.mxu1 %v17710_v62  ;;  %15884 = vmatprep.subr.bf16.mxu0 %v17957_v27  ;;  %v17916_v62 = vcombine.low %v14340_v11, %v14344_v32  ;;  %v17790_v27 = vcombine.low %v14213_v0, %v14217_v42  ;;  %v17783_v49 = vcombine.high %v14205_v26, %v14209_v39  ;;  %v14293_v32 = vld [vmem:[#allocation27 + $0x510] sm:$0xff]  ;;  %v14166_v42 = vld [vmem:[#allocation27 + $0x118] sm:$0xff] }
 0xb28   :  { %15937 = vmatprep.subr.bf16.mxu1 %v17831_v61  ;;  %v17909_v61 = vcombine.high %v14332_v18, %v14336_v28  ;;  %v14297_v0 = vld [vmem:[#allocation27 + $0x530] sm:$0xff] }
 0xb2a   :  { %15885 = vmatpush2.bf16.msra.mxu0 %v17956_v10  ;;  %v14201_v10 = vld [vmem:[#allocation27 + $0x230] sm:$0xff] }
 0xb2b   :  { %15938 = vmatpush2.bf16.msra.mxu1 %v17830_v56  ;;  %15886 = vmatprep.subr.bf16.mxu0 %v17949_v8  ;;  %v17908_v56 = vcombine.low %v14332_v18, %v14336_v28  ;;  %v17782_v8 = vcombine.low %v14205_v26, %v14209_v39  ;;  %v17775_v16 = vcombine.high %v14197_v33, %v14201_v10  ;;  %v14285_v28 = vld [vmem:[#allocation27 + $0x4d0] sm:$0xff]  ;;  %v14158_v39 = vld [vmem:[#allocation27 + $0xd8] sm:$0xff] }
 0xb2c   :  { %15939 = vmatprep.subr.bf16.mxu1 %v17823_v2  ;;  %v17901_v2 = vcombine.high %v14324_v4, %v14328_v29  ;;  %v14289_v26 = vld [vmem:[#allocation27 + $0x4f0] sm:$0xff] }
 0xb2e   :  { %15887 = vmatpush2.bf16.msra.mxu0 %v17948_v6  ;;  %v14194_v6 = vld [vmem:[#allocation27 + $0x1f8] sm:$0xff] }
 0xb2f   :  { %15940 = vmatpush2.bf16.msra.mxu1 %v17822_v52  ;;  %15888 = vmatprep.subr.bf16.mxu0 %v17941_v19  ;;  %v17900_v52 = vcombine.low %v14324_v4, %v14328_v29  ;;  %v17774_v19 = vcombine.low %v14197_v33, %v14201_v10  ;;  %v17769_v59 = vcombine.high %v14190_v31, %v14194_v6  ;;  %v14277_v29 = vld [vmem:[#allocation27 + $0x490] sm:$0xff]  ;;  %v14150_v10 = vld [vmem:[#allocation27 + $0x98] sm:$0xff] }
 0xb30   :  { %15941 = vmatprep.subr.bf16.mxu1 %v17815_v7  ;;  %v17895_v7 = vcombine.high %v14317_v20, %v14321_v38  ;;  %v14281_v33 = vld [vmem:[#allocation27 + $0x4b0] sm:$0xff] }
 0xb32   :  { %15889 = vmatpush2.bf16.msra.mxu0 %v17940_v9  ;;  %v14186_v9 = vld [vmem:[#allocation27 + $0x1b8] sm:$0xff] }
 0xb33   :  { %15942 = vmatpush2.bf16.msra.mxu1 %v17814_v51  ;;  %15890 = vmatprep.subr.bf16.mxu0 %v17933_v40  ;;  %v17894_v51 = vcombine.low %v14317_v20, %v14321_v38  ;;  %v17768_v40 = vcombine.low %v14190_v31, %v14194_v6  ;;  %v17761_v21 = vcombine.high %v14182_v1, %v14186_v9  ;;  %v14273_v38 = vld [vmem:[#allocation27 + $0x470] sm:$0xff]  ;;  %v14142_v31 = vld [vmem:[#allocation27 + $0x58] sm:$0xff] }
 0xb34   :  { %15943 = vmatprep.subr.bf16.mxu1 %v17807_v15  ;;  %v17887_v15 = vcombine.high %v14309_v41, %v14313_v13  ;;  %v14146_v6 = vld [vmem:[#allocation27 + $0x78] sm:$0xff] }
 0xb36   :  { %15891 = vmatpush2.bf16.msra.mxu0 %v17932_v58  ;;  %v14178_v58 = vld [vmem:[#allocation27 + $0x178] sm:$0xff] }
 0xb37   :  { %15944 = vmatpush2.bf16.msra.mxu1 %v17806_v44  ;;  %15892 = vmatprep.subr.bf16.mxu0 %v17925_v5  ;;  %v17886_v44 = vcombine.low %v14309_v41, %v14313_v13  ;;  %v17760_v5 = vcombine.low %v14182_v1, %v14186_v9  ;;  %v17753_v11 = vcombine.high %v14174_v50, %v14178_v58  ;;  %v14261_v41 = vld [vmem:[#allocation27 + $0x410] sm:$0xff]  ;;  %v14134_v1 = vld [vmem:[#allocation27 + $0x18] sm:$0xff] }
 0xb38   :  { %15945 = vmatprep.subr.bf16.mxu1 %v17799_v14  ;;  %v17879_v14 = vcombine.high %v14301_v34, %v14305_v24  ;;  %v14265_v13 = vld [vmem:[#allocation27 + $0x430] sm:$0xff]  ;;  %v14138_v9 = vld [vmem:[#allocation27 + $0x38] sm:$0xff] }
 0xb3a   :  { %15893 = vmatpush2.bf16.msra.mxu0 %v17924_v12  ;;  %v14170_v12 = vld [vmem:[#allocation27 + $0x138] sm:$0xff] }
 0xb3b   :  { %15946 = vmatpush2.bf16.msra.mxu1 %v17798_v37  ;;  %15894 = vmatprep.subr.bf16.mxu0 %v17917_v25  ;;  %v17878_v37 = vcombine.low %v14301_v34, %v14305_v24  ;;  %v17752_v25 = vcombine.low %v14174_v50, %v14178_v58  ;;  %v17745_v18 = vcombine.high %v14166_v42, %v14170_v12  ;;  %v14381_v34 = vld [vmem:[#allocation27 + $0x7d0] sm:$0xff]  ;;  %v14254_v50 = vld [vmem:[#allocation27 + $0x3d8] sm:$0xff] }
 0xb3c   :  { %15947 = vmatprep.subr.bf16.mxu1 %v17791_v46  ;;  %v17871_v46 = vcombine.high %v14293_v32, %v14297_v0  ;;  %v14385_v24 = vld [vmem:[#allocation27 + $0x7f0] sm:$0xff]  ;;  %v14258_v58 = vld [vmem:[#allocation27 + $0x3f8] sm:$0xff] }
 0xb3e   :  { %15895 = vmatpush2.bf16.msra.mxu0 %v17916_v62  ;;  %v14162_v62 = vld [vmem:[#allocation27 + $0xf8] sm:$0xff] }
 0xb3f   :  { %15948 = vmatpush2.bf16.msra.mxu1 %v17790_v27  ;;  %15896 = vmatprep.subr.bf16.mxu0 %v17909_v61  ;;  %v17870_v27 = vcombine.low %v14293_v32, %v14297_v0  ;;  %v17744_v61 = vcombine.low %v14166_v42, %v14170_v12  ;;  %v17737_v4 = vcombine.high %v14158_v39, %v14162_v62  ;;  %v14373_v32 = vld [vmem:[#allocation27 + $0x790] sm:$0xff]  ;;  %v14246_v42 = vld [vmem:[#allocation27 + $0x398] sm:$0xff] }
 0xb40   :  { %15949 = vmatprep.subr.bf16.mxu1 %v17783_v49  ;;  %v17863_v49 = vcombine.high %v14285_v28, %v14289_v26  ;;  %v14377_v0 = vld [vmem:[#allocation27 + $0x7b0] sm:$0xff]  ;;  %v14250_v12 = vld [vmem:[#allocation27 + $0x3b8] sm:$0xff] }
 0xb42   :  { %15897 = vmatpush2.bf16.msra.mxu0 %v17908_v56  ;;  %v14154_v56 = vld [vmem:[#allocation27 + $0xb8] sm:$0xff] }
 0xb43   :  { %15950 = vmatpush2.bf16.msra.mxu1 %v17782_v8  ;;  %15898 = vmatprep.subr.bf16.mxu0 %v17901_v2  ;;  %v17862_v8 = vcombine.low %v14285_v28, %v14289_v26  ;;  %v17736_v2 = vcombine.low %v14158_v39, %v14162_v62  ;;  %v17729_v20 = vcombine.high %v14150_v10, %v14154_v56  ;;  %v14365_v28 = vld [vmem:[#allocation27 + $0x750] sm:$0xff]  ;;  %v14238_v39 = vld [vmem:[#allocation27 + $0x358] sm:$0xff] }
 0xb44   :  { %15951 = vmatprep.subr.bf16.mxu1 %v17775_v16  ;;  %v17855_v16 = vcombine.high %v14277_v29, %v14281_v33  ;;  %v14369_v26 = vld [vmem:[#allocation27 + $0x770] sm:$0xff]  ;;  %v14242_v62 = vld [vmem:[#allocation27 + $0x378] sm:$0xff] }
 0xb46   :  { %15899 = vmatpush2.bf16.msra.mxu0 %v17900_v52  ;;  %v17854_v52 = vcombine.low %v14277_v29, %v14281_v33  ;;  %v14357_v29 = vld [vmem:[#allocation27 + $0x710] sm:$0xff] }
 0xb47   :  { %15952 = vmatpush2.bf16.msra.mxu1 %v17774_v19  ;;  %15974 = vmatprep.subr.bf16.mxu0 %v17895_v7  ;;  %v17728_v19 = vcombine.low %v14150_v10, %v14154_v56  ;;  %v14361_v33 = vld [vmem:[#allocation27 + $0x730] sm:$0xff]  ;;  %v14230_v10 = vld [vmem:[#allocation27 + $0x318] sm:$0xff] }
 0xb48   :  { %16027 = vmatprep.subr.bf16.mxu1 %v17769_v59  ;;  %v17721_v59 = vcombine.high %v14142_v31, %v14146_v6  ;;  %v14234_v56 = vld [vmem:[#allocation27 + $0x338] sm:$0xff] }
 0xb49   :  { %20454 = vmatmul.mubr.msk.bf16.vlgmr.msra.gmra.mxu0 %vm22385_vm0, %v22545_v54 }
 0xb4a   :  { %20457 = vmatprep.mubr.msk.bf16.mxu0 %vm22422_vm1, %v22563_v23  ;;  %20460 = vmatmul.mubr.msk.bf16.vlgmr.msra.gmra.mxu1 %vm22385_vm0, %v22505_v35 }
 0xb4b   :  { %15975 = vmatpush1.bf16.msra.mxu0 %v17894_v51  ;;  %20463 = vmatprep.mubr.msk.bf16.mxu1 %vm22422_vm1, %v22518_v17 }
 0xb4c   :  { %16028 = vmatpush1.bf16.msra.mxu1 %v17768_v40  ;;  %15976 = vmatprep.subr.bf16.mxu0 %v17887_v15  ;;  %v17720_v40 = vcombine.low %v14142_v31, %v14146_v6  ;;  %v17839_v15 = vcombine.high %v14261_v41, %v14265_v13  ;;  %v14222_v31 = vld [vmem:[#allocation27 + $0x2d8] sm:$0xff] }
 0xb4d   :  { %16029 = vmatprep.subr.bf16.mxu1 %v17761_v21  ;;  %v17713_v21 = vcombine.high %v14134_v1, %v14138_v9  ;;  %v14226_v6 = vld [vmem:[#allocation27 + $0x2f8] sm:$0xff] }
 0xb4f   :  { %15977 = vmatpush1.bf16.msra.mxu0 %v17886_v44  ;;  %v17838_v44 = vcombine.low %v14261_v41, %v14265_v13  ;;  %v14341_v41 = vld [vmem:[#allocation27 + $0x690] sm:$0xff] }
 0xb50   :  { %16030 = vmatpush1.bf16.msra.mxu1 %v17760_v5  ;;  %15978 = vmatprep.subr.bf16.mxu0 %v17879_v14  ;;  %v17712_v5 = vcombine.low %v14134_v1, %v14138_v9  ;;  %v17959_v14 = vcombine.high %v14381_v34, %v14385_v24  ;;  %v14345_v13 = vld [vmem:[#allocation27 + $0x6b0] sm:$0xff]  ;;  %v14214_v1 = vld [vmem:[#allocation27 + $0x298] sm:$0xff] }
 0xb51   :  { %20466 = vmatmul.mubr.msk.bf16.gmra.mxu0 %vm22422_vm1, %v22568_v22  ;;  %16031 = vmatprep.subr.bf16.mxu1 %v17753_v11  ;;  %v17833_v11 = vcombine.high %v14254_v50, %v14258_v58  ;;  %v14218_v9 = vld [vmem:[#allocation27 + $0x2b8] sm:$0xff] }
 0xb52   :  { %20469 = vmatmul.mubr.msk.bf16.gmra.mxu1 %vm22422_vm1, %v22524_v36  ;;  %20472 = vmatprep.mubr.msk.bf16.mxu0 %vm22385_vm0, %v22540_v30 }
 0xb53   :  { %15979 = vmatpush1.bf16.msra.mxu0 %v17878_v37  ;;  %20475 = vmatprep.mubr.msk.bf16.mxu1 %vm22385_vm0, %v22499_v43  ;;  %v14269_v43 = vld [vmem:[#allocation27 + $0x450] sm:$0xff]  ;;  %v17958_v37 = vcombine.low %v14381_v34, %v14385_v24 }
 0xb54   :  { %16032 = vmatpush1.bf16.msra.mxu1 %v17752_v25  ;;  %15980 = vmatprep.subr.bf16.mxu0 %v17871_v46  ;;  %v17847_v7 = vcombine.high %v14269_v43, %v14273_v38  ;;  %v17846_v51 = vcombine.low %v14269_v43, %v14273_v38  ;;  %v17832_v25 = vcombine.low %v14254_v50, %v14258_v58  ;;  %v14349_v43 = vld [vmem:[#allocation27 + $0x6d0] sm:$0xff]  ;;  %v14206_v50 = vld [vmem:[#allocation27 + $0x258] sm:$0xff] }
 0xb55   :  { %16033 = vmatprep.subr.bf16.mxu1 %v17745_v18  ;;  %v17951_v46 = vcombine.high %v14373_v32, %v14377_v0  ;;  %v17825_v18 = vcombine.high %v14246_v42, %v14250_v12  ;;  %v14353_v38 = vld [vmem:[#allocation27 + $0x6f0] sm:$0xff]  ;;  %v14210_v58 = vld [vmem:[#allocation27 + $0x278] sm:$0xff] }
 0xb56   :  { %v14333_v34 = vld [vmem:[#allocation27 + $0x650] sm:$0xff] }
 0xb57   :  { %15981 = vmatpush1.bf16.msra.mxu0 %v17870_v27  ;;  %v17950_v27 = vcombine.low %v14373_v32, %v14377_v0  ;;  %v14337_v24 = vld [vmem:[#allocation27 + $0x670] sm:$0xff] }
 0xb58   :  { %16034 = vmatpush1.bf16.msra.mxu1 %v17744_v61  ;;  %15982 = vmatprep.subr.bf16.mxu0 %v17863_v49  ;;  %v17824_v61 = vcombine.low %v14246_v42, %v14250_v12  ;;  %v17943_v49 = vcombine.high %v14365_v28, %v14369_v26  ;;  %v14325_v32 = vld [vmem:[#allocation27 + $0x610] sm:$0xff]  ;;  %v14198_v42 = vld [vmem:[#allocation27 + $0x218] sm:$0xff] }
 0xb59   :  { %16035 = vmatprep.subr.bf16.mxu1 %v17737_v4  ;;  %v17817_v4 = vcombine.high %v14238_v39, %v14242_v62  ;;  %v14329_v0 = vld [vmem:[#allocation27 + $0x630] sm:$0xff]  ;;  %v14202_v12 = vld [vmem:[#allocation27 + $0x238] sm:$0xff] }
 0xb5b   :  { %15983 = vmatpush1.bf16.msra.mxu0 %v17862_v8  ;;  %v17942_v8 = vcombine.low %v14365_v28, %v14369_v26  ;;  %v14318_v28 = vld [vmem:[#allocation27 + $0x5d8] sm:$0xff] }
 0xb5c   :  { %16036 = vmatpush1.bf16.msra.mxu1 %v17736_v2  ;;  %15984 = vmatprep.subr.bf16.mxu0 %v17855_v16  ;;  %v17816_v2 = vcombine.low %v14238_v39, %v14242_v62  ;;  %v17935_v16 = vcombine.high %v14357_v29, %v14361_v33  ;;  %v14322_v26 = vld [vmem:[#allocation27 + $0x5f8] sm:$0xff]  ;;  %v17902_v39 = vcombine.low %v14325_v32, %v14329_v0 }
 0xb5d   :  { %16037 = vmatprep.subr.bf16.mxu1 %v17729_v20  ;;  %v17809_v20 = vcombine.high %v14230_v10, %v14234_v56  ;;  %v17776_v62 = vcombine.low %v14198_v42, %v14202_v12 }
 0xb5f   :  { %15985 = vmatpush1.bf16.msra.mxu0 %v17854_v52  ;;  %v17934_v52 = vcombine.low %v14357_v29, %v14361_v33 }
 0xb60   :  { %16038 = vmatpush1.bf16.msra.mxu1 %v17728_v19  ;;  %15986 = vmatprep.subr.bf16.mxu0 %v17847_v7  ;;  %v17808_v19 = vcombine.low %v14230_v10, %v14234_v56  ;;  %v17927_v7 = vcombine.high %v14349_v43, %v14353_v38  ;;  %v14302_v56 = vld [vmem:[#allocation27 + $0x558] sm:$0xff] }
 0xb61   :  { %16039 = vmatprep.subr.bf16.mxu1 %v17721_v59  ;;  %v17801_v59 = vcombine.high %v14222_v31, %v14226_v6 }
 0xb63   :  { %15987 = vmatpush1.bf16.msra.mxu0 %v17846_v51  ;;  %v17926_v51 = vcombine.low %v14349_v43, %v14353_v38  ;;  %v14294_v38 = vld [vmem:[#allocation27 + $0x518] sm:$0xff] }
 0xb64   :  { %16040 = vmatpush1.bf16.msra.mxu1 %v17720_v40  ;;  %15988 = vmatprep.subr.bf16.mxu0 %v17839_v15  ;;  %v17800_v40 = vcombine.low %v14222_v31, %v14226_v6  ;;  %v17919_v15 = vcombine.high %v14341_v41, %v14345_v13  ;;  %v14298_v31 = vld [vmem:[#allocation27 + $0x538] sm:$0xff] }
 0xb65   :  { %16041 = vmatprep.subr.bf16.mxu1 %v17713_v21  ;;  %v17793_v21 = vcombine.high %v14214_v1, %v14218_v9 }
 0xb67   :  { %15989 = vmatpush1.bf16.msra.mxu0 %v17838_v44  ;;  %v17918_v44 = vcombine.low %v14341_v41, %v14345_v13 }
 0xb68   :  { %16042 = vmatpush1.bf16.msra.mxu1 %v17712_v5  ;;  %15990 = vmatprep.subr.bf16.mxu0 %v17959_v14  ;;  %v17792_v5 = vcombine.low %v14214_v1, %v14218_v9  ;;  %v17911_v14 = vcombine.high %v14333_v34, %v14337_v24  ;;  %v14278_v1 = vld [vmem:[#allocation27 + $0x498] sm:$0xff] }
 0xb69   :  { %16043 = vmatprep.subr.bf16.mxu1 %v17833_v11  ;;  %v17785_v11 = vcombine.high %v14206_v50, %v14210_v58  ;;  %v14282_v9 = vld [vmem:[#allocation27 + $0x4b8] sm:$0xff] }
 0xb6b   :  { %15991 = vmatpush2.bf16.msra.mxu0 %v17958_v37  ;;  %v17910_v37 = vcombine.low %v14333_v34, %v14337_v24  ;;  %v17856_v34 = vcombine.low %v14278_v1, %v14282_v9  ;;  %v14262_v24 = vld [vmem:[#allocation27 + $0x418] sm:$0xff] }
 0xb6c   :  { %16044 = vmatpush2.bf16.msra.mxu1 %v17832_v25  ;;  %15992 = vmatprep.subr.bf16.mxu0 %v17951_v46  ;;  %v17784_v25 = vcombine.low %v14206_v50, %v14210_v58  ;;  %v17903_v46 = vcombine.high %v14325_v32, %v14329_v0  ;;  %v14266_v50 = vld [vmem:[#allocation27 + $0x438] sm:$0xff] }
 0xb6d   :  { %16045 = vmatprep.subr.bf16.mxu1 %v17825_v18  ;;  %v17777_v18 = vcombine.high %v14198_v42, %v14202_v12  ;;  %v14374_v0 = vld [vmem:[#allocation27 + $0x798] sm:$0xff] }
 0xb6e   :  { %v14378_v42 = vld [vmem:[#allocation27 + $0x7b8] sm:$0xff] }
 0xb6f   :  { %15993 = vmatpush2.bf16.msra.mxu0 %v17950_v27  ;;  %v17897_v27 = vcombine.high %v14318_v28, %v14322_v26 }
 0xb70   :  { %16046 = vmatpush2.bf16.msra.mxu1 %v17824_v61  ;;  %15994 = vmatprep.subr.bf16.mxu0 %v17943_v49  ;;  %v14310_v61 = vld [vmem:[#allocation27 + $0x598] sm:$0xff] }
 0xb71   :  { %16047 = vmatprep.subr.bf16.mxu1 %v17817_v4  ;;  %v14314_v49 = vld [vmem:[#allocation27 + $0x5b8] sm:$0xff]  ;;  %v17896_v4 = vcombine.low %v14318_v28, %v14322_v26 }
 0xb72   :  { %v17889_v33 = vcombine.high %v14310_v61, %v14314_v49  ;;  %v14358_v26 = vld [vmem:[#allocation27 + $0x718] sm:$0xff] }
 0xb73   :  { %15995 = vmatpush2.bf16.msra.mxu0 %v17942_v8  ;;  %v14306_v8 = vld [vmem:[#allocation27 + $0x578] sm:$0xff] }
 0xb74   :  { %16048 = vmatpush2.bf16.msra.mxu1 %v17816_v2  ;;  %15996 = vmatprep.subr.bf16.mxu0 %v17935_v16  ;;  %v17888_v2 = vcombine.low %v14310_v61, %v14314_v49  ;;  %v17880_v6 = vcombine.low %v14302_v56, %v14306_v8  ;;  %v14350_v61 = vld [vmem:[#allocation27 + $0x6d8] sm:$0xff] }
 0xb75   :  { %16049 = vmatprep.subr.bf16.mxu1 %v17809_v20  ;;  %v17881_v20 = vcombine.high %v14302_v56, %v14306_v8  ;;  %v14354_v49 = vld [vmem:[#allocation27 + $0x6f8] sm:$0xff] }
 0xb76   :  { %v14342_v56 = vld [vmem:[#allocation27 + $0x698] sm:$0xff] }
 0xb77   :  { %15997 = vmatpush2.bf16.msra.mxu0 %v17934_v52  ;;  %v14346_v8 = vld [vmem:[#allocation27 + $0x6b8] sm:$0xff] }
 0xb78   :  { %16050 = vmatpush2.bf16.msra.mxu1 %v17808_v19  ;;  %15998 = vmatprep.subr.bf16.mxu0 %v17927_v7  ;;  %v17873_v19 = vcombine.high %v14294_v38, %v14298_v31  ;;  %v14290_v7 = vld [vmem:[#allocation27 + $0x4f8] sm:$0xff] }
 0xb79   :  { %16051 = vmatprep.subr.bf16.mxu1 %v17801_v59  ;;  %v17872_v59 = vcombine.low %v14294_v38, %v14298_v31  ;;  %v17920_v38 = vcombine.low %v14342_v56, %v14346_v8 }
 0xb7b   :  { %15999 = vmatpush2.bf16.msra.mxu0 %v17926_v51 }
 0xb7c   :  { %16052 = vmatpush2.bf16.msra.mxu1 %v17800_v40  ;;  %16000 = vmatprep.subr.bf16.mxu0 %v17919_v15  ;;  %v17857_v15 = vcombine.high %v14278_v1, %v14282_v9 }
 0xb7d   :  { %16053 = vmatprep.subr.bf16.mxu1 %v17793_v21  ;;  %v14270_v21 = vld [vmem:[#allocation27 + $0x458] sm:$0xff] }
 0xb7f   :  { %16001 = vmatpush2.bf16.msra.mxu0 %v17918_v44  ;;  %v17841_v44 = vcombine.high %v14262_v24, %v14266_v50 }
 0xb80   :  { %16054 = vmatpush2.bf16.msra.mxu1 %v17792_v5  ;;  %16002 = vmatprep.subr.bf16.mxu0 %v17911_v14  ;;  %v14382_v5 = vld [vmem:[#allocation27 + $0x7d8] sm:$0xff] }
 0xb81   :  { %16055 = vmatprep.subr.bf16.mxu1 %v17785_v11  ;;  %v14386_v14 = vld [vmem:[#allocation27 + $0x7f8] sm:$0xff]  ;;  %v17840_v11 = vcombine.low %v14262_v24, %v14266_v50 }
 0xb82   :  { %v17961_v32 = vcombine.high %v14382_v5, %v14386_v14  ;;  %v17960_v12 = vcombine.low %v14382_v5, %v14386_v14 }
 0xb83   :  { %16003 = vmatpush2.bf16.msra.mxu0 %v17910_v37  ;;  %v17953_v37 = vcombine.high %v14374_v0, %v14378_v42 }
 0xb84   :  { %16056 = vmatpush2.bf16.msra.mxu1 %v17784_v25  ;;  %16004 = vmatprep.subr.bf16.mxu0 %v17903_v46  ;;  %v14366_v25 = vld [vmem:[#allocation27 + $0x758] sm:$0xff] }
 0xb85   :  { %16057 = vmatprep.subr.bf16.mxu1 %v17777_v18  ;;  %v14370_v46 = vld [vmem:[#allocation27 + $0x778] sm:$0xff]  ;;  %v17952_v18 = vcombine.low %v14374_v0, %v14378_v42 }
 0xb86   :  { %v17945_v28 = vcombine.high %v14366_v25, %v14370_v46 }
 0xb87   :  { %16005 = vmatpush2.bf16.msra.mxu0 %v17902_v39  ;;  %v14362_v39 = vld [vmem:[#allocation27 + $0x738] sm:$0xff] }
 0xb88   :  { %16058 = vmatpush2.bf16.msra.mxu1 %v17776_v62  ;;  %16080 = vmatprep.subr.bf16.mxu0 %v17897_v27  ;;  %v17944_v62 = vcombine.low %v14366_v25, %v14370_v46  ;;  %v17937_v27 = vcombine.high %v14358_v26, %v14362_v39 }
 0xb89   :  { %v22606_v29 = vpop.f32.mrf.mxu1 }
 0xb8a   :  { %20478 = vmatmul.mubr.msk.bf16.vlgmr.msra.gmra.mxu0 %vm22385_vm0, %v22545_v54 }
 0xb8b   :  { %v22611_v10 = vpop.f32.mrf.mxu1  ;;  %20481 = vmatprep.mubr.msk.bf16.mxu0 %vm22422_vm1, %v22563_v23  ;;  %20484 = vmatmul.mubr.msk.bf16.vlgmr.msra.gmra.mxu1 %vm22385_vm0, %v22505_v35  ;;  %v14286_v35 = vld [vmem:[#allocation27 + $0x4d8] sm:$0xff] }
 0xb8c   :  { %16081 = vmatpush1.bf16.msra.mxu0 %v17896_v4  ;;  %20487 = vmatprep.mubr.msk.bf16.mxu1 %vm22422_vm1, %v22518_v17  ;;  %v17865_v13 = vcombine.high %v14286_v35, %v14290_v7  ;;  %v17864_v40 = vcombine.low %v14286_v35, %v14290_v7  ;;  %v17936_v4 = vcombine.low %v14358_v26, %v14362_v39  ;;  %v22635_v7 = vld [vmem:[#allocation28] sm:$0xff] }
 0xb8d   :  { %v15747_v16 = vpop.f32.mrf.mxu1  ;;  %16082 = vmatprep.subr.bf16.mxu0 %v17889_v33  ;;  %v17929_v33 = vcombine.high %v14350_v61, %v14354_v49  ;;  %v14396_v1 = vrot.slane %v22635_v7, %v21193_v57  ;;  %v14404_v53 = vrot.slane %v22635_v7, %v21281_v63 }
 0xb8e   :  { %v17921_v16 = vcombine.high %v14342_v56, %v14346_v8 }
 0xb8f   :  { %v15749_v43 = vpop.f32.mrf.mxu1 }
 0xb90   :  { %16083 = vmatpush1.bf16.msra.mxu0 %v17888_v2  ;;  %v17928_v2 = vcombine.low %v14350_v61, %v14354_v49  ;;  %v14338_v43 = vld [vmem:[#allocation27 + $0x678] sm:$0xff] }
 0xb91   :  { %16084 = vmatprep.subr.bf16.mxu0 %v17881_v20  ;;  %v22622_v52 = vpop.f32.mrf.mxu1  ;;  %v14334_v20 = vld [vmem:[#allocation27 + $0x658] sm:$0xff] }
 0xb92   :  { %20490 = vmatmul.mubr.msk.bf16.gmra.mxu0 %vm22422_vm1, %v22568_v22  ;;  %v17913_v31 = vcombine.high %v14334_v20, %v14338_v43  ;;  %v17912_v35 = vcombine.low %v14334_v20, %v14338_v43 }
 0xb93   :  { %20493 = vmatmul.mubr.msk.bf16.gmra.mxu1 %vm22422_vm1, %v22524_v36  ;;  %20496 = vmatprep.mubr.msk.bf16.mxu0 %vm22385_vm0, %v22540_v30  ;;  %v22633_v17 = vpop.f32.mrf.mxu1  ;;  %v14274_v36 = vld [vmem:[#allocation27 + $0x478] sm:$0xff] }
 0xb94   :  { %16085 = vmatpush1.bf16.msra.mxu0 %v17880_v6  ;;  %v17849_v30 = vcombine.high %v14270_v21, %v14274_v36  ;;  %v17848_v58 = vcombine.low %v14270_v21, %v14274_v36  ;;  %v14326_v6 = vld [vmem:[#allocation27 + $0x618] sm:$0xff] }
 0xb95   :  { %16086 = vmatprep.subr.bf16.mxu0 %v17873_v19  ;;  %v15757_v41 = vpop.f32.mrf.mxu1  ;;  %v14330_v19 = vld [vmem:[#allocation27 + $0x638] sm:$0xff] }
 0xb96   :  { %v14392_v41 = vrot.slane %v22635_v7, %v21188_v45 }
 0xb97   :  { %v15759_v51 = vpop.f32.mrf.mxu1 }
 0xb98   :  { %16087 = vmatpush1.bf16.msra.mxu0 %v17872_v59  ;;  %v17905_v59 = vcombine.high %v14326_v6, %v14330_v19  ;;  %v15744_v9 = vadd.f32 %v22606_v29, %v14392_v41 }
 0xb99   :  { %16088 = vmatprep.subr.bf16.mxu0 %v17865_v13  ;;  %v17904_v13 = vcombine.low %v14326_v6, %v14330_v19 }
 0xb9c   :  { %16089 = vmatpush1.bf16.msra.mxu0 %v17864_v40 }
 0xb9d   :  { %16090 = vmatprep.subr.bf16.mxu0 %v17857_v15  ;;  %v15746_v15 = vadd.f32 %v22611_v10, %v14396_v1 }
 0xba0   :  { %16091 = vmatpush1.bf16.msra.mxu0 %v17856_v34 }
 0xba1   :  { %16092 = vmatprep.subr.bf16.mxu0 %v17849_v30 }
 0xba4   :  { %16093 = vmatpush1.bf16.msra.mxu0 %v17848_v58 }
 0xba5   :  { %16094 = vmatprep.subr.bf16.mxu0 %v17841_v44  ;;  %v15756_v44 = vadd.f32 %v22633_v17, %v14396_v1  ;;  %v14411_v1 = vsub.s32 5, %v21131_v48 }
 0xba8   :  { %16095 = vmatpush1.bf16.msra.mxu0 %v17840_v11 }
 0xba9   :  { %16096 = vmatprep.subr.bf16.mxu0 %v17961_v32 }
 0xbac   :  { %16097 = vmatpush2.bf16.msra.mxu0 %v17960_v12 }
 0xbad   :  { %16098 = vmatprep.subr.bf16.mxu0 %v17953_v37  ;;  %v14400_v37 = vrot.slane %v22635_v7, %v21278_v60 }
 0xbb0   :  { %16099 = vmatpush2.bf16.msra.mxu0 %v17952_v18 }
 0xbb1   :  { %16100 = vmatprep.subr.bf16.mxu0 %v17945_v28 }
 0xbb4   :  { %16101 = vmatpush2.bf16.msra.mxu0 %v17944_v62 }
 0xbb5   :  { %16102 = vmatprep.subr.bf16.mxu0 %v17937_v27 }
 0xbb8   :  { %16103 = vmatpush2.bf16.msra.mxu0 %v17936_v4 }
 0xbb9   :  { %16104 = vmatprep.subr.bf16.mxu0 %v17929_v33 }
 0xbbc   :  { %16105 = vmatpush2.bf16.msra.mxu0 %v17928_v2 }
 0xbbd   :  { %16106 = vmatprep.subr.bf16.mxu0 %v17921_v16 }
 0xbc0   :  { %16107 = vmatpush2.bf16.msra.mxu0 %v17920_v38 }
 0xbc1   :  { %16108 = vmatprep.subr.bf16.mxu0 %v17913_v31 }
 0xbc4   :  { %16109 = vmatpush2.bf16.msra.mxu0 %v17912_v35 }
 0xbc5   :  { %16110 = vmatprep.subr.bf16.mxu0 %v17905_v59 }
 0xbc8   :  { %16111 = vmatpush2.bf16.msra.mxu0 %v17904_v13  ;;  %v14407_v13 = vsub.s32 4, %v21131_v48 }
 0xbc9   :  { %v15796_v51 = vpop.f32.mrf.mxu0  ;;  %v15849_v40 = vpop.f32.mrf.mxu1 }
 0xbca   :  { %v15797_v21 = vadd.f32 %v15796_v51, %v15744_v9  ;;  %v14408_v9 = vrot.slane %v22635_v7, %v14407_v13  ;;  %v14412_v51 = vrot.slane %v22635_v7, %v14411_v1 }
 0xbcb   :  { %20499 = vmatmul.mubr.msk.bf16.vlgmr.msra.gmra.mxu0 %vm22385_vm0, %v22545_v54  ;;  %v15798_v36 = vpop.f32.mrf.mxu0  ;;  %v15851_v45 = vpop.f32.mrf.mxu1  ;;  %v15754_v54 = vadd.f32 %v22622_v52, %v14392_v41 }
 0xbcc   :  { %v16133_v34 = vsel %vm21148_vm6, %v15797_v21, 0.0  ;;  %20502 = vmatprep.mubr.msk.bf16.mxu0 %vm22422_vm1, %v22563_v23  ;;  %v15799_v57 = vadd.f32 %v15798_v36, %v15746_v15  ;;  %v15852_v46 = vadd.f32 %v15851_v45, %v14404_v53 }
 0xbcd   :  { %16165 = vst [vmem:[#allocation2 + $0x40] sm:$0xff] %v16133_v34  ;;  %v15800_v29 = vpop.f32.mrf.mxu0  ;;  %v15853_v30 = vpop.f32.mrf.mxu1 }
 0xbce   :  { %v16134_v10 = vsel %vm21148_vm6, %v15799_v57, 0.0 }
 0xbcf   :  { %16166 = vst [vmem:[#allocation2 + $0x48] sm:$0xff] %v16134_v10  ;;  %v15802_v24 = vpop.f32.mrf.mxu0  ;;  %v15855_v47 = vpop.f32.mrf.mxu1 }
 0xbd1   :  { %v15806_v50 = vpop.f32.mrf.mxu0  ;;  %v15859_v58 = vpop.f32.mrf.mxu1 }
 0xbd2   :  { %v15807_v5 = vadd.f32 %v15806_v50, %v15754_v54  ;;  %v15860_v63 = vadd.f32 %v15859_v58, %v14400_v37 }
 0xbd3   :  { %20505 = vmatmul.mubr.msk.bf16.gmra.mxu0 %vm22422_vm1, %v22568_v22  ;;  %v15808_v23 = vpop.f32.mrf.mxu0  ;;  %v15861_v14 = vpop.f32.mrf.mxu1  ;;  %v15850_v22 = vadd.f32 %v15849_v40, %v14400_v37 }
 0xbd4   :  { %v16149_v11 = vsel %vm21167_vm11, %v15807_v5, 0.0  ;;  %v15809_v32 = vadd.f32 %v15808_v23, %v15756_v44  ;;  %v15862_v8 = vadd.f32 %v15861_v14, %v14404_v53 }
 0xbd5   :  { %16181 = vst [vmem:[#allocation2 + $0xc0] sm:$0xff] %v16149_v11  ;;  %v15810_v0 = vpop.f32.mrf.mxu0  ;;  %v15863_v42 = vpop.f32.mrf.mxu1 }
 0xbd6   :  { %v16150_v52 = vsel %vm21167_vm11, %v15809_v32, 0.0 }
 0xbd7   :  { %16182 = vst [vmem:[#allocation2 + $0xc8] sm:$0xff] %v16150_v52  ;;  %v15812_v12 = vpop.f32.mrf.mxu0  ;;  %v15865_v17 = vpop.f32.mrf.mxu1 }
 0xc09   :  { %v15902_v25 = vpop.f32.mrf.mxu0 }
 0xc0a   :  { %v15903_v18 = vadd.f32 %v15902_v25, %v15850_v22  ;;  %v15955_v28 = vpop.f32.mrf.mxu1  ;;  %v14415_v22 = vsub.s32 6, %v21131_v48  ;;  %v14419_v25 = vsub.s32 7, %v21131_v48 }
 0xc0b   :  { %v15904_v26 = vpop.f32.mrf.mxu0  ;;  %v15956_v40 = vadd.f32 %v15955_v28, %v14408_v9 }
 0xc0c   :  { %v16135_v39 = vsel %vm21148_vm6, %v15903_v18, 0.0  ;;  %v15905_v62 = vadd.f32 %v15904_v26, %v15852_v46  ;;  %v15957_v27 = vpop.f32.mrf.mxu1  ;;  %v14416_v46 = vrot.slane %v22635_v7, %v14415_v22  ;;  %v14420_v18 = vrot.slane %v22635_v7, %v14419_v25 }
 0xc0d   :  { %16167 = vst [vmem:[#allocation2 + $0x50] sm:$0xff] %v16135_v39  ;;  %v15906_v61 = vpop.f32.mrf.mxu0  ;;  %v15958_v21 = vadd.f32 %v15957_v27, %v14412_v51 }
 0xc0e   :  { %v16136_v49 = vsel %vm21148_vm6, %v15905_v62, 0.0  ;;  %v15959_v60 = vpop.f32.mrf.mxu1 }
 0xc0f   :  { %16168 = vst [vmem:[#allocation2 + $0x58] sm:$0xff] %v16136_v49  ;;  %v15908_v4 = vpop.f32.mrf.mxu0 }
 0xc10   :  { %v15961_v33 = vpop.f32.mrf.mxu1 }
 0xc11   :  { %v15912_v56 = vpop.f32.mrf.mxu0 }
 0xc12   :  { %v15913_v2 = vadd.f32 %v15912_v56, %v15860_v63  ;;  %v15965_v16 = vpop.f32.mrf.mxu1 }
 0xc13   :  { %v15914_v20 = vpop.f32.mrf.mxu0  ;;  %v15966_v50 = vadd.f32 %v15965_v16, %v14408_v9 }
 0xc14   :  { %v16151_v43 = vsel %vm21167_vm11, %v15913_v2, 0.0  ;;  %v15915_v38 = vadd.f32 %v15914_v20, %v15862_v8  ;;  %v15967_v31 = vpop.f32.mrf.mxu1 }
 0xc15   :  { %16183 = vst [vmem:[#allocation2 + $0xd0] sm:$0xff] %v16151_v43  ;;  %v15916_v6 = vpop.f32.mrf.mxu0  ;;  %v15968_v5 = vadd.f32 %v15967_v31, %v14412_v51 }
 0xc16   :  { %v16152_v19 = vsel %vm21167_vm11, %v15915_v38, 0.0  ;;  %v15969_v35 = vpop.f32.mrf.mxu1  ;;  %v16198_v43 = vld [vmem:[#allocation2 + $0x41] ss:$8 sm:$0xf] }
 0xc17   :  { %16184 = vst [vmem:[#allocation2 + $0xd8] sm:$0xff] %v16152_v19  ;;  %v15918_v59 = vpop.f32.mrf.mxu0 }
 0xc18   :  { %v15971_v41 = vpop.f32.mrf.mxu1 }
 0xc1e   :  { %v16203_v19 = vld [vmem:[#allocation2 + $0xc1] ss:$8 sm:$0xf] }
 0xc4a   :  { %v16008_v15 = vpop.f32.mrf.mxu0 }
 0xc4b   :  { %v16009_v36 = vadd.f32 %v16008_v15, %v15956_v40  ;;  %v16061_v45 = vpop.f32.mrf.mxu1 }
 0xc4c   :  { %v16010_v34 = vpop.f32.mrf.mxu0  ;;  %v16062_v28 = vadd.f32 %v16061_v45, %v14416_v46 }
 0xc4d   :  { %v16137_v57 = vsel %vm21148_vm6, %v16009_v36, 0.0  ;;  %v16011_v29 = vadd.f32 %v16010_v34, %v15958_v21  ;;  %v16063_v30 = vpop.f32.mrf.mxu1 }
 0xc4e   :  { %16169 = vst [vmem:[#allocation2 + $0x60] sm:$0xff] %v16137_v57  ;;  %v16012_v10 = vpop.f32.mrf.mxu0  ;;  %v16064_v39 = vadd.f32 %v16063_v30, %v14420_v18 }
 0xc4f   :  { %v16138_v24 = vsel %vm21148_vm6, %v16011_v29, 0.0  ;;  %v16065_v47 = vpop.f32.mrf.mxu1 }
 0xc50   :  { %16170 = vst [vmem:[#allocation2 + $0x68] sm:$0xff] %v16138_v24  ;;  %v16014_v54 = vpop.f32.mrf.mxu0 }
 0xc51   :  { %v16067_v58 = vpop.f32.mrf.mxu1 }
 0xc52   :  { %v16018_v44 = vpop.f32.mrf.mxu0 }
 0xc53   :  { %v16019_v23 = vadd.f32 %v16018_v44, %v15966_v50  ;;  %v16071_v14 = vpop.f32.mrf.mxu1 }
 0xc54   :  { %v16020_v11 = vpop.f32.mrf.mxu0  ;;  %v16072_v63 = vadd.f32 %v16071_v14, %v14416_v46 }
 0xc55   :  { %v16153_v32 = vsel %vm21167_vm11, %v16019_v23, 0.0  ;;  %v16021_v0 = vadd.f32 %v16020_v11, %v15968_v5  ;;  %v16073_v42 = vpop.f32.mrf.mxu1 }
 0xc56   :  { %16185 = vst [vmem:[#allocation2 + $0xe0] sm:$0xff] %v16153_v32  ;;  %v16022_v52 = vpop.f32.mrf.mxu0  ;;  %v16074_v56 = vadd.f32 %v16073_v42, %v14420_v18 }
 0xc57   :  { %v16154_v12 = vsel %vm21167_vm11, %v16021_v0, 0.0  ;;  %v16075_v17 = vpop.f32.mrf.mxu1 }
 0xc58   :  { %16186 = vst [vmem:[#allocation2 + $0xe8] sm:$0xff] %v16154_v12  ;;  %v16024_v37 = vpop.f32.mrf.mxu0 }
 0xc59   :  { %v16077_v53 = vpop.f32.mrf.mxu1 }
 0xc8b   :  { %v16114_v26 = vpop.f32.mrf.mxu0 }
 0xc8c   :  { %v16115_v62 = vadd.f32 %v16114_v26, %v16062_v28 }
 0xc8d   :  { %v16116_v27 = vpop.f32.mrf.mxu0 }
 0xc8e   :  { %v16139_v61 = vsel %vm21148_vm6, %v16115_v62, 0.0  ;;  %v16117_v49 = vadd.f32 %v16116_v27, %v16064_v39 }
 0xc8f   :  { %16171 = vst [vmem:[#allocation2 + $0x70] sm:$0xff] %v16139_v61  ;;  %v16118_v60 = vpop.f32.mrf.mxu0 }
 0xc90   :  { %v16140_v4 = vsel %vm21148_vm6, %v16117_v49, 0.0 }
 0xc91   :  { %16172 = vst [vmem:[#allocation2 + $0x78] sm:$0xff] %v16140_v4  ;;  %v16120_v48 = vpop.f32.mrf.mxu0 }
 0xc93   :  { %v16124_v33 = vpop.f32.mrf.mxu0 }
 0xc94   :  { %v16125_v7 = vadd.f32 %v16124_v33, %v16072_v63 }
 0xc95   :  { %v16126_v8 = vpop.f32.mrf.mxu0 }
 0xc96   :  { %v16155_v2 = vsel %vm21167_vm11, %v16125_v7, 0.0  ;;  %v16127_v16 = vadd.f32 %v16126_v8, %v16074_v56 }
 0xc97   :  { %16187 = vst [vmem:[#allocation2 + $0xf0] sm:$0xff] %v16155_v2  ;;  %v16128_v20 = vpop.f32.mrf.mxu0 }
 0xc98   :  { %v16156_v38 = vsel %vm21167_vm11, %v16127_v16, 0.0  ;;  %v16199_v31 = vld [vmem:[#allocation2 + $0x41] ss:$8 sm:$0xf0] }
 0xc99   :  { %16188 = vst [vmem:[#allocation2 + $0xf8] sm:$0xff] %v16156_v38  ;;  %v16130_v55 = vpop.f32.mrf.mxu0  ;;  %v16200_v6 = vor.u32 %v16199_v31, %v16198_v43 }
 0xc9b   :  { %16201 = vst [vmem:[#allocation30] sm:$0xff] %v16200_v6 }
 0xca0   :  { %v16204_v35 = vld [vmem:[#allocation2 + $0xc1] ss:$8 sm:$0xf0] }
 0xca1   :  { %v16205_v59 = vor.u32 %v16204_v35, %v16203_v19 }
 0xca3   :  { %16207 = vst [vmem:[#allocation30 + $0x8] sm:$0xff] %v16205_v59 }
 0xca4   :  { %20837 = shalt.err (!%p20834_p0)
}
 0xca5   :  { %16219 = dma.vmem_to_hbm [thread:$0]  %s16214_s29, 256, %s22721_s17, [#allocation6], %s20879_s3, %s20879_s3, %s20880_s2  }
 0xca6   :  { %20864 = dma.done.wait [#allocation6], 256  }
 0xca7   :  { %20865 = vsyncadd [#allocation6], 4294967040 }
 0xca8   :  { %16223 = vsyncpa [#allocation5], 1 }
 0xca9   :  { %16224 = vsyncpa [#allocation8], 1 }
 0xcaa   :  { %16225 = vsyncpa [#allocation11], 1 }
 0xcab   :  { %16226 = vsyncpa [#allocation14], 1 }
 0xcac   :  { %16227 = vsyncpa [#allocation17], 1 }
 0xcad   :  { %16228 = vsyncpa [#allocation20], 1 }
 0xcae   :  { %16229 = vsyncpa [#allocation23], 1 }
 0xcaf   :  { %16230 = vsyncpa [#allocation26], 1 }
 0xcb0   :  { %16231 = vsyncpa [#allocation29], 1 }
 0xcb1   :  { %16232 = vsyncpa [#allocation6], 1 }

</bundles_post_ra>
